<compile_context>
chip_gen: v7x
topology: tpu7x:2x2x1
jax: 0.10.0
libtpu: 0.0.40
codegen_flags: <defaults>
</compile_context>

<pallas_src>
import jax
import jax.numpy as jnp
from jax.experimental import pallas as pl
from jax.experimental.pallas import tpu as pltpu


def _mlp_kernel(x_ref,
                w1_ref, b1_ref,
                w2_ref, b2_ref,
                w3_ref, b3_ref,
                w4_ref, b4_ref,
                o_ref):
    # ---- Layer 1 (VPU): (TB, 9) x (9, 1024) as 9 unrolled broadcast FMAs,
    # f32 accumulation.  Keeps the padded K=9 strip off the MXU (the binding
    # slot at large batch); the VALU slot has slack here.
    x = x_ref[...].astype(jnp.float32)                    # (TB, 9)
    w1 = w1_ref[...]                                      # (9, L1) f32
    h1 = x[:, 0:1] * w1[0:1, :] + b1_ref[...]             # (TB, L1) f32
    for k in range(1, x_ref.shape[1]):                    # static unroll (9 taps)
        h1 = h1 + x[:, k:k + 1] * w1[k:k + 1, :]
    h1 = jnp.maximum(h1, 0.0)

    # ---- Layer 2 (MXU): (TB, 1024) @ (1024, 256), bf16 inputs / f32 acc.
    h2 = jnp.dot(h1.astype(jnp.bfloat16), w2_ref[...],
                 preferred_element_type=jnp.float32) + b2_ref[...]
    h2 = jnp.maximum(h2, 0.0)

    # ---- Layer 3 (MXU): (TB, 256) @ (256, 64), bf16 inputs / f32 acc.
    h3 = jnp.dot(h2.astype(jnp.bfloat16), w3_ref[...],
                 preferred_element_type=jnp.float32) + b3_ref[...]
    h3 = jnp.maximum(h3, 0.0)

    # ---- Layer 4 (VPU+XLU): 64 -> 1 as a lane reduction (an N=1 MXU matmul
    # would waste a full MXU pass), then one transpose so the store is
    # lane-dense (unmasked vst instead of a 1-lane masked store).
    logits = jnp.sum(h3 * w4_ref[...], axis=-1, keepdims=True) + b4_ref[...]  # (TB, 1)
    probs = jax.nn.sigmoid(jnp.transpose(logits))          # (1, TB), EUP exp path
    o_ref[...] = probs.reshape(o_ref.shape).astype(o_ref.dtype)


def _pick_tb(batch, desired=256):
    """Batch tile: fill the 256-wide MXU at large B, but keep >= 2 grid steps
    when possible so the "parallel" axis feeds both v7x TensorCores."""
    half = max(128, (batch // 2) // 128 * 128)   # round_down(B/2, 128), floor 128
    return int(min(desired, half))


def net_forward(x, params, *, tb=None):
    """Full MLP forward pass in a single batch-tiled Pallas call.

    x: (B, 9) float32 (cast to bf16 for the HBM->VMEM fetch)
    params: dict with w1 f32 (9,1024), w2/w3 bf16 (in,out), w4 f32 (1,64),
            b1..b4 f32 (1,out).
    tb: batch tile; auto-picked (<=256, multiple of 128, >=2 tiles when B allows).
    """
    B, in_features = x.shape
    if tb is None:
        tb = _pick_tb(B)
    num_tiles = pl.cdiv(B, tb)
    b_pad = num_tiles * tb

    x = x.astype(jnp.bfloat16)                  # halve input HBM traffic
    if b_pad != B:
        x = jnp.pad(x, ((0, b_pad - B), (0, 0)))

    operands = (
        x,
        params["w1"], params["b1"],
        params["w2"], params["b2"],
        params["w3"], params["b3"],
        params["w4"], params["b4"],
    )

    def resident(arr):
        # Full-array block whose index never changes -> fetched once, stays in
        # VMEM across all grid steps.
        shape = arr.shape
        return pl.BlockSpec(shape, lambda i, _s=shape: (0,) * len(_s))

    in_specs = [
        pl.BlockSpec((tb, in_features), lambda i: (i, 0)),   # activations: tiled
        resident(params["w1"]), resident(params["b1"]),
        resident(params["w2"]), resident(params["b2"]),
        resident(params["w3"]), resident(params["b3"]),
        resident(params["w4"]), resident(params["b4"]),
    ]
    # Lane-dense output: one (1, 1, tb) row per grid step (last two block dims
    # equal the full array dims, so no (8,128) tiling constraint is triggered).
    out_specs = pl.BlockSpec((1, 1, tb), lambda i: (i, 0, 0))

    out = pl.pallas_call(
        _mlp_kernel,
        out_shape=jax.ShapeDtypeStruct((num_tiles, 1, tb), jnp.float32),
        grid=(num_tiles,),
        in_specs=in_specs,
        out_specs=out_specs,
        compiler_params=pltpu.CompilerParams(
            dimension_semantics=("parallel",)),   # megacore split on v7x
    )(*operands)
    return out.reshape(b_pad, 1)[:B]


def init_params(key, l1=1024, l2=256, l3=64, in_features=9):
    """Deterministic PyTorch-style uniform fan-in init.

    w2/w3 are stored in bfloat16 (bulk of the weight bytes; MXU is bf16
    native); w1 (36 KiB, VPU path), w4 and all biases stay float32.
    """
    dims = [(in_features, l1), (l1, l2), (l2, l3), (l3, 1)]
    params = {}
    keys = jax.random.split(key, 2 * len(dims))
    for i, (fan_in, fan_out) in enumerate(dims):
        bound = 1.0 / jnp.sqrt(jnp.float32(fan_in))
        w = jax.random.uniform(keys[2 * i], (fan_in, fan_out),
                               minval=-bound, maxval=bound, dtype=jnp.float32)
        b = jax.random.uniform(keys[2 * i + 1], (1, fan_out),
                               minval=-bound, maxval=bound, dtype=jnp.float32)
        if i == 0:
            params["w1"] = w                               # f32, VPU layer
        elif i < 3:
            params[f"w{i + 1}"] = w.astype(jnp.bfloat16)   # bf16, MXU layers
        else:
            params["w4"] = w.reshape(1, fan_in)            # (1, 64) row, VPU reduce
        params[f"b{i + 1}"] = b
    return params


def ref_forward(x, params):
    """Plain-JAX reference (f32 math on the same stored weights and the same
    bf16-rounded input the kernel sees)."""
    h = x.astype(jnp.bfloat16).astype(jnp.float32)
    h = jnp.maximum(h @ params["w1"] + params["b1"], 0.0)
    for i in (2, 3):
        w = params[f"w{i}"].astype(jnp.float32)
        h = jnp.maximum(h @ w + params[f"b{i}"], 0.0)
    logits = jnp.sum(h * params["w4"], axis=-1, keepdims=True) + params["b4"]
    return jax.nn.sigmoid(logits)


if __name__ == "__main__":
    key = jax.random.PRNGKey(0)
    k_x, k_p = jax.random.split(key)

    B = 200   # non-multiple of 128: exercises padding; tile picker -> 2x128 tiles
    x = jax.random.normal(k_x, (B, 9), dtype=jnp.float32)
    params = init_params(k_p)

    out = jax.block_until_ready(net_forward(x, params))

    ref = ref_forward(x, params)
    assert out.shape == (B, 1)
    # bf16 weights/activations inside the kernel vs f32 reference -> loose tol.
    assert jnp.allclose(out, ref, atol=2e-2, rtol=2e-2), (
        float(jnp.max(jnp.abs(out - ref))))

    print("KERNEL_OK")
</pallas_src>

<mosaic_0001>
module attributes {stable_mosaic.version = 11 : i64} {
  func.func @_mlp_kernel(%arg0: i32, %arg1: memref<128x9xbf16, #tpu.memory_space<vmem>>, %arg2: memref<9x1024xf32, #tpu.memory_space<vmem>>, %arg3: memref<1x1024xf32, #tpu.memory_space<vmem>>, %arg4: memref<1024x256xbf16, #tpu.memory_space<vmem>>, %arg5: memref<1x256xf32, #tpu.memory_space<vmem>>, %arg6: memref<256x64xbf16, #tpu.memory_space<vmem>>, %arg7: memref<1x64xf32, #tpu.memory_space<vmem>>, %arg8: memref<1x64xf32, #tpu.memory_space<vmem>>, %arg9: memref<1x1xf32, #tpu.memory_space<vmem>>, %arg10: memref<1x1x128xf32, #tpu.memory_space<vmem>>) attributes {dimension_semantics = [#tpu.dimension_semantics<parallel>], iteration_bounds = array<i64: 2>, scalar_prefetch = 0 : i64, scratch_operands = 0 : i64, tpu.core_type = #tpu.core_type<tc>, window_params = [{transform_indices = @transform_0, window_bounds = array<i64: 128, 9>}, {pipeline_mode = #tpu.pipeline_mode<synchronous>, transform_indices = @transform_1, window_bounds = array<i64: 9, 1024>}, {pipeline_mode = #tpu.pipeline_mode<synchronous>, transform_indices = @transform_2, window_bounds = array<i64: 1, 1024>}, {pipeline_mode = #tpu.pipeline_mode<synchronous>, transform_indices = @transform_3, window_bounds = array<i64: 1024, 256>}, {pipeline_mode = #tpu.pipeline_mode<synchronous>, transform_indices = @transform_4, window_bounds = array<i64: 1, 256>}, {pipeline_mode = #tpu.pipeline_mode<synchronous>, transform_indices = @transform_5, window_bounds = array<i64: 256, 64>}, {pipeline_mode = #tpu.pipeline_mode<synchronous>, transform_indices = @transform_6, window_bounds = array<i64: 1, 64>}, {pipeline_mode = #tpu.pipeline_mode<synchronous>, transform_indices = @transform_7, window_bounds = array<i64: 1, 64>}, {pipeline_mode = #tpu.pipeline_mode<synchronous>, transform_indices = @transform_8, window_bounds = array<i64: 1, 1>}, {transform_indices = @transform_9, window_bounds = array<i64: 1, 1, 128>}]} {
    %c0 = arith.constant 0 : index
    %c0_0 = arith.constant 0 : index
    %0 = vector.load %arg1[%c0, %c0_0] : memref<128x9xbf16, #tpu.memory_space<vmem>>, vector<128x9xbf16>
    %1 = arith.extf %0 : vector<128x9xbf16> to vector<128x9xf32>
    %c0_1 = arith.constant 0 : index
    %c0_2 = arith.constant 0 : index
    %2 = vector.load %arg2[%c0_1, %c0_2] : memref<9x1024xf32, #tpu.memory_space<vmem>>, vector<9x1024xf32>
    %3 = vector.extract_strided_slice %1 {offsets = [0, 0], sizes = [128, 1], strides = [1, 1]} : vector<128x9xf32> to vector<128x1xf32>
    %4 = vector.extract_strided_slice %2 {offsets = [0, 0], sizes = [1, 1024], strides = [1, 1]} : vector<9x1024xf32> to vector<1x1024xf32>
    %5 = vector.broadcast %3 : vector<128x1xf32> to vector<128x1024xf32>
    %6 = vector.broadcast %4 : vector<1x1024xf32> to vector<128x1024xf32>
    %7 = arith.mulf %5, %6 : vector<128x1024xf32>
    %c0_3 = arith.constant 0 : index
    %c0_4 = arith.constant 0 : index
    %8 = vector.load %arg3[%c0_3, %c0_4] : memref<1x1024xf32, #tpu.memory_space<vmem>>, vector<1x1024xf32>
    %9 = vector.broadcast %8 : vector<1x1024xf32> to vector<128x1024xf32>
    %10 = arith.addf %7, %9 : vector<128x1024xf32>
    %11 = vector.extract_strided_slice %1 {offsets = [0, 1], sizes = [128, 1], strides = [1, 1]} : vector<128x9xf32> to vector<128x1xf32>
    %12 = vector.extract_strided_slice %2 {offsets = [1, 0], sizes = [1, 1024], strides = [1, 1]} : vector<9x1024xf32> to vector<1x1024xf32>
    %13 = vector.broadcast %11 : vector<128x1xf32> to vector<128x1024xf32>
    %14 = vector.broadcast %12 : vector<1x1024xf32> to vector<128x1024xf32>
    %15 = arith.mulf %13, %14 : vector<128x1024xf32>
    %16 = arith.addf %10, %15 : vector<128x1024xf32>
    %17 = vector.extract_strided_slice %1 {offsets = [0, 2], sizes = [128, 1], strides = [1, 1]} : vector<128x9xf32> to vector<128x1xf32>
    %18 = vector.extract_strided_slice %2 {offsets = [2, 0], sizes = [1, 1024], strides = [1, 1]} : vector<9x1024xf32> to vector<1x1024xf32>
    %19 = vector.broadcast %17 : vector<128x1xf32> to vector<128x1024xf32>
    %20 = vector.broadcast %18 : vector<1x1024xf32> to vector<128x1024xf32>
    %21 = arith.mulf %19, %20 : vector<128x1024xf32>
    %22 = arith.addf %16, %21 : vector<128x1024xf32>
    %23 = vector.extract_strided_slice %1 {offsets = [0, 3], sizes = [128, 1], strides = [1, 1]} : vector<128x9xf32> to vector<128x1xf32>
    %24 = vector.extract_strided_slice %2 {offsets = [3, 0], sizes = [1, 1024], strides = [1, 1]} : vector<9x1024xf32> to vector<1x1024xf32>
    %25 = vector.broadcast %23 : vector<128x1xf32> to vector<128x1024xf32>
    %26 = vector.broadcast %24 : vector<1x1024xf32> to vector<128x1024xf32>
    %27 = arith.mulf %25, %26 : vector<128x1024xf32>
    %28 = arith.addf %22, %27 : vector<128x1024xf32>
    %29 = vector.extract_strided_slice %1 {offsets = [0, 4], sizes = [128, 1], strides = [1, 1]} : vector<128x9xf32> to vector<128x1xf32>
    %30 = vector.extract_strided_slice %2 {offsets = [4, 0], sizes = [1, 1024], strides = [1, 1]} : vector<9x1024xf32> to vector<1x1024xf32>
    %31 = vector.broadcast %29 : vector<128x1xf32> to vector<128x1024xf32>
    %32 = vector.broadcast %30 : vector<1x1024xf32> to vector<128x1024xf32>
    %33 = arith.mulf %31, %32 : vector<128x1024xf32>
    %34 = arith.addf %28, %33 : vector<128x1024xf32>
    %35 = vector.extract_strided_slice %1 {offsets = [0, 5], sizes = [128, 1], strides = [1, 1]} : vector<128x9xf32> to vector<128x1xf32>
    %36 = vector.extract_strided_slice %2 {offsets = [5, 0], sizes = [1, 1024], strides = [1, 1]} : vector<9x1024xf32> to vector<1x1024xf32>
    %37 = vector.broadcast %35 : vector<128x1xf32> to vector<128x1024xf32>
    %38 = vector.broadcast %36 : vector<1x1024xf32> to vector<128x1024xf32>
    %39 = arith.mulf %37, %38 : vector<128x1024xf32>
    %40 = arith.addf %34, %39 : vector<128x1024xf32>
    %41 = vector.extract_strided_slice %1 {offsets = [0, 6], sizes = [128, 1], strides = [1, 1]} : vector<128x9xf32> to vector<128x1xf32>
    %42 = vector.extract_strided_slice %2 {offsets = [6, 0], sizes = [1, 1024], strides = [1, 1]} : vector<9x1024xf32> to vector<1x1024xf32>
    %43 = vector.broadcast %41 : vector<128x1xf32> to vector<128x1024xf32>
    %44 = vector.broadcast %42 : vector<1x1024xf32> to vector<128x1024xf32>
    %45 = arith.mulf %43, %44 : vector<128x1024xf32>
    %46 = arith.addf %40, %45 : vector<128x1024xf32>
    %47 = vector.extract_strided_slice %1 {offsets = [0, 7], sizes = [128, 1], strides = [1, 1]} : vector<128x9xf32> to vector<128x1xf32>
    %48 = vector.extract_strided_slice %2 {offsets = [7, 0], sizes = [1, 1024], strides = [1, 1]} : vector<9x1024xf32> to vector<1x1024xf32>
    %49 = vector.broadcast %47 : vector<128x1xf32> to vector<128x1024xf32>
    %50 = vector.broadcast %48 : vector<1x1024xf32> to vector<128x1024xf32>
    %51 = arith.mulf %49, %50 : vector<128x1024xf32>
    %52 = arith.addf %46, %51 : vector<128x1024xf32>
    %53 = vector.extract_strided_slice %1 {offsets = [0, 8], sizes = [128, 1], strides = [1, 1]} : vector<128x9xf32> to vector<128x1xf32>
    %54 = vector.extract_strided_slice %2 {offsets = [8, 0], sizes = [1, 1024], strides = [1, 1]} : vector<9x1024xf32> to vector<1x1024xf32>
    %55 = vector.broadcast %53 : vector<128x1xf32> to vector<128x1024xf32>
    %56 = vector.broadcast %54 : vector<1x1024xf32> to vector<128x1024xf32>
    %57 = arith.mulf %55, %56 : vector<128x1024xf32>
    %58 = arith.addf %52, %57 : vector<128x1024xf32>
    %cst = arith.constant 0.000000e+00 : f32
    %59 = vector.broadcast %cst : f32 to vector<128x1024xf32>
    %60 = arith.maximumf %58, %59 : vector<128x1024xf32>
    %61 = arith.truncf %60 : vector<128x1024xf32> to vector<128x1024xbf16>
    %c0_5 = arith.constant 0 : index
    %c0_6 = arith.constant 0 : index
    %62 = vector.load %arg4[%c0_5, %c0_6] : memref<1024x256xbf16, #tpu.memory_space<vmem>>, vector<1024x256xbf16>
    %cst_7 = arith.constant dense<0.000000e+00> : vector<128x256xf32>
    %63 = tpu.matmul %61, %62, %cst_7 {dimension_numbers = #tpu.dot_dimension_numbers<[1], [0], [0], [1], [0, 0, 1, 1], [], []>} : vector<128x1024xbf16>, vector<1024x256xbf16>, vector<128x256xf32> -> vector<128x256xf32>
    %c0_8 = arith.constant 0 : index
    %c0_9 = arith.constant 0 : index
    %64 = vector.load %arg5[%c0_8, %c0_9] : memref<1x256xf32, #tpu.memory_space<vmem>>, vector<1x256xf32>
    %65 = vector.broadcast %64 : vector<1x256xf32> to vector<128x256xf32>
    %66 = arith.addf %63, %65 : vector<128x256xf32>
    %cst_10 = arith.constant 0.000000e+00 : f32
    %67 = vector.broadcast %cst_10 : f32 to vector<128x256xf32>
    %68 = arith.maximumf %66, %67 : vector<128x256xf32>
    %69 = arith.truncf %68 : vector<128x256xf32> to vector<128x256xbf16>
    %c0_11 = arith.constant 0 : index
    %c0_12 = arith.constant 0 : index
    %70 = vector.load %arg6[%c0_11, %c0_12] : memref<256x64xbf16, #tpu.memory_space<vmem>>, vector<256x64xbf16>
    %cst_13 = arith.constant dense<0.000000e+00> : vector<128x64xf32>
    %71 = tpu.matmul %69, %70, %cst_13 {dimension_numbers = #tpu.dot_dimension_numbers<[1], [0], [0], [1], [0, 0, 1, 1], [], []>} : vector<128x256xbf16>, vector<256x64xbf16>, vector<128x64xf32> -> vector<128x64xf32>
    %c0_14 = arith.constant 0 : index
    %c0_15 = arith.constant 0 : index
    %72 = vector.load %arg7[%c0_14, %c0_15] : memref<1x64xf32, #tpu.memory_space<vmem>>, vector<1x64xf32>
    %73 = vector.broadcast %72 : vector<1x64xf32> to vector<128x64xf32>
    %74 = arith.addf %71, %73 : vector<128x64xf32>
    %cst_16 = arith.constant 0.000000e+00 : f32
    %75 = vector.broadcast %cst_16 : f32 to vector<128x64xf32>
    %76 = arith.maximumf %74, %75 : vector<128x64xf32>
    %c0_17 = arith.constant 0 : index
    %c0_18 = arith.constant 0 : index
    %77 = vector.load %arg8[%c0_17, %c0_18] : memref<1x64xf32, #tpu.memory_space<vmem>>, vector<1x64xf32>
    %78 = vector.broadcast %77 : vector<1x64xf32> to vector<128x64xf32>
    %79 = arith.mulf %76, %78 : vector<128x64xf32>
    %cst_19 = arith.constant dense<0.000000e+00> : vector<128xf32>
    %80 = vector.multi_reduction <add>, %79, %cst_19 [1] : vector<128x64xf32> to vector<128xf32>
    %81 = vector.shape_cast %80 : vector<128xf32> to vector<128x1xf32>
    %c0_20 = arith.constant 0 : index
    %c0_21 = arith.constant 0 : index
    %82 = vector.load %arg9[%c0_20, %c0_21] : memref<1x1xf32, #tpu.memory_space<vmem>>, vector<1x1xf32>
    %83 = vector.broadcast %82 : vector<1x1xf32> to vector<128x1xf32>
    %84 = arith.addf %81, %83 : vector<128x1xf32>
    %85 = tpu.transpose %84, [1, 0] : vector<128x1xf32> -> vector<1x128xf32>
    %86 = arith.negf %85 : vector<1x128xf32>
    %87 = math.exp %86 : vector<1x128xf32>
    %cst_22 = arith.constant 1.000000e+00 : f32
    %88 = vector.broadcast %cst_22 : f32 to vector<1x128xf32>
    %89 = arith.addf %88, %87 : vector<1x128xf32>
    %90 = arith.divf %88, %89 : vector<1x128xf32>
    %91 = vector.shape_cast %90 : vector<1x128xf32> to vector<1x1x128xf32>
    %c0_23 = arith.constant 0 : index
    %c0_24 = arith.constant 0 : index
    %c0_25 = arith.constant 0 : index
    %92 = vector.load %arg10[%c0_23, %c0_24, %c0_25] : memref<1x1x128xf32, #tpu.memory_space<vmem>>, vector<1x1x128xf32>
    tpu.vector_store %arg10[%c0_23, %c0_24, %c0_25], %91 {strides = array<i32>} : memref<1x1x128xf32, #tpu.memory_space<vmem>>, vector<1x1x128xf32>,
    return
  }
  func.func @transform_0(%arg0: i32) -> (i32, i32) {
    %c0_i32 = arith.constant 0 : i32
    %c0_i32_0 = arith.constant 0 : i32
    return %arg0, %c0_i32 : i32, i32
  }
  func.func @transform_1(%arg0: i32) -> (i32, i32) {
    %c0_i32 = arith.constant 0 : i32
    %c0_i32_0 = arith.constant 0 : i32
    %c0_i32_1 = arith.constant 0 : i32
    return %c0_i32, %c0_i32_0 : i32, i32
  }
  func.func @transform_2(%arg0: i32) -> (i32, i32) {
    %c0_i32 = arith.constant 0 : i32
    %c0_i32_0 = arith.constant 0 : i32
    %c0_i32_1 = arith.constant 0 : i32
    return %c0_i32, %c0_i32_0 : i32, i32
  }
  func.func @transform_3(%arg0: i32) -> (i32, i32) {
    %c0_i32 = arith.constant 0 : i32
    %c0_i32_0 = arith.constant 0 : i32
    %c0_i32_1 = arith.constant 0 : i32
    return %c0_i32, %c0_i32_0 : i32, i32
  }
  func.func @transform_4(%arg0: i32) -> (i32, i32) {
    %c0_i32 = arith.constant 0 : i32
    %c0_i32_0 = arith.constant 0 : i32
    %c0_i32_1 = arith.constant 0 : i32
    return %c0_i32, %c0_i32_0 : i32, i32
  }
  func.func @transform_5(%arg0: i32) -> (i32, i32) {
    %c0_i32 = arith.constant 0 : i32
    %c0_i32_0 = arith.constant 0 : i32
    %c0_i32_1 = arith.constant 0 : i32
    return %c0_i32, %c0_i32_0 : i32, i32
  }
  func.func @transform_6(%arg0: i32) -> (i32, i32) {
    %c0_i32 = arith.constant 0 : i32
    %c0_i32_0 = arith.constant 0 : i32
    %c0_i32_1 = arith.constant 0 : i32
    return %c0_i32, %c0_i32_0 : i32, i32
  }
  func.func @transform_7(%arg0: i32) -> (i32, i32) {
    %c0_i32 = arith.constant 0 : i32
    %c0_i32_0 = arith.constant 0 : i32
    %c0_i32_1 = arith.constant 0 : i32
    return %c0_i32, %c0_i32_0 : i32, i32
  }
  func.func @transform_8(%arg0: i32) -> (i32, i32) {
    %c0_i32 = arith.constant 0 : i32
    %c0_i32_0 = arith.constant 0 : i32
    %c0_i32_1 = arith.constant 0 : i32
    return %c0_i32, %c0_i32_0 : i32, i32
  }
  func.func @transform_9(%arg0: i32) -> (i32, i32, i32) {
    %c0_i32 = arith.constant 0 : i32
    %c0_i32_0 = arith.constant 0 : i32
    %c0_i32_1 = arith.constant 0 : i32
    return %arg0, %c0_i32, %c0_i32_0 : i32, i32, i32
  }
}

</mosaic_0001>

<bundles_post_ra>
// kernel: tpu_custom_call.1
= control target key start
LH: loop header
LB: loop body
LE: loop exit
PB: predicated region body
PF: predicated region fallthrough
CT: control target
= control target key end

     0   :  { %s10707_s0 = inlined_call_operand.vmem [shape: bf16[256,9], index: 0, kind: input, shape index: {}]   ;;  %s10708_s1 = inlined_call_operand.vmem [shape: f32[9,1024], index: 1, kind: input, shape index: {}]   ;;  %s10709_s2 = inlined_call_operand.vmem [shape: f32[1,1024], index: 2, kind: input, shape index: {}]   ;;  %s10710_s3 = inlined_call_operand.hbm [shape: bf16[1024,256], index: 3, kind: input, shape index: {}]   ;;  %s10711_s4 = inlined_call_operand.vmem [shape: f32[1,256], index: 4, kind: input, shape index: {}]   ;;  %s10712_s5 = inlined_call_operand.vmem [shape: bf16[256,64], index: 5, kind: input, shape index: {}]   ;;  %s10713_s6 = inlined_call_operand.vmem [shape: f32[1,64], index: 6, kind: input, shape index: {}]   ;;  %s10714_s7 = inlined_call_operand.vmem [shape: f32[1,64], index: 7, kind: input, shape index: {}]   ;;  %s10715_s8 = inlined_call_operand.<no memory space> [shape: f32[1,1], index: 8, kind: input, shape index: {}]   ;;  %s10716_s9 = inlined_call_operand.hbm [shape: f32[2,1,128], index: 9, kind: output, shape index: {}]  }
   0x1   :  { %v14_v0 = vstv %s10715_s8 }
   0x2   :  { %15 = vst [vmem:[#allocation2] sm:$0x1] %v14_v0 }
   0x3   :  { %16 = vsyncpa [#allocation4], 0 }
   0x4   :  { %17 = vsyncpa [#allocation5], 0 }
   0x5   :  { %19 = vsyncpa [#allocation5 + $0x1], 0  ;;  %s6887_s11 = smov 0   ;;  %s6889_s12 = smov 0  }
   0x6   :  { %s6891_s13 = smov 0   ;;  %s6893_s14 = smov 0  }
   0x7 LB: > { %s6908_s8 = sadd.s32 4294967295, %s6819_s14   ;;  %s5558_s15 = sadd.s32 4294967294, %s6819_s14   ;;  %s6819_s14 = sphi %s6893_s14, %s12596_s14   ;;  %s6815_s13 = sphi %s6891_s13, %s12595_s13   ;;  %s6811_s12 = sphi %s6889_s12, %s12594_s12   ;;  %s6807_s11 = sphi %s6887_s11, %s12593_s11  }
   0x8   : > { %s6912_s16 = sadd.s32 1, %s6819_s14   ;;  %s226_s17 = sadd.s32 1, %s6815_s13 }
   0x9   : > { %s223_s18 = ssub.s32 %s6819_s14, %s6912_s16  ;;  %p236_p0 = scmp.ne.s32.totalorder %s6815_s13, %s6811_s12 }
   0xa   : > { %p224_p1 = scmp.eq.s32.totalorder %s223_s18, 0  ;;  %p237_p2 = scmp.eq.s32.totalorder %s6908_s8, 1 }
   0xb   : > { %p242_p3 = scmp.ne.s32.totalorder %s6811_s12, %s6807_s11  ;;  %p243_p4 = scmp.eq.s32.totalorder %s5558_s15, 1 }
   0xc   : > { %s6923_s19 = scalar_select %p224_p1, %s6815_s13, %s226_s17  }
   0xd   : > { %p6925_p5 = por %p237_p2, %p236_p0  ;;  %p6929_p6 = por %p243_p4, %p242_p3 }
   0xe   : > { %p5559_p7 = scmp.ge.s32.totalorder %s6819_s14, 1  ;;  %p250_p8 = scmp.lt.s32.totalorder %s6819_s14, 3 }
   0xf   : > { %s11549_s20 = scalar_select %p6925_p5, 1, 0 }
  0x10   : > { %s11550_s21 = scalar_select %p6929_p6, 1, 0 }
  0x11   : > { %p10717_p9 = scmp.eq.s32.totalorder %s6908_s8, 0  ;;  %p6936_p10 = pnand %p5559_p7, %p250_p8 }
  0x12   : > { %s6821_s23 = smov [#allocation3]   ;;  %s6725_s28 = scalar_lea.hbm %s10710_s3, 16384 }
  0x13   : > { %s11551_s22 = scalar_select %p6936_p10, 1, 0 }
  0x14   : > { %s268_s24 = sshll.u32 %s6821_s23, 4  ;;  %p5994_p11 = pneg %p6936_p10  ;;  %s269_s24 = int_to_ptr.vmem [resolvable:$true] %s268_s24 }
  0x15   : > { %p6726_p13 = scmp.ne.s32.totalorder %s10710_s3, %s6725_s28  ;;  %p6732_p3 = scmp.lt.u32.totalorder %s6725_s28, %s10710_s3 }
  0x16   : > { %p6944_p12 = pnand %p10717_p9, %p5994_p11 }
  0x18   : > { %p6727_p0 = pneg %p6944_p12 }
  0x1a   : > { %p6728_p1 = pnand %p6727_p0, %p6726_p13 }
  0x1c   : > { %p6729_p2 = pneg %p6728_p1 }
  0x1e   : > { %p6734_p4 = pnand %p6732_p3, %p6729_p2 }
  0x20   : > { %6737 = shalt.err (!%p6734_p4)
}
  0x21   : > { %s6738_s17 = scalar_lea.vmem %s269_s24, 16384  ;;  %p6746_p9 = scmp.lt.s32.totalorder %s269_s24, %s269_s24 }
  0x22   : > { %p6739_p7 = scmp.ne.s32.totalorder %s269_s24, %s6738_s17  ;;  %p6747_p6 = scmp.lt.s32.totalorder %s6738_s17, %s6738_s17 }
  0x24   : > { %p6741_p8 = pnand %p6739_p7, %p6727_p0  ;;  %p6748_p5 = por %p6747_p6, %p6746_p9 }
  0x26   : > { %p6742_p11 = pneg %p6741_p8 }
  0x28   : > { %p6749_p10 = pnand %p6748_p5, %p6742_p11 }
  0x2a   : > { %6752 = shalt.err (!%p6749_p10)
}
  0x2b   : > { %s6822_s18 = smov 128   ;;  %s6823_s23 = smov 8  }
  0x2c   : > { %5997 = dma.hbm_to_vmem [thread:$0]  (!%p6944_p12), %s10710_s3, 16384, %s269_s24, [#allocation4], %s6822_s18, %s6822_s18, %s6823_s23  }
  0x2d   : > { %p11553_p13 = scmp.ne.s32.totalorder %s11551_s22, 0 }
  0x2f   : > { %308 = sbr.rel (%p11553_p13) target bundleno = 1628 (0x65c), region = 56 }
  0x36   : > { %p11554_p1 = scmp.eq.s32.totalorder %s6908_s8, 0 }
  0x38   : > { %6798 = dma.done.wait (%p11554_p1), [#allocation4], 16384   ;;  %p11555_p0 = pmov %p11554_p1 }
  0x39   : > { %s6971_s28 = sshll.u32 %s6908_s8, 4  ;;  %v6824_v1 = vmov 2   ;;  %v10724_v2 = vmov 0   ;;  %v6466_v7 = vld [vmem:[#allocation3 + $0x4] ss:$8 sps:$4 sm:$0xff]   ;;  %v10726_v20 = vmov 3  }
  0x3a   : > { %6800 = vsyncadd (%p11555_p0), [#allocation4], 4294950912  ;;  %6061 = vset.pattern.permute.xlu1 %v6824_v1  ;;  %6049 = vset.pattern.permute.xlu0 %v10724_v2  ;;  %p344_p5 = scmp.lt.s32.totalorder %s6971_s28, 31  ;;  %v6468_v9 = vld [vmem:[#allocation3 + $0x104] ss:$8 sps:$4 sm:$0xff]   ;;  %v10732_v21 = vmov 1   ;;  %s10665_s17 = scalar_lea.hbm %s10716_s9, %s6971_s28 }
  0x3b   : > { %4596 = vmatprep.subr.bf16.mxu1 %v6466_v7  ;;  %v6470_v10 = vld [vmem:[#allocation3] ss:$8 sps:$4 sm:$0xff]   ;;  %v6472_v13 = vld [vmem:[#allocation3 + $0x14] ss:$8 sps:$4 sm:$0xff]   ;;  %4709 = vmatprep.subr.bf16.mxu0 %v6468_v9  ;;  %v6476_v19 = vld [vmem:[#allocation3 + $0x10] ss:$8 sps:$4 sm:$0xff]  }
  0x3c   : > { %s345_s22 = scalar_select %p344_p5, %s6971_s28, 31  ;;  %v6471_v11 = vld [vmem:[#allocation3 + $0x100] ss:$8 sps:$4 sm:$0xff]   ;;  %4597 = vmatpush1.bf16.msra.mxu1 %v6470_v10  ;;  %v6474_v18 = vld [vmem:[#allocation3 + $0x114] ss:$8 sps:$4 sm:$0xff]   ;;  %v10722_v40 = vmov 4  }
  0x3d   : > { %4710 = vmatpush1.bf16.msra.mxu0 %v6471_v11  ;;  %4598 = vmatprep.subr.bf16.mxu1 %v6472_v13  ;;  %v6477_v22 = vld [vmem:[#allocation3 + $0x110] ss:$8 sps:$4 sm:$0xff]   ;;  %v6478_v31 = vld [vmem:[#allocation3 + $0x24] ss:$8 sps:$4 sm:$0xff]   ;;  %v6482_v34 = vld [vmem:[#allocation3 + $0x20] ss:$8 sps:$4 sm:$0xff]  }
  0x3e   : > { %s5565_s24 = sshll.u32 %s345_s22, 2  ;;  %4711 = vmatprep.subr.bf16.mxu0 %v6474_v18  ;;  %v6480_v33 = vld [vmem:[#allocation3 + $0x124] ss:$8 sps:$4 sm:$0xff]   ;;  %v6483_v39 = vld [vmem:[#allocation3 + $0x120] ss:$8 sps:$4 sm:$0xff]   ;;  %v10730_v52 = vmov 5  }
  0x3f   : > { %s6980_s30 = scalar_lea.vmem %s10707_s0, %s5565_s24  ;;  %v6484_v41 = vld [vmem:[#allocation3 + $0x34] ss:$8 sps:$4 sm:$0xff]   ;;  %v6488_v44 = vld [vmem:[#allocation3 + $0x30] ss:$8 sps:$4 sm:$0xff]   ;;  %v6490_v46 = vld [vmem:[#allocation3 + $0x44] ss:$8 sps:$4 sm:$0xff]  }
  0x40   : > { %v5726_v3 = vld [vmem:[%s6980_s30] sm:$0xff]   ;;  %v5757_v6 = vld [vmem:[%s6980_s30 + $0x8] sm:$0xff]   ;;  %v5758_v12 = vld [vmem:[%s6980_s30 + $0x10] sm:$0xff]   ;;  %4599 = vmatpush1.bf16.msra.mxu1 %v6476_v19  ;;  %v10720_v56 = vmov 7   ;;  %v10728_v59 = vmov 6   ;;  %v10721_v18 = vmov 8  }
  0x41   : > { %v5727_v4 = vunpack.c.l.bf16 %v5726_v3  ;;  %v5728_v5 = vunpack.c.h.bf16 %v5726_v3  ;;  %v5759_v14 = vld [vmem:[%s6980_s30 + $0x18] sm:$0xff]   ;;  %v5760_v15 = vld [vmem:[%s6980_s30 + $0x20] sm:$0xff]   ;;  %v5731_v16 = vunpack.c.l.bf16 %v5757_v6  ;;  %v5732_v17 = vunpack.c.h.bf16 %v5757_v6  ;;  %v5761_v27 = vld [vmem:[%s6980_s30 + $0x28] sm:$0xff]   ;;  %4712 = vmatpush1.bf16.msra.mxu0 %v6477_v22  ;;  %4600 = vmatprep.subr.bf16.mxu1 %v6478_v31  ;;  %s341_s29 = sand.u32 1, %s6811_s12   ;;  %p12591_p9 = scmp.ne.s32.totalorder %s11549_s20, 0 }
  0x42   : > { %v5735_v23 = vunpack.c.l.bf16 %v5758_v12  ;;  %v5736_v24 = vunpack.c.h.bf16 %v5758_v12  ;;  %v5739_v25 = vunpack.c.l.bf16 %v5759_v14  ;;  %v5740_v26 = vunpack.c.h.bf16 %v5759_v14  ;;  %v6486_v42 = vld [vmem:[#allocation3 + $0x134] ss:$8 sps:$4 sm:$0xff]   ;;  %4713 = vmatprep.subr.bf16.mxu0 %v6480_v33  ;;  %v6489_v45 = vld [vmem:[#allocation3 + $0x130] ss:$8 sps:$4 sm:$0xff]   ;;  %v6492_v47 = vld [vmem:[#allocation3 + $0x144] ss:$8 sps:$4 sm:$0xff]  }
  0x43   : > { %v6984_v8 = vpack.i.bf16 %v5728_v5, %v5727_v4  ;;  %v6996_v28 = vpack.i.bf16 %v5732_v17, %v5731_v16  ;;  %v5743_v29 = vunpack.c.l.bf16 %v5760_v15  ;;  %v5744_v30 = vunpack.c.h.bf16 %v5760_v15  ;;  %v6494_v48 = vld [vmem:[#allocation3 + $0x40] ss:$8 sps:$4 sm:$0xff]   ;;  %v6496_v50 = vld [vmem:[#allocation3 + $0x54] ss:$8 sps:$4 sm:$0xff]   ;;  %v6500_v53 = vld [vmem:[#allocation3 + $0x50] ss:$8 sps:$4 sm:$0xff]  }
  0x44   : > { %v6998_v32 = vpack.i.bf16 %v5736_v24, %v5735_v23  ;;  %v5747_v35 = vunpack.c.l.bf16 %v5761_v27  ;;  %v5748_v36 = vunpack.c.h.bf16 %v5761_v27  ;;  %v7000_v37 = vpack.i.bf16 %v5740_v26, %v5739_v25  ;;  %4601 = vmatpush1.bf16.msra.mxu1 %v6482_v34  ;;  %v6495_v49 = vld [vmem:[#allocation3 + $0x140] ss:$8 sps:$4 sm:$0xff]   ;;  %v6498_v51 = vld [vmem:[#allocation3 + $0x154] ss:$8 sps:$4 sm:$0xff]   ;;  %v6501_v54 = vld [vmem:[#allocation3 + $0x150] ss:$8 sps:$4 sm:$0xff]  }
  0x45   : > { %6063 = vperm.xlu1 %6061, %v6984_v8   ;;  %6051 = vperm.xlu0 %6049, %v6984_v8   ;;  %v7002_v38 = vpack.i.bf16 %v5744_v30, %v5743_v29  ;;  %v6502_v55 = vld [vmem:[#allocation3 + $0x64] ss:$8 sps:$4 sm:$0xff]   ;;  %v6506_v58 = vld [vmem:[#allocation3 + $0x60] ss:$8 sps:$4 sm:$0xff]   ;;  %v6508_v61 = vld [vmem:[#allocation3 + $0x74] ss:$8 sps:$4 sm:$0xff]  }
  0x46   : > { %v7008_v43 = vpack.i.bf16 %v5748_v36, %v5747_v35  ;;  %4714 = vmatpush1.bf16.msra.mxu0 %v6483_v39  ;;  %4602 = vmatprep.subr.bf16.mxu1 %v6484_v41  ;;  %v6504_v57 = vld [vmem:[#allocation3 + $0x164] ss:$8 sps:$4 sm:$0xff]   ;;  %v6507_v60 = vld [vmem:[#allocation3 + $0x160] ss:$8 sps:$4 sm:$0xff]   ;;  %v6510_v62 = vld [vmem:[#allocation3 + $0x174] ss:$8 sps:$4 sm:$0xff]  }
  0x47   : > { %4715 = vmatprep.subr.bf16.mxu0 %v6486_v42  ;;  %v6512_v63 = vld [vmem:[#allocation3 + $0x70] ss:$8 sps:$4 sm:$0xff]   ;;  %v6514_v3 = vld [vmem:[#allocation3 + $0x84] ss:$8 sps:$4 sm:$0xff]   ;;  %v6518_v5 = vld [vmem:[#allocation3 + $0x80] ss:$8 sps:$4 sm:$0xff]  }
  0x48   : > { %4603 = vmatpush1.bf16.msra.mxu1 %v6488_v44  ;;  %v6513_v0 = vld [vmem:[#allocation3 + $0x170] ss:$8 sps:$4 sm:$0xff]   ;;  %v6516_v4 = vld [vmem:[#allocation3 + $0x184] ss:$8 sps:$4 sm:$0xff]   ;;  %v6519_v6 = vld [vmem:[#allocation3 + $0x180] ss:$8 sps:$4 sm:$0xff]  }
  0x49   : > { %6067 = vset.pattern.permute.xlu1 %v10726_v20  ;;  %6055 = vset.pattern.permute.xlu0 %v10732_v21  ;;  %v6520_v7 = vld [vmem:[#allocation3 + $0x94] ss:$8 sps:$4 sm:$0xff]   ;;  %v6524_v10 = vld [vmem:[#allocation3 + $0x90] ss:$8 sps:$4 sm:$0xff]   ;;  %v6526_v12 = vld [vmem:[#allocation3 + $0xa4] ss:$8 sps:$4 sm:$0xff]  }
  0x4a   : > { %6069 = vperm.xlu1 %6067, %v6984_v8   ;;  %6057 = vperm.xlu0 %6055, %v6984_v8   ;;  %v6522_v9 = vld [vmem:[#allocation3 + $0x194] ss:$8 sps:$4 sm:$0xff]   ;;  %v6525_v11 = vld [vmem:[#allocation3 + $0x190] ss:$8 sps:$4 sm:$0xff]   ;;  %v6528_v13 = vld [vmem:[#allocation3 + $0x1a4] ss:$8 sps:$4 sm:$0xff]  }
  0x4b   : > { %4716 = vmatpush1.bf16.msra.mxu0 %v6489_v45  ;;  %4604 = vmatprep.subr.bf16.mxu1 %v6490_v46  ;;  %v6530_v14 = vld [vmem:[#allocation3 + $0xa0] ss:$8 sps:$4 sm:$0xff]   ;;  %v6532_v16 = vld [vmem:[#allocation3 + $0xb4] ss:$8 sps:$4 sm:$0xff]   ;;  %v6536_v19 = vld [vmem:[#allocation3 + $0xb0] ss:$8 sps:$4 sm:$0xff]  }
  0x4c   : > { %4717 = vmatprep.subr.bf16.mxu0 %v6492_v47  ;;  %4605 = vmatpush1.bf16.msra.mxu1 %v6494_v48  ;;  %v6531_v15 = vld [vmem:[#allocation3 + $0x1a0] ss:$8 sps:$4 sm:$0xff]   ;;  %v6534_v17 = vld [vmem:[#allocation3 + $0x1b4] ss:$8 sps:$4 sm:$0xff]   ;;  %v6537_v22 = vld [vmem:[#allocation3 + $0x1b0] ss:$8 sps:$4 sm:$0xff]  }
  0x4d   : > { %4606 = vmatprep.subr.bf16.mxu1 %v6496_v50  ;;  %v6538_v23 = vld [vmem:[#allocation3 + $0xc4] ss:$8 sps:$4 sm:$0xff]   ;;  %v6542_v25 = vld [vmem:[#allocation3 + $0xc0] ss:$8 sps:$4 sm:$0xff]   ;;  %v6546_v27 = vld [vmem:[#allocation3 + $0x1d4] ss:$8 sps:$4 sm:$0xff]  }
  0x4e   : > { %6073 = vset.pattern.permute.xlu1 %v10724_v2  ;;  %6079 = vset.pattern.permute.xlu0 %v10722_v40  ;;  %v6540_v24 = vld [vmem:[#allocation3 + $0x1c4] ss:$8 sps:$4 sm:$0xff]   ;;  %v6543_v26 = vld [vmem:[#allocation3 + $0x1c0] ss:$8 sps:$4 sm:$0xff]   ;;  %v6548_v29 = vld [vmem:[#allocation3 + $0xd0] ss:$8 sps:$4 sm:$0xff]  }
  0x4f   : > { %6075 = vperm.xlu1 %6073, %v6996_v28   ;;  %6081 = vperm.xlu0 %6079, %v6984_v8   ;;  %v6549_v30 = vld [vmem:[#allocation3 + $0x1d0] ss:$8 sps:$4 sm:$0xff]   ;;  %v6550_v31 = vld [vmem:[#allocation3 + $0xe4] ss:$8 sps:$4 sm:$0xff]   ;;  %v6554_v34 = vld [vmem:[#allocation3 + $0xe0] ss:$8 sps:$4 sm:$0xff]  }
  0x50   : > { %4718 = vmatpush1.bf16.msra.mxu0 %v6495_v49  ;;  %4607 = vmatpush1.bf16.msra.mxu1 %v6500_v53  ;;  %v6552_v33 = vld [vmem:[#allocation3 + $0x1e4] ss:$8 sps:$4 sm:$0xff]   ;;  %v6555_v35 = vld [vmem:[#allocation3 + $0x1e0] ss:$8 sps:$4 sm:$0xff]   ;;  %v6556_v36 = vld [vmem:[#allocation3 + $0xf4] ss:$8 sps:$4 sm:$0xff]  }
  0x51   : > { %4719 = vmatprep.subr.bf16.mxu0 %v6498_v51  ;;  %4608 = vmatprep.subr.bf16.mxu1 %v6502_v55  ;;  %v6558_v39 = vld [vmem:[#allocation3 + $0x1f4] ss:$8 sps:$4 sm:$0xff]   ;;  %v6560_v41 = vld [vmem:[#allocation3 + $0xf0] ss:$8 sps:$4 sm:$0xff]   ;;  %vm5367_vm0 = vcmask 523264   ;;  %s5479_s18 = scalar_lea.sflag [#allocation5], %s341_s29 }
  0x52   : > { %v5762_v42 = vld [vmem:[%s6980_s30 + $0x30] sm:$0xff]   ;;  %v5763_v44 = vld [vmem:[%s6980_s30 + $0x38] sm:$0xff]   ;;  %s342_s30 = scalar_lea.vmem [#allocation6], %s341_s29  ;;  %s6833_s26 = smov [#allocation6]  }
  0x53   : > { %6085 = vset.pattern.permute.xlu1 %v10732_v21  ;;  %6097 = vset.pattern.permute.xlu0 %v6824_v1  ;;  %v5751_v45 = vunpack.c.l.bf16 %v5762_v42  ;;  %v5752_v46 = vunpack.c.h.bf16 %v5762_v42  ;;  %v5755_v48 = vunpack.c.l.bf16 %v5763_v44  ;;  %s5491_s8 = sshll.u32 %s342_s30, 4  ;;  %s6757_s27 = sshll.u32 %s6833_s26, 4  ;;  %s10667_s8 = int_to_ptr.vmem [resolvable:$true] %s5491_s8  ;;  %s6758_s27 = int_to_ptr.vmem [resolvable:$false] %s6757_s27 }
  0x54   : > { %6087 = vperm.xlu1 %6085, %v6996_v28   ;;  %6099 = vperm.xlu0 %6097, %v6996_v28   ;;  %s6753_s23 = scalar_lea.vmem %s10667_s8, 16  ;;  %s6759_s22 = scalar_lea.vmem %s6758_s27, 32 }
  0x55   : > { %4720 = vmatpush1.bf16.msra.mxu0 %v6501_v54  ;;  %4609 = vmatpush1.bf16.msra.mxu1 %v6506_v58  ;;  %v7058_v47 = vpack.i.bf16 %v5752_v46, %v5751_v45  ;;  %v638_v54 = vld [vmem:[%s10709_s2] sm:$0xff]  ;;  %v383_v58 = vld [vmem:[%s10708_s1 + $0x8] sm:$0xff]  ;;  %p6754_p6 = scmp.ne.s32.totalorder %s10667_s8, %s6753_s23  ;;  %p6760_p2 = scmp.lt.s32.totalorder %s10667_s8, %s6758_s27 }
  0x56   : > { %4721 = vmatprep.subr.bf16.mxu0 %v6504_v57  ;;  %4610 = vmatprep.subr.bf16.mxu1 %v6508_v61  ;;  %p6761_p3 = scmp.lt.s32.totalorder %s6759_s22, %s6753_s23 }
  0x57   : > { %p6755_p10 = pnand %p6754_p6, %p12591_p9 }
  0x58   : > { %6091 = vset.pattern.permute.xlu1 %v10730_v52  ;;  %6140 = vperm.xlu0 %6097, %v6998_v32   ;;  %p6762_p4 = por %p6761_p3, %p6760_p2 }
  0x59   : > { %6093 = vperm.xlu1 %6091, %v6984_v8   ;;  %4722 = vmatpush1.bf16.msra.mxu0 %v6507_v60  ;;  %p6756_p12 = pneg %p6755_p10 }
  0x5a   : > { %4723 = vmatprep.subr.bf16.mxu0 %v6510_v62  ;;  %4611 = vmatpush1.bf16.msra.mxu1 %v6512_v63 }
  0x5b   : > { %4612 = vmatprep.subr.bf16.mxu1 %v6514_v3  ;;  %p6763_p7 = pnand %p6762_p4, %p6756_p12 }
  0x5c   : > { %6144 = vset.pattern.permute.xlu0 %v10720_v56 }
  0x5d   : > { %6103 = vset.pattern.permute.xlu1 %v10728_v59  ;;  %6146 = vperm.xlu0 %6144, %v6984_v8  }
  0x5e   : > { %6105 = vperm.xlu1 %6103, %v6984_v8   ;;  %4724 = vmatpush1.bf16.msra.mxu0 %v6513_v0 }
  0x5f   : > { %4725 = vmatprep.subr.bf16.mxu0 %v6516_v4  ;;  %4613 = vmatpush1.bf16.msra.mxu1 %v6518_v5  ;;  %v385_v4 = vld [vmem:[%s10708_s1 + $0x18] sm:$0xff] }
  0x60   : > { %4614 = vmatprep.subr.bf16.mxu1 %v6520_v7 }
  0x61   : > { %6163 = vperm.xlu0 %6144, %v6996_v28  }
  0x62   : > { %6109 = vset.pattern.permute.xlu1 %v10726_v20  ;;  %4726 = vmatpush1.bf16.msra.mxu0 %v6519_v6 }
  0x63   : > { %6111 = vperm.xlu1 %6109, %v6996_v28   ;;  %4727 = vmatprep.subr.bf16.mxu0 %v6522_v9 }
  0x64   : > { %4615 = vmatpush1.bf16.msra.mxu1 %v6524_v10 }
  0x65   : > { %6204 = vperm.xlu0 %6144, %v6998_v32   ;;  %4616 = vmatprep.subr.bf16.mxu1 %v6526_v12 }
  0x66   : > { %4728 = vmatpush1.bf16.msra.mxu0 %v6525_v11 }
  0x67   : > { %6115 = vset.pattern.permute.xlu1 %v10724_v2  ;;  %4729 = vmatprep.subr.bf16.mxu0 %v6528_v13  ;;  %v382_v13 = vld [vmem:[%s10708_s1] sm:$0xff] }
  0x68   : > { %6117 = vperm.xlu1 %6115, %v6998_v32   ;;  %4617 = vmatpush1.bf16.msra.mxu1 %v6530_v14 }
  0x69   : > { %6245 = vperm.xlu0 %6144, %v7000_v37   ;;  %4618 = vmatprep.subr.bf16.mxu1 %v6532_v16 }
  0x6a   : > { %4730 = vmatpush1.bf16.msra.mxu0 %v6531_v15 }
  0x6b   : > { %4731 = vmatprep.subr.bf16.mxu0 %v6534_v17 }
  0x6c   : > { %6121 = vset.pattern.permute.xlu1 %v10722_v40  ;;  %4619 = vmatpush1.bf16.msra.mxu1 %v6536_v19 }
  0x6d   : > { %6123 = vperm.xlu1 %6121, %v6996_v28   ;;  %6286 = vperm.xlu0 %6144, %v7002_v38  }
  0x6e   : > { %4732 = vmatpush1.bf16.msra.mxu0 %v6537_v22  ;;  %4620 = vmatprep.subr.bf16.mxu1 %v6538_v23 }
  0x6f   : > { %4733 = vmatprep.subr.bf16.mxu0 %v6540_v24 }
  0x70   : > { %4621 = vmatpush1.bf16.msra.mxu1 %v6542_v25 }
  0x71   : > { %6127 = vset.pattern.permute.xlu1 %v10732_v21  ;;  %6290 = vset.pattern.permute.xlu0 %v10721_v18 }
  0x72   : > { %6129 = vperm.xlu1 %6127, %v6998_v32   ;;  %6292 = vperm.xlu0 %6290, %v6984_v8   ;;  %v6544_v8 = vld [vmem:[#allocation3 + $0xd4] ss:$8 sps:$4 sm:$0xff]  }
  0x73   : > { %4734 = vmatpush1.bf16.msra.mxu0 %v6543_v26  ;;  %4622 = vmatprep.subr.bf16.mxu1 %v6544_v8 }
  0x74   : > { %4735 = vmatprep.subr.bf16.mxu0 %v6546_v27  ;;  %4623 = vmatpush1.bf16.msra.mxu1 %v6548_v29  ;;  %v384_v29 = vld [vmem:[%s10708_s1 + $0x10] sm:$0xff] }
  0x75   : > { %4624 = vmatprep.subr.bf16.mxu1 %v6550_v31 }
  0x76   : > { %6133 = vset.pattern.permute.xlu1 %v10730_v52  ;;  %6297 = vperm.xlu0 %6290, %v6996_v28  }
  0x77   : > { %6135 = vperm.xlu1 %6133, %v6996_v28   ;;  %4736 = vmatpush1.bf16.msra.mxu0 %v6549_v30 }
  0x78   : > { %4737 = vmatprep.subr.bf16.mxu0 %v6552_v33  ;;  %4625 = vmatpush1.bf16.msra.mxu1 %v6554_v34 }
  0x79   : > { %4626 = vmatprep.subr.bf16.mxu1 %v6556_v36 }
  0x7a   : > { %6302 = vperm.xlu0 %6290, %v6998_v32  }
  0x7b   : > { %6150 = vset.pattern.permute.xlu1 %v10728_v59  ;;  %4738 = vmatpush1.bf16.msra.mxu0 %v6555_v35 }
  0x7c   : > { %6152 = vperm.xlu1 %6150, %v6996_v28   ;;  %v6561_v28 = vld [vmem:[#allocation3 + $0x1f0] ss:$8 sps:$4 sm:$0xff]   ;;  %4739 = vmatprep.subr.bf16.mxu0 %v6558_v39 }
  0x7d   : > { %4627 = vmatpush1.bf16.msra.mxu1 %v6560_v41 }
  0x7e   : > { %6307 = vperm.xlu0 %6290, %v7000_v37  }
  0x7f   : > { %4740 = vmatpush1.bf16.msra.mxu0 %v6561_v28 }
  0x80   : > { %6156 = vset.pattern.permute.xlu1 %v10726_v20 }
  0x81   : > { %6158 = vperm.xlu1 %6156, %v6998_v32  }
  0x82   : > { %6324 = vperm.xlu0 %6290, %v7002_v38  }
  0x85   : > { %6167 = vset.pattern.permute.xlu1 %v10724_v2 }
  0x86   : > { %6169 = vperm.xlu1 %6167, %v7000_v37   ;;  %6365 = vperm.xlu0 %6290, %v7008_v43  }
  0x8a   : > { %6173 = vset.pattern.permute.xlu1 %v10722_v40  ;;  %6369 = vset.pattern.permute.xlu0 %v6824_v1  ;;  %v5756_v1 = vunpack.c.h.bf16 %v5763_v44 }
  0x8b   : > { %6175 = vperm.xlu1 %6173, %v6998_v32   ;;  %6371 = vperm.xlu0 %6369, %v7000_v37  }
  0x8c   : > { %v7063_v49 = vpack.i.bf16 %v5756_v1, %v5755_v48 }
  0x8e   : > { %11556 = vst [vmem:[#allocation9_spill] sm:$0xff] %v7063_v49 }
  0x8f   : > { %6179 = vset.pattern.permute.xlu1 %v10732_v21  ;;  %6376 = vperm.xlu0 %6369, %v7002_v38  }
  0x90   : > { %6181 = vperm.xlu1 %6179, %v7000_v37  }
  0x93   : > { %6381 = vperm.xlu0 %6369, %v7008_v43  }
  0x94   : > { %6185 = vset.pattern.permute.xlu1 %v10730_v52 }
  0x95   : > { %6187 = vperm.xlu1 %6185, %v6998_v32  }
  0x97   : > { %6386 = vperm.xlu0 %6369, %v7058_v47  }
  0x99   : > { %6191 = vset.pattern.permute.xlu1 %v10728_v59 }
  0x9a   : > { %6193 = vperm.xlu1 %6191, %v6998_v32   ;;  %v478_v32 = vlaneseq }
  0x9b   : > { %6403 = vperm.xlu0 %6369, %v7063_v49  }
  0x9c   : > { %v479_v50 = vshrl.u32 %v478_v32, 7 }
  0x9e   : > { %6197 = vset.pattern.permute.xlu1 %v10726_v20  ;;  %v7083_v51 = vsub.s32 0, %v479_v50  ;;  %v7085_v53 = vsub.s32 1, %v479_v50  ;;  %v7091_v55 = vsub.s32 2, %v479_v50  ;;  %v7093_v57 = vsub.s32 3, %v479_v50 }
  0x9f   : > { %6199 = vperm.xlu1 %6197, %v7000_v37   ;;  %6407 = vset.pattern.permute.xlu0 %v10720_v56  ;;  %v7100_v60 = vsub.s32 4, %v479_v50  ;;  %v7102_v61 = vsub.s32 5, %v479_v50  ;;  %v7104_v62 = vsub.s32 6, %v479_v50  ;;  %v7106_v63 = vsub.s32 7, %v479_v50 }
  0xa0   : > { %6409 = vperm.xlu0 %6407, %v7008_v43   ;;  %11557 = vst [vmem:[#allocation10_spill] sm:$0xff] %v7083_v51  ;;  %11558 = vst [vmem:[#allocation11_spill] sm:$0xff] %v7085_v53  ;;  %v7109_v0 = vrot.slane %v383_v58, %v7083_v51  ;;  %v7112_v3 = vrot.slane %v638_v54, %v7085_v53  ;;  %v7121_v5 = vrot.slane %v383_v58, %v7091_v55 }
  0xa1   : > { %11559 = vst [vmem:[#allocation12_spill] sm:$0xff] %v7091_v55  ;;  %11560 = vst [vmem:[#allocation13_spill] sm:$0xff] %v7093_v57  ;;  %v7124_v6 = vrot.slane %v383_v58, %v7093_v57  ;;  %v7127_v7 = vrot.slane %v383_v58, %v7100_v60  ;;  %v7131_v9 = vrot.slane %v383_v58, %v7102_v61 }
  0xa2   : > { %11561 = vst [vmem:[#allocation14_spill] sm:$0xff] %v7100_v60  ;;  %11562 = vst [vmem:[#allocation15_spill] sm:$0xff] %v7102_v61  ;;  %v7134_v10 = vrot.slane %v383_v58, %v7104_v62  ;;  %v7137_v11 = vrot.slane %v383_v58, %v7106_v63  ;;  %v7140_v12 = vrot.slane %v385_v4, %v7083_v51 }
  0xa3   : > { %6208 = vset.pattern.permute.xlu1 %v10724_v2  ;;  %11563 = vst [vmem:[#allocation16_spill] sm:$0xff] %v7104_v62  ;;  %11564 = vst [vmem:[#allocation17_spill] sm:$0xff] %v7106_v63  ;;  %v7147_v14 = vrot.slane %v638_v54, %v7093_v57  ;;  %v7150_v15 = vrot.slane %v385_v4, %v7085_v53  ;;  %v7153_v16 = vrot.slane %v385_v4, %v7091_v55 }
  0xa4   : > { %6210 = vperm.xlu1 %6208, %v7002_v38   ;;  %6426 = vperm.xlu0 %6407, %v7058_v47   ;;  %11565 = vst [vmem:[#allocation18_spill] sm:$0xff] %v7109_v0  ;;  %11566 = vst [vmem:[#allocation19_spill] sm:$0xff] %v7112_v3  ;;  %v7156_v17 = vrot.slane %v385_v4, %v7093_v57  ;;  %v7159_v19 = vrot.slane %v385_v4, %v7100_v60 }
  0xa5   : > { %11568 = vst [vmem:[#allocation21_spill] sm:$0xff] %v7121_v5  ;;  %11569 = vst [vmem:[#allocation22_spill] sm:$0xff] %v7124_v6  ;;  %v7162_v22 = vrot.slane %v385_v4, %v7102_v61  ;;  %v7165_v23 = vrot.slane %v385_v4, %v7104_v62  ;;  %v7168_v24 = vrot.slane %v385_v4, %v7106_v63 }
  0xa6   : > { %11570 = vst [vmem:[#allocation23_spill] sm:$0xff] %v7127_v7  ;;  %11571 = vst [vmem:[#allocation24_spill] sm:$0xff] %v7131_v9  ;;  %v7171_v25 = vrot.slane %v382_v13, %v7083_v51  ;;  %v7174_v26 = vrot.slane %v638_v54, %v7083_v51  ;;  %v7177_v8 = vrot.slane %v382_v13, %v7085_v53 }
  0xa7   : > { %11572 = vst [vmem:[#allocation25_spill] sm:$0xff] %v7134_v10  ;;  %11573 = vst [vmem:[#allocation26_spill] sm:$0xff] %v7137_v11  ;;  %v7180_v27 = vrot.slane %v382_v13, %v7091_v55  ;;  %v7186_v30 = vrot.slane %v382_v13, %v7093_v57  ;;  %v7189_v31 = vrot.slane %v382_v13, %v7100_v60 }
  0xa8   : > { %6214 = vset.pattern.permute.xlu1 %v10722_v40  ;;  %6442 = vset.pattern.permute.xlu0 %v10730_v52  ;;  %11574 = vst [vmem:[#allocation27_spill] sm:$0xff] %v7140_v12  ;;  %11575 = vst [vmem:[#allocation28_spill] sm:$0xff] %v7147_v14  ;;  %v7192_v33 = vrot.slane %v382_v13, %v7102_v61  ;;  %v7195_v34 = vrot.slane %v382_v13, %v7104_v62 }
  0xa9   : > { %6216 = vperm.xlu1 %6214, %v7000_v37   ;;  %6444 = vperm.xlu0 %6442, %v7063_v49   ;;  %11576 = vst [vmem:[#allocation29_spill] sm:$0xff] %v7150_v15  ;;  %11577 = vst [vmem:[#allocation30_spill] sm:$0xff] %v7153_v16  ;;  %v7199_v35 = vrot.slane %v382_v13, %v7106_v63  ;;  %v7202_v36 = vrot.slane %v384_v29, %v7083_v51 }
  0xaa   : > { %11578 = vst [vmem:[#allocation31_spill] sm:$0xff] %v7156_v17  ;;  %11579 = vst [vmem:[#allocation32_spill] sm:$0xff] %v7159_v19  ;;  %v7205_v39 = vrot.slane %v638_v54, %v7091_v55  ;;  %v7208_v41 = vrot.slane %v384_v29, %v7085_v53  ;;  %v7212_v28 = vrot.slane %v384_v29, %v7091_v55 }
  0xab   : > { %11580 = vst [vmem:[#allocation33_spill] sm:$0xff] %v7162_v22  ;;  %11581 = vst [vmem:[#allocation34_spill] sm:$0xff] %v7165_v23  ;;  %v7215_v42 = vrot.slane %v384_v29, %v7093_v57  ;;  %v7218_v44 = vrot.slane %v384_v29, %v7100_v60  ;;  %v7221_v45 = vrot.slane %v384_v29, %v7102_v61  ;;  %v11609_v61 = vmov 1  }
  0xac   : > { %11582 = vst [vmem:[#allocation35_spill] sm:$0xff] %v7168_v24  ;;  %11583 = vst [vmem:[#allocation36_spill] sm:$0xff] %v7171_v25  ;;  %v7224_v46 = vrot.slane %v384_v29, %v7104_v62  ;;  %v7227_v48 = vrot.slane %v384_v29, %v7106_v63 }
  0xad   : > { %6220 = vset.pattern.permute.xlu1 %v10732_v21  ;;  %6460 = vset.pattern.permute.xlu0 %v10721_v18  ;;  %11584 = vst [vmem:[#allocation37_spill] sm:$0xff] %v7174_v26  ;;  %11585 = vst [vmem:[#allocation38_spill] sm:$0xff] %v7177_v8 }
  0xae   : > { %6222 = vperm.xlu1 %6220, %v7002_v38   ;;  %11586 = vst [vmem:[#allocation39_spill] sm:$0xff] %v7180_v27  ;;  %11587 = vst [vmem:[#allocation40_spill] sm:$0xff] %v7186_v30 }
  0xaf   : > { %11588 = vst [vmem:[#allocation41_spill] sm:$0xff] %v7189_v31  ;;  %11589 = vst [vmem:[#allocation42_spill] sm:$0xff] %v7192_v33 }
  0xb0   : > { %11590 = vst [vmem:[#allocation43_spill] sm:$0xff] %v7195_v34  ;;  %11591 = vst [vmem:[#allocation44_spill] sm:$0xff] %v7199_v35 }
  0xb1   : > { %11592 = vst [vmem:[#allocation45_spill] sm:$0xff] %v7202_v36  ;;  %11593 = vst [vmem:[#allocation46_spill] sm:$0xff] %v7205_v39 }
  0xb2   : > { %6226 = vset.pattern.permute.xlu1 %v10730_v52  ;;  %11594 = vst [vmem:[#allocation47_spill] sm:$0xff] %v7208_v41  ;;  %11595 = vst [vmem:[#allocation48_spill] sm:$0xff] %v7212_v28 }
  0xb3   : > { %6228 = vperm.xlu1 %6226, %v7000_v37   ;;  %11596 = vst [vmem:[#allocation49_spill] sm:$0xff] %v7215_v42  ;;  %11597 = vst [vmem:[#allocation50_spill] sm:$0xff] %v7218_v44 }
  0xb4   : > { %11598 = vst [vmem:[#allocation51_spill] sm:$0xff] %v7221_v45  ;;  %11599 = vst [vmem:[#allocation52_spill] sm:$0xff] %v7224_v46  ;;  %v11614_v46 = vmov 5  }
  0xb5   : > { %11600 = vst [vmem:[#allocation53_spill] sm:$0xff] %v7227_v48 }
  0xb7   : > { %6232 = vset.pattern.permute.xlu1 %v10728_v59 }
  0xb8   : > { %6234 = vperm.xlu1 %6232, %v7000_v37   ;;  %v7115_v37 = vrot.slane %v383_v58, %v7085_v53 }
  0xba   : > { %11567 = vst [vmem:[#allocation20_spill] sm:$0xff] %v7115_v37 }
  0xbc   : > { %6238 = vset.pattern.permute.xlu1 %v10726_v20 }
  0xbd   : > { %6240 = vperm.xlu1 %6238, %v7002_v38  }
  0xc1   : > { %6249 = vset.pattern.permute.xlu1 %v10724_v2 }
  0xc2   : > { %6251 = vperm.xlu1 %6249, %v7008_v43  }
  0xc4   : > { %v6064_v1 = vpop.permute.xlu1 %6063  ;;  %v6052_v32 = vpop.permute.xlu0 %6051 }
  0xc5   : > { %v7229_v50 = vunpack.i.h.bf16 %v6064_v1  ;;  %v7231_v54 = vunpack.i.l.bf16 %v6064_v1  ;;  %v7233_v58 = vunpack.i.h.bf16 %v6052_v32  ;;  %v7235_v4 = vunpack.i.l.bf16 %v6052_v32 }
  0xc6   : > { %6255 = vset.pattern.permute.xlu1 %v10722_v40 }
  0xc7   : > { %11601 = vst [vmem:[#allocation54_spill] sm:$0xff] %v7229_v50  ;;  %11602 = vst [vmem:[#allocation55_spill] sm:$0xff] %v7231_v54  ;;  %6257 = vperm.xlu1 %6255, %v7002_v38   ;;  %v511_v13 = vmul.f32 %v7235_v4, %v7109_v0  ;;  %v519_v29 = vmul.f32 %v7233_v58, %v7109_v0  ;;  %v1257_v56 = vmul.f32 %v7231_v54, %v7121_v5 }
  0xc8   : > { %11603 = vst [vmem:[#allocation56_spill] sm:$0xff] %v7233_v58  ;;  %11604 = vst [vmem:[#allocation57_spill] sm:$0xff] %v7235_v4  ;;  %v1265_v1 = vmul.f32 %v7229_v50, %v7121_v5  ;;  %v513_v32 = vmul.f32 %v7235_v4, %v7140_v12  ;;  %v521_v18 = vmul.f32 %v7233_v58, %v7140_v12 }
  0xc9   : > { %v1259_v40 = vmul.f32 %v7231_v54, %v7153_v16  ;;  %v1267_v2 = vmul.f32 %v7229_v50, %v7153_v16  ;;  %v6070_v20 = vpop.permute.xlu1 %6069  ;;  %v6058_v59 = vpop.permute.xlu0 %6057  ;;  %v681_v52 = vadd.f32 %v7112_v3, %v511_v13  ;;  %v689_v21 = vadd.f32 %v7112_v3, %v519_v29 }
  0xca   : > { %v510_v63 = vmul.f32 %v7235_v4, %v7171_v25  ;;  %v518_v62 = vmul.f32 %v7233_v58, %v7171_v25  ;;  %v7261_v60 = vunpack.i.h.bf16 %v6070_v20  ;;  %v7263_v57 = vunpack.i.l.bf16 %v6070_v20 }
  0xcb   : > { %v7265_v55 = vunpack.i.h.bf16 %v6058_v59  ;;  %v7267_v53 = vunpack.i.l.bf16 %v6058_v59  ;;  %6261 = vset.pattern.permute.xlu1 %v11609_v61  ;;  %v683_v13 = vadd.f32 %v7147_v14, %v513_v32  ;;  %v691_v29 = vadd.f32 %v7147_v14, %v521_v18 }
  0xcc   : > { %11605 = vst [vmem:[#allocation58_spill] sm:$0xff] %v7261_v60  ;;  %11606 = vst [vmem:[#allocation59_spill] sm:$0xff] %v7263_v57  ;;  %v680_v51 = vadd.f32 %v7174_v26, %v510_v63  ;;  %v688_v16 = vadd.f32 %v7174_v26, %v518_v62  ;;  %6263 = vperm.xlu1 %6261, %v7008_v43   ;;  %v1609_v59 = vmul.f32 %v7263_v57, %v7124_v6 }
  0xcd   : > { %11607 = vst [vmem:[#allocation60_spill] sm:$0xff] %v7265_v55  ;;  %11608 = vst [vmem:[#allocation61_spill] sm:$0xff] %v7267_v53  ;;  %v905_v20 = vmul.f32 %v7267_v53, %v7115_v37  ;;  %v913_v25 = vmul.f32 %v7265_v55, %v7115_v37  ;;  %v1617_v32 = vmul.f32 %v7261_v60, %v7124_v6 }
  0xce   : > { %v907_v18 = vmul.f32 %v7267_v53, %v7150_v15  ;;  %v915_v62 = vmul.f32 %v7265_v55, %v7150_v15  ;;  %v1611_v63 = vmul.f32 %v7263_v57, %v7156_v17  ;;  %v1619_v26 = vmul.f32 %v7261_v60, %v7156_v17  ;;  %v6076_v14 = vpop.permute.xlu1 %6075  ;;  %v6082_v12 = vpop.permute.xlu0 %6081 }
  0xcf   : > { %v1033_v49 = vadd.f32 %v905_v20, %v681_v52  ;;  %v1041_v5 = vadd.f32 %v913_v25, %v689_v21  ;;  %v904_v37 = vmul.f32 %v7267_v53, %v7177_v8  ;;  %v912_v6 = vmul.f32 %v7265_v55, %v7177_v8 }
  0xd0   : > { %v7295_v3 = vunpack.i.h.bf16 %v6076_v14  ;;  %v7297_v0 = vunpack.i.l.bf16 %v6076_v14  ;;  %v7299_v15 = vunpack.i.h.bf16 %v6082_v12  ;;  %v7301_v48 = vunpack.i.l.bf16 %v6082_v12  ;;  %6267 = vset.pattern.permute.xlu1 %v11614_v46 }
  0xd1   : > { %v1385_v17 = vadd.f32 %v1257_v56, %v1033_v49  ;;  %v1393_v45 = vadd.f32 %v1265_v1, %v1041_v5  ;;  %v1035_v52 = vadd.f32 %v907_v18, %v683_v13  ;;  %v1043_v21 = vadd.f32 %v915_v62, %v691_v29  ;;  %6269 = vperm.xlu1 %6267, %v7002_v38  }
  0xd2   : > { %11610 = vst [vmem:[#allocation62_spill] sm:$0xff] %v7295_v3  ;;  %11611 = vst [vmem:[#allocation63_spill] sm:$0xff] %v7297_v0  ;;  %v1961_v25 = vmul.f32 %v7301_v48, %v7127_v7  ;;  %v1969_v20 = vmul.f32 %v7299_v15, %v7127_v7  ;;  %v1963_v14 = vmul.f32 %v7301_v48, %v7159_v19 }
  0xd3   : > { %11612 = vst [vmem:[#allocation64_spill] sm:$0xff] %v7299_v15  ;;  %11613 = vst [vmem:[#allocation65_spill] sm:$0xff] %v7301_v48  ;;  %v1971_v12 = vmul.f32 %v7299_v15, %v7159_v19  ;;  %v1737_v8 = vadd.f32 %v1609_v59, %v1385_v17  ;;  %v1745_v46 = vadd.f32 %v1617_v32, %v1393_v45  ;;  %v6088_v5 = vpop.permute.xlu1 %6087  ;;  %v6100_v1 = vpop.permute.xlu0 %6099 }
  0xd4   : > { %v1387_v56 = vadd.f32 %v1259_v40, %v1035_v52  ;;  %v1395_v49 = vadd.f32 %v1267_v2, %v1043_v21  ;;  %v1032_v13 = vadd.f32 %v904_v37, %v680_v51  ;;  %v1040_v29 = vadd.f32 %v912_v6, %v688_v16 }
  0xd5   : > { %v1256_v18 = vmul.f32 %v7231_v54, %v7180_v27  ;;  %v1264_v62 = vmul.f32 %v7229_v50, %v7180_v27  ;;  %v7317_v7 = vunpack.i.h.bf16 %v6088_v5  ;;  %v7319_v3 = vunpack.i.l.bf16 %v6088_v5 }
  0xd6   : > { %v7321_v0 = vunpack.i.h.bf16 %v6100_v1  ;;  %v7323_v17 = vunpack.i.l.bf16 %v6100_v1  ;;  %v11619_v40 = vmov 6   ;;  %v2089_v2 = vadd.f32 %v1961_v25, %v1737_v8 }
  0xd7   : > { %11615 = vst [vmem:[#allocation66_spill] sm:$0xff] %v7317_v7  ;;  %11616 = vst [vmem:[#allocation67_spill] sm:$0xff] %v7319_v3  ;;  %6273 = vset.pattern.permute.xlu1 %v11619_v40  ;;  %v2097_v45 = vadd.f32 %v1969_v20, %v1745_v46  ;;  %v1739_v51 = vadd.f32 %v1611_v63, %v1387_v56  ;;  %v1747_v37 = vadd.f32 %v1619_v26, %v1395_v49  ;;  %v6141_v52 = vpop.permute.xlu0 %6140  ;;  %v11624_v49 = vmov 3  }
  0xd8   : > { %11617 = vst [vmem:[#allocation68_spill] sm:$0xff] %v7321_v0  ;;  %11618 = vst [vmem:[#allocation69_spill] sm:$0xff] %v7323_v17  ;;  %6275 = vperm.xlu1 %6273, %v7002_v38   ;;  %v1384_v6 = vadd.f32 %v1256_v18, %v1032_v13  ;;  %v1392_v16 = vadd.f32 %v1264_v62, %v1040_v29  ;;  %v1608_v59 = vmul.f32 %v7263_v57, %v7186_v30  ;;  %v6094_v26 = vpop.permute.xlu1 %6093 }
  0xd9   : > { %v1616_v32 = vmul.f32 %v7261_v60, %v7186_v30  ;;  %v2091_v21 = vadd.f32 %v1963_v14, %v1739_v51  ;;  %v2099_v5 = vadd.f32 %v1971_v12, %v1747_v37  ;;  %v1960_v1 = vmul.f32 %v7301_v48, %v7189_v31 }
  0xda   : > { %v1968_v8 = vmul.f32 %v7299_v15, %v7189_v31  ;;  %v7335_v46 = vunpack.i.h.bf16 %v6141_v52  ;;  %v7337_v38 = vunpack.i.l.bf16 %v6141_v52  ;;  %v1736_v63 = vadd.f32 %v1608_v59, %v1384_v6 }
  0xdb   : > { %v1744_v25 = vadd.f32 %v1616_v32, %v1392_v16  ;;  %v7339_v20 = vunpack.i.h.bf16 %v6094_v26  ;;  %v7341_v56 = vunpack.i.l.bf16 %v6094_v26  ;;  %v512_v14 = vmul.f32 %v7235_v4, %v7202_v36 }
  0xdc   : > { %11620 = vst [vmem:[#allocation70_spill] sm:$0xff] %v7335_v46  ;;  %11621 = vst [vmem:[#allocation71_spill] sm:$0xff] %v7337_v38  ;;  %v520_v12 = vmul.f32 %v7233_v58, %v7202_v36  ;;  %6279 = vset.pattern.permute.xlu1 %v11624_v49  ;;  %v2088_v13 = vadd.f32 %v1960_v1, %v1736_v63  ;;  %v906_v18 = vmul.f32 %v7267_v53, %v7208_v41  ;;  %v6147_v59 = vpop.permute.xlu0 %6146 }
  0xdd   : > { %11622 = vst [vmem:[#allocation72_spill] sm:$0xff] %v7339_v20  ;;  %11623 = vst [vmem:[#allocation73_spill] sm:$0xff] %v7341_v56  ;;  %v2096_v29 = vadd.f32 %v1968_v8, %v1744_v25  ;;  %v914_v62 = vmul.f32 %v7265_v55, %v7208_v41  ;;  %6281 = vperm.xlu1 %6279, %v7008_v43   ;;  %v2313_v51 = vmul.f32 %v7341_v56, %v7131_v9  ;;  %v6106_v26 = vpop.permute.xlu1 %6105  ;;  %v11629_v41 = vmov 0  }
  0xde   : > { %v2321_v37 = vmul.f32 %v7339_v20, %v7131_v9  ;;  %v2315_v6 = vmul.f32 %v7341_v56, %v7162_v22  ;;  %v2323_v16 = vmul.f32 %v7339_v20, %v7162_v22  ;;  %v2312_v32 = vmul.f32 %v7341_v56, %v7192_v33 }
  0xdf   : > { %v2320_v52 = vmul.f32 %v7339_v20, %v7192_v33  ;;  %v682_v1 = vadd.f32 %v7205_v39, %v512_v14  ;;  %v690_v8 = vadd.f32 %v7205_v39, %v520_v12  ;;  %v7367_v63 = vunpack.i.h.bf16 %v6147_v59 }
  0xe0   : > { %v7369_v25 = vunpack.i.l.bf16 %v6147_v59  ;;  %v2441_v55 = vadd.f32 %v2313_v51, %v2089_v2  ;;  %v2449_v53 = vadd.f32 %v2321_v37, %v2097_v45  ;;  %v7371_v58 = vunpack.i.h.bf16 %v6106_v26  ;;  %v6164_v45 = vpop.permute.xlu0 %6163 }
  0xe1   : > { %11625 = vst [vmem:[#allocation74_spill] sm:$0xff] %v7367_v63  ;;  %v7373_v4 = vunpack.i.l.bf16 %v6106_v26  ;;  %v2443_v46 = vadd.f32 %v2315_v6, %v2091_v21  ;;  %v2451_v38 = vadd.f32 %v2323_v16, %v2099_v5  ;;  %6311 = vset.pattern.permute.xlu1 %v11629_v41  ;;  %v3025_v12 = vmul.f32 %v7367_v63, %v7137_v11 }
  0xe2   : > { %11626 = vst [vmem:[#allocation75_spill] sm:$0xff] %v7369_v25  ;;  %11627 = vst [vmem:[#allocation76_spill] sm:$0xff] %v7371_v58  ;;  %v3017_v14 = vmul.f32 %v7369_v25, %v7137_v11  ;;  %v3019_v59 = vmul.f32 %v7369_v25, %v7168_v24  ;;  %v3027_v2 = vmul.f32 %v7367_v63, %v7168_v24  ;;  %6313 = vperm.xlu1 %6311, %v7058_v47   ;;  %v6112_v36 = vpop.permute.xlu1 %6111 }
  0xe3   : > { %11628 = vst [vmem:[#allocation77_spill] sm:$0xff] %v7373_v4  ;;  %v2665_v21 = vmul.f32 %v7373_v4, %v7134_v10  ;;  %v2673_v5 = vmul.f32 %v7371_v58, %v7134_v10  ;;  %v2667_v51 = vmul.f32 %v7373_v4, %v7165_v23  ;;  %v2675_v37 = vmul.f32 %v7371_v58, %v7165_v23 }
  0xe4   : > { %v7393_v6 = vunpack.i.h.bf16 %v6164_v45  ;;  %v7395_v16 = vunpack.i.l.bf16 %v6164_v45  ;;  %v2440_v26 = vadd.f32 %v2312_v32, %v2088_v13  ;;  %v2448_v39 = vadd.f32 %v2320_v52, %v2096_v29  ;;  %v6205_v45 = vpop.permute.xlu0 %6204 }
  0xe5   : > { %v2793_v33 = vadd.f32 %v2665_v21, %v2441_v55  ;;  %v2801_v31 = vadd.f32 %v2673_v5, %v2449_v53  ;;  %v2795_v30 = vadd.f32 %v2667_v51, %v2443_v46  ;;  %v2803_v27 = vadd.f32 %v2675_v37, %v2451_v38 }
  0xe6   : > { %11630 = vst [vmem:[#allocation78_spill] sm:$0xff] %v7393_v6  ;;  %11631 = vst [vmem:[#allocation79_spill] sm:$0xff] %v7395_v16  ;;  %v7397_v24 = vunpack.i.h.bf16 %v6112_v36  ;;  %v7399_v22 = vunpack.i.l.bf16 %v6112_v36  ;;  %v2664_v19 = vmul.f32 %v7373_v4, %v7195_v34  ;;  %v2672_v23 = vmul.f32 %v7371_v58, %v7195_v34 }
  0xe7   : > { %v11634_v6 = vmov 4   ;;  %v7406_v13 = vadd.f32 %v3017_v14, %v2793_v33  ;;  %v7408_v29 = vadd.f32 %v3025_v12, %v2801_v31  ;;  %v7410_v53 = vadd.f32 %v3019_v59, %v2795_v30  ;;  %v6118_v30 = vpop.permute.xlu1 %6117 }
  0xe8   : > { %11632 = vst [vmem:[#allocation80_spill] sm:$0xff] %v7397_v24  ;;  %11633 = vst [vmem:[#allocation81_spill] sm:$0xff] %v7399_v22  ;;  %6317 = vset.pattern.permute.xlu1 %v11634_v6  ;;  %v7412_v55 = vadd.f32 %v3027_v2, %v2803_v27  ;;  %v7415_v36 = vunpack.i.h.bf16 %v6205_v45  ;;  %v7417_v46 = vunpack.i.l.bf16 %v6205_v45  ;;  %v2792_v38 = vadd.f32 %v2664_v19, %v2440_v26  ;;  %v6246_v2 = vpop.permute.xlu0 %6245  ;;  %v11641_v26 = vld [vmem:[#allocation51_spill] sm:$0xff] }
  0xe9   : > { %6319 = vperm.xlu1 %6317, %v7008_v43   ;;  %v2800_v32 = vadd.f32 %v2672_v23, %v2448_v39  ;;  %v3016_v52 = vmul.f32 %v7369_v25, %v7199_v35  ;;  %v3024_v33 = vmul.f32 %v7367_v63, %v7199_v35  ;;  %v1034_v31 = vadd.f32 %v906_v18, %v682_v1 }
  0xea   : > { %11635 = vst [vmem:[#allocation82_spill] sm:$0xff] %v7415_v36  ;;  %11636 = vst [vmem:[#allocation83_spill] sm:$0xff] %v7417_v46  ;;  %v1042_v14 = vadd.f32 %v914_v62, %v690_v8  ;;  %v1258_v27 = vmul.f32 %v7231_v54, %v7212_v28  ;;  %v1266_v12 = vmul.f32 %v7229_v50, %v7212_v28  ;;  %v7431_v23 = vunpack.i.h.bf16 %v6118_v30  ;;  %v11652_v50 = vld [vmem:[#allocation19_spill] sm:$0xff]  ;;  %v11654_v36 = vld [vmem:[#allocation21_spill] sm:$0xff] }
  0xeb   : > { %v1610_v59 = vmul.f32 %v7263_v57, %v7215_v42  ;;  %v1618_v19 = vmul.f32 %v7261_v60, %v7215_v42  ;;  %v7433_v39 = vunpack.i.l.bf16 %v6118_v30  ;;  %v7435_v18 = vadd.f32 %v3016_v52, %v2792_v38  ;;  %v7496_v46 = vld [vmem:[%s10708_s1 + $0x48] ss:$0 sm:$0xff] }
  0xec   : > { %11637 = vst [vmem:[#allocation84_spill] sm:$0xff] %v7431_v23  ;;  %v7437_v62 = vadd.f32 %v3024_v33, %v2800_v32  ;;  %v7440_v1 = vunpack.i.h.bf16 %v6246_v2  ;;  %v7442_v8 = vunpack.i.l.bf16 %v6246_v2  ;;  %v1386_v21 = vadd.f32 %v1258_v27, %v1034_v31  ;;  %v11642_v33 = vld [vmem:[#allocation52_spill] sm:$0xff]  ;;  %v6124_v30 = vpop.permute.xlu1 %6123  ;;  %v6287_v27 = vpop.permute.xlu0 %6286  ;;  %11656 = vst [vmem:[#allocation92_spill] sm:$0xff] %v7496_v46 }
  0xed   : > { %11638 = vst [vmem:[#allocation85_spill] sm:$0xff] %v7433_v39  ;;  %6328 = vset.pattern.permute.xlu1 %v11609_v61  ;;  %v1394_v5 = vadd.f32 %v1266_v12, %v1042_v14  ;;  %v1962_v51 = vmul.f32 %v7301_v48, %v7218_v44  ;;  %v1970_v37 = vmul.f32 %v7299_v15, %v7218_v44  ;;  %v11643_v12 = vld [vmem:[#allocation53_spill] sm:$0xff]  ;;  %v11645_v48 = vld [vmem:[#allocation63_spill] sm:$0xff] }
  0xee   : > { %11639 = vst [vmem:[#allocation86_spill] sm:$0xff] %v7440_v1  ;;  %11640 = vst [vmem:[#allocation87_spill] sm:$0xff] %v7442_v8  ;;  %6330 = vperm.xlu1 %6328, %v7058_v47   ;;  %v2314_v45 = vmul.f32 %v7341_v56, %v11641_v26  ;;  %v2322_v38 = vmul.f32 %v7339_v20, %v11641_v26  ;;  %v1738_v32 = vadd.f32 %v1610_v59, %v1386_v21  ;;  %v11644_v56 = vld [vmem:[#allocation18_spill] sm:$0xff]  ;;  %v11651_v20 = vmov 5   ;;  %v11653_v1 = vld [vmem:[#allocation20_spill] sm:$0xff] }
  0xef   : > { %v1746_v52 = vadd.f32 %v1618_v19, %v1394_v5  ;;  %v2666_v31 = vmul.f32 %v7373_v4, %v11642_v33  ;;  %v2674_v14 = vmul.f32 %v7371_v58, %v11642_v33  ;;  %v3018_v2 = vmul.f32 %v7369_v25, %v11643_v12  ;;  %v11646_v59 = vld [vmem:[#allocation62_spill] sm:$0xff] }
  0xf0   : > { %v3026_v15 = vmul.f32 %v7367_v63, %v11643_v12  ;;  %v527_v60 = vmul.f32 %v11645_v48, %v11644_v56  ;;  %v535_v19 = vmul.f32 %v11646_v59, %v11644_v56  ;;  %v7465_v21 = vunpack.i.h.bf16 %v6124_v30  ;;  %v7545_v12 = vld [vmem:[%s10708_s1 + $0x50] ss:$0 sm:$0xff] }
  0xf1   : > { %v7467_v5 = vunpack.i.l.bf16 %v6124_v30  ;;  %v7469_v4 = vunpack.i.h.bf16 %v6287_v27  ;;  %v7471_v58 = vunpack.i.l.bf16 %v6287_v27  ;;  %v2090_v25 = vadd.f32 %v1962_v51, %v1738_v32  ;;  %v11655_v32 = vld [vmem:[#allocation22_spill] sm:$0xff]  ;;  %11663 = vst [vmem:[#allocation98_spill] sm:$0xff] %v7545_v12 }
  0xf2   : > { %11647 = vst [vmem:[#allocation88_spill] sm:$0xff] %v7465_v21  ;;  %6334 = vset.pattern.permute.xlu1 %v11651_v20  ;;  %v2098_v57 = vadd.f32 %v1970_v37, %v1746_v52  ;;  %v697_v63 = vadd.f32 %v11652_v50, %v527_v60  ;;  %v705_v54 = vadd.f32 %v11652_v50, %v535_v19  ;;  %v6130_v19 = vpop.permute.xlu1 %6129 }
  0xf3   : > { %11648 = vst [vmem:[#allocation89_spill] sm:$0xff] %v7467_v5  ;;  %11649 = vst [vmem:[#allocation90_spill] sm:$0xff] %v7469_v4  ;;  %6336 = vperm.xlu1 %6334, %v7008_v43   ;;  %v921_v8 = vmul.f32 %v7319_v3, %v11653_v1  ;;  %v929_v30 = vmul.f32 %v7317_v7, %v11653_v1  ;;  %v1273_v27 = vmul.f32 %v7323_v17, %v11654_v36 }
  0xf4   : > { %11650 = vst [vmem:[#allocation91_spill] sm:$0xff] %v7471_v58  ;;  %v1281_v4 = vmul.f32 %v7321_v0, %v11654_v36  ;;  %v2442_v51 = vadd.f32 %v2314_v45, %v2090_v25  ;;  %v2450_v37 = vadd.f32 %v2322_v38, %v2098_v57  ;;  %v7487_v60 = vmul.f32 %v7399_v22, %v11655_v32  ;;  %v6293_v58 = vpop.permute.xlu0 %6292  ;;  %v7501_v25 = vld [vmem:[%s10708_s1 + $0x58] ss:$0 sm:$0xff] }
  0xf5   : > { %v7491_v52 = vmul.f32 %v7397_v24, %v11655_v32  ;;  %11657 = vst [vmem:[#allocation93_spill] sm:$0xff] %v7501_v25  ;;  %v1049_v57 = vadd.f32 %v921_v8, %v697_v63  ;;  %v1057_v45 = vadd.f32 %v929_v30, %v705_v54  ;;  %v11658_v38 = vld [vmem:[#allocation23_spill] sm:$0xff]  ;;  %v7511_v50 = vunpack.i.h.bf16 %v6130_v19  ;;  %v7522_v54 = vld [vmem:[%s10708_s1 + $0x40] ss:$0 sm:$0xff] }
  0xf6   : > { %v7505_v36 = vmul.f32 %v7467_v5, %v11658_v38  ;;  %v7509_v32 = vmul.f32 %v7465_v21, %v11658_v38  ;;  %v7513_v1 = vunpack.i.l.bf16 %v6130_v19  ;;  %v7515_v23 = vunpack.i.h.bf16 %v6293_v58 }
  0xf7   : > { %11659 = vst [vmem:[#allocation94_spill] sm:$0xff] %v7511_v50  ;;  %v7517_v39 = vunpack.i.l.bf16 %v6293_v58  ;;  %6340 = vset.pattern.permute.xlu1 %v11619_v40  ;;  %v2794_v63 = vadd.f32 %v2666_v31, %v2442_v51  ;;  %v2802_v8 = vadd.f32 %v2674_v14, %v2450_v37  ;;  %v1401_v30 = vadd.f32 %v1273_v27, %v1049_v57  ;;  %v6136_v27 = vpop.permute.xlu1 %6135 }
  0xf8   : > { %11660 = vst [vmem:[#allocation95_spill] sm:$0xff] %v7513_v1  ;;  %11661 = vst [vmem:[#allocation96_spill] sm:$0xff] %v7515_v23  ;;  %v1409_v38 = vadd.f32 %v1281_v4, %v1057_v45  ;;  %6342 = vperm.xlu1 %6340, %v7008_v43   ;;  %v3377_v58 = vmul.f32 %v7515_v23, %v7496_v46  ;;  %v3379_v1 = vmul.f32 %v7515_v23, %v7501_v25  ;;  %v6298_v56 = vpop.permute.xlu0 %6297 }
  0xf9   : > { %11662 = vst [vmem:[#allocation97_spill] sm:$0xff] %v7517_v39  ;;  %v3369_v19 = vmul.f32 %v7517_v39, %v7496_v46  ;;  %v3371_v50 = vmul.f32 %v7517_v39, %v7501_v25  ;;  %v3368_v31 = vmul.f32 %v7517_v39, %v7522_v54  ;;  %v3376_v4 = vmul.f32 %v7515_v23, %v7522_v54 }
  0xfa   : > { %v3146_v43 = vadd.f32 %v3018_v2, %v2794_v63  ;;  %v3154_v14 = vadd.f32 %v3026_v15, %v2802_v8  ;;  %v3505_v37 = vadd.f32 %v3377_v58, %v7408_v29  ;;  %v3507_v45 = vadd.f32 %v3379_v1, %v7412_v55 }
  0xfb   : > { %v3497_v51 = vadd.f32 %v3369_v19, %v7406_v13  ;;  %v3499_v57 = vadd.f32 %v3371_v50, %v7410_v53  ;;  %v7547_v33 = vunpack.i.h.bf16 %v6136_v27  ;;  %v7549_v26 = vunpack.i.l.bf16 %v6136_v27 }
  0xfc   : > { %v7551_v2 = vunpack.i.h.bf16 %v6298_v56  ;;  %v7553_v15 = vunpack.i.l.bf16 %v6298_v56  ;;  %6346 = vset.pattern.permute.xlu1 %v11624_v49  ;;  %v3633_v29 = vmax.f32 %v3505_v37, 0.0  ;;  %v3635_v53 = vmax.f32 %v3507_v45, 0.0  ;;  %v6303_v56 = vpop.permute.xlu0 %6302  ;;  %v6153_v37 = vpop.permute.xlu1 %6152 }
  0xfd   : > { %11664 = vst [vmem:[#allocation99_spill] sm:$0xff] %v7547_v33  ;;  %11665 = vst [vmem:[#allocation100_spill] sm:$0xff] %v7549_v26  ;;  %v3625_v13 = vmax.f32 %v3497_v51, 0.0  ;;  %v3627_v50 = vmax.f32 %v3499_v57, 0.0  ;;  %6348 = vperm.xlu1 %6346, %v7058_v47   ;;  %v3496_v55 = vadd.f32 %v3368_v31, %v7435_v18  ;;  %v3504_v1 = vadd.f32 %v3376_v4, %v7437_v62 }
  0xfe   : > { %11666 = vst [vmem:[#allocation101_spill] sm:$0xff] %v7551_v2  ;;  %11667 = vst [vmem:[#allocation102_spill] sm:$0xff] %v7553_v15  ;;  %v3370_v63 = vmul.f32 %v7517_v39, %v7545_v12  ;;  %v3378_v8 = vmul.f32 %v7515_v23, %v7545_v12  ;;  %v7563_v27 = vunpack.i.h.bf16 %v6303_v56  ;;  %v7565_v51 = vunpack.i.l.bf16 %v6303_v56  ;;  %v11682_v23 = vld [vmem:[#allocation28_spill] sm:$0xff]  ;;  %v11683_v39 = vld [vmem:[#allocation30_spill] sm:$0xff] }
  0xff   : > { %v3753_v19 = vpack.c.bf16 %v3633_v29, %v3625_v13  ;;  %v3755_v58 = vpack.c.bf16 %v3635_v53, %v3627_v50  ;;  %v3624_v57 = vmax.f32 %v3496_v55, 0.0  ;;  %v3632_v45 = vmax.f32 %v3504_v1, 0.0 }
 0x100   : > { %11668 = vst [vmem:[#allocation103_spill] sm:$0xff] %v7563_v27  ;;  %11669 = vst [vmem:[#allocation104_spill] sm:$0xff] %v7565_v51  ;;  %v3498_v44 = vadd.f32 %v3370_v63, %v3146_v43  ;;  %v3506_v18 = vadd.f32 %v3378_v8, %v3154_v14  ;;  %v7567_v31 = vunpack.i.h.bf16 %v6153_v37  ;;  %v7569_v62 = vunpack.i.l.bf16 %v6153_v37  ;;  %v6308_v56 = vpop.permute.xlu0 %6307  ;;  %v11672_v14 = vld [vmem:[#allocation9_spill] sm:$0xff]  ;;  %v11687_v27 = vld [vmem:[#allocation32_spill] sm:$0xff] }
 0x101   : > { %4628 = vmatprep.mubr.bf16.mxu1 %v3753_v19  ;;  %4741 = vmatprep.mubr.bf16.mxu0 %v3755_v58  ;;  %v1753_v4 = vadd.f32 %v7487_v60, %v1401_v30  ;;  %v1761_v13 = vadd.f32 %v7491_v52, %v1409_v38  ;;  %v3752_v29 = vpack.c.bf16 %v3632_v45, %v3624_v57  ;;  %v7577_v55 = vunpack.i.h.bf16 %v6308_v56  ;;  %v6159_v30 = vpop.permute.xlu1 %6158 }
 0x102   : > { %11670 = vst [vmem:[#allocation105_spill] sm:$0xff] %v7567_v31  ;;  %11671 = vst [vmem:[#allocation106_spill] sm:$0xff] %v7569_v62  ;;  %6352 = vset.pattern.permute.xlu1 %v11629_v41  ;;  %v3626_v50 = vmax.f32 %v3498_v44, 0.0  ;;  %v3634_v53 = vmax.f32 %v3506_v18, 0.0  ;;  %v2329_v43 = vmul.f32 %v7549_v26, %v7131_v9  ;;  %v7579_v1 = vunpack.i.l.bf16 %v6308_v56 }
 0x103   : > { %6354 = vperm.xlu1 %6352, %v11672_v14   ;;  %11673 = vst [vmem:[#allocation107_spill] sm:$0xff] %v7577_v55  ;;  %v2105_v63 = vadd.f32 %v7505_v36, %v1753_v4  ;;  %v2113_v60 = vadd.f32 %v7509_v32, %v1761_v13  ;;  %4629 = vmatmul.mubr.bf16.vlgmr.msra.gmra.mrb[0].mxu1 %v3752_v29  ;;  %v11675_v36 = vld [vmem:[#allocation78_spill] sm:$0xff]  ;;  %v7595_v37 = vunpack.i.h.bf16 %v6159_v30  ;;  %v7597_v57 = vunpack.i.l.bf16 %v6159_v30 }
 0x104   : > { %11674 = vst [vmem:[#allocation108_spill] sm:$0xff] %v7579_v1  ;;  %v3754_v52 = vpack.c.bf16 %v3634_v53, %v3626_v50  ;;  %v2337_v41 = vmul.f32 %v7547_v33, %v7131_v9  ;;  %v2681_v44 = vmul.f32 %v7569_v62, %v7134_v10  ;;  %v2689_v38 = vmul.f32 %v7567_v31, %v7134_v10  ;;  %v6325_v45 = vpop.permute.xlu0 %6324  ;;  %v11680_v53 = vld [vmem:[#allocation27_spill] sm:$0xff] }
 0x105   : > { %v2457_v8 = vadd.f32 %v2329_v43, %v2105_v63  ;;  %v3033_v19 = vmul.f32 %v7395_v16, %v7137_v11  ;;  %v3041_v58 = vmul.f32 %v11675_v36, %v7137_v11  ;;  %v3385_v32 = vmul.f32 %v7553_v15, %v7496_v46  ;;  %11676 = vst [vmem:[#allocation109_spill] sm:$0xff] %v7595_v37 }
 0x106   : > { %4742 = vmatmul.mubr.bf16.vlgmr.msra.gmra.mrb[0].mxu0 %v3754_v52  ;;  %11677 = vst [vmem:[#allocation110_spill] sm:$0xff] %v7597_v57  ;;  %v2465_v18 = vadd.f32 %v2337_v41, %v2113_v60  ;;  %v3393_v4 = vmul.f32 %v7551_v2, %v7496_v46  ;;  %v7602_v13 = vunpack.i.h.bf16 %v6325_v45  ;;  %v7604_v29 = vunpack.i.l.bf16 %v6325_v45  ;;  %v11681_v60 = vld [vmem:[#allocation29_spill] sm:$0xff]  ;;  %v11699_v46 = vld [vmem:[#allocation42_spill] sm:$0xff] }
 0x107   : > { %6358 = vset.pattern.permute.xlu1 %v11634_v6  ;;  %v2809_v50 = vadd.f32 %v2681_v44, %v2457_v8  ;;  %v529_v56 = vmul.f32 %v11645_v48, %v11680_v53  ;;  %v537_v63 = vmul.f32 %v11646_v59, %v11680_v53  ;;  %v923_v52 = vmul.f32 %v7319_v3, %v11681_v60 }
 0x108   : > { %11678 = vst [vmem:[#allocation111_spill] sm:$0xff] %v7602_v13  ;;  %11679 = vst [vmem:[#allocation112_spill] sm:$0xff] %v7604_v29  ;;  %6360 = vperm.xlu1 %6358, %v7058_v47   ;;  %v2817_v43 = vadd.f32 %v2689_v38, %v2465_v18  ;;  %v931_v41 = vmul.f32 %v7317_v7, %v11681_v60  ;;  %v1275_v44 = vmul.f32 %v7323_v17, %v11683_v39  ;;  %v6170_v13 = vpop.permute.xlu1 %6169  ;;  %v11684_v29 = vld [vmem:[#allocation31_spill] sm:$0xff] }
 0x109   : > { %v3161_v30 = vadd.f32 %v3033_v19, %v2809_v50  ;;  %v699_v45 = vadd.f32 %v11682_v23, %v529_v56  ;;  %v1283_v8 = vmul.f32 %v7321_v0, %v11683_v39  ;;  %v707_v18 = vadd.f32 %v11682_v23, %v537_v63  ;;  %v11688_v23 = vld [vmem:[#allocation33_spill] sm:$0xff] }
 0x10a   : > { %v3169_v38 = vadd.f32 %v3041_v58, %v2817_v43  ;;  %v1627_v55 = vmul.f32 %v7399_v22, %v11684_v29  ;;  %v1635_v1 = vmul.f32 %v7397_v24, %v11684_v29  ;;  %v7625_v60 = vunpack.i.h.bf16 %v6170_v13 }
 0x10b   : > { %v7627_v19 = vunpack.i.l.bf16 %v6170_v13  ;;  %v3513_v50 = vadd.f32 %v3385_v32, %v3161_v30  ;;  %v1051_v56 = vadd.f32 %v923_v52, %v699_v45  ;;  %v1059_v39 = vadd.f32 %v931_v41, %v707_v18  ;;  %v11690_v18 = vld [vmem:[#allocation35_spill] sm:$0xff] }
 0x10c   : > { %11685 = vst [vmem:[#allocation113_spill] sm:$0xff] %v7625_v60  ;;  %6390 = vset.pattern.permute.xlu1 %v11609_v61  ;;  %v3521_v53 = vadd.f32 %v3393_v4, %v3169_v38  ;;  %v1979_v58 = vmul.f32 %v7467_v5, %v11687_v27  ;;  %v1987_v43 = vmul.f32 %v7465_v21, %v11687_v27  ;;  %v11689_v4 = vld [vmem:[#allocation34_spill] sm:$0xff]  ;;  %v6176_v45 = vpop.permute.xlu1 %6175 }
 0x10d   : > { %11686 = vst [vmem:[#allocation114_spill] sm:$0xff] %v7627_v19  ;;  %6392 = vperm.xlu1 %6390, %v11672_v14   ;;  %v3641_v63 = vmax.f32 %v3513_v50, 0.0  ;;  %v1403_v29 = vadd.f32 %v1275_v44, %v1051_v56  ;;  %v2331_v13 = vmul.f32 %v7549_v26, %v11688_v23  ;;  %v2339_v32 = vmul.f32 %v7547_v33, %v11688_v23  ;;  %v11694_v27 = vld [vmem:[#allocation38_spill] sm:$0xff] }
 0x10e   : > { %v3649_v52 = vmax.f32 %v3521_v53, 0.0  ;;  %v1411_v61 = vadd.f32 %v1283_v8, %v1059_v39  ;;  %v2683_v41 = vmul.f32 %v7569_v62, %v11689_v4  ;;  %v2691_v30 = vmul.f32 %v7567_v31, %v11689_v4 }
 0x10f   : > { %v1755_v38 = vadd.f32 %v1627_v55, %v1403_v29  ;;  %v3035_v50 = vmul.f32 %v7395_v16, %v11690_v18  ;;  %v3043_v44 = vmul.f32 %v11675_v36, %v11690_v18  ;;  %v3387_v56 = vmul.f32 %v7553_v15, %v7501_v25  ;;  %v11693_v55 = vld [vmem:[#allocation36_spill] sm:$0xff] }
 0x110   : > { %v7649_v60 = vunpack.i.h.bf16 %v6176_v45  ;;  %v7651_v39 = vunpack.i.l.bf16 %v6176_v45  ;;  %v3761_v53 = vpack.c.bf16 %v3649_v52, %v3641_v63  ;;  %v1763_v8 = vadd.f32 %v1635_v1, %v1411_v61  ;;  %v11696_v61 = vld [vmem:[#allocation37_spill] sm:$0xff] }
 0x111   : > { %v2107_v19 = vadd.f32 %v1979_v58, %v1755_v38  ;;  %v3395_v4 = vmul.f32 %v7551_v2, %v7501_v25  ;;  %v526_v29 = vmul.f32 %v11645_v48, %v11693_v55  ;;  %v534_v23 = vmul.f32 %v11646_v59, %v11693_v55  ;;  %6396 = vset.pattern.permute.xlu1 %v11651_v20  ;;  %v11695_v58 = vld [vmem:[#allocation39_spill] sm:$0xff] }
 0x112   : > { %11691 = vst [vmem:[#allocation115_spill] sm:$0xff] %v7649_v60  ;;  %11692 = vst [vmem:[#allocation116_spill] sm:$0xff] %v7651_v39  ;;  %4638 = vmatprep.mubr.bf16.mxu1 %v3761_v53  ;;  %v2115_v18 = vadd.f32 %v1987_v43, %v1763_v8  ;;  %v920_v45 = vmul.f32 %v7319_v3, %v11694_v27  ;;  %v928_v1 = vmul.f32 %v7317_v7, %v11694_v27  ;;  %v11697_v43 = vld [vmem:[#allocation40_spill] sm:$0xff]  ;;  %v11698_v27 = vld [vmem:[#allocation41_spill] sm:$0xff] }
 0x113   : > { %v1272_v63 = vmul.f32 %v7323_v17, %v11695_v58  ;;  %v2459_v52 = vadd.f32 %v2331_v13, %v2107_v19  ;;  %v696_v38 = vadd.f32 %v11696_v61, %v526_v29  ;;  %v704_v25 = vadd.f32 %v11696_v61, %v534_v23  ;;  %6398 = vperm.xlu1 %6396, %v7058_v47   ;;  %v7677_v19 = vpop.permute.xlu1 %6181 }
 0x114   : > { %v1280_v55 = vmul.f32 %v7321_v0, %v11695_v58  ;;  %v2467_v20 = vadd.f32 %v2339_v32, %v2115_v18  ;;  %v1624_v53 = vmul.f32 %v7399_v22, %v11697_v43  ;;  %v1632_v8 = vmul.f32 %v7397_v24, %v11697_v43 }
 0x115   : > { %v1976_v51 = vmul.f32 %v7467_v5, %v11698_v27  ;;  %v2811_v13 = vadd.f32 %v2683_v41, %v2459_v52  ;;  %v1048_v29 = vadd.f32 %v920_v45, %v696_v38  ;;  %v1056_v23 = vadd.f32 %v928_v1, %v704_v25 }
 0x116   : > { %v1984_v58 = vmul.f32 %v7465_v21, %v11698_v27  ;;  %v2819_v61 = vadd.f32 %v2691_v30, %v2467_v20  ;;  %v2328_v32 = vmul.f32 %v7549_v26, %v11699_v46  ;;  %v2336_v18 = vmul.f32 %v7547_v33, %v11699_v46 }
 0x117   : > { %v2680_v43 = vmul.f32 %v7569_v62, %v7195_v34  ;;  %v3163_v11 = vadd.f32 %v3035_v50, %v2811_v13  ;;  %v1400_v10 = vadd.f32 %v1272_v63, %v1048_v29  ;;  %v1408_v9 = vadd.f32 %v1280_v55, %v1056_v23  ;;  %6413 = vset.pattern.permute.xlu1 %v11619_v40  ;;  %v7699_v38 = vpop.permute.xlu1 %6187  ;;  %v11701_v29 = vld [vmem:[#allocation47_spill] sm:$0xff] }
 0x118   : > { %v2688_v41 = vmul.f32 %v7567_v31, %v7195_v34  ;;  %v3171_v25 = vadd.f32 %v3043_v44, %v2819_v61  ;;  %v3032_v30 = vmul.f32 %v7395_v16, %v7199_v35  ;;  %v3040_v45 = vmul.f32 %v11675_v36, %v7199_v35  ;;  %6415 = vperm.xlu1 %6413, %v7058_v47   ;;  %v11700_v61 = vld [vmem:[#allocation45_spill] sm:$0xff] }
 0x119   : > { %v3384_v1 = vmul.f32 %v7553_v15, %v7522_v54  ;;  %v3515_v50 = vadd.f32 %v3387_v56, %v3163_v11  ;;  %v1752_v63 = vadd.f32 %v1624_v53, %v1400_v10  ;;  %v1760_v55 = vadd.f32 %v1632_v8, %v1408_v9  ;;  %v11702_v56 = vld [vmem:[#allocation46_spill] sm:$0xff] }
 0x11a   : > { %v3392_v52 = vmul.f32 %v7551_v2, %v7522_v54  ;;  %v3523_v44 = vadd.f32 %v3395_v4, %v3171_v25  ;;  %v528_v20 = vmul.f32 %v11645_v48, %v11700_v61  ;;  %v536_v13 = vmul.f32 %v11646_v59, %v11700_v61 }
 0x11b   : > { %v922_v23 = vmul.f32 %v7319_v3, %v11701_v29  ;;  %v3643_v35 = vmax.f32 %v3515_v50, 0.0  ;;  %v2104_v34 = vadd.f32 %v1976_v51, %v1752_v63  ;;  %v2112_v11 = vadd.f32 %v1984_v58, %v1760_v55  ;;  %v6366_v58 = vpop.permute.xlu0 %6365 }
 0x11c   : > { %v930_v9 = vmul.f32 %v7317_v7, %v11701_v29  ;;  %v3651_v10 = vmax.f32 %v3523_v44, 0.0  ;;  %v698_v53 = vadd.f32 %v11702_v56, %v528_v20  ;;  %v706_v4 = vadd.f32 %v11702_v56, %v536_v13  ;;  %6419 = vset.pattern.permute.xlu1 %v11624_v49  ;;  %v6194_v13 = vpop.permute.xlu1 %6193 }
 0x11d   : > { %v1274_v8 = vmul.f32 %v7323_v17, %v7212_v28  ;;  %v2456_v25 = vadd.f32 %v2328_v32, %v2104_v34  ;;  %v2464_v59 = vadd.f32 %v2336_v18, %v2112_v11  ;;  %v1282_v50 = vmul.f32 %v7321_v0, %v7212_v28  ;;  %6421 = vperm.xlu1 %6419, %v11672_v14   ;;  %v11703_v34 = vld [vmem:[#allocation50_spill] sm:$0xff]  ;;  %v11704_v0 = vld [vmem:[#allocation51_spill] sm:$0xff] }
 0x11e   : > { %v1626_v51 = vmul.f32 %v7399_v22, %v7215_v42  ;;  %v3763_v63 = vpack.c.bf16 %v3651_v10, %v3643_v35  ;;  %v1050_v55 = vadd.f32 %v922_v23, %v698_v53  ;;  %v1058_v44 = vadd.f32 %v930_v9, %v706_v4  ;;  %v11705_v53 = vld [vmem:[#allocation52_spill] sm:$0xff] }
 0x11f   : > { %v1634_v20 = vmul.f32 %v7397_v24, %v7215_v42  ;;  %v2808_v17 = vadd.f32 %v2680_v43, %v2456_v25  ;;  %v2816_v49 = vadd.f32 %v2688_v41, %v2464_v59  ;;  %v1978_v32 = vmul.f32 %v7467_v5, %v11703_v34  ;;  %v11733_v24 = vld [vmem:[#allocation23_spill] sm:$0xff] }
 0x120   : > { %v1986_v18 = vmul.f32 %v7465_v21, %v11703_v34  ;;  %4751 = vmatprep.mubr.bf16.mxu0 %v3763_v63  ;;  %v1402_v11 = vadd.f32 %v1274_v8, %v1050_v55  ;;  %v1410_v22 = vadd.f32 %v1282_v50, %v1058_v44  ;;  %v2330_v35 = vmul.f32 %v7549_v26, %v11704_v0  ;;  %v11706_v8 = vld [vmem:[#allocation53_spill] sm:$0xff]  ;;  %v6372_v55 = vpop.permute.xlu0 %6371  ;;  %v11732_v26 = vld [vmem:[#allocation22_spill] sm:$0xff] }
 0x121   : > { %v2338_v23 = vmul.f32 %v7547_v33, %v11704_v0  ;;  %v3160_v9 = vadd.f32 %v3032_v30, %v2808_v17  ;;  %v3168_v10 = vadd.f32 %v3040_v45, %v2816_v49  ;;  %v2682_v59 = vmul.f32 %v7569_v62, %v11705_v53  ;;  %6430 = vset.pattern.permute.xlu1 %v11634_v6  ;;  %v6200_v6 = vpop.permute.xlu1 %6199  ;;  %v11731_v33 = vld [vmem:[#allocation70_spill] sm:$0xff] }
 0x122   : > { %v2690_v43 = vmul.f32 %v7567_v31, %v11705_v53  ;;  %v1754_v41 = vadd.f32 %v1626_v51, %v1402_v11  ;;  %v1762_v4 = vadd.f32 %v1634_v20, %v1410_v22  ;;  %v3034_v25 = vmul.f32 %v7395_v16, %v11706_v8  ;;  %6432 = vperm.xlu1 %6430, %v11672_v14   ;;  %v11730_v31 = vld [vmem:[#allocation71_spill] sm:$0xff] }
 0x123   : > { %v3042_v50 = vmul.f32 %v11675_v36, %v11706_v8  ;;  %v3512_v17 = vadd.f32 %v3384_v1, %v3160_v9  ;;  %v3520_v30 = vadd.f32 %v3392_v52, %v3168_v10  ;;  %v3386_v45 = vmul.f32 %v7553_v15, %v7545_v12 }
 0x124   : > { %v3394_v63 = vmul.f32 %v7551_v2, %v7545_v12  ;;  %v2106_v51 = vadd.f32 %v1978_v32, %v1754_v41  ;;  %v2114_v22 = vadd.f32 %v1986_v18, %v1762_v4  ;;  %v7743_v44 = vunpack.i.h.bf16 %v6366_v58 }
 0x125   : > { %v7745_v20 = vunpack.i.l.bf16 %v6366_v58  ;;  %v3640_v49 = vmax.f32 %v3512_v17, 0.0  ;;  %v3648_v11 = vmax.f32 %v3520_v30, 0.0  ;;  %v7748_v36 = vunpack.i.h.bf16 %v7677_v19  ;;  %v6211_v30 = vpop.permute.xlu1 %6210 }
 0x126   : > { %11707 = vst [vmem:[#allocation41_spill] sm:$0xff] %v7743_v44  ;;  %v7751_v1 = vunpack.i.l.bf16 %v7677_v19  ;;  %v2458_v52 = vadd.f32 %v2330_v35, %v2106_v51  ;;  %v2466_v9 = vadd.f32 %v2338_v23, %v2114_v22  ;;  %v7753_v10 = vunpack.i.h.bf16 %v6372_v55  ;;  %v11736_v44 = vld [vmem:[#allocation24_spill] sm:$0xff] }
 0x127   : > { %11708 = vst [vmem:[#allocation42_spill] sm:$0xff] %v7745_v20  ;;  %11709 = vst [vmem:[#allocation45_spill] sm:$0xff] %v7748_v36  ;;  %v7755_v2 = vunpack.i.l.bf16 %v6372_v55  ;;  %v11713_v32 = vmov 8   ;;  %v3760_v18 = vpack.c.bf16 %v3648_v11, %v3640_v49  ;;  %v7759_v58 = vunpack.i.h.bf16 %v7699_v38  ;;  %v11723_v49 = vld [vmem:[#allocation85_spill] sm:$0xff] }
 0x128   : > { %11710 = vst [vmem:[#allocation117_spill] sm:$0xff] %v7751_v1  ;;  %11711 = vst [vmem:[#allocation118_spill] sm:$0xff] %v7753_v10  ;;  %6436 = vset.pattern.permute.xlu1 %v11713_v32  ;;  %v7762_v41 = vunpack.i.l.bf16 %v7699_v38  ;;  %v7764_v4 = vunpack.i.h.bf16 %v6194_v13  ;;  %v2810_v19 = vadd.f32 %v2682_v59, %v2458_v52  ;;  %v2818_v35 = vadd.f32 %v2690_v43, %v2466_v9  ;;  %v11722_v38 = vld [vmem:[#allocation18_spill] sm:$0xff]  ;;  %v11726_v43 = vld [vmem:[#allocation95_spill] sm:$0xff] }
 0x129   : > { %11712 = vst [vmem:[#allocation119_spill] sm:$0xff] %v7755_v2  ;;  %11714 = vst [vmem:[#allocation120_spill] sm:$0xff] %v7759_v58  ;;  %6438 = vperm.xlu1 %6436, %v7058_v47   ;;  %v7767_v23 = vunpack.i.l.bf16 %v6194_v13  ;;  %v7769_v17 = vunpack.i.h.bf16 %v6200_v6  ;;  %4639 = vmatmul.mubr.bf16.gmra.mrb[4].mxu1 %v3760_v18  ;;  %v7771_v55 = vunpack.i.l.bf16 %v6200_v6  ;;  %v7773_v51 = vunpack.i.h.bf16 %v6211_v30  ;;  %v11724_v47 = vld [vmem:[#allocation84_spill] sm:$0xff]  ;;  %v11727_v9 = vld [vmem:[#allocation19_spill] sm:$0xff]  ;;  %v6217_v21 = vpop.permute.xlu1 %6216 }
 0x12a   : > { %11715 = vst [vmem:[#allocation121_spill] sm:$0xff] %v7762_v41  ;;  %11716 = vst [vmem:[#allocation122_spill] sm:$0xff] %v7764_v4  ;;  %v7775_v22 = vunpack.i.l.bf16 %v6211_v30  ;;  %v543_v11 = vmul.f32 %v11723_v49, %v11722_v38  ;;  %v3162_v32 = vadd.f32 %v3034_v25, %v2810_v19  ;;  %v3170_v15 = vadd.f32 %v3042_v50, %v2818_v35  ;;  %v11725_v13 = vld [vmem:[#allocation20_spill] sm:$0xff]  ;;  %v11728_v18 = vld [vmem:[#allocation94_spill] sm:$0xff] }
 0x12b   : > { %11717 = vst [vmem:[#allocation123_spill] sm:$0xff] %v7767_v23  ;;  %11718 = vst [vmem:[#allocation124_spill] sm:$0xff] %v7769_v17  ;;  %v551_v59 = vmul.f32 %v11724_v47, %v11722_v38  ;;  %v937_v52 = vmul.f32 %v11726_v43, %v11725_v13  ;;  %v945_v16 = vmul.f32 %v11728_v18, %v11725_v13  ;;  %v11729_v30 = vld [vmem:[#allocation21_spill] sm:$0xff]  ;;  %v11743_v17 = vld [vmem:[#allocation104_spill] sm:$0xff] }
 0x12c   : > { %11719 = vst [vmem:[#allocation125_spill] sm:$0xff] %v7771_v55  ;;  %11720 = vst [vmem:[#allocation126_spill] sm:$0xff] %v7773_v51  ;;  %v713_v6 = vadd.f32 %v11727_v9, %v543_v11  ;;  %v1289_v62 = vmul.f32 %v11730_v31, %v11729_v30  ;;  %v1297_v25 = vmul.f32 %v11731_v33, %v11729_v30  ;;  %v11737_v51 = vld [vmem:[#allocation25_spill] sm:$0xff]  ;;  %v11745_v55 = vld [vmem:[#allocation27_spill] sm:$0xff] }
 0x12d   : > { %11721 = vst [vmem:[#allocation127_spill] sm:$0xff] %v7775_v22  ;;  %6448 = vset.pattern.permute.xlu1 %v11619_v40  ;;  %v3514_v50 = vadd.f32 %v3386_v45, %v3162_v32  ;;  %v3522_v19 = vadd.f32 %v3394_v63, %v3170_v15  ;;  %v721_v35 = vadd.f32 %v11727_v9, %v551_v59  ;;  %v7801_v63 = vunpack.i.h.bf16 %v6217_v21  ;;  %v11746_v10 = vld [vmem:[#allocation29_spill] sm:$0xff]  ;;  %v11749_v2 = vld [vmem:[#allocation28_spill] sm:$0xff]  ;;  %v11750_v1 = vld [vmem:[#allocation31_spill] sm:$0xff] }
 0x12e   : > { %6450 = vperm.xlu1 %6448, %v11672_v14   ;;  %v1641_v40 = vmul.f32 %v7597_v57, %v11732_v26  ;;  %v1065_v11 = vadd.f32 %v937_v52, %v713_v6  ;;  %v1649_v5 = vmul.f32 %v7595_v37, %v11732_v26  ;;  %v1993_v7 = vmul.f32 %v7651_v39, %v11733_v24  ;;  %v6564_v9 = vld [vmem:[#allocation3 + $0x204] ss:$8 sps:$4 sm:$0xff]   ;;  %v11751_v38 = vld [vmem:[#allocation32_spill] sm:$0xff] }
 0x12f   : > { %v2001_v3 = vmul.f32 %v7649_v60, %v11733_v24  ;;  %v3642_v45 = vmax.f32 %v3514_v50, 0.0  ;;  %v3650_v15 = vmax.f32 %v3522_v19, 0.0  ;;  %11734 = vst [vmem:[#allocation128_spill] sm:$0xff] %v7801_v63  ;;  %v7803_v32 = vunpack.i.l.bf16 %v6217_v21  ;;  %v11738_v19 = vld [vmem:[#allocation26_spill] sm:$0xff]  ;;  %v11739_v24 = vld [vmem:[#allocation83_spill] sm:$0xff]  ;;  %4822 = vmatprep.subr.bf16.mxu0 %v6564_v9 }
 0x130   : > { %v1073_v59 = vadd.f32 %v945_v16, %v721_v35  ;;  %v1417_v48 = vadd.f32 %v1289_v62, %v1065_v11  ;;  %v2345_v52 = vmul.f32 %v7762_v41, %v11736_v44  ;;  %v2353_v6 = vmul.f32 %v7759_v58, %v11736_v44  ;;  %v11741_v35 = vld [vmem:[#allocation82_spill] sm:$0xff] }
 0x131   : > { %11735 = vst [vmem:[#allocation129_spill] sm:$0xff] %v7803_v32  ;;  %v3762_v20 = vpack.c.bf16 %v3650_v15, %v3642_v45  ;;  %v2697_v22 = vmul.f32 %v7767_v23, %v11737_v51  ;;  %v2705_v50 = vmul.f32 %v7764_v4, %v11737_v51  ;;  %v3049_v63 = vmul.f32 %v11739_v24, %v11738_v19  ;;  %v11742_v32 = vld [vmem:[#allocation92_spill] sm:$0xff]  ;;  %v11744_v45 = vld [vmem:[#allocation103_spill] sm:$0xff] }
 0x132   : > { %v11740_v21 = vmov 7   ;;  %v1425_v16 = vadd.f32 %v1297_v25, %v1073_v59  ;;  %v1769_v62 = vadd.f32 %v1641_v40, %v1417_v48  ;;  %v3057_v11 = vmul.f32 %v11741_v35, %v11738_v19  ;;  %v7832_v19 = vpop.permute.xlu1 %6222 }
 0x133   : > { %6454 = vset.pattern.permute.xlu1 %v11740_v21  ;;  %v3401_v44 = vmul.f32 %v11743_v17, %v11742_v32  ;;  %4752 = vmatmul.mubr.bf16.gmra.mrb[4].mxu0 %v3762_v20  ;;  %v3409_v15 = vmul.f32 %v11744_v45, %v11742_v32  ;;  %v545_v51 = vmul.f32 %v11723_v49, %v11745_v55  ;;  %v11747_v21 = vld [vmem:[#allocation30_spill] sm:$0xff] }
 0x134   : > { %v553_v26 = vmul.f32 %v11724_v47, %v11745_v55  ;;  %v939_v25 = vmul.f32 %v11726_v43, %v11746_v10  ;;  %v1777_v48 = vadd.f32 %v1649_v5, %v1425_v16  ;;  %v2121_v40 = vadd.f32 %v1993_v7, %v1769_v62  ;;  %11748 = vst [vmem:[#allocation130_spill] sm:$0xff] %v7832_v19  ;;  %v6562_v32 = vld [vmem:[#allocation3 + $0x200] ss:$8 sps:$4 sm:$0xff]   ;;  %v6567_v16 = vld [vmem:[#allocation3 + $0x304] ss:$8 sps:$4 sm:$0xff]  }
 0x135   : > { %v947_v59 = vmul.f32 %v11728_v18, %v11746_v10  ;;  %v1291_v20 = vmul.f32 %v11730_v31, %v11747_v21  ;;  %v715_v30 = vadd.f32 %v11749_v2, %v545_v51  ;;  %v1299_v55 = vmul.f32 %v11731_v33, %v11747_v21  ;;  %v6565_v5 = vld [vmem:[#allocation3 + $0x300] ss:$8 sps:$4 sm:$0xff]   ;;  %4823 = vmatpush1.bf16.msra.mxu0 %v6562_v32 }
 0x136   : > { %v723_v36 = vadd.f32 %v11749_v2, %v553_v26  ;;  %v1643_v7 = vmul.f32 %v7597_v57, %v11750_v1  ;;  %v2129_v62 = vadd.f32 %v2001_v3, %v1777_v48  ;;  %v2473_v10 = vadd.f32 %v2345_v52, %v2121_v40  ;;  %v11752_v2 = vld [vmem:[#allocation33_spill] sm:$0xff]  ;;  %v11753_v52 = vld [vmem:[#allocation34_spill] sm:$0xff]  ;;  %5828 = vmatprep.subr.bf16.mxu1 %v6567_v16 }
 0x137   : > { %v1651_v13 = vmul.f32 %v7595_v37, %v11750_v1  ;;  %v1995_v14 = vmul.f32 %v7651_v39, %v11751_v38  ;;  %v1067_v51 = vadd.f32 %v939_v25, %v715_v30  ;;  %v2003_v26 = vmul.f32 %v7649_v60, %v11751_v38  ;;  %v11754_v30 = vld [vmem:[#allocation35_spill] sm:$0xff]  ;;  %5844 = vmatpush1.bf16.msra.mxu1 %v6565_v5 }
 0x138   : > { %v1075_v19 = vadd.f32 %v947_v59, %v723_v36  ;;  %v2347_v21 = vmul.f32 %v7762_v41, %v11752_v2  ;;  %v2481_v12 = vadd.f32 %v2353_v6, %v2129_v62  ;;  %v2825_v8 = vadd.f32 %v2697_v22, %v2473_v10  ;;  %v11755_v22 = vld [vmem:[#allocation93_spill] sm:$0xff]  ;;  %v7860_v62 = vpop.permute.xlu1 %6228 }
 0x139   : > { %v2355_v3 = vmul.f32 %v7759_v58, %v11752_v2  ;;  %v2699_v48 = vmul.f32 %v7767_v23, %v11753_v52  ;;  %v1419_v40 = vadd.f32 %v1291_v20, %v1067_v51  ;;  %v2707_v36 = vmul.f32 %v7764_v4, %v11753_v52  ;;  %v11758_v2 = vld [vmem:[#allocation37_spill] sm:$0xff] }
 0x13a   : > { %v1427_v9 = vadd.f32 %v1299_v55, %v1075_v19  ;;  %v3051_v25 = vmul.f32 %v11739_v24, %v11754_v30  ;;  %v2833_v59 = vadd.f32 %v2705_v50, %v2481_v12  ;;  %v3177_v32 = vadd.f32 %v3049_v63, %v2825_v8  ;;  %v11756_v19 = vld [vmem:[#allocation36_spill] sm:$0xff]  ;;  %v11757_v8 = vld [vmem:[#allocation38_spill] sm:$0xff] }
 0x13b   : > { %v3059_v10 = vmul.f32 %v11741_v35, %v11754_v30  ;;  %v3403_v6 = vmul.f32 %v11743_v17, %v11755_v22  ;;  %v1771_v16 = vadd.f32 %v1643_v7, %v1419_v40  ;;  %v3411_v55 = vmul.f32 %v11744_v45, %v11755_v22  ;;  %v11759_v22 = vld [vmem:[#allocation39_spill] sm:$0xff] }
 0x13c   : > { %v1779_v20 = vadd.f32 %v1651_v13, %v1427_v9  ;;  %v542_v51 = vmul.f32 %v11723_v49, %v11756_v19  ;;  %v3185_v52 = vadd.f32 %v3057_v11, %v2833_v59  ;;  %v3529_v5 = vadd.f32 %v3401_v44, %v3177_v32 }
 0x13d   : > { %v550_v12 = vmul.f32 %v11724_v47, %v11756_v19  ;;  %v936_v63 = vmul.f32 %v11726_v43, %v11757_v8  ;;  %v2123_v50 = vadd.f32 %v1995_v14, %v1771_v16  ;;  %v944_v13 = vmul.f32 %v11728_v18, %v11757_v8  ;;  %v11760_v16 = vld [vmem:[#allocation40_spill] sm:$0xff] }
 0x13e   : > { %v2131_v30 = vadd.f32 %v2003_v26, %v1779_v20  ;;  %v712_v38 = vadd.f32 %v11758_v2, %v542_v51  ;;  %v3537_v7 = vadd.f32 %v3409_v15, %v3185_v52  ;;  %v3657_v40 = vmax.f32 %v3529_v5, 0.0  ;;  %v7882_v52 = vpop.permute.xlu1 %6234 }
 0x13f   : > { %v720_v9 = vadd.f32 %v11758_v2, %v550_v12  ;;  %v1288_v44 = vmul.f32 %v11730_v31, %v11759_v22  ;;  %v2475_v11 = vadd.f32 %v2347_v21, %v2123_v50  ;;  %v1296_v19 = vmul.f32 %v11731_v33, %v11759_v22 }
 0x140   : > { %v2483_v59 = vadd.f32 %v2355_v3, %v2131_v30  ;;  %v1064_v32 = vadd.f32 %v936_v63, %v712_v38  ;;  %v3665_v14 = vmax.f32 %v3537_v7, 0.0  ;;  %v1640_v20 = vmul.f32 %v7597_v57, %v11760_v16 }
 0x141   : > { %v1072_v26 = vadd.f32 %v944_v13, %v720_v9  ;;  %v1648_v15 = vmul.f32 %v7595_v37, %v11760_v16  ;;  %v2827_v51 = vadd.f32 %v2699_v48, %v2475_v11  ;;  %v1992_v21 = vmul.f32 %v7651_v39, %v11698_v27 }
 0x142   : > { %v2835_v5 = vadd.f32 %v2707_v36, %v2483_v59  ;;  %v1416_v12 = vadd.f32 %v1288_v44, %v1064_v32  ;;  %v3769_v38 = vpack.c.bf16 %v3665_v14, %v3657_v40  ;;  %v2000_v30 = vmul.f32 %v7649_v60, %v11698_v27  ;;  %v11761_v36 = vld [vmem:[#allocation43_spill] sm:$0xff]  ;;  %v11762_v40 = vld [vmem:[#allocation44_spill] sm:$0xff] }
 0x143   : > { %v1424_v3 = vadd.f32 %v1296_v19, %v1072_v26  ;;  %v2344_v63 = vmul.f32 %v7762_v41, %v11699_v46  ;;  %v3179_v50 = vadd.f32 %v3051_v25, %v2827_v51  ;;  %v2352_v9 = vmul.f32 %v7759_v58, %v11699_v46  ;;  %v6241_v51 = vpop.permute.xlu1 %6240 }
 0x144   : > { %v3187_v13 = vadd.f32 %v3059_v10, %v2835_v5  ;;  %v1768_v7 = vadd.f32 %v1640_v20, %v1416_v12  ;;  %4648 = vmatprep.mubr.bf16.mxu1 %v3769_v38  ;;  %v2696_v44 = vmul.f32 %v7767_v23, %v11761_v36  ;;  %v2704_v19 = vmul.f32 %v7764_v4, %v11761_v36 }
 0x145   : > { %v1776_v48 = vadd.f32 %v1648_v15, %v1424_v3  ;;  %v3048_v11 = vmul.f32 %v11739_v24, %v11762_v40  ;;  %v3531_v59 = vadd.f32 %v3403_v6, %v3179_v50  ;;  %v3056_v25 = vmul.f32 %v11741_v35, %v11762_v40 }
 0x146   : > { %v3539_v32 = vadd.f32 %v3411_v55, %v3187_v13  ;;  %v2120_v14 = vadd.f32 %v1992_v21, %v1768_v7  ;;  %v3400_v26 = vmul.f32 %v11743_v17, %v7522_v54  ;;  %v3408_v20 = vmul.f32 %v11744_v45, %v7522_v54 }
 0x147   : > { %v2128_v10 = vadd.f32 %v2000_v30, %v1776_v48  ;;  %v544_v15 = vmul.f32 %v11723_v49, %v11700_v61  ;;  %v3659_v5 = vmax.f32 %v3531_v59, 0.0  ;;  %v552_v6 = vmul.f32 %v11724_v47, %v11700_v61  ;;  %v11795_v47 = vld [vmem:[#allocation129_spill] sm:$0xff] }
 0x148   : > { %v3667_v12 = vmax.f32 %v3539_v32, 0.0  ;;  %v2472_v38 = vadd.f32 %v2344_v63, %v2120_v14  ;;  %v938_v3 = vmul.f32 %v11726_v43, %v11701_v29  ;;  %v946_v30 = vmul.f32 %v11728_v18, %v11701_v29  ;;  %v11794_v43 = vld [vmem:[#allocation23_spill] sm:$0xff] }
 0x149   : > { %v2480_v55 = vadd.f32 %v2352_v9, %v2128_v10  ;;  %v714_v21 = vadd.f32 %v11702_v56, %v544_v15  ;;  %v722_v13 = vadd.f32 %v11702_v56, %v552_v6  ;;  %v1290_v7 = vmul.f32 %v11730_v31, %v7212_v28  ;;  %v11793_v31 = vld [vmem:[#allocation124_spill] sm:$0xff] }
 0x14a   : > { %v3771_v54 = vpack.c.bf16 %v3667_v12, %v3659_v5  ;;  %v2824_v50 = vadd.f32 %v2696_v44, %v2472_v38  ;;  %v1298_v9 = vmul.f32 %v11731_v33, %v7212_v28  ;;  %v1642_v59 = vmul.f32 %v7597_v57, %v7215_v42  ;;  %v6252_v38 = vpop.permute.xlu1 %6251  ;;  %v11791_v33 = vld [vmem:[#allocation22_spill] sm:$0xff] }
 0x14b   : > { %v2832_v63 = vadd.f32 %v2704_v19, %v2480_v55  ;;  %v1066_v48 = vadd.f32 %v938_v3, %v714_v21  ;;  %v1074_v14 = vadd.f32 %v946_v30, %v722_v13  ;;  %v1650_v10 = vmul.f32 %v7595_v37, %v7215_v42  ;;  %v11812_v42 = vld [vmem:[#allocation34_spill] sm:$0xff] }
 0x14c   : > { %4761 = vmatprep.mubr.bf16.mxu0 %v3771_v54  ;;  %v3176_v32 = vadd.f32 %v3048_v11, %v2824_v50  ;;  %v1994_v44 = vmul.f32 %v7651_v39, %v11703_v34  ;;  %v2002_v19 = vmul.f32 %v7649_v60, %v11703_v34  ;;  %v2346_v12 = vmul.f32 %v7762_v41, %v11704_v0  ;;  %v11763_v54 = vld [vmem:[#allocation53_spill] sm:$0xff]  ;;  %v11790_v39 = vld [vmem:[#allocation118_spill] sm:$0xff] }
 0x14d   : > { %v3184_v15 = vadd.f32 %v3056_v25, %v2832_v63  ;;  %v1418_v5 = vadd.f32 %v1290_v7, %v1066_v48  ;;  %v1426_v55 = vadd.f32 %v1298_v9, %v1074_v14  ;;  %v2354_v11 = vmul.f32 %v7759_v58, %v11704_v0  ;;  %v11764_v63 = vld [vmem:[#allocation98_spill] sm:$0xff]  ;;  %v6377_v9 = vpop.permute.xlu0 %6376  ;;  %v11788_v58 = vld [vmem:[#allocation119_spill] sm:$0xff] }
 0x14e   : > { %v3528_v6 = vadd.f32 %v3400_v26, %v3176_v32  ;;  %v2698_v21 = vmul.f32 %v7767_v23, %v11705_v53  ;;  %v2706_v25 = vmul.f32 %v7764_v4, %v11705_v53  ;;  %v3050_v50 = vmul.f32 %v11739_v24, %v11763_v54  ;;  %v11784_v4 = vld [vmem:[#allocation20_spill] sm:$0xff] }
 0x14f   : > { %v3536_v3 = vadd.f32 %v3408_v20, %v3184_v15  ;;  %v1770_v30 = vadd.f32 %v1642_v59, %v1418_v5  ;;  %v1778_v7 = vadd.f32 %v1650_v10, %v1426_v55  ;;  %v3058_v26 = vmul.f32 %v11741_v35, %v11763_v54  ;;  %v11765_v15 = vld [vmem:[#allocation130_spill] sm:$0xff]  ;;  %v11768_v55 = vld [vmem:[#allocation9_spill] sm:$0xff]  ;;  %v11810_v53 = vld [vmem:[#allocation32_spill] sm:$0xff] }
 0x150   : > { %v3656_v13 = vmax.f32 %v3528_v6, 0.0  ;;  %v3402_v48 = vmul.f32 %v11743_v17, %v11764_v63  ;;  %v3410_v20 = vmul.f32 %v11744_v45, %v11764_v63  ;;  %v7943_v5 = vunpack.i.h.bf16 %v11765_v15  ;;  %6456 = vperm.xlu1 %6454, %v11768_v55   ;;  %6462 = vperm.xlu0 %6460, %v11768_v55   ;;  %v11781_v55 = vld [vmem:[#allocation18_spill] sm:$0xff] }
 0x151   : > { %v3664_v32 = vmax.f32 %v3536_v3, 0.0  ;;  %v2122_v14 = vadd.f32 %v1994_v44, %v1770_v30  ;;  %v2130_v59 = vadd.f32 %v2002_v19, %v1778_v7  ;;  %v7946_v24 = vunpack.i.l.bf16 %v11765_v15  ;;  %v6258_v3 = vpop.permute.xlu1 %6257  ;;  %v6574_v56 = vld [vmem:[#allocation3 + $0x220] ss:$8 sps:$4 sm:$0xff]  }
 0x152   : > { %11766 = vst [vmem:[#allocation93_spill] sm:$0xff] %v7943_v5  ;;  %v7949_v35 = vunpack.i.h.bf16 %v6377_v9  ;;  %v7951_v17 = vunpack.i.l.bf16 %v6377_v9  ;;  %v7955_v19 = vunpack.i.h.bf16 %v7860_v62  ;;  %v7958_v30 = vunpack.i.l.bf16 %v7860_v62  ;;  %v11807_v5 = vld [vmem:[#allocation30_spill] sm:$0xff] }
 0x153   : > { %11767 = vst [vmem:[#allocation37_spill] sm:$0xff] %v7946_v24  ;;  %v3768_v10 = vpack.c.bf16 %v3664_v32, %v3656_v13  ;;  %v2474_v6 = vadd.f32 %v2346_v12, %v2122_v14  ;;  %v2482_v44 = vadd.f32 %v2354_v11, %v2130_v59  ;;  %v7961_v7 = vunpack.i.h.bf16 %v7882_v52 }
 0x154   : > { %11769 = vst [vmem:[#allocation39_spill] sm:$0xff] %v7949_v35  ;;  %11770 = vst [vmem:[#allocation40_spill] sm:$0xff] %v7951_v17  ;;  %v7964_v13 = vunpack.i.l.bf16 %v7882_v52  ;;  %v7966_v63 = vunpack.i.h.bf16 %v6241_v51  ;;  %v7968_v9 = vunpack.i.l.bf16 %v6241_v51  ;;  %v7970_v32 = vunpack.i.h.bf16 %v6252_v38  ;;  %v11783_v52 = vld [vmem:[#allocation113_spill] sm:$0xff]  ;;  %v11802_v35 = vld [vmem:[#allocation92_spill] sm:$0xff] }
 0x155   : > { %11771 = vst [vmem:[#allocation43_spill] sm:$0xff] %v7955_v19  ;;  %11772 = vst [vmem:[#allocation44_spill] sm:$0xff] %v7958_v30  ;;  %4649 = vmatmul.mubr.bf16.gmra.mrb[8].mxu1 %v3768_v10  ;;  %v2826_v12 = vadd.f32 %v2698_v21, %v2474_v6  ;;  %v2834_v11 = vadd.f32 %v2706_v25, %v2482_v44  ;;  %v7972_v14 = vunpack.i.l.bf16 %v6252_v38  ;;  %v7974_v59 = vunpack.i.h.bf16 %v6258_v3  ;;  %v11782_v10 = vld [vmem:[#allocation114_spill] sm:$0xff]  ;;  %v11785_v51 = vld [vmem:[#allocation117_spill] sm:$0xff] }
 0x156   : > { %11773 = vst [vmem:[#allocation98_spill] sm:$0xff] %v7961_v7  ;;  %11774 = vst [vmem:[#allocation130_spill] sm:$0xff] %v7964_v13  ;;  %v7976_v15 = vunpack.i.l.bf16 %v6258_v3  ;;  %v559_v21 = vmul.f32 %v11782_v10, %v11781_v55  ;;  %v567_v6 = vmul.f32 %v11783_v52, %v11781_v55  ;;  %v953_v23 = vmul.f32 %v11785_v51, %v11784_v4  ;;  %v11786_v25 = vld [vmem:[#allocation45_spill] sm:$0xff]  ;;  %v11803_v17 = vld [vmem:[#allocation108_spill] sm:$0xff] }
 0x157   : > { %11775 = vst [vmem:[#allocation9_spill] sm:$0xff] %v7966_v63  ;;  %11776 = vst [vmem:[#allocation131_spill] sm:$0xff] %v7968_v9  ;;  %v3178_v62 = vadd.f32 %v3050_v50, %v2826_v12  ;;  %v3186_v45 = vadd.f32 %v3058_v26, %v2834_v11  ;;  %v961_v44 = vmul.f32 %v11786_v25, %v11784_v4  ;;  %v11787_v38 = vld [vmem:[#allocation21_spill] sm:$0xff]  ;;  %v11789_v50 = vld [vmem:[#allocation19_spill] sm:$0xff] }
 0x158   : > { %11777 = vst [vmem:[#allocation132_spill] sm:$0xff] %v7970_v32  ;;  %11778 = vst [vmem:[#allocation133_spill] sm:$0xff] %v7972_v14  ;;  %v1305_v41 = vmul.f32 %v11788_v58, %v11787_v38  ;;  %v729_v3 = vadd.f32 %v11789_v50, %v559_v21  ;;  %v737_v12 = vadd.f32 %v11789_v50, %v567_v6  ;;  %v11792_v26 = vld [vmem:[#allocation125_spill] sm:$0xff]  ;;  %v6570_v55 = vld [vmem:[#allocation3 + $0x214] ss:$8 sps:$4 sm:$0xff]  }
 0x159   : > { %11779 = vst [vmem:[#allocation134_spill] sm:$0xff] %v7974_v59  ;;  %11780 = vst [vmem:[#allocation135_spill] sm:$0xff] %v7976_v15  ;;  %v3530_v60 = vadd.f32 %v3402_v48, %v3178_v62  ;;  %v1313_v37 = vmul.f32 %v11790_v39, %v11787_v38  ;;  %v3538_v57 = vadd.f32 %v3410_v20, %v3186_v45  ;;  %v11796_v62 = vld [vmem:[#allocation128_spill] sm:$0xff]  ;;  %v11798_v20 = vld [vmem:[#allocation25_spill] sm:$0xff]  ;;  %4824 = vmatprep.subr.bf16.mxu0 %v6570_v55 }
 0x15a   : > { %v1657_v11 = vmul.f32 %v11792_v26, %v11791_v33  ;;  %v1665_v18 = vmul.f32 %v11793_v31, %v11791_v33  ;;  %v2009_v49 = vmul.f32 %v11795_v47, %v11794_v43  ;;  %v1081_v14 = vadd.f32 %v953_v23, %v729_v3  ;;  %v11797_v59 = vld [vmem:[#allocation24_spill] sm:$0xff]  ;;  %v11799_v23 = vld [vmem:[#allocation26_spill] sm:$0xff] }
 0x15b   : > { %v3658_v32 = vmax.f32 %v3530_v60, 0.0  ;;  %v1089_v48 = vadd.f32 %v961_v44, %v737_v12  ;;  %v2017_v21 = vmul.f32 %v11796_v62, %v11794_v43  ;;  %v3666_v6 = vmax.f32 %v3538_v57, 0.0  ;;  %v11800_v44 = vld [vmem:[#allocation87_spill] sm:$0xff]  ;;  %v11801_v57 = vld [vmem:[#allocation86_spill] sm:$0xff] }
 0x15c   : > { %v2361_v15 = vmul.f32 %v7958_v30, %v11797_v59  ;;  %v2369_v45 = vmul.f32 %v7955_v19, %v11797_v59  ;;  %v2713_v63 = vmul.f32 %v7964_v13, %v11798_v20  ;;  %v1433_v9 = vadd.f32 %v1305_v41, %v1081_v14  ;;  %v11804_v59 = vld [vmem:[#allocation107_spill] sm:$0xff]  ;;  %v6579_v55 = vld [vmem:[#allocation3 + $0x324] ss:$8 sps:$4 sm:$0xff]  }
 0x15d   : > { %v1441_v33 = vadd.f32 %v1313_v37, %v1089_v48  ;;  %v2721_v60 = vmul.f32 %v7961_v7, %v11798_v20  ;;  %v3065_v3 = vmul.f32 %v11800_v44, %v11799_v23  ;;  %v3770_v12 = vpack.c.bf16 %v3666_v6, %v3658_v32  ;;  %v11805_v14 = vld [vmem:[#allocation27_spill] sm:$0xff]  ;;  %v11806_v32 = vld [vmem:[#allocation29_spill] sm:$0xff] }
 0x15e   : > { %v3073_v43 = vmul.f32 %v11801_v57, %v11799_v23  ;;  %v8014_v38 = vmul.f32 %v11803_v17, %v11802_v35  ;;  %v8018_v50 = vmul.f32 %v11804_v59, %v11802_v35  ;;  %v1785_v41 = vadd.f32 %v1657_v11, %v1433_v9  ;;  %v11809_v11 = vld [vmem:[#allocation28_spill] sm:$0xff] }
 0x15f   : > { %v1793_v37 = vadd.f32 %v1665_v18, %v1441_v33  ;;  %v561_v48 = vmul.f32 %v11782_v10, %v11805_v14  ;;  %v569_v20 = vmul.f32 %v11783_v52, %v11805_v14  ;;  %4762 = vmatmul.mubr.bf16.gmra.mrb[8].mxu0 %v3770_v12  ;;  %v955_v6 = vmul.f32 %v11785_v51, %v11806_v32  ;;  %v8032_v33 = vpop.permute.xlu1 %6263  ;;  %v6568_v14 = vld [vmem:[#allocation3 + $0x210] ss:$8 sps:$4 sm:$0xff]  }
 0x160   : > { %v963_v23 = vmul.f32 %v11786_v25, %v11806_v32  ;;  %v1307_v24 = vmul.f32 %v11788_v58, %v11807_v5  ;;  %v1315_v35 = vmul.f32 %v11790_v39, %v11807_v5  ;;  %11808 = vst [vmem:[#allocation92_spill] sm:$0xff] %v8032_v33  ;;  %v2137_v18 = vadd.f32 %v2009_v49, %v1785_v41  ;;  %v6571_v49 = vld [vmem:[#allocation3 + $0x310] ss:$8 sps:$4 sm:$0xff]   ;;  %v11811_v33 = vld [vmem:[#allocation33_spill] sm:$0xff] }
 0x161   : > { %v2145_v9 = vadd.f32 %v2017_v21, %v1793_v37  ;;  %v731_v4 = vadd.f32 %v11809_v11, %v561_v48  ;;  %v739_v12 = vadd.f32 %v11809_v11, %v569_v20  ;;  %v1659_v54 = vmul.f32 %v11792_v26, %v11750_v1  ;;  %v6573_v21 = vld [vmem:[#allocation3 + $0x314] ss:$8 sps:$4 sm:$0xff]   ;;  %v6576_v11 = vld [vmem:[#allocation3 + $0x224] ss:$8 sps:$4 sm:$0xff]   ;;  %4825 = vmatpush1.bf16.msra.mxu0 %v6568_v14 }
 0x162   : > { %v1667_v32 = vmul.f32 %v11793_v31, %v11750_v1  ;;  %v2011_v0 = vmul.f32 %v11795_v47, %v11810_v53  ;;  %v2019_v5 = vmul.f32 %v11796_v62, %v11810_v53  ;;  %v2489_v41 = vadd.f32 %v2361_v15, %v2137_v18  ;;  %5829 = vmatprep.subr.bf16.mxu1 %v6573_v21 }
 0x163   : > { %v2497_v37 = vadd.f32 %v2369_v45, %v2145_v9  ;;  %v1083_v48 = vadd.f32 %v955_v6, %v731_v4  ;;  %v1091_v20 = vadd.f32 %v963_v23, %v739_v12  ;;  %v2363_v34 = vmul.f32 %v7958_v30, %v11811_v33  ;;  %v11813_v6 = vld [vmem:[#allocation35_spill] sm:$0xff]  ;;  %5845 = vmatpush1.bf16.msra.mxu1 %v6571_v49 }
 0x164   : > { %v2371_v1 = vmul.f32 %v7955_v19, %v11811_v33  ;;  %v2715_v28 = vmul.f32 %v7964_v13, %v11812_v42  ;;  %v2723_v53 = vmul.f32 %v7961_v7, %v11812_v42  ;;  %v2841_v15 = vadd.f32 %v2713_v63, %v2489_v41  ;;  %v8059_v12 = vld [vmem:[%s10708_s1 + $0x58] ss:$0 sm:$0xff]  ;;  %v8069_v63 = vpop.permute.xlu1 %6269  ;;  %4826 = vmatprep.subr.bf16.mxu0 %v6576_v11 }
 0x165   : > { %v2849_v45 = vadd.f32 %v2721_v60, %v2497_v37  ;;  %v1435_v4 = vadd.f32 %v1307_v24, %v1083_v48  ;;  %v1443_v23 = vadd.f32 %v1315_v35, %v1091_v20  ;;  %v3067_v18 = vmul.f32 %v11800_v44, %v11813_v6  ;;  %11814 = vst [vmem:[#allocation136_spill] sm:$0xff] %v8059_v12  ;;  %v6577_v60 = vld [vmem:[#allocation3 + $0x320] ss:$8 sps:$4 sm:$0xff]   ;;  %v6582_v48 = vld [vmem:[#allocation3 + $0x234] ss:$8 sps:$4 sm:$0xff]  }
 0x166   : > { %v3075_v9 = vmul.f32 %v11801_v57, %v11813_v6  ;;  %v8063_v14 = vmul.f32 %v8059_v12, %v11803_v17  ;;  %v8067_v24 = vmul.f32 %v8059_v12, %v11804_v59  ;;  %v3193_v35 = vadd.f32 %v3065_v3, %v2841_v15  ;;  %v6585_v20 = vld [vmem:[#allocation3 + $0x334] ss:$8 sps:$4 sm:$0xff]   ;;  %4827 = vmatpush1.bf16.msra.mxu0 %v6574_v56  ;;  %v6580_v3 = vld [vmem:[#allocation3 + $0x230] ss:$8 sps:$4 sm:$0xff]   ;;  %v6588_v15 = vld [vmem:[#allocation3 + $0x244] ss:$8 sps:$4 sm:$0xff]  }
 0x167   : > { %v3201_v21 = vadd.f32 %v3073_v43, %v2849_v45  ;;  %v1787_v41 = vadd.f32 %v1659_v54, %v1435_v4  ;;  %v1795_v37 = vadd.f32 %v1667_v32, %v1443_v23  ;;  %v11815_v6 = vld [vmem:[#allocation36_spill] sm:$0xff]  ;;  %v952_v12 = vmul.f32 %v11785_v51, %v11757_v8  ;;  %5830 = vmatprep.subr.bf16.mxu1 %v6579_v55 }
 0x168   : > { %v558_v42 = vmul.f32 %v11782_v10, %v11815_v6  ;;  %v566_v33 = vmul.f32 %v11783_v52, %v11815_v6  ;;  %v960_v49 = vmul.f32 %v11786_v25, %v11757_v8  ;;  %v3545_v43 = vadd.f32 %v8014_v38, %v3193_v35  ;;  %5846 = vmatpush1.bf16.msra.mxu1 %v6577_v60  ;;  %v6583_v56 = vld [vmem:[#allocation3 + $0x330] ss:$8 sps:$4 sm:$0xff]   ;;  %v8091_v55 = vpop.permute.xlu1 %6275 }
 0x169   : > { %v3553_v54 = vadd.f32 %v8018_v50, %v3201_v21  ;;  %v2139_v32 = vadd.f32 %v2011_v0, %v1787_v41  ;;  %v2147_v11 = vadd.f32 %v2019_v5, %v1795_v37  ;;  %v1304_v23 = vmul.f32 %v11788_v58, %v11759_v22  ;;  %4828 = vmatprep.subr.bf16.mxu0 %v6582_v48  ;;  %v6586_v21 = vld [vmem:[#allocation3 + $0x240] ss:$8 sps:$4 sm:$0xff]  }
 0x16a   : > { %v728_v45 = vadd.f32 %v11758_v2, %v558_v42  ;;  %v736_v4 = vadd.f32 %v11758_v2, %v566_v33  ;;  %v1312_v8 = vmul.f32 %v11790_v39, %v11759_v22  ;;  %v3673_v6 = vmax.f32 %v3545_v43, 0.0  ;;  %5831 = vmatprep.subr.bf16.mxu1 %v6585_v20  ;;  %4829 = vmatpush1.bf16.msra.mxu0 %v6580_v3  ;;  %v6589_v43 = vld [vmem:[#allocation3 + $0x340] ss:$8 sps:$4 sm:$0xff]  }
 0x16b   : > { %v3681_v38 = vmax.f32 %v3553_v54, 0.0  ;;  %v2491_v35 = vadd.f32 %v2363_v34, %v2139_v32  ;;  %v2499_v50 = vadd.f32 %v2371_v1, %v2147_v11  ;;  %v1656_v42 = vmul.f32 %v11792_v26, %v11760_v16  ;;  %4830 = vmatprep.subr.bf16.mxu0 %v6588_v15  ;;  %v6591_v1 = vld [vmem:[#allocation3 + $0x344] ss:$8 sps:$4 sm:$0xff]   ;;  %v6594_v54 = vld [vmem:[#allocation3 + $0x254] ss:$8 sps:$4 sm:$0xff]  }
 0x16c   : > { %v1080_v0 = vadd.f32 %v952_v12, %v728_v45  ;;  %v1088_v5 = vadd.f32 %v960_v49, %v736_v4  ;;  %v1664_v33 = vmul.f32 %v11793_v31, %v11760_v16  ;;  %v2008_v34 = vmul.f32 %v11795_v47, %v11698_v27  ;;  %5847 = vmatpush1.bf16.msra.mxu1 %v6583_v56  ;;  %v6597_v32 = vld [vmem:[#allocation3 + $0x354] ss:$8 sps:$4 sm:$0xff]   ;;  %v6592_v4 = vld [vmem:[#allocation3 + $0x250] ss:$8 sps:$4 sm:$0xff]  }
 0x16d   : > { %v3777_v60 = vpack.c.bf16 %v3681_v38, %v3673_v6  ;;  %v2843_v41 = vadd.f32 %v2715_v28, %v2491_v35  ;;  %v2851_v37 = vadd.f32 %v2723_v53, %v2499_v50  ;;  %v2016_v20 = vmul.f32 %v11796_v62, %v11698_v27  ;;  %v8114_v56 = vld [vmem:[%s10708_s1 + $0x40] ss:$0 sm:$0xff]  ;;  %5832 = vmatprep.subr.bf16.mxu1 %v6591_v1  ;;  %v6600_v35 = vld [vmem:[#allocation3 + $0x264] ss:$8 sps:$4 sm:$0xff]  }
 0x16e   : > { %v1432_v12 = vadd.f32 %v1304_v23, %v1080_v0  ;;  %v1440_v48 = vadd.f32 %v1312_v8, %v1088_v5  ;;  %v2360_v49 = vmul.f32 %v7958_v30, %v11699_v46  ;;  %v2368_v28 = vmul.f32 %v7955_v19, %v11699_v46  ;;  %4831 = vmatpush1.bf16.msra.mxu0 %v6586_v21  ;;  %v8122_v5 = vpop.permute.xlu1 %6281  ;;  %v11816_v1 = vld [vmem:[#allocation46_spill] sm:$0xff] }
 0x16f   : > { %4658 = vmatprep.mubr.bf16.mxu1 %v3777_v60  ;;  %v3195_v3 = vadd.f32 %v3067_v18, %v2843_v41  ;;  %v3203_v6 = vadd.f32 %v3075_v9, %v2851_v37  ;;  %v2712_v53 = vmul.f32 %v7964_v13, %v11761_v36  ;;  %v2720_v15 = vmul.f32 %v7961_v7, %v11761_v36 }
 0x170   : > { %v1784_v8 = vadd.f32 %v1656_v42, %v1432_v12  ;;  %v1792_v11 = vadd.f32 %v1664_v33, %v1440_v48  ;;  %v3064_v45 = vmul.f32 %v11800_v44, %v11762_v40  ;;  %v3072_v23 = vmul.f32 %v11801_v57, %v11762_v40  ;;  %5848 = vmatpush1.bf16.msra.mxu1 %v6589_v43  ;;  %v6595_v42 = vld [vmem:[#allocation3 + $0x350] ss:$8 sps:$4 sm:$0xff]  }
 0x171   : > { %v3547_v18 = vadd.f32 %v8063_v14, %v3195_v3  ;;  %v3555_v9 = vadd.f32 %v8067_v24, %v3203_v6  ;;  %v3416_v38 = vmul.f32 %v8114_v56, %v11803_v17  ;;  %v3424_v14 = vmul.f32 %v8114_v56, %v11804_v59  ;;  %4832 = vmatprep.subr.bf16.mxu0 %v6594_v54  ;;  %v11817_v6 = vld [vmem:[#allocation48_spill] sm:$0xff]  ;;  %v6603_v54 = vld [vmem:[#allocation3 + $0x364] ss:$8 sps:$4 sm:$0xff]  }
 0x172   : > { %v2136_v50 = vadd.f32 %v2008_v34, %v1784_v8  ;;  %v2144_v0 = vadd.f32 %v2016_v20, %v1792_v11  ;;  %v560_v24 = vmul.f32 %v11782_v10, %v11700_v61  ;;  %v568_v60 = vmul.f32 %v11783_v52, %v11700_v61  ;;  %5833 = vmatprep.subr.bf16.mxu1 %v6597_v32  ;;  %v6598_v20 = vld [vmem:[#allocation3 + $0x260] ss:$8 sps:$4 sm:$0xff]  }
 0x173   : > { %v3675_v33 = vmax.f32 %v3547_v18, 0.0  ;;  %v3683_v21 = vmax.f32 %v3555_v9, 0.0  ;;  %v954_v41 = vmul.f32 %v11785_v51, %v11701_v29  ;;  %v962_v48 = vmul.f32 %v11786_v25, %v11701_v29  ;;  %4833 = vmatpush1.bf16.msra.mxu0 %v6592_v4  ;;  %v11818_v18 = vld [vmem:[#allocation49_spill] sm:$0xff]  ;;  %v11849_v10 = vld [vmem:[#allocation22_spill] sm:$0xff] }
 0x174   : > { %v2488_v37 = vadd.f32 %v2360_v49, %v2136_v50  ;;  %v2496_v34 = vadd.f32 %v2368_v28, %v2144_v0  ;;  %v730_v12 = vadd.f32 %v11816_v1, %v560_v24  ;;  %v738_v3 = vadd.f32 %v11816_v1, %v568_v60  ;;  %4834 = vmatprep.subr.bf16.mxu0 %v6600_v35  ;;  %v6601_v4 = vld [vmem:[#allocation3 + $0x360] ss:$8 sps:$4 sm:$0xff]  }
 0x175   : > { %v3779_v43 = vpack.c.bf16 %v3683_v21, %v3675_v33  ;;  %v1306_v8 = vmul.f32 %v11788_v58, %v11817_v6  ;;  %v1314_v11 = vmul.f32 %v11790_v39, %v11817_v6  ;;  %v1658_v9 = vmul.f32 %v11792_v26, %v11818_v18  ;;  %5849 = vmatpush1.bf16.msra.mxu1 %v6595_v42  ;;  %v11819_v24 = vld [vmem:[#allocation50_spill] sm:$0xff]  ;;  %v6606_v21 = vld [vmem:[#allocation3 + $0x274] ss:$8 sps:$4 sm:$0xff]   ;;  %v6314_v42 = vpop.permute.xlu1 %6313  ;;  %v11846_v39 = vld [vmem:[#allocation21_spill] sm:$0xff] }
 0x176   : > { %v2840_v49 = vadd.f32 %v2712_v53, %v2488_v37  ;;  %v2848_v28 = vadd.f32 %v2720_v15, %v2496_v34  ;;  %v1082_v32 = vadd.f32 %v954_v41, %v730_v12  ;;  %v1090_v50 = vadd.f32 %v962_v48, %v738_v3  ;;  %v11820_v41 = vld [vmem:[#allocation51_spill] sm:$0xff]  ;;  %v11821_v3 = vld [vmem:[#allocation52_spill] sm:$0xff]  ;;  %5834 = vmatprep.subr.bf16.mxu1 %v6603_v54  ;;  %v6615_v54 = vld [vmem:[#allocation3 + $0x384] ss:$8 sps:$4 sm:$0xff]  }
 0x177   : > { %4771 = vmatprep.mubr.bf16.mxu0 %v3779_v43  ;;  %v1666_v0 = vmul.f32 %v11793_v31, %v11818_v18  ;;  %v2010_v33 = vmul.f32 %v11795_v47, %v11819_v24  ;;  %v2018_v35 = vmul.f32 %v11796_v62, %v11819_v24  ;;  %v2362_v37 = vmul.f32 %v7958_v30, %v11820_v41  ;;  %v6604_v34 = vld [vmem:[#allocation3 + $0x270] ss:$8 sps:$4 sm:$0xff]   ;;  %v6609_v12 = vld [vmem:[#allocation3 + $0x374] ss:$8 sps:$4 sm:$0xff]   ;;  %v11843_v30 = vld [vmem:[#allocation37_spill] sm:$0xff] }
 0x178   : > { %v3192_v53 = vadd.f32 %v3064_v45, %v2840_v49  ;;  %v3200_v15 = vadd.f32 %v3072_v23, %v2848_v28  ;;  %v1434_v60 = vadd.f32 %v1306_v8, %v1082_v32  ;;  %4835 = vmatpush1.bf16.msra.mxu0 %v6598_v20  ;;  %v1442_v48 = vadd.f32 %v1314_v11, %v1090_v50  ;;  %v6612_v45 = vld [vmem:[#allocation3 + $0x284] ss:$8 sps:$4 sm:$0xff]   ;;  %v6382_v32 = vpop.permute.xlu0 %6381  ;;  %v6607_v11 = vld [vmem:[#allocation3 + $0x370] ss:$8 sps:$4 sm:$0xff]   ;;  %v6637_v18 = vld [vmem:[#allocation3 + $0x3c0] ss:$8 sps:$4 sm:$0xff]  }
 0x179   : > { %v2370_v43 = vmul.f32 %v7955_v19, %v11820_v41  ;;  %v2714_v47 = vmul.f32 %v7964_v13, %v11821_v3  ;;  %v2722_v62 = vmul.f32 %v7961_v7, %v11821_v3  ;;  %v11822_v28 = vld [vmem:[#allocation53_spill] sm:$0xff]  ;;  %5850 = vmatpush1.bf16.msra.mxu1 %v6601_v4  ;;  %v8159_v13 = vld [vmem:[%s10708_s1 + $0x50] ss:$0 sm:$0xff]  ;;  %4836 = vmatprep.subr.bf16.mxu0 %v6606_v21  ;;  %v6618_v21 = vld [vmem:[#allocation3 + $0x294] ss:$8 sps:$4 sm:$0xff]  }
 0x17a   : > { %v3544_v23 = vadd.f32 %v3416_v38, %v3192_v53  ;;  %v3552_v8 = vadd.f32 %v3424_v14, %v3200_v15  ;;  %v1786_v49 = vadd.f32 %v1658_v9, %v1434_v60  ;;  %v3066_v20 = vmul.f32 %v11800_v44, %v11822_v28  ;;  %11823 = vst [vmem:[#allocation137_spill] sm:$0xff] %v8159_v13  ;;  %v6610_v60 = vld [vmem:[#allocation3 + $0x280] ss:$8 sps:$4 sm:$0xff]   ;;  %v11873_v41 = vld [vmem:[#allocation35_spill] sm:$0xff] }
 0x17b   : > { %v1794_v50 = vadd.f32 %v1666_v0, %v1442_v48  ;;  %v3074_v19 = vmul.f32 %v11801_v57, %v11822_v28  ;;  %v3418_v38 = vmul.f32 %v8159_v13, %v11803_v17  ;;  %v3426_v14 = vmul.f32 %v8159_v13, %v11804_v59  ;;  %v11824_v0 = vld [vmem:[#allocation92_spill] sm:$0xff]  ;;  %5835 = vmatprep.subr.bf16.mxu1 %v6609_v12  ;;  %v11865_v13 = vld [vmem:[#allocation29_spill] sm:$0xff] }
 0x17c   : > { %v3672_v9 = vmax.f32 %v3544_v23, 0.0  ;;  %v3680_v4 = vmax.f32 %v3552_v8, 0.0  ;;  %v2138_v53 = vadd.f32 %v2010_v33, %v1786_v49  ;;  %v8166_v15 = vunpack.i.h.bf16 %v11824_v0  ;;  %4837 = vmatpush1.bf16.msra.mxu0 %v6604_v34  ;;  %v6320_v34 = vpop.permute.xlu1 %6319  ;;  %v11842_v7 = vld [vmem:[#allocation20_spill] sm:$0xff] }
 0x17d   : > { %v2146_v48 = vadd.f32 %v2018_v35, %v1794_v50  ;;  %v8169_v57 = vunpack.i.l.bf16 %v11824_v0  ;;  %v8171_v44 = vunpack.i.h.bf16 %v6382_v32  ;;  %v8173_v17 = vunpack.i.l.bf16 %v6382_v32  ;;  %4838 = vmatprep.subr.bf16.mxu0 %v6612_v45  ;;  %5851 = vmatpush1.bf16.msra.mxu1 %v6607_v11  ;;  %v6613_v35 = vld [vmem:[#allocation3 + $0x380] ss:$8 sps:$4 sm:$0xff]  }
 0x17e   : > { %11825 = vst [vmem:[#allocation92_spill] sm:$0xff] %v8166_v15  ;;  %v3776_v59 = vpack.c.bf16 %v3680_v4, %v3672_v9  ;;  %v2490_v23 = vadd.f32 %v2362_v37, %v2138_v53  ;;  %v8176_v33 = vunpack.i.h.bf16 %v8069_v63  ;;  %v8179_v8 = vunpack.i.l.bf16 %v8069_v63  ;;  %5836 = vmatprep.subr.bf16.mxu1 %v6615_v54  ;;  %v6621_v37 = vld [vmem:[#allocation3 + $0x394] ss:$8 sps:$4 sm:$0xff]   ;;  %v11839_v0 = vld [vmem:[#allocation18_spill] sm:$0xff] }
 0x17f   : > { %11826 = vst [vmem:[#allocation138_spill] sm:$0xff] %v8169_v57  ;;  %11827 = vst [vmem:[#allocation139_spill] sm:$0xff] %v8171_v44  ;;  %v2498_v12 = vadd.f32 %v2370_v43, %v2146_v48  ;;  %v8182_v49 = vunpack.i.h.bf16 %v8091_v55  ;;  %v8185_v32 = vunpack.i.l.bf16 %v8091_v55  ;;  %v8188_v45 = vunpack.i.h.bf16 %v8122_v5  ;;  %v6616_v43 = vld [vmem:[#allocation3 + $0x290] ss:$8 sps:$4 sm:$0xff]  }
 0x180   : > { %11828 = vst [vmem:[#allocation140_spill] sm:$0xff] %v8173_v17  ;;  %11829 = vst [vmem:[#allocation141_spill] sm:$0xff] %v8176_v33  ;;  %4659 = vmatmul.mubr.bf16.gmra.mrb[12].mxu1 %v3776_v59  ;;  %v2842_v50 = vadd.f32 %v2714_v47, %v2490_v23  ;;  %v8191_v63 = vunpack.i.l.bf16 %v8122_v5  ;;  %v8193_v9 = vunpack.i.h.bf16 %v6314_v42  ;;  %v8195_v11 = vunpack.i.l.bf16 %v6314_v42  ;;  %4839 = vmatpush1.bf16.msra.mxu0 %v6610_v60  ;;  %v11840_v48 = vld [vmem:[#allocation127_spill] sm:$0xff]  ;;  %v6624_v59 = vld [vmem:[#allocation3 + $0x2a4] ss:$8 sps:$4 sm:$0xff]  }
 0x181   : > { %11830 = vst [vmem:[#allocation142_spill] sm:$0xff] %v8179_v8  ;;  %11831 = vst [vmem:[#allocation143_spill] sm:$0xff] %v8182_v49  ;;  %v2850_v4 = vadd.f32 %v2722_v62, %v2498_v12  ;;  %v8197_v53 = vunpack.i.h.bf16 %v6320_v34  ;;  %v8199_v55 = vunpack.i.l.bf16 %v6320_v34  ;;  %v575_v54 = vmul.f32 %v11840_v48, %v11839_v0  ;;  %4840 = vmatprep.subr.bf16.mxu0 %v6618_v21  ;;  %v11841_v5 = vld [vmem:[#allocation126_spill] sm:$0xff]  ;;  %v11844_v60 = vld [vmem:[#allocation93_spill] sm:$0xff] }
 0x182   : > { %11832 = vst [vmem:[#allocation144_spill] sm:$0xff] %v8185_v32  ;;  %11833 = vst [vmem:[#allocation145_spill] sm:$0xff] %v8188_v45  ;;  %v3194_v47 = vadd.f32 %v3066_v20, %v2842_v50  ;;  %v583_v23 = vmul.f32 %v11841_v5, %v11839_v0  ;;  %v969_v42 = vmul.f32 %v11843_v30, %v11842_v7  ;;  %5852 = vmatpush1.bf16.msra.mxu1 %v6613_v35  ;;  %v6619_v62 = vld [vmem:[#allocation3 + $0x390] ss:$8 sps:$4 sm:$0xff]   ;;  %v6627_v50 = vld [vmem:[#allocation3 + $0x3a4] ss:$8 sps:$4 sm:$0xff]  }
 0x183   : > { %11834 = vst [vmem:[#allocation146_spill] sm:$0xff] %v8191_v63  ;;  %11835 = vst [vmem:[#allocation147_spill] sm:$0xff] %v8193_v9  ;;  %v977_v31 = vmul.f32 %v11844_v60, %v11842_v7  ;;  %v3202_v12 = vadd.f32 %v3074_v19, %v2850_v4  ;;  %v11845_v34 = vld [vmem:[#allocation19_spill] sm:$0xff]  ;;  %v11847_v58 = vld [vmem:[#allocation40_spill] sm:$0xff]  ;;  %5837 = vmatprep.subr.bf16.mxu1 %v6621_v37  ;;  %v971_v28 = vmul.f32 %v11843_v30, %v11865_v13 }
 0x184   : > { %11836 = vst [vmem:[#allocation148_spill] sm:$0xff] %v8195_v11  ;;  %11837 = vst [vmem:[#allocation149_spill] sm:$0xff] %v8197_v53  ;;  %v745_v26 = vadd.f32 %v11845_v34, %v575_v54  ;;  %v1321_v25 = vmul.f32 %v11847_v58, %v11846_v39  ;;  %v11848_v21 = vld [vmem:[#allocation39_spill] sm:$0xff]  ;;  %v3546_v51 = vadd.f32 %v3418_v38, %v3194_v47  ;;  %v11851_v35 = vld [vmem:[#allocation9_spill] sm:$0xff]  ;;  %4841 = vmatpush1.bf16.msra.mxu0 %v6616_v43 }
 0x185   : > { %11838 = vst [vmem:[#allocation150_spill] sm:$0xff] %v8199_v55  ;;  %v1329_v20 = vmul.f32 %v11848_v21, %v11846_v39  ;;  %v753_v52 = vadd.f32 %v11845_v34, %v583_v23  ;;  %v11850_v9 = vld [vmem:[#allocation131_spill] sm:$0xff]  ;;  %v1681_v53 = vmul.f32 %v11851_v35, %v11849_v10  ;;  %v6622_v19 = vld [vmem:[#allocation3 + $0x2a0] ss:$8 sps:$4 sm:$0xff]   ;;  %v3554_v4 = vadd.f32 %v3426_v14, %v3202_v12 }
 0x186   : > { %v1673_v11 = vmul.f32 %v11850_v9, %v11849_v10  ;;  %v1097_v54 = vadd.f32 %v969_v42, %v745_v26  ;;  %v11852_v55 = vld [vmem:[#allocation23_spill] sm:$0xff]  ;;  %v11854_v44 = vld [vmem:[#allocation134_spill] sm:$0xff]  ;;  %4842 = vmatprep.subr.bf16.mxu0 %v6624_v59  ;;  %v3674_v47 = vmax.f32 %v3546_v51, 0.0  ;;  %v11855_v34 = vld [vmem:[#allocation24_spill] sm:$0xff]  ;;  %5853 = vmatpush1.bf16.msra.mxu1 %v6619_v62 }
 0x187   : > { %v11853_v45 = vld [vmem:[#allocation135_spill] sm:$0xff]  ;;  %v2033_v37 = vmul.f32 %v11854_v44, %v11852_v55  ;;  %v1105_v23 = vadd.f32 %v977_v31, %v753_v52  ;;  %v2377_v17 = vmul.f32 %v8179_v8, %v11855_v34  ;;  %v2385_v10 = vmul.f32 %v8176_v33, %v11855_v34  ;;  %v6625_v43 = vld [vmem:[#allocation3 + $0x3a0] ss:$8 sps:$4 sm:$0xff]   ;;  %5838 = vmatprep.subr.bf16.mxu1 %v6627_v50  ;;  %v8238_v62 = vld [vmem:[%s10708_s1 + $0x48] ss:$0 sm:$0xff] }
 0x188   : > { %v2025_v63 = vmul.f32 %v11853_v45, %v11852_v55  ;;  %v6630_v38 = vld [vmem:[#allocation3 + $0x2b4] ss:$8 sps:$4 sm:$0xff]   ;;  %v3682_v14 = vmax.f32 %v3554_v4, 0.0  ;;  %v1449_v26 = vadd.f32 %v1321_v25, %v1097_v54  ;;  %v11856_v42 = vld [vmem:[#allocation25_spill] sm:$0xff]  ;;  %v11857_v51 = vld [vmem:[#allocation26_spill] sm:$0xff]  ;;  %11860 = vst [vmem:[#allocation151_spill] sm:$0xff] %v8238_v62  ;;  %v8242_v54 = vpop.permute.xlu1 %6330  ;;  %4843 = vmatpush1.bf16.msra.mxu0 %v6622_v19  ;;  %v979_v19 = vmul.f32 %v11844_v60, %v11865_v13 }
 0x189   : > { %v2729_v12 = vmul.f32 %v8185_v32, %v11856_v42  ;;  %v2737_v55 = vmul.f32 %v8182_v49, %v11856_v42  ;;  %v1457_v59 = vadd.f32 %v1329_v20, %v1105_v23  ;;  %v11858_v31 = vld [vmem:[#allocation91_spill] sm:$0xff]  ;;  %v11859_v39 = vld [vmem:[#allocation90_spill] sm:$0xff]  ;;  %v11861_v25 = vld [vmem:[#allocation112_spill] sm:$0xff]  ;;  %11862 = vst [vmem:[#allocation152_spill] sm:$0xff] %v8242_v54  ;;  %4844 = vmatprep.subr.bf16.mxu0 %v6630_v38 }
 0x18a   : > { %v3081_v52 = vmul.f32 %v11858_v31, %v11857_v51  ;;  %v3089_v15 = vmul.f32 %v11859_v39, %v11857_v51  ;;  %v3433_v4 = vmul.f32 %v8238_v62, %v11861_v25  ;;  %v6628_v42 = vld [vmem:[#allocation3 + $0x2b0] ss:$8 sps:$4 sm:$0xff]   ;;  %v3778_v50 = vpack.c.bf16 %v3682_v14, %v3674_v47  ;;  %5854 = vmatpush1.bf16.msra.mxu1 %v6625_v43 }
 0x18b   : > { %v1801_v20 = vadd.f32 %v1673_v11, %v1449_v26  ;;  %v11863_v23 = vld [vmem:[#allocation111_spill] sm:$0xff]  ;;  %v1809_v7 = vadd.f32 %v1681_v53, %v1457_v59  ;;  %v11866_v47 = vld [vmem:[#allocation28_spill] sm:$0xff]  ;;  %v11867_v26 = vld [vmem:[#allocation30_spill] sm:$0xff]  ;;  %v3083_v24 = vmul.f32 %v11858_v31, %v11873_v41 }
 0x18c   : > { %v3441_v34 = vmul.f32 %v8238_v62, %v11863_v23  ;;  %v11864_v57 = vld [vmem:[#allocation27_spill] sm:$0xff]  ;;  %4772 = vmatmul.mubr.bf16.gmra.mrb[12].mxu0 %v3778_v50  ;;  %v1323_v62 = vmul.f32 %v11847_v58, %v11867_v26  ;;  %v1331_v53 = vmul.f32 %v11848_v21, %v11867_v26  ;;  %v11869_v50 = vld [vmem:[#allocation32_spill] sm:$0xff] }
 0x18d   : > { %v577_v51 = vmul.f32 %v11840_v48, %v11864_v57  ;;  %v585_v0 = vmul.f32 %v11841_v5, %v11864_v57  ;;  %v2153_v11 = vadd.f32 %v2025_v63, %v1801_v20  ;;  %v2161_v38 = vadd.f32 %v2033_v37, %v1809_v7  ;;  %v11868_v57 = vld [vmem:[#allocation31_spill] sm:$0xff]  ;;  %4845 = vmatpush1.bf16.msra.mxu0 %v6628_v42  ;;  %v11870_v7 = vld [vmem:[#allocation33_spill] sm:$0xff] }
 0x18e   : > { %v1675_v54 = vmul.f32 %v11850_v9, %v11868_v57  ;;  %v1683_v13 = vmul.f32 %v11851_v35, %v11868_v57  ;;  %v2035_v20 = vmul.f32 %v11854_v44, %v11869_v50  ;;  %v2387_v37 = vmul.f32 %v8176_v33, %v11870_v7  ;;  %v6631_v57 = vld [vmem:[#allocation3 + $0x3b0] ss:$8 sps:$4 sm:$0xff]   ;;  %v6633_v42 = vld [vmem:[#allocation3 + $0x3b4] ss:$8 sps:$4 sm:$0xff]  }
 0x18f   : > { %v747_v14 = vadd.f32 %v11866_v47, %v577_v51  ;;  %v755_v59 = vadd.f32 %v11866_v47, %v585_v0  ;;  %v2505_v43 = vadd.f32 %v2377_v17, %v2153_v11  ;;  %v2027_v51 = vmul.f32 %v11853_v45, %v11869_v50  ;;  %v8272_v47 = vpop.permute.xlu1 %6336  ;;  %v11872_v11 = vld [vmem:[#allocation34_spill] sm:$0xff]  ;;  %5839 = vmatprep.subr.bf16.mxu1 %v6633_v42 }
 0x190   : > { %v2513_v3 = vadd.f32 %v2385_v10, %v2161_v38  ;;  %v2379_v0 = vmul.f32 %v8179_v8, %v11870_v7  ;;  %11871 = vst [vmem:[#allocation153_spill] sm:$0xff] %v8272_v47  ;;  %v2739_v50 = vmul.f32 %v8182_v49, %v11872_v11  ;;  %v6634_v10 = vld [vmem:[#allocation3 + $0x2c0] ss:$8 sps:$4 sm:$0xff]   ;;  %v3091_v7 = vmul.f32 %v11859_v39, %v11873_v41  ;;  %v6639_v47 = vld [vmem:[#allocation3 + $0x3c4] ss:$8 sps:$4 sm:$0xff]  }
 0x191   : > { %v1099_v63 = vadd.f32 %v971_v28, %v747_v14  ;;  %v1107_v26 = vadd.f32 %v979_v19, %v755_v59  ;;  %v2857_v17 = vadd.f32 %v2729_v12, %v2505_v43  ;;  %v2731_v14 = vmul.f32 %v8185_v32, %v11872_v11  ;;  %v6636_v19 = vld [vmem:[#allocation3 + $0x2c4] ss:$8 sps:$4 sm:$0xff]   ;;  %v11874_v43 = vld [vmem:[#allocation136_spill] sm:$0xff]  ;;  %5855 = vmatpush1.bf16.msra.mxu1 %v6631_v57 }
 0x192   : > { %v2865_v38 = vadd.f32 %v2737_v55, %v2513_v3  ;;  %v3443_v11 = vmul.f32 %v11874_v43, %v11863_v23  ;;  %v6642_v3 = vld [vmem:[#allocation3 + $0x2d4] ss:$8 sps:$4 sm:$0xff]   ;;  %4846 = vmatprep.subr.bf16.mxu0 %v6636_v19  ;;  %5840 = vmatprep.subr.bf16.mxu1 %v6639_v47  ;;  %v1672_v47 = vmul.f32 %v11850_v9, %v11760_v16 }
 0x193   : > { %v1451_v28 = vadd.f32 %v1323_v62, %v1099_v63  ;;  %v1459_v59 = vadd.f32 %v1331_v53, %v1107_v26  ;;  %v3209_v12 = vadd.f32 %v3081_v52, %v2857_v17  ;;  %v3435_v63 = vmul.f32 %v11874_v43, %v11861_v25  ;;  %v11875_v53 = vld [vmem:[#allocation36_spill] sm:$0xff]  ;;  %4847 = vmatpush1.bf16.msra.mxu0 %v6634_v10  ;;  %v8296_v1 = vpop.permute.xlu1 %6342 }
 0x194   : > { %v3217_v55 = vadd.f32 %v3089_v15, %v2865_v38  ;;  %v574_v6 = vmul.f32 %v11840_v48, %v11875_v53  ;;  %v582_v42 = vmul.f32 %v11841_v5, %v11875_v53  ;;  %v6645_v52 = vld [vmem:[#allocation3 + $0x3d4] ss:$8 sps:$4 sm:$0xff]   ;;  %v6640_v43 = vld [vmem:[#allocation3 + $0x2d0] ss:$8 sps:$4 sm:$0xff]   ;;  %4848 = vmatprep.subr.bf16.mxu0 %v6642_v3 }
 0x195   : > { %v1803_v62 = vadd.f32 %v1675_v54, %v1451_v28  ;;  %v1811_v26 = vadd.f32 %v1683_v13, %v1459_v59  ;;  %v3561_v54 = vadd.f32 %v3433_v4, %v3209_v12  ;;  %v11876_v28 = vld [vmem:[#allocation38_spill] sm:$0xff]  ;;  %v1328_v12 = vmul.f32 %v11848_v21, %v11759_v22  ;;  %5856 = vmatpush1.bf16.msra.mxu1 %v6637_v18 }
 0x196   : > { %v968_v41 = vmul.f32 %v11843_v30, %v11876_v28  ;;  %v976_v57 = vmul.f32 %v11844_v60, %v11876_v28  ;;  %v3569_v15 = vadd.f32 %v3441_v34, %v3217_v55  ;;  %v744_v38 = vadd.f32 %v11758_v2, %v574_v6  ;;  %v6643_v10 = vld [vmem:[#allocation3 + $0x3d0] ss:$8 sps:$4 sm:$0xff]   ;;  %5841 = vmatprep.subr.bf16.mxu1 %v6645_v52 }
 0x197   : > { %v2155_v17 = vadd.f32 %v2027_v51, %v1803_v62  ;;  %v2163_v13 = vadd.f32 %v2035_v20, %v1811_v26  ;;  %v752_v59 = vadd.f32 %v11758_v2, %v582_v42  ;;  %v3689_v19 = vmax.f32 %v3561_v54, 0.0  ;;  %4849 = vmatpush1.bf16.msra.mxu0 %v6640_v43  ;;  %v8316_v43 = vpop.permute.xlu1 %6348 }
 0x198   : > { %v1320_v51 = vmul.f32 %v11847_v58, %v11759_v22  ;;  %v3697_v34 = vmax.f32 %v3569_v15, 0.0  ;;  %v1096_v62 = vadd.f32 %v968_v41, %v744_v38  ;;  %v2024_v26 = vmul.f32 %v11853_v45, %v11698_v27 }
 0x199   : > { %v2507_v4 = vadd.f32 %v2379_v0, %v2155_v17  ;;  %v2515_v20 = vadd.f32 %v2387_v37, %v2163_v13  ;;  %v1104_v6 = vadd.f32 %v976_v57, %v752_v59  ;;  %v1680_v0 = vmul.f32 %v11851_v35, %v11760_v16  ;;  %5857 = vmatpush1.bf16.msra.mxu1 %v6643_v10 }
 0x19a   : > { %v3785_v42 = vpack.c.bf16 %v3697_v34, %v3689_v19  ;;  %v1448_v3 = vadd.f32 %v1320_v51, %v1096_v62  ;;  %v2032_v41 = vmul.f32 %v11854_v44, %v11698_v27  ;;  %v2376_v37 = vmul.f32 %v8179_v8, %v11699_v46 }
 0x19b   : > { %v2859_v55 = vadd.f32 %v2731_v14, %v2507_v4  ;;  %v2867_v18 = vadd.f32 %v2739_v50, %v2515_v20  ;;  %v1456_v54 = vadd.f32 %v1328_v12, %v1104_v6  ;;  %v2384_v14 = vmul.f32 %v8176_v33, %v11699_v46  ;;  %v6387_v20 = vpop.permute.xlu0 %6386 }
 0x19c   : > { %4668 = vmatprep.mubr.bf16.mxu1 %v3785_v42  ;;  %v1800_v57 = vadd.f32 %v1672_v47, %v1448_v3  ;;  %v2728_v50 = vmul.f32 %v8185_v32, %v11761_v36  ;;  %v2736_v13 = vmul.f32 %v8182_v49, %v11761_v36  ;;  %v3080_v38 = vmul.f32 %v11858_v31, %v11762_v40  ;;  %v11877_v47 = vld [vmem:[#allocation46_spill] sm:$0xff] }
 0x19d   : > { %v3211_v17 = vadd.f32 %v3083_v24, %v2859_v55  ;;  %v3219_v52 = vadd.f32 %v3091_v7, %v2867_v18  ;;  %v1808_v15 = vadd.f32 %v1680_v0, %v1456_v54  ;;  %v3088_v59 = vmul.f32 %v11859_v39, %v11762_v40  ;;  %v11878_v18 = vld [vmem:[#allocation48_spill] sm:$0xff] }
 0x19e   : > { %v2152_v4 = vadd.f32 %v2024_v26, %v1800_v57  ;;  %v3432_v51 = vmul.f32 %v8114_v56, %v11861_v25  ;;  %v3440_v10 = vmul.f32 %v8114_v56, %v11863_v23  ;;  %v584_v34 = vmul.f32 %v11841_v5, %v11700_v61  ;;  %v6648_v57 = vld [vmem:[#allocation3 + $0x2e4] ss:$8 sps:$4 sm:$0xff]  }
 0x19f   : > { %v3563_v24 = vadd.f32 %v3435_v63, %v3211_v17  ;;  %v3571_v19 = vadd.f32 %v3443_v11, %v3219_v52  ;;  %v2160_v7 = vadd.f32 %v2032_v41, %v1808_v15  ;;  %v576_v63 = vmul.f32 %v11840_v48, %v11700_v61  ;;  %v6646_v52 = vld [vmem:[#allocation3 + $0x2e0] ss:$8 sps:$4 sm:$0xff]   ;;  %4850 = vmatprep.subr.bf16.mxu0 %v6648_v57 }
 0x1a0   : > { %v2504_v6 = vadd.f32 %v2376_v37, %v2152_v4  ;;  %v970_v11 = vmul.f32 %v11843_v30, %v11701_v29  ;;  %v754_v26 = vadd.f32 %v11877_v47, %v584_v34  ;;  %v978_v42 = vmul.f32 %v11844_v60, %v11701_v29  ;;  %4851 = vmatpush1.bf16.msra.mxu0 %v6646_v52  ;;  %v11885_v52 = vld [vmem:[#allocation152_spill] sm:$0xff]  ;;  %v11916_v48 = vld [vmem:[#allocation22_spill] sm:$0xff] }
 0x1a1   : > { %v3691_v12 = vmax.f32 %v3563_v24, 0.0  ;;  %v3699_v62 = vmax.f32 %v3571_v19, 0.0  ;;  %v2512_v55 = vadd.f32 %v2384_v14, %v2160_v7  ;;  %v746_v0 = vadd.f32 %v11877_v47, %v576_v63  ;;  %v6355_v14 = vpop.permute.xlu1 %6354  ;;  %v11879_v19 = vld [vmem:[#allocation49_spill] sm:$0xff]  ;;  %v6404_v63 = vpop.permute.xlu0 %6403 }
 0x1a2   : > { %v1322_v3 = vmul.f32 %v11847_v58, %v11878_v18  ;;  %v2856_v17 = vadd.f32 %v2728_v50, %v2504_v6  ;;  %v1330_v37 = vmul.f32 %v11848_v21, %v11878_v18  ;;  %v1106_v24 = vadd.f32 %v978_v42, %v754_v26  ;;  %v11880_v50 = vld [vmem:[#allocation50_spill] sm:$0xff]  ;;  %v11912_v21 = vld [vmem:[#allocation21_spill] sm:$0xff]  ;;  %v11913_v58 = vld [vmem:[#allocation140_spill] sm:$0xff] }
 0x1a3   : > { %v3787_v54 = vpack.c.bf16 %v3699_v62, %v3691_v12  ;;  %v2864_v41 = vadd.f32 %v2736_v13, %v2512_v55  ;;  %v1098_v15 = vadd.f32 %v970_v11, %v746_v0  ;;  %v1674_v4 = vmul.f32 %v11850_v9, %v11879_v19  ;;  %v11881_v11 = vld [vmem:[#allocation51_spill] sm:$0xff] }
 0x1a4   : > { %v1682_v7 = vmul.f32 %v11851_v35, %v11879_v19  ;;  %v3208_v34 = vadd.f32 %v3080_v38, %v2856_v17  ;;  %v2026_v13 = vmul.f32 %v11853_v45, %v11880_v50  ;;  %v2034_v62 = vmul.f32 %v11854_v44, %v11880_v50  ;;  %v11910_v44 = vld [vmem:[#allocation138_spill] sm:$0xff] }
 0x1a5   : > { %4781 = vmatprep.mubr.bf16.mxu0 %v3787_v54  ;;  %v3216_v12 = vadd.f32 %v3088_v59, %v2864_v41  ;;  %v1450_v6 = vadd.f32 %v1322_v3, %v1098_v15  ;;  %v1458_v55 = vadd.f32 %v1330_v37, %v1106_v24  ;;  %v2378_v0 = vmul.f32 %v8179_v8, %v11881_v11  ;;  %v11882_v54 = vld [vmem:[#allocation52_spill] sm:$0xff]  ;;  %v11883_v3 = vld [vmem:[#allocation53_spill] sm:$0xff] }
 0x1a6   : > { %v2386_v26 = vmul.f32 %v8176_v33, %v11881_v11  ;;  %v3560_v42 = vadd.f32 %v3432_v51, %v3208_v34  ;;  %v2730_v38 = vmul.f32 %v8185_v32, %v11882_v54  ;;  %v2738_v59 = vmul.f32 %v8182_v49, %v11882_v54  ;;  %v11884_v51 = vld [vmem:[#allocation137_spill] sm:$0xff]  ;;  %v6361_v34 = vpop.permute.xlu1 %6360  ;;  %v11933_v54 = vld [vmem:[#allocation31_spill] sm:$0xff] }
 0x1a7   : > { %v3568_v35 = vadd.f32 %v3440_v10, %v3216_v12  ;;  %v1802_v17 = vadd.f32 %v1674_v4, %v1450_v6  ;;  %v1810_v41 = vadd.f32 %v1682_v7, %v1458_v55  ;;  %v3082_v37 = vmul.f32 %v11858_v31, %v11883_v3  ;;  %v6410_v6 = vpop.permute.xlu0 %6409 }
 0x1a8   : > { %v3090_v15 = vmul.f32 %v11859_v39, %v11883_v3  ;;  %v3688_v24 = vmax.f32 %v3560_v42, 0.0  ;;  %v3434_v10 = vmul.f32 %v11884_v51, %v11861_v25  ;;  %v3442_v57 = vmul.f32 %v11884_v51, %v11863_v23  ;;  %v11890_v42 = vld [vmem:[#allocation153_spill] sm:$0xff]  ;;  %v11931_v51 = vld [vmem:[#allocation30_spill] sm:$0xff] }
 0x1a9   : > { %v3696_v33 = vmax.f32 %v3568_v35, 0.0  ;;  %v2154_v12 = vadd.f32 %v2026_v13, %v1802_v17  ;;  %v2162_v49 = vadd.f32 %v2034_v62, %v1810_v41  ;;  %v8367_v4 = vunpack.i.h.bf16 %v11885_v52 }
 0x1aa   : > { %v8370_v7 = vunpack.i.l.bf16 %v11885_v52  ;;  %v8372_v39 = vunpack.i.h.bf16 %v6387_v20  ;;  %v8374_v35 = vunpack.i.l.bf16 %v6387_v20  ;;  %v8377_v25 = vunpack.i.h.bf16 %v11890_v42 }
 0x1ab   : > { %11886 = vst [vmem:[#allocation46_spill] sm:$0xff] %v8367_v4  ;;  %v3784_v55 = vpack.c.bf16 %v3696_v33, %v3688_v24  ;;  %v2506_v31 = vadd.f32 %v2378_v0, %v2154_v12  ;;  %v2514_v23 = vadd.f32 %v2386_v26, %v2162_v49  ;;  %v8380_v13 = vunpack.i.l.bf16 %v11890_v42 }
 0x1ac   : > { %11887 = vst [vmem:[#allocation152_spill] sm:$0xff] %v8370_v7  ;;  %11888 = vst [vmem:[#allocation154_spill] sm:$0xff] %v8372_v39  ;;  %v8382_v62 = vunpack.i.h.bf16 %v6404_v63  ;;  %v8384_v17 = vunpack.i.l.bf16 %v6404_v63  ;;  %v8387_v41 = vunpack.i.h.bf16 %v8296_v1  ;;  %v8390_v33 = vunpack.i.l.bf16 %v8296_v1  ;;  %v8408_v1 = vpop.permute.xlu1 %6392 }
 0x1ad   : > { %11889 = vst [vmem:[#allocation155_spill] sm:$0xff] %v8374_v35  ;;  %11891 = vst [vmem:[#allocation153_spill] sm:$0xff] %v8377_v25  ;;  %4669 = vmatmul.mubr.bf16.gmra.mrb[16].mxu1 %v3784_v55  ;;  %v8392_v20 = vunpack.i.h.bf16 %v6410_v6  ;;  %v2858_v24 = vadd.f32 %v2730_v38, %v2506_v31  ;;  %v2866_v52 = vadd.f32 %v2738_v59, %v2514_v23  ;;  %v8394_v0 = vunpack.i.l.bf16 %v6410_v6  ;;  %v11906_v23 = vld [vmem:[#allocation18_spill] sm:$0xff]  ;;  %v11907_v38 = vld [vmem:[#allocation133_spill] sm:$0xff] }
 0x1ae   : > { %11892 = vst [vmem:[#allocation156_spill] sm:$0xff] %v8380_v13  ;;  %11893 = vst [vmem:[#allocation157_spill] sm:$0xff] %v8382_v62  ;;  %v8397_v49 = vunpack.i.h.bf16 %v8316_v43  ;;  %v8400_v26 = vunpack.i.l.bf16 %v8316_v43  ;;  %v8402_v63 = vunpack.i.h.bf16 %v6355_v14  ;;  %v8404_v12 = vunpack.i.l.bf16 %v6355_v14  ;;  %v11908_v6 = vld [vmem:[#allocation132_spill] sm:$0xff]  ;;  %v11917_v62 = vld [vmem:[#allocation146_spill] sm:$0xff] }
 0x1af   : > { %11894 = vst [vmem:[#allocation158_spill] sm:$0xff] %v8384_v17  ;;  %11895 = vst [vmem:[#allocation159_spill] sm:$0xff] %v8387_v41  ;;  %v8406_v55 = vunpack.i.h.bf16 %v6361_v34  ;;  %v3210_v42 = vadd.f32 %v3082_v37, %v2858_v24  ;;  %v3218_v32 = vadd.f32 %v3090_v15, %v2866_v52  ;;  %v8410_v31 = vunpack.i.l.bf16 %v6361_v34  ;;  %v11909_v43 = vld [vmem:[#allocation20_spill] sm:$0xff]  ;;  %v11914_v15 = vld [vmem:[#allocation19_spill] sm:$0xff] }
 0x1b0   : > { %11896 = vst [vmem:[#allocation160_spill] sm:$0xff] %v8390_v33  ;;  %11897 = vst [vmem:[#allocation161_spill] sm:$0xff] %v8392_v20  ;;  %v591_v59 = vmul.f32 %v11907_v38, %v11906_v23  ;;  %v599_v8 = vmul.f32 %v11908_v6, %v11906_v23  ;;  %v985_v45 = vmul.f32 %v11910_v44, %v11909_v43  ;;  %v11911_v14 = vld [vmem:[#allocation92_spill] sm:$0xff]  ;;  %v11915_v24 = vld [vmem:[#allocation139_spill] sm:$0xff] }
 0x1b1   : > { %11898 = vst [vmem:[#allocation162_spill] sm:$0xff] %v8394_v0  ;;  %11899 = vst [vmem:[#allocation163_spill] sm:$0xff] %v8397_v49  ;;  %v993_v9 = vmul.f32 %v11911_v14, %v11909_v43  ;;  %v1337_v60 = vmul.f32 %v11913_v58, %v11912_v21  ;;  %v3562_v30 = vadd.f32 %v3434_v10, %v3210_v42  ;;  %v11928_v43 = vld [vmem:[#allocation41_spill] sm:$0xff] }
 0x1b2   : > { %11900 = vst [vmem:[#allocation164_spill] sm:$0xff] %v8400_v26  ;;  %11901 = vst [vmem:[#allocation165_spill] sm:$0xff] %v8402_v63  ;;  %v3570_v37 = vadd.f32 %v3442_v57, %v3218_v32  ;;  %v761_v34 = vadd.f32 %v11914_v15, %v591_v59  ;;  %v1345_v52 = vmul.f32 %v11915_v24, %v11912_v21  ;;  %v11918_v63 = vld [vmem:[#allocation145_spill] sm:$0xff]  ;;  %v11922_v59 = vld [vmem:[#allocation24_spill] sm:$0xff] }
 0x1b3   : > { %11902 = vst [vmem:[#allocation166_spill] sm:$0xff] %v8404_v12  ;;  %11903 = vst [vmem:[#allocation167_spill] sm:$0xff] %v8406_v55  ;;  %v769_v5 = vadd.f32 %v11914_v15, %v599_v8  ;;  %v1689_v17 = vmul.f32 %v11917_v62, %v11916_v48  ;;  %v1697_v12 = vmul.f32 %v11918_v63, %v11916_v48  ;;  %v11919_v55 = vld [vmem:[#allocation23_spill] sm:$0xff]  ;;  %v3690_v26 = vmax.f32 %v3562_v30, 0.0  ;;  %v11921_v32 = vld [vmem:[#allocation149_spill] sm:$0xff]  ;;  %v8440_v48 = vpop.permute.xlu1 %6398 }
 0x1b4   : > { %11904 = vst [vmem:[#allocation168_spill] sm:$0xff] %v8408_v1  ;;  %11905 = vst [vmem:[#allocation169_spill] sm:$0xff] %v8410_v31  ;;  %v11920_v31 = vld [vmem:[#allocation150_spill] sm:$0xff]  ;;  %v3698_v39 = vmax.f32 %v3570_v37, 0.0  ;;  %v1113_v10 = vadd.f32 %v985_v45, %v761_v34  ;;  %v2049_v57 = vmul.f32 %v11921_v32, %v11919_v55  ;;  %v2393_v35 = vmul.f32 %v8380_v13, %v11922_v59  ;;  %v11923_v21 = vld [vmem:[#allocation25_spill] sm:$0xff] }
 0x1b5   : > { %v2041_v49 = vmul.f32 %v11920_v31, %v11919_v55  ;;  %v1121_v42 = vadd.f32 %v993_v9, %v769_v5  ;;  %v2401_v8 = vmul.f32 %v8377_v25, %v11922_v59  ;;  %v2745_v15 = vmul.f32 %v8390_v33, %v11923_v21  ;;  %11924 = vst [vmem:[#allocation170_spill] sm:$0xff] %v8440_v48  ;;  %v11925_v45 = vld [vmem:[#allocation26_spill] sm:$0xff]  ;;  %v11927_v55 = vld [vmem:[#allocation151_spill] sm:$0xff] }
 0x1b6   : > { %v3786_v4 = vpack.c.bf16 %v3698_v39, %v3690_v26  ;;  %v1465_v7 = vadd.f32 %v1337_v60, %v1113_v10  ;;  %v2753_v30 = vmul.f32 %v8387_v41, %v11923_v21  ;;  %v3097_v37 = vmul.f32 %v8394_v0, %v11925_v45  ;;  %v11926_v34 = vld [vmem:[#allocation42_spill] sm:$0xff]  ;;  %v11929_v39 = vld [vmem:[#allocation27_spill] sm:$0xff]  ;;  %v11930_v10 = vld [vmem:[#allocation29_spill] sm:$0xff] }
 0x1b7   : > { %v1473_v9 = vadd.f32 %v1345_v52, %v1121_v42  ;;  %v3105_v5 = vmul.f32 %v8392_v20, %v11925_v45  ;;  %v3449_v59 = vmul.f32 %v11927_v55, %v11926_v34  ;;  %v3457_v23 = vmul.f32 %v11927_v55, %v11928_v43  ;;  %v6649_v42 = vld [vmem:[#allocation3 + $0x3e0] ss:$8 sps:$4 sm:$0xff]   ;;  %v6651_v21 = vld [vmem:[#allocation3 + $0x3e4] ss:$8 sps:$4 sm:$0xff]  }
 0x1b8   : > { %4782 = vmatmul.mubr.bf16.gmra.mrb[16].mxu0 %v3786_v4  ;;  %v1817_v48 = vadd.f32 %v1689_v17, %v1465_v7  ;;  %v593_v60 = vmul.f32 %v11907_v38, %v11929_v39  ;;  %v601_v26 = vmul.f32 %v11908_v6, %v11929_v39  ;;  %v987_v52 = vmul.f32 %v11910_v44, %v11930_v10  ;;  %v11932_v17 = vld [vmem:[#allocation28_spill] sm:$0xff] }
 0x1b9   : > { %v1825_v45 = vadd.f32 %v1697_v12, %v1473_v9  ;;  %v995_v1 = vmul.f32 %v11911_v14, %v11930_v10  ;;  %v1339_v55 = vmul.f32 %v11913_v58, %v11931_v51  ;;  %v1347_v4 = vmul.f32 %v11915_v24, %v11931_v51  ;;  %5842 = vmatprep.subr.bf16.mxu1 %v6651_v21  ;;  %v11934_v9 = vld [vmem:[#allocation32_spill] sm:$0xff]  ;;  %v8474_v51 = vpop.permute.xlu1 %6415 }
 0x1ba   : > { %v2169_v7 = vadd.f32 %v2041_v49, %v1817_v48  ;;  %v763_v3 = vadd.f32 %v11932_v17, %v593_v60  ;;  %v771_v39 = vadd.f32 %v11932_v17, %v601_v26  ;;  %v1691_v11 = vmul.f32 %v11917_v62, %v11933_v54  ;;  %11935 = vst [vmem:[#allocation171_spill] sm:$0xff] %v8474_v51  ;;  %v11936_v26 = vld [vmem:[#allocation33_spill] sm:$0xff] }
 0x1bb   : > { %v2177_v50 = vadd.f32 %v2049_v57, %v1825_v45  ;;  %v1699_v12 = vmul.f32 %v11918_v63, %v11933_v54  ;;  %v2043_v10 = vmul.f32 %v11920_v31, %v11934_v9  ;;  %v2051_v19 = vmul.f32 %v11921_v32, %v11934_v9  ;;  %5858 = vmatpush1.bf16.msra.mxu1 %v6649_v42  ;;  %v11937_v45 = vld [vmem:[#allocation34_spill] sm:$0xff]  ;;  %v11938_v42 = vld [vmem:[#allocation35_spill] sm:$0xff] }
 0x1bc   : > { %v2521_v48 = vadd.f32 %v2393_v35, %v2169_v7  ;;  %v1115_v49 = vadd.f32 %v987_v52, %v763_v3  ;;  %v1123_v60 = vadd.f32 %v995_v1, %v771_v39  ;;  %v2395_v17 = vmul.f32 %v8380_v13, %v11936_v26 }
 0x1bd   : > { %v2529_v21 = vadd.f32 %v2401_v8, %v2177_v50  ;;  %v2403_v57 = vmul.f32 %v8377_v25, %v11936_v26  ;;  %v2747_v54 = vmul.f32 %v8390_v33, %v11937_v45  ;;  %v2755_v18 = vmul.f32 %v8387_v41, %v11937_v45  ;;  %v11939_v50 = vld [vmem:[#allocation136_spill] sm:$0xff] }
 0x1be   : > { %v2873_v9 = vadd.f32 %v2745_v15, %v2521_v48  ;;  %v1467_v29 = vadd.f32 %v1339_v55, %v1115_v49  ;;  %v1475_v51 = vadd.f32 %v1347_v4, %v1123_v60  ;;  %v3099_v3 = vmul.f32 %v8394_v0, %v11938_v42  ;;  %v8500_v49 = vpop.permute.xlu1 %6421 }
 0x1bf   : > { %v2881_v35 = vadd.f32 %v2753_v30, %v2529_v21  ;;  %v3107_v1 = vmul.f32 %v8392_v20, %v11938_v42  ;;  %v3451_v8 = vmul.f32 %v11939_v50, %v11926_v34  ;;  %v3459_v39 = vmul.f32 %v11939_v50, %v11928_v43 }
 0x1c0   : > { %v3225_v52 = vadd.f32 %v3097_v37, %v2873_v9  ;;  %v1819_v7 = vadd.f32 %v1691_v11, %v1467_v29  ;;  %v1827_v26 = vadd.f32 %v1699_v12, %v1475_v51  ;;  %v590_v55 = vmul.f32 %v11907_v38, %v11875_v53 }
 0x1c1   : > { %v3233_v15 = vadd.f32 %v3105_v5, %v2881_v35  ;;  %v598_v4 = vmul.f32 %v11908_v6, %v11875_v53  ;;  %v984_v30 = vmul.f32 %v11910_v44, %v11876_v28  ;;  %v992_v48 = vmul.f32 %v11911_v14, %v11876_v28 }
 0x1c2   : > { %v3577_v60 = vadd.f32 %v3449_v59, %v3225_v52  ;;  %v2171_v21 = vadd.f32 %v2043_v10, %v1819_v7  ;;  %v2179_v37 = vadd.f32 %v2051_v19, %v1827_v26  ;;  %v760_v29 = vadd.f32 %v11758_v2, %v590_v55 }
 0x1c3   : > { %v3585_v11 = vadd.f32 %v3457_v23, %v3233_v15  ;;  %v768_v51 = vadd.f32 %v11758_v2, %v598_v4  ;;  %v1336_v5 = vmul.f32 %v11913_v58, %v11759_v22  ;;  %v1344_v12 = vmul.f32 %v11915_v24, %v11759_v22  ;;  %v8518_v15 = vpop.permute.xlu1 %6432 }
 0x1c4   : > { %v3705_v9 = vmax.f32 %v3577_v60, 0.0  ;;  %v2523_v35 = vadd.f32 %v2395_v17, %v2171_v21  ;;  %v2531_v50 = vadd.f32 %v2403_v57, %v2179_v37  ;;  %v1112_v28 = vadd.f32 %v984_v30, %v760_v29 }
 0x1c5   : > { %v3713_v53 = vmax.f32 %v3585_v11, 0.0  ;;  %v1120_v42 = vadd.f32 %v992_v48, %v768_v51  ;;  %v1688_v19 = vmul.f32 %v11917_v62, %v11760_v16  ;;  %v1696_v23 = vmul.f32 %v11918_v63, %v11760_v16 }
 0x1c6   : > { %v2875_v59 = vadd.f32 %v2747_v54, %v2523_v35  ;;  %v2883_v10 = vadd.f32 %v2755_v18, %v2531_v50  ;;  %v1464_v26 = vadd.f32 %v1336_v5, %v1112_v28  ;;  %v2040_v52 = vmul.f32 %v11920_v31, %v11698_v27  ;;  %v11940_v50 = vld [vmem:[#allocation47_spill] sm:$0xff] }
 0x1c7   : > { %v3793_v7 = vpack.c.bf16 %v3713_v53, %v3705_v9  ;;  %v1472_v55 = vadd.f32 %v1344_v12, %v1120_v42  ;;  %v2048_v17 = vmul.f32 %v11921_v32, %v11698_v27  ;;  %v2392_v57 = vmul.f32 %v8380_v13, %v11699_v46 }
 0x1c8   : > { %v3227_v4 = vadd.f32 %v3099_v3, %v2875_v59  ;;  %v3235_v30 = vadd.f32 %v3107_v1, %v2883_v10  ;;  %v1816_v48 = vadd.f32 %v1688_v19, %v1464_v26  ;;  %v2400_v18 = vmul.f32 %v8377_v25, %v11699_v46  ;;  %v8543_v59 = vpop.permute.xlu1 %6438 }
 0x1c9   : > { %4678 = vmatprep.mubr.bf16.mxu1 %v3793_v7  ;;  %v1824_v28 = vadd.f32 %v1696_v23, %v1472_v55  ;;  %v2744_v53 = vmul.f32 %v8390_v33, %v11761_v36  ;;  %v2752_v54 = vmul.f32 %v8387_v41, %v11761_v36  ;;  %v3096_v42 = vmul.f32 %v8394_v0, %v11762_v40 }
 0x1ca   : > { %v3579_v60 = vadd.f32 %v3451_v8, %v3227_v4  ;;  %v3587_v21 = vadd.f32 %v3459_v39, %v3235_v30  ;;  %v2168_v37 = vadd.f32 %v2040_v52, %v1816_v48  ;;  %v3104_v3 = vmul.f32 %v8392_v20, %v11762_v40  ;;  %v11941_v52 = vld [vmem:[#allocation48_spill] sm:$0xff]  ;;  %v11942_v4 = vld [vmem:[#allocation49_spill] sm:$0xff] }
 0x1cb   : > { %v2176_v1 = vadd.f32 %v2048_v17, %v1824_v28  ;;  %v3448_v29 = vmul.f32 %v8114_v56, %v11926_v34  ;;  %v3456_v11 = vmul.f32 %v8114_v56, %v11928_v43  ;;  %v592_v51 = vmul.f32 %v11907_v38, %v11700_v61  ;;  %v6652_v48 = vld [vmem:[#allocation3 + $0x2f0] ss:$8 sps:$4 sm:$0xff]  }
 0x1cc   : > { %v3707_v5 = vmax.f32 %v3579_v60, 0.0  ;;  %v3715_v12 = vmax.f32 %v3587_v21, 0.0  ;;  %v2520_v9 = vadd.f32 %v2392_v57, %v2168_v37  ;;  %v600_v8 = vmul.f32 %v11908_v6, %v11700_v61  ;;  %v11943_v21 = vld [vmem:[#allocation50_spill] sm:$0xff]  ;;  %v11983_v38 = vld [vmem:[#allocation163_spill] sm:$0xff] }
 0x1cd   : > { %v2528_v39 = vadd.f32 %v2400_v18, %v2176_v1  ;;  %v762_v35 = vadd.f32 %v11877_v47, %v592_v51  ;;  %v986_v19 = vmul.f32 %v11910_v44, %v11940_v50  ;;  %v994_v23 = vmul.f32 %v11911_v14, %v11940_v50  ;;  %v6654_v18 = vld [vmem:[#allocation3 + $0x2f4] ss:$8 sps:$4 sm:$0xff]   ;;  %v6655_v1 = vld [vmem:[#allocation3 + $0x3f0] ss:$8 sps:$4 sm:$0xff]  }
 0x1ce   : > { %v3795_v56 = vpack.c.bf16 %v3715_v12, %v3707_v5  ;;  %v2872_v10 = vadd.f32 %v2744_v53, %v2520_v9  ;;  %v770_v26 = vadd.f32 %v11877_v47, %v600_v8  ;;  %v1338_v7 = vmul.f32 %v11913_v58, %v11941_v52  ;;  %v11944_v9 = vld [vmem:[#allocation51_spill] sm:$0xff]  ;;  %4852 = vmatprep.subr.bf16.mxu0 %v6654_v18  ;;  %v11982_v44 = vld [vmem:[#allocation164_spill] sm:$0xff] }
 0x1cf   : > { %v2880_v55 = vadd.f32 %v2752_v54, %v2528_v39  ;;  %v1114_v17 = vadd.f32 %v986_v19, %v762_v35  ;;  %v1346_v57 = vmul.f32 %v11915_v24, %v11941_v52  ;;  %v1690_v30 = vmul.f32 %v11917_v62, %v11942_v4  ;;  %v6657_v54 = vld [vmem:[#allocation3 + $0x3f4] ss:$8 sps:$4 sm:$0xff]   ;;  %4853 = vmatpush1.bf16.msra.mxu0 %v6652_v48  ;;  %v11980_v24 = vld [vmem:[#allocation154_spill] sm:$0xff] }
 0x1d0   : > { %4791 = vmatprep.mubr.bf16.mxu0 %v3795_v56  ;;  %v3224_v28 = vadd.f32 %v3096_v42, %v2872_v10  ;;  %v1122_v60 = vadd.f32 %v994_v23, %v770_v26  ;;  %v1698_v53 = vmul.f32 %v11918_v63, %v11942_v4  ;;  %v2042_v37 = vmul.f32 %v11920_v31, %v11943_v21  ;;  %v11945_v19 = vld [vmem:[#allocation52_spill] sm:$0xff]  ;;  %v11946_v26 = vld [vmem:[#allocation53_spill] sm:$0xff]  ;;  %v11977_v63 = vld [vmem:[#allocation19_spill] sm:$0xff] }
 0x1d1   : > { %v3232_v51 = vadd.f32 %v3104_v3, %v2880_v55  ;;  %v1466_v5 = vadd.f32 %v1338_v7, %v1114_v17  ;;  %v2050_v12 = vmul.f32 %v11921_v32, %v11943_v21  ;;  %v2394_v8 = vmul.f32 %v8380_v13, %v11944_v9  ;;  %v6427_v55 = vpop.permute.xlu0 %6426  ;;  %v6451_v17 = vpop.permute.xlu1 %6450  ;;  %5843 = vmatprep.subr.bf16.mxu1 %v6657_v54  ;;  %v11976_v32 = vld [vmem:[#allocation46_spill] sm:$0xff]  ;;  %v11979_v62 = vld [vmem:[#allocation155_spill] sm:$0xff] }
 0x1d2   : > { %v3576_v39 = vadd.f32 %v3448_v29, %v3224_v28  ;;  %v1474_v42 = vadd.f32 %v1346_v57, %v1122_v60  ;;  %v2402_v35 = vmul.f32 %v8377_v25, %v11944_v9  ;;  %v2746_v23 = vmul.f32 %v8390_v33, %v11945_v19  ;;  %v11947_v28 = vld [vmem:[#allocation137_spill] sm:$0xff]  ;;  %5859 = vmatpush1.bf16.msra.mxu1 %v6655_v1  ;;  %v11973_v25 = vld [vmem:[#allocation147_spill] sm:$0xff]  ;;  %v12003_v4 = vld [vmem:[#allocation38_spill] sm:$0xff] }
 0x1d3   : > { %v3584_v56 = vadd.f32 %v3456_v11, %v3232_v51  ;;  %v1818_v10 = vadd.f32 %v1690_v30, %v1466_v5  ;;  %v2754_v3 = vmul.f32 %v8387_v41, %v11945_v19  ;;  %v3098_v7 = vmul.f32 %v8394_v0, %v11946_v26  ;;  %v6682_v11 = vld [vmem:[#allocation3 + $0x304] ss:$8 sps:$4 sm:$0xff]   ;;  %v11948_v5 = vld [vmem:[#allocation168_spill] sm:$0xff] }
 0x1d4   : > { %v3704_v29 = vmax.f32 %v3576_v39, 0.0  ;;  %v1826_v57 = vadd.f32 %v1698_v53, %v1474_v42  ;;  %v3106_v18 = vmul.f32 %v8392_v20, %v11946_v26  ;;  %v3450_v60 = vmul.f32 %v11947_v28, %v11926_v34  ;;  %4935 = vmatprep.subr.bf16.mxu0 %v6682_v11  ;;  %v11951_v39 = vld [vmem:[#allocation170_spill] sm:$0xff] }
 0x1d5   : > { %v3712_v30 = vmax.f32 %v3584_v56, 0.0  ;;  %v2170_v48 = vadd.f32 %v2042_v37, %v1818_v10  ;;  %v3458_v51 = vmul.f32 %v11947_v28, %v11928_v43  ;;  %v8575_v0 = vunpack.i.h.bf16 %v11948_v5  ;;  %v11954_v56 = vld [vmem:[#allocation171_spill] sm:$0xff]  ;;  %v6445_v28 = vpop.permute.xlu0 %6444 }
 0x1d6   : > { %v2178_v54 = vadd.f32 %v2050_v12, %v1826_v57  ;;  %v8578_v53 = vunpack.i.l.bf16 %v11948_v5  ;;  %v8581_v42 = vunpack.i.h.bf16 %v11951_v39  ;;  %v8584_v34 = vunpack.i.l.bf16 %v11951_v39 }
 0x1d7   : > { %11949 = vst [vmem:[#allocation136_spill] sm:$0xff] %v8575_v0  ;;  %v3792_v1 = vpack.c.bf16 %v3712_v30, %v3704_v29  ;;  %v2522_v11 = vadd.f32 %v2394_v8, %v2170_v48  ;;  %v8587_v37 = vunpack.i.h.bf16 %v11954_v56  ;;  %v8590_v10 = vunpack.i.l.bf16 %v11954_v56  ;;  %v6457_v48 = vpop.permute.xlu1 %6456 }
 0x1d8   : > { %11950 = vst [vmem:[#allocation47_spill] sm:$0xff] %v8578_v53  ;;  %11952 = vst [vmem:[#allocation48_spill] sm:$0xff] %v8581_v42  ;;  %v2530_v43 = vadd.f32 %v2402_v35, %v2178_v54  ;;  %v8592_v12 = vunpack.i.h.bf16 %v6427_v55  ;;  %v8594_v57 = vunpack.i.l.bf16 %v6427_v55  ;;  %v8597_v5 = vunpack.i.h.bf16 %v8500_v49 }
 0x1d9   : > { %11953 = vst [vmem:[#allocation137_spill] sm:$0xff] %v8584_v34  ;;  %11955 = vst [vmem:[#allocation168_spill] sm:$0xff] %v8587_v37  ;;  %4679 = vmatmul.mubr.bf16.gmra.mrb[20].mxu1 %v3792_v1  ;;  %v2874_v39 = vadd.f32 %v2746_v23, %v2522_v11  ;;  %v8600_v29 = vunpack.i.l.bf16 %v8500_v49  ;;  %v8603_v8 = vunpack.i.h.bf16 %v8518_v15  ;;  %v8606_v30 = vunpack.i.l.bf16 %v8518_v15 }
 0x1da   : > { %11956 = vst [vmem:[#allocation170_spill] sm:$0xff] %v8590_v10  ;;  %11957 = vst [vmem:[#allocation171_spill] sm:$0xff] %v8592_v12  ;;  %v2882_v35 = vadd.f32 %v2754_v3, %v2530_v43  ;;  %v8608_v54 = vunpack.i.h.bf16 %v6445_v28  ;;  %v8610_v55 = vunpack.i.l.bf16 %v6445_v28  ;;  %v8613_v56 = vunpack.i.h.bf16 %v8543_v59  ;;  %v11971_v43 = vld [vmem:[#allocation18_spill] sm:$0xff]  ;;  %v11972_v3 = vld [vmem:[#allocation148_spill] sm:$0xff] }
 0x1db   : > { %11958 = vst [vmem:[#allocation172_spill] sm:$0xff] %v8594_v57  ;;  %11959 = vst [vmem:[#allocation173_spill] sm:$0xff] %v8597_v5  ;;  %v3226_v1 = vadd.f32 %v3098_v7, %v2874_v39  ;;  %v8616_v23 = vunpack.i.l.bf16 %v8543_v59  ;;  %v8618_v49 = vunpack.i.h.bf16 %v6451_v17  ;;  %v8620_v11 = vunpack.i.l.bf16 %v6451_v17  ;;  %v11974_v7 = vld [vmem:[#allocation20_spill] sm:$0xff] }
 0x1dc   : > { %11960 = vst [vmem:[#allocation174_spill] sm:$0xff] %v8600_v29  ;;  %11961 = vst [vmem:[#allocation175_spill] sm:$0xff] %v8603_v8  ;;  %v3234_v20 = vadd.f32 %v3106_v18, %v2882_v35  ;;  %v8622_v15 = vunpack.i.h.bf16 %v6457_v48  ;;  %v8624_v41 = vunpack.i.l.bf16 %v6457_v48  ;;  %v607_v28 = vmul.f32 %v11972_v3, %v11971_v43  ;;  %v11975_v39 = vld [vmem:[#allocation152_spill] sm:$0xff]  ;;  %v11978_v35 = vld [vmem:[#allocation21_spill] sm:$0xff] }
 0x1dd   : > { %11962 = vst [vmem:[#allocation176_spill] sm:$0xff] %v8606_v30  ;;  %11963 = vst [vmem:[#allocation177_spill] sm:$0xff] %v8608_v54  ;;  %v3578_v33 = vadd.f32 %v3450_v60, %v3226_v1  ;;  %v615_v13 = vmul.f32 %v11973_v25, %v11971_v43  ;;  %v1001_v59 = vmul.f32 %v11975_v39, %v11974_v7  ;;  %v11981_v1 = vld [vmem:[#allocation22_spill] sm:$0xff]  ;;  %v11987_v8 = vld [vmem:[#allocation24_spill] sm:$0xff] }
 0x1de   : > { %11964 = vst [vmem:[#allocation178_spill] sm:$0xff] %v8610_v55  ;;  %11965 = vst [vmem:[#allocation179_spill] sm:$0xff] %v8613_v56  ;;  %v1009_v31 = vmul.f32 %v11976_v32, %v11974_v7  ;;  %v3586_v17 = vadd.f32 %v3458_v51, %v3234_v20  ;;  %v777_v18 = vadd.f32 %v11977_v63, %v607_v28  ;;  %v11984_v20 = vld [vmem:[#allocation23_spill] sm:$0xff]  ;;  %v11985_v51 = vld [vmem:[#allocation169_spill] sm:$0xff] }
 0x1df   : > { %11966 = vst [vmem:[#allocation180_spill] sm:$0xff] %v8616_v23  ;;  %11967 = vst [vmem:[#allocation181_spill] sm:$0xff] %v8618_v49  ;;  %v1353_v48 = vmul.f32 %v11979_v62, %v11978_v35  ;;  %v1361_v58 = vmul.f32 %v11980_v24, %v11978_v35  ;;  %v3706_v14 = vmax.f32 %v3578_v33, 0.0  ;;  %v785_v60 = vadd.f32 %v11977_v63, %v615_v13  ;;  %v11988_v30 = vld [vmem:[#allocation25_spill] sm:$0xff]  ;;  %v11995_v7 = vld [vmem:[#allocation31_spill] sm:$0xff] }
 0x1e0   : > { %11968 = vst [vmem:[#allocation182_spill] sm:$0xff] %v8620_v11  ;;  %11969 = vst [vmem:[#allocation183_spill] sm:$0xff] %v8622_v15  ;;  %v1705_v6 = vmul.f32 %v11982_v44, %v11981_v1  ;;  %v1713_v15 = vmul.f32 %v11983_v38, %v11981_v1  ;;  %v1129_v49 = vadd.f32 %v1001_v59, %v777_v18  ;;  %v11986_v11 = vld [vmem:[#allocation167_spill] sm:$0xff] }
 0x1e1   : > { %11970 = vst [vmem:[#allocation184_spill] sm:$0xff] %v8624_v41  ;;  %v3714_v41 = vmax.f32 %v3586_v17, 0.0  ;;  %v2057_v28 = vmul.f32 %v11985_v51, %v11984_v20  ;;  %v2065_v54 = vmul.f32 %v11986_v11, %v11984_v20  ;;  %v1137_v55 = vadd.f32 %v1009_v31, %v785_v60  ;;  %v11989_v17 = vld [vmem:[#allocation26_spill] sm:$0xff]  ;;  %v11990_v60 = vld [vmem:[#allocation151_spill] sm:$0xff] }
 0x1e2   : > { %v2409_v33 = vmul.f32 %v8584_v34, %v11987_v8  ;;  %v2417_v13 = vmul.f32 %v8581_v42, %v11987_v8  ;;  %v2761_v5 = vmul.f32 %v8590_v10, %v11988_v30  ;;  %v1481_v1 = vadd.f32 %v1353_v48, %v1129_v49  ;;  %v11992_v48 = vld [vmem:[#allocation29_spill] sm:$0xff] }
 0x1e3   : > { %v3794_v29 = vpack.c.bf16 %v3714_v41, %v3706_v14  ;;  %v2769_v59 = vmul.f32 %v8587_v37, %v11988_v30  ;;  %v3113_v18 = vmul.f32 %v8594_v57, %v11989_v17  ;;  %v1489_v63 = vadd.f32 %v1361_v58, %v1137_v55  ;;  %v11991_v41 = vld [vmem:[#allocation27_spill] sm:$0xff]  ;;  %v11993_v30 = vld [vmem:[#allocation30_spill] sm:$0xff] }
 0x1e4   : > { %v3121_v31 = vmul.f32 %v8592_v12, %v11989_v17  ;;  %v3465_v20 = vmul.f32 %v11990_v60, %v8616_v23  ;;  %v3473_v8 = vmul.f32 %v11990_v60, %v8613_v56  ;;  %v1833_v35 = vadd.f32 %v1705_v6, %v1481_v1  ;;  %v11994_v1 = vld [vmem:[#allocation28_spill] sm:$0xff] }
 0x1e5   : > { %4792 = vmatmul.mubr.bf16.gmra.mrb[20].mxu0 %v3794_v29  ;;  %v609_v14 = vmul.f32 %v11972_v3, %v11991_v41  ;;  %v617_v49 = vmul.f32 %v11973_v25, %v11991_v41  ;;  %v1003_v58 = vmul.f32 %v11975_v39, %v11992_v48  ;;  %v1841_v55 = vadd.f32 %v1713_v15, %v1489_v63  ;;  %v11996_v15 = vld [vmem:[#allocation32_spill] sm:$0xff] }
 0x1e6   : > { %v1011_v17 = vmul.f32 %v11976_v32, %v11992_v48  ;;  %v1355_v0 = vmul.f32 %v11979_v62, %v11993_v30  ;;  %v1363_v29 = vmul.f32 %v11980_v24, %v11993_v30  ;;  %v2185_v6 = vadd.f32 %v2057_v28, %v1833_v35  ;;  %v11997_v28 = vld [vmem:[#allocation33_spill] sm:$0xff] }
 0x1e7   : > { %v779_v60 = vadd.f32 %v11994_v1, %v609_v14  ;;  %v787_v53 = vadd.f32 %v11994_v1, %v617_v49  ;;  %v1707_v41 = vmul.f32 %v11982_v44, %v11995_v7  ;;  %v2193_v43 = vadd.f32 %v2065_v54, %v1841_v55 }
 0x1e8   : > { %v1715_v63 = vmul.f32 %v11983_v38, %v11995_v7  ;;  %v2059_v48 = vmul.f32 %v11985_v51, %v11996_v15  ;;  %v2067_v26 = vmul.f32 %v11986_v11, %v11996_v15  ;;  %v2537_v19 = vadd.f32 %v2409_v33, %v2185_v6  ;;  %v6463_v7 = vpop.permute.xlu0 %6462  ;;  %v11998_v33 = vld [vmem:[#allocation35_spill] sm:$0xff] }
 0x1e9   : > { %v1131_v30 = vadd.f32 %v1003_v58, %v779_v60  ;;  %v1139_v35 = vadd.f32 %v1011_v17, %v787_v53  ;;  %v2411_v14 = vmul.f32 %v8584_v34, %v11997_v28  ;;  %v2545_v49 = vadd.f32 %v2417_v13, %v2193_v43  ;;  %v8701_v13 = vld [vmem:[%s10708_s1 + $0x58] ss:$0 sm:$0xff]  ;;  %v12002_v60 = vld [vmem:[#allocation36_spill] sm:$0xff] }
 0x1ea   : > { %v2419_v1 = vmul.f32 %v8581_v42, %v11997_v28  ;;  %v2763_v54 = vmul.f32 %v8590_v10, %v11937_v45  ;;  %v2771_v55 = vmul.f32 %v8587_v37, %v11937_v45  ;;  %v2889_v9 = vadd.f32 %v2761_v5, %v2537_v19  ;;  %11999 = vst [vmem:[#allocation151_spill] sm:$0xff] %v8701_v13 }
 0x1eb   : > { %v1483_v21 = vadd.f32 %v1355_v0, %v1131_v30  ;;  %v1491_v15 = vadd.f32 %v1363_v29, %v1139_v35  ;;  %v3115_v53 = vmul.f32 %v8594_v57, %v11998_v33  ;;  %v2897_v17 = vadd.f32 %v2769_v59, %v2545_v49 }
 0x1ec   : > { %v3123_v43 = vmul.f32 %v8592_v12, %v11998_v33  ;;  %v3467_v58 = vmul.f32 %v8701_v13, %v8616_v23  ;;  %v3475_v19 = vmul.f32 %v8701_v13, %v8613_v56  ;;  %v3241_v0 = vadd.f32 %v3113_v18, %v2889_v9 }
 0x1ed   : > { %v1835_v5 = vadd.f32 %v1707_v41, %v1483_v21  ;;  %v1843_v30 = vadd.f32 %v1715_v63, %v1491_v15  ;;  %v8707_v29 = vunpack.i.h.bf16 %v6463_v7  ;;  %v3249_v59 = vadd.f32 %v3121_v31, %v2897_v17 }
 0x1ee   : > { %v8709_v6 = vunpack.i.l.bf16 %v6463_v7  ;;  %v606_v35 = vmul.f32 %v11972_v3, %v12002_v60  ;;  %v614_v49 = vmul.f32 %v11973_v25, %v12002_v60  ;;  %v3593_v33 = vadd.f32 %v3465_v20, %v3241_v0 }
 0x1ef   : > { %12000 = vst [vmem:[#allocation185_spill] sm:$0xff] %v8707_v29  ;;  %v2187_v45 = vadd.f32 %v2059_v48, %v1835_v5  ;;  %v2195_v28 = vadd.f32 %v2067_v26, %v1843_v30  ;;  %v1000_v13 = vmul.f32 %v11975_v39, %v12003_v4  ;;  %v3601_v9 = vadd.f32 %v3473_v8, %v3249_v59 }
 0x1f0   : > { %12001 = vst [vmem:[#allocation186_spill] sm:$0xff] %v8709_v6  ;;  %v776_v21 = vadd.f32 %v11758_v2, %v606_v35  ;;  %v784_v18 = vadd.f32 %v11758_v2, %v614_v49  ;;  %v1008_v7 = vmul.f32 %v11976_v32, %v12003_v4  ;;  %v3721_v31 = vmax.f32 %v3593_v33, 0.0 }
 0x1f1   : > { %v2539_v41 = vadd.f32 %v2411_v14, %v2187_v45  ;;  %v2547_v63 = vadd.f32 %v2419_v1, %v2195_v28  ;;  %v1352_v15 = vmul.f32 %v11979_v62, %v11759_v22  ;;  %v3729_v20 = vmax.f32 %v3601_v9, 0.0 }
 0x1f2   : > { %v1128_v48 = vadd.f32 %v1000_v13, %v776_v21  ;;  %v1136_v26 = vadd.f32 %v1008_v7, %v784_v18  ;;  %v1360_v17 = vmul.f32 %v11980_v24, %v11759_v22  ;;  %v1704_v5 = vmul.f32 %v11982_v44, %v11760_v16 }
 0x1f3   : > { %v2891_v8 = vadd.f32 %v2763_v54, %v2539_v41  ;;  %v2899_v0 = vadd.f32 %v2771_v55, %v2547_v63  ;;  %v1712_v30 = vmul.f32 %v11983_v38, %v11760_v16  ;;  %v3801_v33 = vpack.c.bf16 %v3729_v20, %v3721_v31  ;;  %v8748_v63 = vld [vmem:[%s10708_s1 + $0x40] ss:$0 sm:$0xff] }
 0x1f4   : > { %v1480_v45 = vadd.f32 %v1352_v15, %v1128_v48  ;;  %v1488_v1 = vadd.f32 %v1360_v17, %v1136_v26  ;;  %v2056_v28 = vmul.f32 %v11985_v51, %v11698_v27  ;;  %v2064_v59 = vmul.f32 %v11986_v11, %v11698_v27 }
 0x1f5   : > { %v3243_v14 = vadd.f32 %v3115_v53, %v2891_v8  ;;  %v3251_v13 = vadd.f32 %v3123_v43, %v2899_v0  ;;  %v2408_v54 = vmul.f32 %v8584_v34, %v11699_v46  ;;  %4688 = vmatprep.mubr.bf16.mxu1 %v3801_v33  ;;  %v2416_v49 = vmul.f32 %v8581_v42, %v11699_v46 }
 0x1f6   : > { %v1832_v55 = vadd.f32 %v1704_v5, %v1480_v45  ;;  %v1840_v35 = vadd.f32 %v1712_v30, %v1488_v1  ;;  %v2760_v9 = vmul.f32 %v8590_v10, %v11761_v36  ;;  %v2768_v53 = vmul.f32 %v8587_v37, %v11761_v36 }
 0x1f7   : > { %v3595_v21 = vadd.f32 %v3467_v58, %v3243_v14  ;;  %v3603_v18 = vadd.f32 %v3475_v19, %v3251_v13  ;;  %v3112_v43 = vmul.f32 %v8594_v57, %v11762_v40  ;;  %v3120_v41 = vmul.f32 %v8592_v12, %v11762_v40 }
 0x1f8   : > { %v2184_v7 = vadd.f32 %v2056_v28, %v1832_v55  ;;  %v2192_v31 = vadd.f32 %v2064_v59, %v1840_v35  ;;  %v3464_v58 = vmul.f32 %v8748_v63, %v8616_v23  ;;  %v3472_v20 = vmul.f32 %v8748_v63, %v8613_v56 }
 0x1f9   : > { %v3723_v19 = vmax.f32 %v3595_v21, 0.0  ;;  %v3731_v15 = vmax.f32 %v3603_v18, 0.0  ;;  %v608_v48 = vmul.f32 %v11972_v3, %v11700_v61  ;;  %v616_v8 = vmul.f32 %v11973_v25, %v11700_v61  ;;  %v12030_v25 = vld [vmem:[#allocation182_spill] sm:$0xff] }
 0x1fa   : > { %v2536_v26 = vadd.f32 %v2408_v54, %v2184_v7  ;;  %v2544_v17 = vadd.f32 %v2416_v49, %v2192_v31  ;;  %v1002_v0 = vmul.f32 %v11975_v39, %v11940_v50  ;;  %v1010_v33 = vmul.f32 %v11976_v32, %v11940_v50  ;;  %v12004_v54 = vld [vmem:[#allocation49_spill] sm:$0xff]  ;;  %v12005_v49 = vld [vmem:[#allocation50_spill] sm:$0xff]  ;;  %v12026_v32 = vld [vmem:[#allocation24_spill] sm:$0xff] }
 0x1fb   : > { %v3803_v5 = vpack.c.bf16 %v3731_v15, %v3723_v19  ;;  %v778_v30 = vadd.f32 %v11877_v47, %v608_v48  ;;  %v1354_v45 = vmul.f32 %v11979_v62, %v11941_v52  ;;  %v786_v14 = vadd.f32 %v11877_v47, %v616_v8  ;;  %v12006_v19 = vld [vmem:[#allocation51_spill] sm:$0xff]  ;;  %v12029_v39 = vld [vmem:[#allocation25_spill] sm:$0xff] }
 0x1fc   : > { %v2888_v1 = vadd.f32 %v2760_v9, %v2536_v26  ;;  %v2896_v28 = vadd.f32 %v2768_v53, %v2544_v17  ;;  %v1362_v13 = vmul.f32 %v11980_v24, %v11941_v52  ;;  %v1706_v55 = vmul.f32 %v11982_v44, %v12004_v54  ;;  %v12007_v26 = vld [vmem:[#allocation52_spill] sm:$0xff]  ;;  %v12021_v44 = vld [vmem:[#allocation174_spill] sm:$0xff] }
 0x1fd   : > { %4801 = vmatprep.mubr.bf16.mxu0 %v3803_v5  ;;  %v1130_v59 = vadd.f32 %v1002_v0, %v778_v30  ;;  %v1714_v35 = vmul.f32 %v11983_v38, %v12004_v54  ;;  %v2058_v21 = vmul.f32 %v11985_v51, %v12005_v49  ;;  %v1138_v9 = vadd.f32 %v1010_v33, %v786_v14  ;;  %v12008_v30 = vld [vmem:[#allocation53_spill] sm:$0xff]  ;;  %v12020_v38 = vld [vmem:[#allocation22_spill] sm:$0xff]  ;;  %v12039_v54 = vld [vmem:[#allocation31_spill] sm:$0xff] }
 0x1fe   : > { %v3240_v18 = vadd.f32 %v3112_v43, %v2888_v1  ;;  %v3248_v7 = vadd.f32 %v3120_v41, %v2896_v28  ;;  %v2066_v53 = vmul.f32 %v11986_v11, %v12005_v49  ;;  %v2410_v15 = vmul.f32 %v8584_v34, %v12006_v19  ;;  %v8791_v1 = vld [vmem:[%s10708_s1 + $0x50] ss:$0 sm:$0xff]  ;;  %v12019_v11 = vld [vmem:[#allocation157_spill] sm:$0xff] }
 0x1ff   : > { %v1482_v31 = vadd.f32 %v1354_v45, %v1130_v59  ;;  %v2418_v48 = vmul.f32 %v8581_v42, %v12006_v19  ;;  %v2762_v17 = vmul.f32 %v8590_v10, %v12007_v26  ;;  %v1490_v5 = vadd.f32 %v1362_v13, %v1138_v9  ;;  %12009 = vst [vmem:[#allocation36_spill] sm:$0xff] %v8791_v1  ;;  %v12012_v9 = vld [vmem:[#allocation165_spill] sm:$0xff] }
 0x200   : > { %v3592_v8 = vadd.f32 %v3464_v58, %v3240_v18  ;;  %v3600_v0 = vadd.f32 %v3472_v20, %v3248_v7  ;;  %v2770_v43 = vmul.f32 %v8587_v37, %v12007_v26  ;;  %v3114_v33 = vmul.f32 %v8594_v57, %v12008_v30  ;;  %v12011_v18 = vld [vmem:[#allocation166_spill] sm:$0xff]  ;;  %v12014_v57 = vld [vmem:[#allocation47_spill] sm:$0xff] }
 0x201   : > { %v1834_v41 = vadd.f32 %v1706_v55, %v1482_v31  ;;  %v3122_v45 = vmul.f32 %v8592_v12, %v12008_v30  ;;  %v3466_v58 = vmul.f32 %v8791_v1, %v8616_v23  ;;  %v1842_v14 = vadd.f32 %v1714_v35, %v1490_v5  ;;  %v12010_v55 = vld [vmem:[#allocation18_spill] sm:$0xff]  ;;  %v12013_v12 = vld [vmem:[#allocation20_spill] sm:$0xff] }
 0x202   : > { %v3720_v20 = vmax.f32 %v3592_v8, 0.0  ;;  %v3728_v28 = vmax.f32 %v3600_v0, 0.0  ;;  %v3474_v13 = vmul.f32 %v8791_v1, %v8613_v56  ;;  %v623_v7 = vmul.f32 %v12011_v18, %v12010_v55  ;;  %v12015_v23 = vld [vmem:[#allocation136_spill] sm:$0xff]  ;;  %v12016_v0 = vld [vmem:[#allocation21_spill] sm:$0xff]  ;;  %v12017_v35 = vld [vmem:[#allocation158_spill] sm:$0xff] }
 0x203   : > { %v2186_v59 = vadd.f32 %v2058_v21, %v1834_v41  ;;  %v631_v31 = vmul.f32 %v12012_v9, %v12010_v55  ;;  %v1017_v37 = vmul.f32 %v12014_v57, %v12013_v12  ;;  %v2194_v42 = vadd.f32 %v2066_v53, %v1842_v14  ;;  %v12018_v56 = vld [vmem:[#allocation19_spill] sm:$0xff]  ;;  %v12022_v53 = vld [vmem:[#allocation173_spill] sm:$0xff]  ;;  %v12024_v14 = vld [vmem:[#allocation176_spill] sm:$0xff] }
 0x204   : > { %v3800_v10 = vpack.c.bf16 %v3728_v28, %v3720_v20  ;;  %v1025_v8 = vmul.f32 %v12015_v23, %v12013_v12  ;;  %v1369_v5 = vmul.f32 %v12017_v35, %v12016_v0  ;;  %v793_v21 = vadd.f32 %v12018_v56, %v623_v7  ;;  %v12023_v12 = vld [vmem:[#allocation23_spill] sm:$0xff] }
 0x205   : > { %v2538_v34 = vadd.f32 %v2410_v15, %v2186_v59  ;;  %v801_v41 = vadd.f32 %v12018_v56, %v631_v31  ;;  %v1377_v51 = vmul.f32 %v12019_v11, %v12016_v0  ;;  %v2546_v55 = vadd.f32 %v2418_v48, %v2194_v42  ;;  %v12025_v7 = vld [vmem:[#allocation175_spill] sm:$0xff]  ;;  %v12027_v0 = vld [vmem:[#allocation178_spill] sm:$0xff]  ;;  %v12028_v42 = vld [vmem:[#allocation177_spill] sm:$0xff] }
 0x206   : > { %4689 = vmatmul.mubr.bf16.gmra.mrb[24].mxu1 %v3800_v10  ;;  %v1721_v20 = vmul.f32 %v12021_v44, %v12020_v38  ;;  %v1729_v28 = vmul.f32 %v12022_v53, %v12020_v38  ;;  %v2073_v24 = vmul.f32 %v12024_v14, %v12023_v12  ;;  %v1145_v15 = vadd.f32 %v1017_v37, %v793_v21  ;;  %v12033_v21 = vld [vmem:[#allocation184_spill] sm:$0xff] }
 0x207   : > { %v2890_v62 = vadd.f32 %v2762_v17, %v2538_v34  ;;  %v1153_v59 = vadd.f32 %v1025_v8, %v801_v41  ;;  %v2081_v56 = vmul.f32 %v12025_v7, %v12023_v12  ;;  %v2898_v31 = vadd.f32 %v2770_v43, %v2546_v55  ;;  %v12031_v34 = vld [vmem:[#allocation181_spill] sm:$0xff]  ;;  %v12032_v8 = vld [vmem:[#allocation26_spill] sm:$0xff]  ;;  %v12034_v43 = vld [vmem:[#allocation183_spill] sm:$0xff] }
 0x208   : > { %v2425_v10 = vmul.f32 %v12027_v0, %v12026_v32  ;;  %v2433_v48 = vmul.f32 %v12028_v42, %v12026_v32  ;;  %v2777_v3 = vmul.f32 %v12030_v25, %v12029_v39  ;;  %v1497_v1 = vadd.f32 %v1369_v5, %v1145_v15  ;;  %v6686_v32 = vld [vmem:[%s10708_s1 + $0x48] ss:$0 sm:$0xff] }
 0x209   : > { %v3242_v38 = vadd.f32 %v3114_v33, %v2890_v62  ;;  %v1505_v30 = vadd.f32 %v1377_v51, %v1153_v59  ;;  %v2785_v37 = vmul.f32 %v12031_v34, %v12029_v39  ;;  %v3250_v17 = vadd.f32 %v3122_v45, %v2898_v31  ;;  %v12035_v39 = vld [vmem:[#allocation27_spill] sm:$0xff]  ;;  %v12036_v59 = vld [vmem:[#allocation29_spill] sm:$0xff] }
 0x20a   : > { %v3129_v41 = vmul.f32 %v12033_v21, %v12032_v8  ;;  %v3137_v55 = vmul.f32 %v12034_v43, %v12032_v8  ;;  %v3481_v12 = vmul.f32 %v6686_v32, %v8709_v6  ;;  %v1849_v62 = vadd.f32 %v1721_v20, %v1497_v1 }
 0x20b   : > { %v3594_v26 = vadd.f32 %v3466_v58, %v3242_v38  ;;  %v1857_v33 = vadd.f32 %v1729_v28, %v1505_v30  ;;  %v3489_v51 = vmul.f32 %v6686_v32, %v8707_v29  ;;  %v3602_v5 = vadd.f32 %v3474_v13, %v3250_v17  ;;  %v12037_v30 = vld [vmem:[#allocation28_spill] sm:$0xff]  ;;  %v12038_v28 = vld [vmem:[#allocation30_spill] sm:$0xff] }
 0x20c   : > { %v625_v45 = vmul.f32 %v12011_v18, %v12035_v39  ;;  %v633_v15 = vmul.f32 %v12012_v9, %v12035_v39  ;;  %v1019_v31 = vmul.f32 %v12014_v57, %v12036_v59  ;;  %v2201_v19 = vadd.f32 %v2073_v24, %v1849_v62 }
 0x20d   : > { %v3722_v8 = vmax.f32 %v3594_v26, 0.0  ;;  %v2209_v49 = vadd.f32 %v2081_v56, %v1857_v33  ;;  %v1027_v58 = vmul.f32 %v12015_v23, %v12036_v59  ;;  %v3730_v1 = vmax.f32 %v3602_v5, 0.0 }
 0x20e   : > { %v795_v20 = vadd.f32 %v12037_v30, %v625_v45  ;;  %v803_v13 = vadd.f32 %v12037_v30, %v633_v15  ;;  %v1371_v38 = vmul.f32 %v12017_v35, %v12038_v28  ;;  %v2553_v17 = vadd.f32 %v2425_v10, %v2201_v19  ;;  %v12040_v15 = vld [vmem:[#allocation32_spill] sm:$0xff] }
 0x20f   : > { %v2561_v32 = vadd.f32 %v2433_v48, %v2209_v49  ;;  %v1379_v39 = vmul.f32 %v12019_v11, %v12038_v28  ;;  %v1723_v24 = vmul.f32 %v12021_v44, %v12039_v54  ;;  %v3802_v26 = vpack.c.bf16 %v3730_v1, %v3722_v8  ;;  %v12041_v48 = vld [vmem:[#allocation33_spill] sm:$0xff] }
 0x210   : > { %v1147_v56 = vadd.f32 %v1019_v31, %v795_v20  ;;  %v1155_v62 = vadd.f32 %v1027_v58, %v803_v13  ;;  %v1731_v33 = vmul.f32 %v12022_v53, %v12039_v54  ;;  %v2905_v5 = vadd.f32 %v2777_v3, %v2553_v17  ;;  %v12042_v54 = vld [vmem:[#allocation34_spill] sm:$0xff]  ;;  %v12043_v13 = vld [vmem:[#allocation35_spill] sm:$0xff] }
 0x211   : > { %v2913_v45 = vadd.f32 %v2785_v37, %v2561_v32  ;;  %v2075_v59 = vmul.f32 %v12024_v14, %v12040_v15  ;;  %v2083_v49 = vmul.f32 %v12025_v7, %v12040_v15  ;;  %4802 = vmatmul.mubr.bf16.gmra.mrb[24].mxu0 %v3802_v26  ;;  %v2427_v30 = vmul.f32 %v12027_v0, %v12041_v48 }
 0x212   : > { %v1499_v19 = vadd.f32 %v1371_v38, %v1147_v56  ;;  %v1507_v10 = vadd.f32 %v1379_v39, %v1155_v62  ;;  %v2435_v31 = vmul.f32 %v12028_v42, %v12041_v48  ;;  %v3257_v8 = vadd.f32 %v3129_v41, %v2905_v5  ;;  %v12044_v39 = vld [vmem:[#allocation151_spill] sm:$0xff] }
 0x213   : > { %v3265_v58 = vadd.f32 %v3137_v55, %v2913_v45  ;;  %v2779_v3 = vmul.f32 %v12030_v25, %v12042_v54  ;;  %v2787_v37 = vmul.f32 %v12031_v34, %v12042_v54  ;;  %v3131_v28 = vmul.f32 %v12033_v21, %v12043_v13 }
 0x214   : > { %v1851_v1 = vadd.f32 %v1723_v24, %v1499_v19  ;;  %v1859_v20 = vadd.f32 %v1731_v33, %v1507_v10  ;;  %v3139_v38 = vmul.f32 %v12034_v43, %v12043_v13  ;;  %v3609_v17 = vadd.f32 %v3481_v12, %v3257_v8 }
 0x215   : > { %v3617_v32 = vadd.f32 %v3489_v51, %v3265_v58  ;;  %v3483_v41 = vmul.f32 %v12044_v39, %v8709_v6  ;;  %v3491_v55 = vmul.f32 %v12044_v39, %v8707_v29  ;;  %v622_v24 = vmul.f32 %v12011_v18, %v12002_v60 }
 0x216   : > { %v2203_v26 = vadd.f32 %v2075_v59, %v1851_v1  ;;  %v2211_v56 = vadd.f32 %v2083_v49, %v1859_v20  ;;  %v630_v62 = vmul.f32 %v12012_v9, %v12002_v60  ;;  %v3737_v33 = vmax.f32 %v3609_v17, 0.0 }
 0x217   : > { %v3745_v5 = vmax.f32 %v3617_v32, 0.0  ;;  %v1016_v12 = vmul.f32 %v12014_v57, %v12003_v4  ;;  %v1024_v51 = vmul.f32 %v12015_v23, %v12003_v4  ;;  %v792_v19 = vadd.f32 %v11758_v2, %v622_v24 }
 0x218   : > { %v2555_v45 = vadd.f32 %v2427_v30, %v2203_v26  ;;  %v2563_v15 = vadd.f32 %v2435_v31, %v2211_v56  ;;  %v800_v59 = vadd.f32 %v11758_v2, %v630_v62  ;;  %v1368_v10 = vmul.f32 %v12017_v35, %v11759_v22 }
 0x219   : > { %v3809_v49 = vpack.c.bf16 %v3745_v5, %v3737_v33  ;;  %v1376_v60 = vmul.f32 %v12019_v11, %v11759_v22  ;;  %v1720_v48 = vmul.f32 %v12021_v44, %v11760_v16  ;;  %v1144_v54 = vadd.f32 %v1016_v12, %v792_v19  ;;  %v8923_v19 = vpop.f32.mrb[0].mxu1 }
 0x21a   : > { %v2907_v8 = vadd.f32 %v2779_v3, %v2555_v45  ;;  %v2915_v58 = vadd.f32 %v2787_v37, %v2563_v15  ;;  %v1152_v4 = vadd.f32 %v1024_v51, %v800_v59  ;;  %v1728_v30 = vmul.f32 %v12022_v53, %v11760_v16  ;;  %12045 = vst [vmem:[#allocation38_spill] sm:$0xff] %v8923_v19 }
 0x21b   : > { %4698 = vmatprep.mubr.bf16.mxu1 %v3809_v49  ;;  %v2072_v2 = vmul.f32 %v12024_v14, %v11698_v27  ;;  %v2080_v31 = vmul.f32 %v12025_v7, %v11698_v27  ;;  %v2424_v22 = vmul.f32 %v12027_v0, %v11699_v46  ;;  %v1496_v13 = vadd.f32 %v1368_v10, %v1144_v54  ;;  %v12046_v10 = vld [vmem:[#allocation49_spill] sm:$0xff] }
 0x21c   : > { %v3259_v1 = vadd.f32 %v3131_v28, %v2907_v8  ;;  %v3267_v20 = vadd.f32 %v3139_v38, %v2915_v58  ;;  %v1504_v3 = vadd.f32 %v1376_v60, %v1152_v4  ;;  %v2432_v37 = vmul.f32 %v12028_v42, %v11699_v46  ;;  %v12047_v58 = vld [vmem:[#allocation50_spill] sm:$0xff] }
 0x21d   : > { %v2776_v17 = vmul.f32 %v12030_v25, %v11761_v36  ;;  %v2784_v16 = vmul.f32 %v12031_v34, %v11761_v36  ;;  %v3128_v32 = vmul.f32 %v12033_v21, %v11762_v40  ;;  %v1848_v26 = vadd.f32 %v1720_v48, %v1496_v13 }
 0x21e   : > { %v3611_v27 = vadd.f32 %v3483_v41, %v3259_v1  ;;  %v3619_v39 = vadd.f32 %v3491_v55, %v3267_v20  ;;  %v1856_v56 = vadd.f32 %v1728_v30, %v1504_v3  ;;  %v3136_v28 = vmul.f32 %v12034_v43, %v11762_v40  ;;  %v12049_v20 = vld [vmem:[#allocation52_spill] sm:$0xff] }
 0x21f   : > { %v3480_v38 = vmul.f32 %v8748_v63, %v8709_v6  ;;  %v3488_v46 = vmul.f32 %v8748_v63, %v8707_v29  ;;  %v624_v24 = vmul.f32 %v12011_v18, %v11700_v61  ;;  %v2200_v33 = vadd.f32 %v2072_v2, %v1848_v26  ;;  %v12048_v2 = vld [vmem:[#allocation51_spill] sm:$0xff] }
 0x220   : > { %v3739_v36 = vmax.f32 %v3611_v27, 0.0  ;;  %v3747_v62 = vmax.f32 %v3619_v39, 0.0  ;;  %v2208_v5 = vadd.f32 %v2080_v31, %v1856_v56  ;;  %v632_v41 = vmul.f32 %v12012_v9, %v11700_v61  ;;  %v12051_v56 = vld [vmem:[#allocation36_spill] sm:$0xff] }
 0x221   : > { %v794_v55 = vadd.f32 %v11877_v47, %v624_v24  ;;  %v1018_v40 = vmul.f32 %v12014_v57, %v11940_v50  ;;  %v1026_v12 = vmul.f32 %v12015_v23, %v11940_v50  ;;  %v2552_v63 = vadd.f32 %v2424_v22, %v2200_v33  ;;  %v387_v24 = vld [vmem:[%s10708_s1 + $0x28] sm:$0xff] }
 0x222   : > { %v3811_v51 = vpack.c.bf16 %v3747_v62, %v3739_v36  ;;  %v2560_v45 = vadd.f32 %v2432_v37, %v2208_v5  ;;  %v1370_v15 = vmul.f32 %v12017_v35, %v11941_v52  ;;  %v802_v59 = vadd.f32 %v11877_v47, %v632_v41  ;;  %v12052_v5 = vld [vmem:[#allocation10_spill] sm:$0xff] }
 0x223   : > { %v1146_v49 = vadd.f32 %v1018_v40, %v794_v55  ;;  %v1378_v61 = vmul.f32 %v12019_v11, %v11941_v52  ;;  %v1722_v60 = vmul.f32 %v12021_v44, %v12046_v10  ;;  %v2904_v48 = vadd.f32 %v2776_v17, %v2552_v63  ;;  %v8961_v55 = vld [vmem:[%s10709_s2] sm:$0xff]  ;;  %v12054_v40 = vld [vmem:[#allocation15_spill] sm:$0xff]  ;;  %v12093_v35 = vld [vmem:[#allocation126_spill] sm:$0xff] }
 0x224   : > { %4811 = vmatprep.mubr.bf16.mxu0 %v3811_v51  ;;  %v2912_v50 = vadd.f32 %v2784_v16, %v2560_v45  ;;  %v1730_v8 = vmul.f32 %v12022_v53, %v12046_v10  ;;  %v2074_v54 = vmul.f32 %v12024_v14, %v12047_v58  ;;  %v1154_v4 = vadd.f32 %v1026_v12, %v802_v59  ;;  %v12050_v16 = vld [vmem:[#allocation53_spill] sm:$0xff]  ;;  %v12056_v51 = vld [vmem:[#allocation11_spill] sm:$0xff]  ;;  %v9044_v53 = vpop.f32.mrb[1].mxu1 }
 0x225   : > { %v1498_v30 = vadd.f32 %v1370_v15, %v1146_v49  ;;  %v2082_v47 = vmul.f32 %v12025_v7, %v12047_v58  ;;  %v2426_v52 = vmul.f32 %v12027_v0, %v12048_v2  ;;  %v3256_v31 = vadd.f32 %v3128_v32, %v2904_v48  ;;  %v12058_v59 = vld [vmem:[#allocation57_spill] sm:$0xff]  ;;  %12091 = vst [vmem:[#allocation31_spill] sm:$0xff] %v9044_v53  ;;  %v12092_v11 = vld [vmem:[#allocation127_spill] sm:$0xff] }
 0x226   : > { %v3264_v22 = vadd.f32 %v3136_v28, %v2912_v50  ;;  %v2434_v1 = vmul.f32 %v12028_v42, %v12048_v2  ;;  %v2778_v13 = vmul.f32 %v12030_v25, %v12049_v20  ;;  %v1506_v3 = vadd.f32 %v1378_v61, %v1154_v4  ;;  %v12059_v61 = vld [vmem:[#allocation56_spill] sm:$0xff]  ;;  %v12060_v48 = vld [vmem:[#allocation61_spill] sm:$0xff] }
 0x227   : > { %v1850_v37 = vadd.f32 %v1722_v60, %v1498_v30  ;;  %v2786_v17 = vmul.f32 %v12031_v34, %v12049_v20  ;;  %v3130_v27 = vmul.f32 %v12033_v21, %v12050_v16  ;;  %v3608_v39 = vadd.f32 %v3480_v38, %v3256_v31  ;;  %v12064_v31 = vld [vmem:[#allocation55_spill] sm:$0xff]  ;;  %v12065_v20 = vld [vmem:[#allocation54_spill] sm:$0xff] }
 0x228   : > { %v3616_v26 = vadd.f32 %v3488_v46, %v3264_v22  ;;  %v3138_v32 = vmul.f32 %v12034_v43, %v12050_v16  ;;  %v3482_v28 = vmul.f32 %v12051_v56, %v8709_v6  ;;  %v1858_v36 = vadd.f32 %v1730_v8, %v1506_v3  ;;  %v12061_v8 = vld [vmem:[#allocation60_spill] sm:$0xff]  ;;  %v12080_v6 = vld [vmem:[#allocation97_spill] sm:$0xff] }
 0x229   : > { %v2202_v62 = vadd.f32 %v2074_v54, %v1850_v37  ;;  %v3490_v33 = vmul.f32 %v12051_v56, %v8707_v29  ;;  %v8956_v41 = vrot.slane %v387_v24, %v12052_v5  ;;  %v3736_v38 = vmax.f32 %v3608_v39, 0.0  ;;  %v12062_v54 = vld [vmem:[#allocation12_spill] sm:$0xff]  ;;  %v12066_v37 = vld [vmem:[#allocation13_spill] sm:$0xff]  ;;  %v12068_v39 = vld [vmem:[#allocation14_spill] sm:$0xff] }
 0x22a   : > { %v3744_v46 = vmax.f32 %v3616_v26, 0.0  ;;  %v8965_v12 = vrot.slane %v8961_v55, %v12054_v40  ;;  %v8968_v63 = vrot.slane %v387_v24, %v12056_v51  ;;  %v2210_v45 = vadd.f32 %v2082_v47, %v1858_v36 }
 0x22b   : > { %12053 = vst [vmem:[#allocation18_spill] sm:$0xff] %v8956_v41  ;;  %v2554_v15 = vadd.f32 %v2426_v52, %v2202_v62  ;;  %v515_v49 = vmul.f32 %v12058_v59, %v8956_v41  ;;  %v523_v10 = vmul.f32 %v12059_v61, %v8956_v41  ;;  %v8979_v4 = vrot.slane %v387_v24, %v12062_v54 }
 0x22c   : > { %12055 = vst [vmem:[#allocation20_spill] sm:$0xff] %v8965_v12  ;;  %12057 = vst [vmem:[#allocation21_spill] sm:$0xff] %v8968_v63  ;;  %v3808_v60 = vpack.c.bf16 %v3744_v46, %v3736_v38  ;;  %v909_v50 = vmul.f32 %v12060_v48, %v8968_v63  ;;  %v917_v58 = vmul.f32 %v12061_v8, %v8968_v63  ;;  %v12071_v38 = vld [vmem:[#allocation59_spill] sm:$0xff]  ;;  %v12114_v63 = vld [vmem:[#allocation90_spill] sm:$0xff] }
 0x22d   : > { %12063 = vst [vmem:[#allocation19_spill] sm:$0xff] %v8979_v4  ;;  %v2562_v30 = vadd.f32 %v2434_v1, %v2210_v45  ;;  %v2906_v2 = vadd.f32 %v2778_v13, %v2554_v15  ;;  %v685_v47 = vadd.f32 %v8965_v12, %v515_v49  ;;  %v693_v52 = vadd.f32 %v8965_v12, %v523_v10  ;;  %v8996_v13 = vld [vmem:[%s10708_s1 + $0x68] ss:$0 sm:$0xff]  ;;  %v12072_v45 = vld [vmem:[#allocation58_spill] sm:$0xff] }
 0x22e   : > { %4699 = vmatmul.mubr.bf16.gmra.mrb[28].mxu1 %v3808_v60  ;;  %v1261_v22 = vmul.f32 %v12064_v31, %v8979_v4  ;;  %v1269_v3 = vmul.f32 %v12065_v20, %v8979_v4  ;;  %v8988_v16 = vrot.slane %v387_v24, %v12066_v37  ;;  %v8991_v26 = vrot.slane %v387_v24, %v12068_v39  ;;  %v12073_v49 = vld [vmem:[#allocation65_spill] sm:$0xff]  ;;  %v12074_v60 = vld [vmem:[#allocation64_spill] sm:$0xff]  ;;  %v12108_v4 = vld [vmem:[#allocation142_spill] sm:$0xff] }
 0x22f   : > { %v2914_v56 = vadd.f32 %v2786_v17, %v2562_v30  ;;  %v3258_v1 = vadd.f32 %v3130_v27, %v2906_v2  ;;  %12070 = vst [vmem:[#allocation24_spill] sm:$0xff] %v8996_v13  ;;  %v1037_v36 = vadd.f32 %v909_v50, %v685_v47  ;;  %v1045_v62 = vadd.f32 %v917_v58, %v693_v52  ;;  %v12076_v50 = vld [vmem:[#allocation16_spill] sm:$0xff]  ;;  %v12078_v47 = vld [vmem:[#allocation17_spill] sm:$0xff] }
 0x230   : > { %12067 = vst [vmem:[#allocation22_spill] sm:$0xff] %v8988_v16  ;;  %12069 = vst [vmem:[#allocation23_spill] sm:$0xff] %v8991_v26  ;;  %v1613_v46 = vmul.f32 %v12071_v38, %v8988_v16  ;;  %v1621_v15 = vmul.f32 %v12072_v45, %v8988_v16  ;;  %v1965_v10 = vmul.f32 %v12073_v49, %v8991_v26 }
 0x231   : > { %v1973_v17 = vmul.f32 %v12074_v60, %v8991_v26  ;;  %v3266_v27 = vadd.f32 %v3138_v32, %v2914_v56  ;;  %v3610_v30 = vadd.f32 %v3482_v28, %v3258_v1  ;;  %v1389_v2 = vadd.f32 %v1261_v22, %v1037_v36  ;;  %v12081_v32 = vld [vmem:[#allocation73_spill] sm:$0xff]  ;;  %v12082_v22 = vld [vmem:[#allocation72_spill] sm:$0xff] }
 0x232   : > { %v1397_v19 = vadd.f32 %v1269_v3, %v1045_v62  ;;  %v9007_v29 = vrot.slane %v387_v24, %v12054_v40  ;;  %v9010_v58 = vrot.slane %v387_v24, %v12076_v50  ;;  %v9013_v52 = vrot.slane %v387_v24, %v12078_v47  ;;  %v12083_v56 = vld [vmem:[#allocation77_spill] sm:$0xff]  ;;  %v12084_v36 = vld [vmem:[#allocation76_spill] sm:$0xff] }
 0x233   : > { %v3373_v43 = vmul.f32 %v12080_v6, %v8996_v13  ;;  %v3618_v21 = vadd.f32 %v3490_v33, %v3266_v27  ;;  %v3738_v34 = vmax.f32 %v3610_v30, 0.0  ;;  %v1741_v25 = vadd.f32 %v1613_v46, %v1389_v2  ;;  %v12085_v33 = vld [vmem:[#allocation75_spill] sm:$0xff]  ;;  %v12086_v46 = vld [vmem:[#allocation74_spill] sm:$0xff]  ;;  %v12087_v30 = vld [vmem:[#allocation96_spill] sm:$0xff] }
 0x234   : > { %12075 = vst [vmem:[#allocation25_spill] sm:$0xff] %v9007_v29  ;;  %12077 = vst [vmem:[#allocation26_spill] sm:$0xff] %v9010_v58  ;;  %v1749_v42 = vadd.f32 %v1621_v15, %v1397_v19  ;;  %v2317_v28 = vmul.f32 %v12081_v32, %v9007_v29  ;;  %v2325_v3 = vmul.f32 %v12082_v22, %v9007_v29  ;;  %v389_v19 = vld [vmem:[%s10708_s1 + $0x38] sm:$0xff] }
 0x235   : > { %12079 = vst [vmem:[#allocation27_spill] sm:$0xff] %v9013_v52  ;;  %v2669_v1 = vmul.f32 %v12083_v56, %v9010_v58  ;;  %v2677_v24 = vmul.f32 %v12084_v36, %v9010_v58  ;;  %v3746_v62 = vmax.f32 %v3618_v21, 0.0  ;;  %v2093_v0 = vadd.f32 %v1965_v10, %v1741_v25 }
 0x236   : > { %v2101_v7 = vadd.f32 %v1973_v17, %v1749_v42  ;;  %v3021_v27 = vmul.f32 %v12085_v33, %v9013_v52  ;;  %v3029_v15 = vmul.f32 %v12086_v46, %v9013_v52  ;;  %v3381_v2 = vmul.f32 %v12087_v30, %v8996_v13  ;;  %v12099_v52 = vld [vmem:[#allocation39_spill] sm:$0xff] }
 0x237   : > { %v9035_v14 = vrot.slane %v389_v19, %v12052_v5  ;;  %v9039_v25 = vrot.slane %v8961_v55, %v12078_v47  ;;  %v3810_v42 = vpack.c.bf16 %v3746_v62, %v3738_v34  ;;  %v2445_v21 = vadd.f32 %v2317_v28, %v2093_v0  ;;  %v12096_v34 = vld [vmem:[#allocation37_spill] sm:$0xff] }
 0x238   : > { %v2453_v10 = vadd.f32 %v2325_v3, %v2101_v7  ;;  %v9042_v17 = vrot.slane %v389_v19, %v12056_v51  ;;  %v9051_v57 = vrot.slane %v389_v19, %v12062_v54  ;;  %v9054_v9 = vrot.slane %v389_v19, %v12066_v37  ;;  %v12097_v3 = vld [vmem:[#allocation93_spill] sm:$0xff] }
 0x239   : > { %12088 = vst [vmem:[#allocation29_spill] sm:$0xff] %v9035_v14  ;;  %12089 = vst [vmem:[#allocation28_spill] sm:$0xff] %v9039_v25  ;;  %v581_v44 = vmul.f32 %v12092_v11, %v9035_v14  ;;  %v589_v23 = vmul.f32 %v12093_v35, %v9035_v14  ;;  %4812 = vmatmul.mubr.bf16.gmra.mrb[28].mxu0 %v3810_v42  ;;  %v2797_v0 = vadd.f32 %v2669_v1, %v2445_v21  ;;  %v12098_v14 = vld [vmem:[#allocation40_spill] sm:$0xff]  ;;  %v12100_v1 = vld [vmem:[#allocation131_spill] sm:$0xff] }
 0x23a   : > { %12090 = vst [vmem:[#allocation30_spill] sm:$0xff] %v9042_v17  ;;  %12094 = vst [vmem:[#allocation32_spill] sm:$0xff] %v9051_v57  ;;  %v2805_v7 = vadd.f32 %v2677_v24, %v2453_v10  ;;  %v975_v28 = vmul.f32 %v12096_v34, %v9042_v17  ;;  %v983_v62 = vmul.f32 %v12097_v3, %v9042_v17  ;;  %v12101_v21 = vld [vmem:[#allocation9_spill] sm:$0xff] }
 0x23b   : > { %12095 = vst [vmem:[#allocation33_spill] sm:$0xff] %v9054_v9  ;;  %v751_v53 = vadd.f32 %v9039_v25, %v581_v44  ;;  %v759_v18 = vadd.f32 %v9039_v25, %v589_v23  ;;  %v1327_v13 = vmul.f32 %v12098_v14, %v9051_v57  ;;  %v1335_v58 = vmul.f32 %v12099_v52, %v9051_v57 }
 0x23c   : > { %v3149_v29 = vadd.f32 %v3021_v27, %v2797_v0  ;;  %v3157_v42 = vadd.f32 %v3029_v15, %v2805_v7  ;;  %v1679_v24 = vmul.f32 %v12100_v1, %v9054_v9  ;;  %v1687_v10 = vmul.f32 %v12101_v21, %v9054_v9  ;;  %v12106_v7 = vld [vmem:[#allocation135_spill] sm:$0xff] }
 0x23d   : > { %v1103_v26 = vadd.f32 %v975_v28, %v751_v53  ;;  %v1111_v17 = vadd.f32 %v983_v62, %v759_v18  ;;  %v9071_v44 = vrot.slane %v389_v19, %v12068_v39  ;;  %v9074_v23 = vrot.slane %v389_v19, %v12054_v40  ;;  %v12107_v18 = vld [vmem:[#allocation134_spill] sm:$0xff] }
 0x23e   : > { %v3501_v25 = vadd.f32 %v3373_v43, %v3149_v29  ;;  %v3509_v16 = vadd.f32 %v3381_v2, %v3157_v42  ;;  %v9077_v57 = vrot.slane %v389_v19, %v12076_v50  ;;  %v9080_v27 = vrot.slane %v389_v19, %v12078_v47  ;;  %v12109_v43 = vld [vmem:[#allocation141_spill] sm:$0xff]  ;;  %v9093_v19 = vld [vmem:[%s10708_s1 + $0x78] ss:$0 sm:$0xff] }
 0x23f   : > { %12102 = vst [vmem:[#allocation34_spill] sm:$0xff] %v9071_v44  ;;  %12103 = vst [vmem:[#allocation35_spill] sm:$0xff] %v9074_v23  ;;  %v1455_v15 = vadd.f32 %v1327_v13, %v1103_v26  ;;  %v1463_v0 = vadd.f32 %v1335_v58, %v1111_v17  ;;  %v2031_v53 = vmul.f32 %v12106_v7, %v9071_v44  ;;  %v12111_v58 = vld [vmem:[#allocation144_spill] sm:$0xff]  ;;  %v12112_v42 = vld [vmem:[#allocation143_spill] sm:$0xff] }
 0x240   : > { %12104 = vst [vmem:[#allocation151_spill] sm:$0xff] %v9077_v57  ;;  %12105 = vst [vmem:[#allocation49_spill] sm:$0xff] %v9080_v27  ;;  %v2039_v28 = vmul.f32 %v12107_v18, %v9071_v44  ;;  %v3629_v62 = vmax.f32 %v3501_v25, 0.0  ;;  %v3637_v9 = vmax.f32 %v3509_v16, 0.0  ;;  %v2383_v29 = vmul.f32 %v12108_v4, %v9074_v23  ;;  %v386_v16 = vld [vmem:[%s10708_s1 + $0x20] sm:$0xff] }
 0x241   : > { %v2391_v2 = vmul.f32 %v12109_v43, %v9074_v23  ;;  %12110 = vst [vmem:[#allocation50_spill] sm:$0xff] %v9093_v19  ;;  %v1807_v26 = vadd.f32 %v1679_v24, %v1455_v15  ;;  %v1815_v13 = vadd.f32 %v1687_v10, %v1463_v0  ;;  %v2735_v17 = vmul.f32 %v12111_v58, %v9077_v57  ;;  %v12113_v23 = vld [vmem:[#allocation91_spill] sm:$0xff]  ;;  %v12115_v24 = vld [vmem:[#allocation112_spill] sm:$0xff] }
 0x242   : > { %v2743_v25 = vmul.f32 %v12112_v42, %v9077_v57  ;;  %v3757_v44 = vpack.c.bf16 %v3637_v9, %v3629_v62  ;;  %v3087_v12 = vmul.f32 %v12113_v23, %v9080_v27  ;;  %v3095_v41 = vmul.f32 %v12114_v63, %v9080_v27  ;;  %v12116_v58 = vld [vmem:[#allocation111_spill] sm:$0xff] }
 0x243   : > { %v3439_v10 = vmul.f32 %v12115_v24, %v9093_v19  ;;  %v2159_v15 = vadd.f32 %v2031_v53, %v1807_v26  ;;  %v2167_v0 = vadd.f32 %v2039_v28, %v1815_v13  ;;  %v3447_v43 = vmul.f32 %v12116_v58, %v9093_v19 }
 0x244   : > { %v9111_v57 = vrot.slane %v386_v16, %v12052_v5  ;;  %4854 = vmatprep.mubr.bf16.mxu0 %v3757_v44  ;;  %v9115_v9 = vrot.slane %v8961_v55, %v12068_v39  ;;  %v9118_v62 = vrot.slane %v386_v16, %v12056_v51  ;;  %v9121_v27 = vrot.slane %v386_v16, %v12062_v54 }
 0x245   : > { %v9124_v53 = vrot.slane %v386_v16, %v12066_v37  ;;  %v2511_v28 = vadd.f32 %v2383_v29, %v2159_v15  ;;  %v2519_v26 = vadd.f32 %v2391_v2, %v2167_v0 }
 0x246   : > { %v514_v13 = vmul.f32 %v12058_v59, %v9111_v57  ;;  %v522_v44 = vmul.f32 %v12059_v61, %v9111_v57  ;;  %v908_v19 = vmul.f32 %v12060_v48, %v9118_v62  ;;  %v916_v63 = vmul.f32 %v12061_v8, %v9118_v62 }
 0x247   : > { %v1260_v58 = vmul.f32 %v12064_v31, %v9121_v27  ;;  %v1268_v23 = vmul.f32 %v12065_v20, %v9121_v27  ;;  %v2863_v29 = vadd.f32 %v2735_v17, %v2511_v28  ;;  %v2871_v2 = vadd.f32 %v2743_v25, %v2519_v26  ;;  %v9153_v17 = vld [vmem:[%s10708_s1 + $0x60] ss:$0 sm:$0xff] }
 0x248   : > { %v684_v15 = vadd.f32 %v9115_v9, %v514_v13  ;;  %v692_v0 = vadd.f32 %v9115_v9, %v522_v44  ;;  %v1612_v61 = vmul.f32 %v12071_v38, %v9124_v53  ;;  %v1620_v48 = vmul.f32 %v12072_v45, %v9124_v53  ;;  %12117 = vst [vmem:[#allocation51_spill] sm:$0xff] %v9153_v17 }
 0x249   : > { %v9145_v8 = vrot.slane %v386_v16, %v12068_v39  ;;  %v9148_v31 = vrot.slane %v386_v16, %v12054_v40  ;;  %v3215_v59 = vadd.f32 %v3087_v12, %v2863_v29  ;;  %v3223_v20 = vadd.f32 %v3095_v41, %v2871_v2 }
 0x24a   : > { %v1036_v25 = vadd.f32 %v908_v19, %v684_v15  ;;  %v1044_v28 = vadd.f32 %v916_v63, %v692_v0  ;;  %v9164_v38 = vrot.slane %v386_v16, %v12076_v50  ;;  %v9167_v63 = vrot.slane %v386_v16, %v12078_v47  ;;  %v9173_v0 = vpop.f32.mrb[2].mxu1 }
 0x24b   : > { %v1964_v26 = vmul.f32 %v12073_v49, %v9145_v8  ;;  %v1972_v13 = vmul.f32 %v12074_v60, %v9145_v8  ;;  %v2316_v44 = vmul.f32 %v12081_v32, %v9148_v31  ;;  %v2324_v12 = vmul.f32 %v12082_v22, %v9148_v31  ;;  %12118 = vst [vmem:[#allocation52_spill] sm:$0xff] %v9173_v0  ;;  %v12140_v49 = vld [vmem:[#allocation66_spill] sm:$0xff] }
 0x24c   : > { %v3567_v41 = vadd.f32 %v3439_v10, %v3215_v59  ;;  %v3575_v29 = vadd.f32 %v3447_v43, %v3223_v20  ;;  %v1388_v2 = vadd.f32 %v1260_v58, %v1036_v25  ;;  %v1396_v45 = vadd.f32 %v1268_v23, %v1044_v28  ;;  %v388_v23 = vld [vmem:[%s10708_s1 + $0x30] sm:$0xff]  ;;  %v9178_v43 = vpop.f32.mrb[3].mxu1 }
 0x24d   : > { %v3372_v19 = vmul.f32 %v12080_v6, %v9153_v17  ;;  %v3380_v15 = vmul.f32 %v12087_v30, %v9153_v17  ;;  %12119 = vst [vmem:[#allocation53_spill] sm:$0xff] %v9178_v43  ;;  %v2668_v58 = vmul.f32 %v12083_v56, %v9164_v38  ;;  %v2676_v16 = vmul.f32 %v12084_v36, %v9164_v38  ;;  %v12138_v36 = vld [vmem:[#allocation21_spill] sm:$0xff]  ;;  %v12139_v56 = vld [vmem:[#allocation67_spill] sm:$0xff] }
 0x24e   : > { %v3695_v32 = vmax.f32 %v3567_v41, 0.0  ;;  %v3703_v22 = vmax.f32 %v3575_v29, 0.0  ;;  %v1740_v59 = vadd.f32 %v1612_v61, %v1388_v2  ;;  %v1748_v20 = vadd.f32 %v1620_v48, %v1396_v45 }
 0x24f   : > { %v3020_v10 = vmul.f32 %v12085_v33, %v9167_v63  ;;  %v3028_v25 = vmul.f32 %v12086_v46, %v9167_v63  ;;  %v9189_v28 = vrot.slane %v388_v23, %v12052_v5  ;;  %v9193_v41 = vrot.slane %v8961_v55, %v12076_v50  ;;  %v12134_v33 = vld [vmem:[#allocation18_spill] sm:$0xff] }
 0x250   : > { %v3791_v61 = vpack.c.bf16 %v3703_v22, %v3695_v32  ;;  %v2092_v48 = vadd.f32 %v1964_v26, %v1740_v59  ;;  %v2100_v45 = vadd.f32 %v1972_v13, %v1748_v20  ;;  %v9196_v29 = vrot.slane %v388_v23, %v12056_v51 }
 0x251   : > { %12120 = vst [vmem:[#allocation36_spill] sm:$0xff] %v9189_v28  ;;  %12121 = vst [vmem:[#allocation15_spill] sm:$0xff] %v9193_v41  ;;  %v9199_v2 = vrot.slane %v388_v23, %v12062_v54  ;;  %v9202_v43 = vrot.slane %v388_v23, %v12066_v37  ;;  %v580_v26 = vmul.f32 %v12092_v11, %v9189_v28 }
 0x252   : > { %12122 = vst [vmem:[#allocation12_spill] sm:$0xff] %v9196_v29  ;;  %5007 = vmatprep.mubr.bf16.mxu1 %v3791_v61  ;;  %v2444_v32 = vadd.f32 %v2316_v44, %v2092_v48  ;;  %v2452_v22 = vadd.f32 %v2324_v12, %v2100_v45  ;;  %v588_v13 = vmul.f32 %v12093_v35, %v9189_v28  ;;  %v12153_v35 = vld [vmem:[#allocation99_spill] sm:$0xff] }
 0x253   : > { %12123 = vst [vmem:[#allocation13_spill] sm:$0xff] %v9199_v2  ;;  %12124 = vst [vmem:[#allocation14_spill] sm:$0xff] %v9202_v43  ;;  %v974_v55 = vmul.f32 %v12096_v34, %v9196_v29  ;;  %v982_v59 = vmul.f32 %v12097_v3, %v9196_v29  ;;  %v1326_v54 = vmul.f32 %v12098_v14, %v9199_v2  ;;  %v12151_v14 = vld [vmem:[#allocation25_spill] sm:$0xff]  ;;  %v12152_v3 = vld [vmem:[#allocation100_spill] sm:$0xff] }
 0x254   : > { %v1334_v37 = vmul.f32 %v12099_v52, %v9199_v2  ;;  %v2796_v44 = vadd.f32 %v2668_v58, %v2444_v32  ;;  %v2804_v12 = vadd.f32 %v2676_v16, %v2452_v22  ;;  %v750_v20 = vadd.f32 %v9193_v41, %v580_v26 }
 0x255   : > { %v758_v61 = vadd.f32 %v9193_v41, %v588_v13  ;;  %v1678_v48 = vmul.f32 %v12100_v1, %v9202_v43  ;;  %v1686_v45 = vmul.f32 %v12101_v21, %v9202_v43  ;;  %v9223_v0 = vrot.slane %v388_v23, %v12068_v39  ;;  %v6689_v1 = vld [vmem:[#allocation3 + $0x314] ss:$8 sps:$4 sm:$0xff]   ;;  %v6692_v41 = vld [vmem:[#allocation3 + $0x320] ss:$8 sps:$4 sm:$0xff]  }
 0x256   : > { %v9226_v51 = vrot.slane %v388_v23, %v12054_v40  ;;  %v3148_v5 = vadd.f32 %v3020_v10, %v2796_v44  ;;  %v3156_v30 = vadd.f32 %v3028_v25, %v2804_v12  ;;  %v1102_v58 = vadd.f32 %v974_v55, %v750_v20  ;;  %v9237_v40 = vld [vmem:[%s10708_s1 + $0x70] ss:$0 sm:$0xff]  ;;  %v12128_v25 = vld [vmem:[#allocation141_spill] sm:$0xff]  ;;  %v12131_v20 = vld [vmem:[#allocation144_spill] sm:$0xff] }
 0x257   : > { %12125 = vst [vmem:[#allocation16_spill] sm:$0xff] %v9223_v0  ;;  %v1110_v16 = vadd.f32 %v982_v59, %v758_v61  ;;  %v2030_v32 = vmul.f32 %v12106_v7, %v9223_v0  ;;  %v2038_v22 = vmul.f32 %v12107_v18, %v9223_v0  ;;  %12127 = vst [vmem:[#allocation187_spill] sm:$0xff] %v9237_v40  ;;  %v12132_v61 = vld [vmem:[#allocation91_spill] sm:$0xff]  ;;  %v12147_v7 = vld [vmem:[#allocation80_spill] sm:$0xff] }
 0x258   : > { %12126 = vst [vmem:[#allocation17_spill] sm:$0xff] %v9226_v51  ;;  %v2382_v26 = vmul.f32 %v12108_v4, %v9226_v51  ;;  %v3500_v13 = vadd.f32 %v3372_v19, %v3148_v5  ;;  %v3508_v6 = vadd.f32 %v3380_v15, %v3156_v30  ;;  %v1454_v39 = vadd.f32 %v1326_v54, %v1102_v58  ;;  %v12133_v58 = vld [vmem:[#allocation111_spill] sm:$0xff]  ;;  %v12146_v4 = vld [vmem:[#allocation81_spill] sm:$0xff]  ;;  %v12166_v0 = vld [vmem:[#allocation138_spill] sm:$0xff] }
 0x259   : > { %v1462_v10 = vadd.f32 %v1334_v37, %v1110_v16  ;;  %v2390_v55 = vmul.f32 %v12128_v25, %v9226_v51  ;;  %v9242_v59 = vrot.slane %v388_v23, %v12076_v50  ;;  %v9245_v44 = vrot.slane %v388_v23, %v12078_v47  ;;  %v12145_v25 = vld [vmem:[#allocation22_spill] sm:$0xff] }
 0x25a   : > { %v3438_v5 = vmul.f32 %v12115_v24, %v9237_v40  ;;  %v3628_v30 = vmax.f32 %v3500_v13, 0.0  ;;  %v3636_v19 = vmax.f32 %v3508_v6, 0.0  ;;  %v1806_v15 = vadd.f32 %v1678_v48, %v1454_v39  ;;  %v12135_v13 = vld [vmem:[#allocation63_spill] sm:$0xff]  ;;  %v12136_v48 = vld [vmem:[#allocation90_spill] sm:$0xff] }
 0x25b   : > { %12129 = vst [vmem:[#allocation188_spill] sm:$0xff] %v9242_v59  ;;  %12130 = vst [vmem:[#allocation189_spill] sm:$0xff] %v9245_v44  ;;  %v1814_v12 = vadd.f32 %v1686_v45, %v1462_v10  ;;  %v2734_v54 = vmul.f32 %v12131_v20, %v9242_v59  ;;  %v2742_v37 = vmul.f32 %v12112_v42, %v9242_v59  ;;  %v12137_v39 = vld [vmem:[#allocation62_spill] sm:$0xff]  ;;  %v12144_v42 = vld [vmem:[#allocation68_spill] sm:$0xff] }
 0x25c   : > { %v3086_v50 = vmul.f32 %v12132_v61, %v9245_v44  ;;  %v3446_v47 = vmul.f32 %v12133_v58, %v9237_v40  ;;  %v3756_v23 = vpack.c.bf16 %v3636_v19, %v3628_v30  ;;  %v2158_v16 = vadd.f32 %v2030_v32, %v1806_v15  ;;  %v12141_v32 = vld [vmem:[#allocation20_spill] sm:$0xff]  ;;  %v12142_v19 = vld [vmem:[#allocation19_spill] sm:$0xff]  ;;  %v12143_v15 = vld [vmem:[#allocation69_spill] sm:$0xff] }
 0x25d   : > { %v2166_v46 = vadd.f32 %v2038_v22, %v1814_v12  ;;  %v531_v6 = vmul.f32 %v12135_v13, %v12134_v33  ;;  %v3094_v45 = vmul.f32 %v12136_v48, %v9245_v44  ;;  %v539_v10 = vmul.f32 %v12137_v39, %v12134_v33  ;;  %v6688_v61 = vld [vmem:[#allocation3 + $0x300] ss:$8 sps:$4 sm:$0xff]   ;;  %v6690_v33 = vld [vmem:[#allocation3 + $0x310] ss:$8 sps:$4 sm:$0xff]  }
 0x25e   : > { %v925_v60 = vmul.f32 %v12139_v56, %v12138_v36  ;;  %v933_v24 = vmul.f32 %v12140_v49, %v12138_v36  ;;  %4855 = vmatmul.mubr.bf16.vlgmr.msra.gmra.mrb[0].mxu0 %v3756_v23  ;;  %v2510_v58 = vadd.f32 %v2382_v26, %v2158_v16  ;;  %v1277_v12 = vmul.f32 %v12143_v15, %v12142_v19  ;;  %v12148_v16 = vld [vmem:[#allocation23_spill] sm:$0xff]  ;;  %v12164_v44 = vld [vmem:[#allocation132_spill] sm:$0xff]  ;;  %v12165_v51 = vld [vmem:[#allocation30_spill] sm:$0xff] }
 0x25f   : > { %v2518_v30 = vadd.f32 %v2390_v55, %v2166_v46  ;;  %v701_v22 = vadd.f32 %v12141_v32, %v531_v6  ;;  %4936 = vmatpush1.bf16.msra.mxu0 %v6688_v61  ;;  %v709_v48 = vadd.f32 %v12141_v32, %v539_v10  ;;  %v1285_v20 = vmul.f32 %v12144_v42, %v12142_v19  ;;  %v12149_v6 = vld [vmem:[#allocation89_spill] sm:$0xff]  ;;  %v12150_v10 = vld [vmem:[#allocation88_spill] sm:$0xff] }
 0x260   : > { %v1629_v18 = vmul.f32 %v12146_v4, %v12145_v25  ;;  %v1637_v23 = vmul.f32 %v12147_v7, %v12145_v25  ;;  %v2862_v26 = vadd.f32 %v2734_v54, %v2510_v58  ;;  %v1981_v21 = vmul.f32 %v12149_v6, %v12148_v16  ;;  %4937 = vmatprep.subr.bf16.mxu0 %v6689_v1 }
 0x261   : > { %v2870_v46 = vadd.f32 %v2742_v37, %v2518_v30  ;;  %v1053_v55 = vadd.f32 %v925_v60, %v701_v22  ;;  %v1061_v61 = vadd.f32 %v933_v24, %v709_v48  ;;  %v1989_v52 = vmul.f32 %v12150_v10, %v12148_v16  ;;  %v12154_v37 = vld [vmem:[#allocation26_spill] sm:$0xff]  ;;  %v12156_v22 = vld [vmem:[#allocation105_spill] sm:$0xff]  ;;  %v12157_v24 = vld [vmem:[#allocation27_spill] sm:$0xff] }
 0x262   : > { %v2333_v34 = vmul.f32 %v12152_v3, %v12151_v14  ;;  %v2341_v11 = vmul.f32 %v12153_v35, %v12151_v14  ;;  %v3214_v19 = vadd.f32 %v3086_v50, %v2862_v26  ;;  %v12155_v60 = vld [vmem:[#allocation106_spill] sm:$0xff]  ;;  %v2693_v1 = vmul.f32 %v12156_v22, %v12154_v37  ;;  %v12158_v48 = vld [vmem:[#allocation79_spill] sm:$0xff] }
 0x263   : > { %v3222_v25 = vadd.f32 %v3094_v45, %v2870_v46  ;;  %v1405_v54 = vadd.f32 %v1277_v12, %v1053_v55  ;;  %v2685_v58 = vmul.f32 %v12155_v60, %v12154_v37  ;;  %v1413_v30 = vadd.f32 %v1285_v20, %v1061_v61  ;;  %v12159_v16 = vld [vmem:[#allocation78_spill] sm:$0xff]  ;;  %4938 = vmatpush1.bf16.msra.mxu0 %v6690_v33  ;;  %v12160_v45 = vld [vmem:[#allocation24_spill] sm:$0xff]  ;;  %v12162_v55 = vld [vmem:[#allocation29_spill] sm:$0xff] }
 0x264   : > { %v3037_v32 = vmul.f32 %v12158_v48, %v12157_v24  ;;  %v3045_v36 = vmul.f32 %v12159_v16, %v12157_v24  ;;  %v3566_v40 = vadd.f32 %v3438_v5, %v3214_v19  ;;  %v12161_v12 = vld [vmem:[#allocation102_spill] sm:$0xff]  ;;  %v12163_v61 = vld [vmem:[#allocation133_spill] sm:$0xff]  ;;  %v605_v59 = vmul.f32 %v12164_v44, %v12162_v55  ;;  %v12168_v19 = vld [vmem:[#allocation28_spill] sm:$0xff] }
 0x265   : > { %v3574_v14 = vadd.f32 %v3446_v47, %v3222_v25  ;;  %v1757_v50 = vadd.f32 %v1629_v18, %v1405_v54  ;;  %v3389_v26 = vmul.f32 %v12161_v12, %v12160_v45  ;;  %v6691_v46 = vld [vmem:[#allocation3 + $0x324] ss:$8 sps:$4 sm:$0xff]   ;;  %v1765_v20 = vadd.f32 %v1637_v23, %v1413_v30  ;;  %v12167_v18 = vld [vmem:[#allocation92_spill] sm:$0xff] }
 0x266   : > { %4939 = vmatprep.subr.bf16.mxu0 %v6691_v46  ;;  %v597_v37 = vmul.f32 %v12163_v61, %v12162_v55  ;;  %v991_v24 = vmul.f32 %v12166_v0, %v12165_v51  ;;  %v3694_v43 = vmax.f32 %v3566_v40, 0.0  ;;  %v999_v25 = vmul.f32 %v12167_v18, %v12165_v51  ;;  %v12169_v30 = vld [vmem:[#allocation32_spill] sm:$0xff]  ;;  %v12171_v0 = vld [vmem:[#allocation139_spill] sm:$0xff] }
 0x267   : > { %v3702_v33 = vmax.f32 %v3574_v14, 0.0  ;;  %v2109_v5 = vadd.f32 %v1981_v21, %v1757_v50  ;;  %v2117_v47 = vadd.f32 %v1989_v52, %v1765_v20  ;;  %v775_v23 = vadd.f32 %v12168_v19, %v605_v59  ;;  %v12170_v46 = vld [vmem:[#allocation140_spill] sm:$0xff]  ;;  %4940 = vmatpush1.bf16.msra.mxu0 %v6692_v41  ;;  %v12172_v14 = vld [vmem:[#allocation33_spill] sm:$0xff]  ;;  %v12173_v21 = vld [vmem:[#allocation146_spill] sm:$0xff] }
 0x268   : > { %v767_v54 = vadd.f32 %v12168_v19, %v597_v37  ;;  %v1343_v2 = vmul.f32 %v12170_v46, %v12169_v30  ;;  %v1351_v40 = vmul.f32 %v12171_v0, %v12169_v30  ;;  %v1695_v50 = vmul.f32 %v12173_v21, %v12172_v14  ;;  %v6693_v44 = vld [vmem:[#allocation3 + $0x334] ss:$8 sps:$4 sm:$0xff]   ;;  %v12174_v59 = vld [vmem:[#allocation145_spill] sm:$0xff]  ;;  %v9319_v21 = vpop.f32.mrb[4].mxu1 }
 0x269   : > { %v3790_v55 = vpack.c.bf16 %v3702_v33, %v3694_v43  ;;  %v2461_v29 = vadd.f32 %v2333_v34, %v2109_v5  ;;  %4941 = vmatprep.subr.bf16.mxu0 %v6693_v44  ;;  %v2469_v52 = vadd.f32 %v2341_v11, %v2117_v47  ;;  %v1127_v37 = vadd.f32 %v999_v25, %v775_v23  ;;  %v12175_v41 = vld [vmem:[#allocation101_spill] sm:$0xff]  ;;  %v12176_v34 = vld [vmem:[#allocation34_spill] sm:$0xff]  ;;  %v12180_v25 = vld [vmem:[#allocation35_spill] sm:$0xff] }
 0x26a   : > { %v1119_v20 = vadd.f32 %v991_v24, %v767_v54  ;;  %v1703_v19 = vmul.f32 %v12174_v59, %v12172_v14  ;;  %v3397_v43 = vmul.f32 %v12175_v41, %v12160_v45  ;;  %v12177_v33 = vld [vmem:[#allocation150_spill] sm:$0xff]  ;;  %v12178_v30 = vld [vmem:[#allocation149_spill] sm:$0xff]  ;;  %12179 = vst [vmem:[#allocation190_spill] sm:$0xff] %v9319_v21  ;;  %v12181_v47 = vld [vmem:[#allocation156_spill] sm:$0xff] }
 0x26b   : > { %5008 = vmatmul.mubr.bf16.vlgmr.msra.gmra.mrb[32].mxu1 %v3790_v55  ;;  %v2813_v51 = vadd.f32 %v2685_v58, %v2461_v29  ;;  %v2047_v5 = vmul.f32 %v12177_v33, %v12176_v34  ;;  %v2055_v0 = vmul.f32 %v12178_v30, %v12176_v34  ;;  %v2821_v44 = vadd.f32 %v2693_v1, %v2469_v52  ;;  %v6694_v23 = vld [vmem:[#allocation3 + $0x330] ss:$8 sps:$4 sm:$0xff]   ;;  %v9323_v29 = vpop.f32.mrb[5].mxu1  ;;  %v12183_v55 = vld [vmem:[#allocation153_spill] sm:$0xff] }
 0x26c   : > { %v1471_v11 = vadd.f32 %v1343_v2, %v1119_v20  ;;  %v1479_v24 = vadd.f32 %v1351_v40, %v1127_v37  ;;  %v2399_v54 = vmul.f32 %v12181_v47, %v12180_v25  ;;  %4942 = vmatpush1.bf16.msra.mxu0 %v6694_v23  ;;  %12182 = vst [vmem:[#allocation191_spill] sm:$0xff] %v9323_v29  ;;  %v12184_v45 = vld [vmem:[#allocation151_spill] sm:$0xff]  ;;  %v12185_v33 = vld [vmem:[#allocation160_spill] sm:$0xff]  ;;  %v6695_v1 = vld [vmem:[#allocation3 + $0x344] ss:$8 sps:$4 sm:$0xff]   ;;  %v9331_v2 = vpop.f32.mrb[6].mxu1 }
 0x26d   : > { %v3165_v58 = vadd.f32 %v3037_v32, %v2813_v51  ;;  %v2407_v14 = vmul.f32 %v12183_v55, %v12180_v25  ;;  %v2751_v59 = vmul.f32 %v12185_v33, %v12184_v45  ;;  %v12186_v34 = vld [vmem:[#allocation159_spill] sm:$0xff]  ;;  %4943 = vmatprep.subr.bf16.mxu0 %v6695_v1  ;;  %12187 = vst [vmem:[#allocation192_spill] sm:$0xff] %v9331_v2  ;;  %v12188_v37 = vld [vmem:[#allocation49_spill] sm:$0xff]  ;;  %v12189_v23 = vld [vmem:[#allocation162_spill] sm:$0xff] }
 0x26e   : > { %v2759_v21 = vmul.f32 %v12186_v34, %v12184_v45  ;;  %v3173_v40 = vadd.f32 %v3045_v36, %v2821_v44  ;;  %v1823_v52 = vadd.f32 %v1695_v50, %v1471_v11  ;;  %v1831_v20 = vadd.f32 %v1703_v19, %v1479_v24  ;;  %v12190_v32 = vld [vmem:[#allocation161_spill] sm:$0xff]  ;;  %v12191_v55 = vld [vmem:[#allocation50_spill] sm:$0xff]  ;;  %v6697_v24 = vld [vmem:[#allocation3 + $0x354] ss:$8 sps:$4 sm:$0xff]  }
 0x26f   : > { %v3103_v29 = vmul.f32 %v12189_v23, %v12188_v37  ;;  %v3517_v51 = vadd.f32 %v3389_v26, %v3165_v58  ;;  %v3111_v25 = vmul.f32 %v12190_v32, %v12188_v37  ;;  %v12192_v47 = vld [vmem:[#allocation42_spill] sm:$0xff]  ;;  %v530_v45 = vmul.f32 %v12135_v13, %v9111_v57 }
 0x270   : > { %v3455_v33 = vmul.f32 %v12192_v47, %v12191_v55  ;;  %v3525_v34 = vadd.f32 %v3397_v43, %v3173_v40  ;;  %v2175_v1 = vadd.f32 %v2047_v5, %v1823_v52  ;;  %v2183_v30 = vadd.f32 %v2055_v0, %v1831_v20  ;;  %v6696_v19 = vld [vmem:[#allocation3 + $0x340] ss:$8 sps:$4 sm:$0xff]  }
 0x271   : > { %v538_v36 = vmul.f32 %v12137_v39, %v9111_v57  ;;  %4944 = vmatpush1.bf16.msra.mxu0 %v6696_v19  ;;  %v3645_v50 = vmax.f32 %v3517_v51, 0.0  ;;  %v700_v26 = vadd.f32 %v9115_v9, %v530_v45  ;;  %v924_v44 = vmul.f32 %v12139_v56, %v9118_v62 }
 0x272   : > { %v932_v11 = vmul.f32 %v12140_v49, %v9118_v62  ;;  %4945 = vmatprep.subr.bf16.mxu0 %v6697_v24  ;;  %v3653_v58 = vmax.f32 %v3525_v34, 0.0  ;;  %v2527_v43 = vadd.f32 %v2399_v54, %v2175_v1  ;;  %v2535_v5 = vadd.f32 %v2407_v14, %v2183_v30  ;;  %v6698_v24 = vld [vmem:[#allocation3 + $0x350] ss:$8 sps:$4 sm:$0xff]   ;;  %v12193_v30 = vld [vmem:[#allocation41_spill] sm:$0xff] }
 0x273   : > { %v708_v0 = vadd.f32 %v9115_v9, %v538_v36  ;;  %v1052_v40 = vadd.f32 %v924_v44, %v700_v26  ;;  %v1276_v52 = vmul.f32 %v12143_v15, %v9121_v27  ;;  %v1284_v45 = vmul.f32 %v12144_v42, %v9121_v27  ;;  %v6699_v36 = vld [vmem:[#allocation3 + $0x364] ss:$8 sps:$4 sm:$0xff]   ;;  %v9363_v44 = vpop.f32.mrb[7].mxu1  ;;  %v6705_v15 = vld [vmem:[#allocation3 + $0x394] ss:$8 sps:$4 sm:$0xff]  }
 0x274   : > { %v1628_v20 = vmul.f32 %v12146_v4, %v9124_v53  ;;  %v3765_v51 = vpack.c.bf16 %v3653_v58, %v3645_v50  ;;  %v2879_v19 = vadd.f32 %v2751_v59, %v2527_v43  ;;  %v2887_v2 = vadd.f32 %v2759_v21, %v2535_v5  ;;  %12194 = vst [vmem:[#allocation50_spill] sm:$0xff] %v9363_v44  ;;  %v12198_v44 = vld [vmem:[#allocation15_spill] sm:$0xff] }
 0x275   : > { %v1060_v49 = vadd.f32 %v932_v11, %v708_v0  ;;  %4946 = vmatpush1.bf16.msra.mxu0 %v6698_v24  ;;  %v3463_v14 = vmul.f32 %v12193_v30, %v12191_v55  ;;  %v1404_v34 = vadd.f32 %v1276_v52, %v1052_v40  ;;  %v1636_v54 = vmul.f32 %v12147_v7, %v9124_v53 }
 0x276   : > { %v1980_v1 = vmul.f32 %v12149_v6, %v9145_v8  ;;  %4947 = vmatprep.subr.bf16.mxu0 %v6699_v36  ;;  %4864 = vmatprep.mubr.bf16.mxu0 %v3765_v51  ;;  %v3231_v26 = vadd.f32 %v3103_v29, %v2879_v19  ;;  %v3239_v50 = vadd.f32 %v3111_v25, %v2887_v2  ;;  %v6700_v25 = vld [vmem:[#allocation3 + $0x360] ss:$8 sps:$4 sm:$0xff]   ;;  %v6701_v51 = vld [vmem:[#allocation3 + $0x374] ss:$8 sps:$4 sm:$0xff]  }
 0x277   : > { %v1412_v59 = vadd.f32 %v1284_v45, %v1060_v49  ;;  %v1988_v21 = vmul.f32 %v12150_v10, %v9145_v8  ;;  %v1756_v11 = vadd.f32 %v1628_v20, %v1404_v34  ;;  %v2332_v58 = vmul.f32 %v12152_v3, %v9148_v31  ;;  %v12196_v36 = vld [vmem:[#allocation12_spill] sm:$0xff] }
 0x278   : > { %v2340_v43 = vmul.f32 %v12153_v35, %v9148_v31  ;;  %v2684_v5 = vmul.f32 %v12155_v60, %v9164_v38  ;;  %v3583_v0 = vadd.f32 %v3455_v33, %v3231_v26  ;;  %v3591_v40 = vadd.f32 %v3463_v14, %v3239_v50  ;;  %v12197_v26 = vld [vmem:[#allocation138_spill] sm:$0xff]  ;;  %v12204_v60 = vld [vmem:[#allocation16_spill] sm:$0xff] }
 0x279   : > { %v1764_v29 = vadd.f32 %v1636_v54, %v1412_v59  ;;  %v2692_v49 = vmul.f32 %v12156_v22, %v9164_v38  ;;  %4948 = vmatpush1.bf16.msra.mxu0 %v6700_v25  ;;  %v2108_v2 = vadd.f32 %v1980_v1, %v1756_v11  ;;  %v3036_v52 = vmul.f32 %v12158_v48, %v9167_v63  ;;  %v12195_v54 = vld [vmem:[#allocation132_spill] sm:$0xff]  ;;  %v6703_v48 = vld [vmem:[#allocation3 + $0x384] ss:$8 sps:$4 sm:$0xff]  }
 0x27a   : > { %v3044_v45 = vmul.f32 %v12159_v16, %v9167_v63  ;;  %v3388_v20 = vmul.f32 %v12161_v12, %v9153_v17  ;;  %4949 = vmatprep.subr.bf16.mxu0 %v6701_v51  ;;  %v3711_v33 = vmax.f32 %v3583_v0, 0.0  ;;  %v3719_v19 = vmax.f32 %v3591_v40, 0.0  ;;  %v12199_v0 = vld [vmem:[#allocation13_spill] sm:$0xff]  ;;  %v6702_v40 = vld [vmem:[#allocation3 + $0x370] ss:$8 sps:$4 sm:$0xff]  }
 0x27b   : > { %v2116_v24 = vadd.f32 %v1988_v21, %v1764_v29  ;;  %v596_v14 = vmul.f32 %v12163_v61, %v9189_v28  ;;  %v2460_v34 = vadd.f32 %v2332_v58, %v2108_v2  ;;  %v604_v1 = vmul.f32 %v12195_v54, %v9189_v28  ;;  %v12200_v12 = vld [vmem:[#allocation139_spill] sm:$0xff]  ;;  %v12203_v22 = vld [vmem:[#allocation145_spill] sm:$0xff] }
 0x27c   : > { %v990_v50 = vmul.f32 %v12197_v26, %v12196_v36  ;;  %v998_v59 = vmul.f32 %v12167_v18, %v12196_v36  ;;  %v3799_v11 = vpack.c.bf16 %v3719_v19, %v3711_v33  ;;  %v1342_v21 = vmul.f32 %v12170_v46, %v12199_v0  ;;  %v12201_v19 = vld [vmem:[#allocation14_spill] sm:$0xff]  ;;  %v12231_v61 = vld [vmem:[#allocation25_spill] sm:$0xff] }
 0x27d   : > { %v2468_v25 = vadd.f32 %v2340_v43, %v2116_v24  ;;  %v766_v51 = vadd.f32 %v12198_v44, %v596_v14  ;;  %4950 = vmatpush1.bf16.msra.mxu0 %v6702_v40  ;;  %v2812_v29 = vadd.f32 %v2684_v5, %v2460_v34  ;;  %v3396_v58 = vmul.f32 %v12175_v41, %v9153_v17  ;;  %v12202_v24 = vld [vmem:[#allocation146_spill] sm:$0xff] }
 0x27e   : > { %v774_v2 = vadd.f32 %v12198_v44, %v604_v1  ;;  %v1350_v16 = vmul.f32 %v12200_v12, %v12199_v0  ;;  %4951 = vmatprep.subr.bf16.mxu0 %v6703_v48  ;;  %5017 = vmatprep.mubr.bf16.mxu1 %v3799_v11  ;;  %v1694_v14 = vmul.f32 %v12202_v24, %v12201_v19  ;;  %v12205_v41 = vld [vmem:[#allocation150_spill] sm:$0xff]  ;;  %v12206_v1 = vld [vmem:[#allocation149_spill] sm:$0xff]  ;;  %v12208_v11 = vld [vmem:[#allocation156_spill] sm:$0xff] }
 0x27f   : > { %v2820_v43 = vadd.f32 %v2692_v49, %v2468_v25  ;;  %v1118_v33 = vadd.f32 %v990_v50, %v766_v51  ;;  %v1702_v40 = vmul.f32 %v12203_v22, %v12201_v19  ;;  %v3164_v5 = vadd.f32 %v3036_v52, %v2812_v29  ;;  %v12207_v48 = vld [vmem:[#allocation17_spill] sm:$0xff]  ;;  %v12210_v52 = vld [vmem:[#allocation188_spill] sm:$0xff]  ;;  %v12224_v22 = vld [vmem:[#allocation70_spill] sm:$0xff] }
 0x280   : > { %v1126_v34 = vadd.f32 %v998_v59, %v774_v2  ;;  %v2046_v35 = vmul.f32 %v12205_v41, %v12204_v60  ;;  %v2054_v3 = vmul.f32 %v12206_v1, %v12204_v60  ;;  %v2398_v49 = vmul.f32 %v12208_v11, %v12207_v48  ;;  %v12209_v50 = vld [vmem:[#allocation153_spill] sm:$0xff]  ;;  %v12211_v59 = vld [vmem:[#allocation160_spill] sm:$0xff]  ;;  %v12212_v2 = vld [vmem:[#allocation159_spill] sm:$0xff] }
 0x281   : > { %v3172_v10 = vadd.f32 %v3044_v45, %v2820_v43  ;;  %v1470_v6 = vadd.f32 %v1342_v21, %v1118_v33  ;;  %v2406_v25 = vmul.f32 %v12209_v50, %v12207_v48  ;;  %v6704_v51 = vld [vmem:[#allocation3 + $0x380] ss:$8 sps:$4 sm:$0xff]   ;;  %v3516_v7 = vadd.f32 %v3388_v20, %v3164_v5  ;;  %v12214_v20 = vld [vmem:[#allocation187_spill] sm:$0xff]  ;;  %v6707_v41 = vld [vmem:[#allocation3 + $0x3a4] ss:$8 sps:$4 sm:$0xff]  }
 0x282   : > { %4952 = vmatpush1.bf16.msra.mxu0 %v6704_v51  ;;  %v1478_v4 = vadd.f32 %v1350_v16, %v1126_v34  ;;  %v2750_v29 = vmul.f32 %v12211_v59, %v12210_v52  ;;  %v2758_v42 = vmul.f32 %v12212_v2, %v12210_v52  ;;  %v12213_v43 = vld [vmem:[#allocation189_spill] sm:$0xff]  ;;  %v3454_v16 = vmul.f32 %v12192_v47, %v12214_v20  ;;  %v12215_v5 = vld [vmem:[#allocation18_spill] sm:$0xff]  ;;  %v12222_v47 = vld [vmem:[#allocation19_spill] sm:$0xff] }
 0x283   : > { %4953 = vmatprep.subr.bf16.mxu0 %v6705_v15  ;;  %v3524_v45 = vadd.f32 %v3396_v58, %v3172_v10  ;;  %v1822_v21 = vadd.f32 %v1694_v14, %v1470_v6  ;;  %v3102_v33 = vmul.f32 %v12189_v23, %v12213_v43  ;;  %v3110_v56 = vmul.f32 %v12190_v32, %v12213_v43  ;;  %v12216_v34 = vld [vmem:[#allocation85_spill] sm:$0xff]  ;;  %v12217_v15 = vld [vmem:[#allocation84_spill] sm:$0xff]  ;;  %v12219_v58 = vld [vmem:[#allocation95_spill] sm:$0xff] }
 0x284   : > { %v3644_v39 = vmax.f32 %v3516_v7, 0.0  ;;  %v1830_v51 = vadd.f32 %v1702_v40, %v1478_v4  ;;  %v547_v13 = vmul.f32 %v12216_v34, %v12215_v5  ;;  %v555_v10 = vmul.f32 %v12217_v15, %v12215_v5  ;;  %v12218_v6 = vld [vmem:[#allocation21_spill] sm:$0xff]  ;;  %v6706_v23 = vld [vmem:[#allocation3 + $0x390] ss:$8 sps:$4 sm:$0xff]  }
 0x285   : > { %v3652_v59 = vmax.f32 %v3524_v45, 0.0  ;;  %v2174_v2 = vadd.f32 %v2046_v35, %v1822_v21  ;;  %v941_v14 = vmul.f32 %v12219_v58, %v12218_v6  ;;  %v12220_v32 = vld [vmem:[#allocation20_spill] sm:$0xff]  ;;  %v12221_v4 = vld [vmem:[#allocation94_spill] sm:$0xff]  ;;  %v12223_v11 = vld [vmem:[#allocation71_spill] sm:$0xff]  ;;  %v1301_v24 = vmul.f32 %v12224_v22, %v12222_v47 }
 0x286   : > { %4954 = vmatpush1.bf16.msra.mxu0 %v6706_v23  ;;  %v2182_v50 = vadd.f32 %v2054_v3, %v1830_v51  ;;  %v717_v7 = vadd.f32 %v12220_v32, %v547_v13  ;;  %v949_v40 = vmul.f32 %v12221_v4, %v12218_v6  ;;  %v1293_v1 = vmul.f32 %v12223_v11, %v12222_v47  ;;  %v12225_v23 = vld [vmem:[#allocation22_spill] sm:$0xff]  ;;  %v12242_v48 = vld [vmem:[#allocation29_spill] sm:$0xff]  ;;  %v12250_v0 = vld [vmem:[#allocation155_spill] sm:$0xff] }
 0x287   : > { %4955 = vmatprep.subr.bf16.mxu0 %v6707_v41  ;;  %v3764_v35 = vpack.c.bf16 %v3652_v59, %v3644_v39  ;;  %v2526_v45 = vadd.f32 %v2398_v49, %v2174_v2  ;;  %v725_v21 = vadd.f32 %v12220_v32, %v555_v10  ;;  %v3462_v3 = vmul.f32 %v12193_v30, %v12214_v20  ;;  %v12226_v51 = vld [vmem:[#allocation110_spill] sm:$0xff]  ;;  %v12227_v41 = vld [vmem:[#allocation109_spill] sm:$0xff]  ;;  %v12228_v49 = vld [vmem:[#allocation23_spill] sm:$0xff] }
 0x288   : > { %v2534_v12 = vadd.f32 %v2406_v25, %v2182_v50  ;;  %v1069_v13 = vadd.f32 %v941_v14, %v717_v7  ;;  %v1645_v46 = vmul.f32 %v12226_v51, %v12225_v23  ;;  %v1653_v39 = vmul.f32 %v12227_v41, %v12225_v23  ;;  %v12229_v59 = vld [vmem:[#allocation116_spill] sm:$0xff]  ;;  %v12230_v50 = vld [vmem:[#allocation115_spill] sm:$0xff]  ;;  %v12232_v30 = vld [vmem:[#allocation121_spill] sm:$0xff] }
 0x289   : > { %4865 = vmatmul.mubr.bf16.gmra.mrb[4].mxu0 %v3764_v35  ;;  %v2878_v18 = vadd.f32 %v2750_v29, %v2526_v45  ;;  %v1077_v26 = vadd.f32 %v949_v40, %v725_v21  ;;  %v1997_v2 = vmul.f32 %v12229_v59, %v12228_v49  ;;  %v2005_v25 = vmul.f32 %v12230_v50, %v12228_v49  ;;  %v6708_v7 = vld [vmem:[#allocation3 + $0x3a0] ss:$8 sps:$4 sm:$0xff]   ;;  %v12235_v21 = vld [vmem:[#allocation123_spill] sm:$0xff]  ;;  %v6711_v19 = vld [vmem:[#allocation3 + $0x3c4] ss:$8 sps:$4 sm:$0xff]  }
 0x28a   : > { %v2886_v10 = vadd.f32 %v2758_v42, %v2534_v12  ;;  %v1421_v54 = vadd.f32 %v1293_v1, %v1069_v13  ;;  %v2349_v14 = vmul.f32 %v12232_v30, %v12231_v61  ;;  %4956 = vmatpush1.bf16.msra.mxu0 %v6708_v7  ;;  %v12233_v29 = vld [vmem:[#allocation120_spill] sm:$0xff]  ;;  %v12234_v45 = vld [vmem:[#allocation26_spill] sm:$0xff]  ;;  %v12237_v49 = vld [vmem:[#allocation27_spill] sm:$0xff] }
 0x28b   : > { %v3230_v47 = vadd.f32 %v3102_v33, %v2878_v18  ;;  %v1429_v35 = vadd.f32 %v1301_v24, %v1077_v26  ;;  %v2357_v40 = vmul.f32 %v12233_v29, %v12231_v61  ;;  %v2701_v23 = vmul.f32 %v12235_v21, %v12234_v45  ;;  %v6709_v32 = vld [vmem:[#allocation3 + $0x3b4] ss:$8 sps:$4 sm:$0xff]   ;;  %v12236_v1 = vld [vmem:[#allocation122_spill] sm:$0xff] }
 0x28c   : > { %4957 = vmatprep.subr.bf16.mxu0 %v6709_v32  ;;  %v3238_v42 = vadd.f32 %v3110_v56, %v2886_v10  ;;  %v1773_v12 = vadd.f32 %v1645_v46, %v1421_v54  ;;  %v2709_v13 = vmul.f32 %v12236_v1, %v12234_v45  ;;  %v12238_v20 = vld [vmem:[#allocation83_spill] sm:$0xff]  ;;  %v12239_v18 = vld [vmem:[#allocation82_spill] sm:$0xff]  ;;  %v12240_v24 = vld [vmem:[#allocation24_spill] sm:$0xff] }
 0x28d   : > { %v3053_v6 = vmul.f32 %v12238_v20, %v12237_v49  ;;  %v3582_v5 = vadd.f32 %v3454_v16, %v3230_v47  ;;  %v1781_v7 = vadd.f32 %v1653_v39, %v1429_v35  ;;  %v3061_v26 = vmul.f32 %v12239_v18, %v12237_v49  ;;  %v12241_v33 = vld [vmem:[#allocation104_spill] sm:$0xff]  ;;  %v12244_v46 = vld [vmem:[#allocation147_spill] sm:$0xff]  ;;  %v12245_v47 = vld [vmem:[#allocation30_spill] sm:$0xff] }
 0x28e   : > { %v3405_v61 = vmul.f32 %v12241_v33, %v12240_v24  ;;  %v3590_v43 = vadd.f32 %v3462_v3, %v3238_v42  ;;  %v2125_v52 = vadd.f32 %v1997_v2, %v1773_v12  ;;  %v12243_v32 = vld [vmem:[#allocation148_spill] sm:$0xff]  ;;  %v621_v54 = vmul.f32 %v12244_v46, %v12242_v48  ;;  %v12247_v35 = vld [vmem:[#allocation46_spill] sm:$0xff] }
 0x28f   : > { %v613_v56 = vmul.f32 %v12243_v32, %v12242_v48  ;;  %v6710_v10 = vld [vmem:[#allocation3 + $0x3b0] ss:$8 sps:$4 sm:$0xff]   ;;  %v3710_v45 = vmax.f32 %v3582_v5, 0.0  ;;  %v2133_v60 = vadd.f32 %v2005_v25, %v1781_v7  ;;  %v1015_v49 = vmul.f32 %v12247_v35, %v12245_v47  ;;  %v12252_v7 = vld [vmem:[#allocation33_spill] sm:$0xff] }
 0x290   : > { %4958 = vmatpush1.bf16.msra.mxu0 %v6710_v10  ;;  %v12246_v16 = vld [vmem:[#allocation152_spill] sm:$0xff]  ;;  %v3718_v3 = vmax.f32 %v3590_v43, 0.0  ;;  %v2477_v2 = vadd.f32 %v2349_v14, %v2125_v52  ;;  %v12251_v5 = vld [vmem:[#allocation154_spill] sm:$0xff]  ;;  %v12254_v14 = vld [vmem:[#allocation103_spill] sm:$0xff] }
 0x291   : > { %v1007_v39 = vmul.f32 %v12246_v16, %v12245_v47  ;;  %4959 = vmatprep.subr.bf16.mxu0 %v6711_v19  ;;  %v12248_v42 = vld [vmem:[#allocation28_spill] sm:$0xff]  ;;  %v2485_v17 = vadd.f32 %v2357_v40, %v2133_v60  ;;  %v12255_v60 = vld [vmem:[#allocation163_spill] sm:$0xff] }
 0x292   : > { %v783_v12 = vadd.f32 %v12248_v42, %v613_v56  ;;  %v791_v33 = vadd.f32 %v12248_v42, %v621_v54  ;;  %v12249_v48 = vld [vmem:[#allocation32_spill] sm:$0xff]  ;;  %v3798_v36 = vpack.c.bf16 %v3718_v3, %v3710_v45  ;;  %v2829_v47 = vadd.f32 %v2701_v23, %v2477_v2  ;;  %v12256_v54 = vld [vmem:[#allocation34_spill] sm:$0xff]  ;;  %v12257_v42 = vld [vmem:[#allocation169_spill] sm:$0xff] }
 0x293   : > { %v1359_v10 = vmul.f32 %v12250_v0, %v12249_v48  ;;  %v1367_v25 = vmul.f32 %v12251_v5, %v12249_v48  ;;  %v12253_v44 = vld [vmem:[#allocation164_spill] sm:$0xff]  ;;  %v2837_v52 = vadd.f32 %v2709_v13, %v2485_v17  ;;  %v3413_v56 = vmul.f32 %v12254_v14, %v12240_v24  ;;  %v12259_v17 = vld [vmem:[#allocation35_spill] sm:$0xff]  ;;  %v12260_v13 = vld [vmem:[#allocation137_spill] sm:$0xff] }
 0x294   : > { %v1711_v16 = vmul.f32 %v12253_v44, %v12252_v7  ;;  %v1135_v35 = vadd.f32 %v1007_v39, %v783_v12  ;;  %v1143_v19 = vadd.f32 %v1015_v49, %v791_v33  ;;  %v6712_v43 = vld [vmem:[#allocation3 + $0x3c0] ss:$8 sps:$4 sm:$0xff]   ;;  %v1719_v40 = vmul.f32 %v12255_v60, %v12252_v7  ;;  %v6713_v48 = vld [vmem:[#allocation3 + $0x3d4] ss:$8 sps:$4 sm:$0xff]   ;;  %5018 = vmatmul.mubr.bf16.gmra.mrb[36].mxu1 %v3798_v36 }
 0x295   : > { %4960 = vmatpush1.bf16.msra.mxu0 %v6712_v43  ;;  %v2063_v0 = vmul.f32 %v12257_v42, %v12256_v54  ;;  %v3181_v44 = vadd.f32 %v3053_v6, %v2829_v47  ;;  %v12258_v49 = vld [vmem:[#allocation167_spill] sm:$0xff]  ;;  %v3189_v39 = vadd.f32 %v3061_v26, %v2837_v52  ;;  %v2415_v3 = vmul.f32 %v12260_v13, %v12259_v17  ;;  %v12261_v43 = vld [vmem:[#allocation48_spill] sm:$0xff]  ;;  %v12263_v6 = vld [vmem:[#allocation170_spill] sm:$0xff] }
 0x296   : > { %4961 = vmatprep.subr.bf16.mxu0 %v6713_v48  ;;  %v1487_v45 = vadd.f32 %v1359_v10, %v1135_v35  ;;  %v1495_v23 = vadd.f32 %v1367_v25, %v1143_v19  ;;  %v2071_v33 = vmul.f32 %v12258_v49, %v12256_v54  ;;  %v2423_v7 = vmul.f32 %v12261_v43, %v12259_v17  ;;  %v6714_v42 = vld [vmem:[#allocation3 + $0x3d0] ss:$8 sps:$4 sm:$0xff]   ;;  %v6715_v19 = vld [vmem:[#allocation3 + $0x3e4] ss:$8 sps:$4 sm:$0xff]  }
 0x297   : > { %v3533_v24 = vadd.f32 %v3405_v61, %v3181_v44  ;;  %v3541_v48 = vadd.f32 %v3413_v56, %v3189_v39  ;;  %v12262_v36 = vld [vmem:[#allocation151_spill] sm:$0xff]  ;;  %v12264_v35 = vld [vmem:[#allocation168_spill] sm:$0xff]  ;;  %v554_v56 = vmul.f32 %v12217_v15, %v9111_v57  ;;  %v1292_v15 = vmul.f32 %v12223_v11, %v9121_v27 }
 0x298   : > { %v1839_v2 = vadd.f32 %v1711_v16, %v1487_v45  ;;  %v1847_v12 = vadd.f32 %v1719_v40, %v1495_v23  ;;  %v2767_v47 = vmul.f32 %v12263_v6, %v12262_v36  ;;  %v2775_v10 = vmul.f32 %v12264_v35, %v12262_v36  ;;  %v12265_v26 = vld [vmem:[#allocation172_spill] sm:$0xff]  ;;  %v12266_v52 = vld [vmem:[#allocation171_spill] sm:$0xff] }
 0x299   : > { %4962 = vmatpush1.bf16.msra.mxu0 %v6714_v42  ;;  %v3119_v25 = vmul.f32 %v12265_v26, %v12188_v37  ;;  %v3661_v61 = vmax.f32 %v3533_v24, 0.0  ;;  %v3127_v40 = vmul.f32 %v12266_v52, %v12188_v37  ;;  %v3669_v45 = vmax.f32 %v3541_v48, 0.0 }
 0x29a   : > { %4963 = vmatprep.subr.bf16.mxu0 %v6715_v19  ;;  %v2191_v44 = vadd.f32 %v2063_v0, %v1839_v2  ;;  %v2199_v16 = vadd.f32 %v2071_v33, %v1847_v12  ;;  %v546_v42 = vmul.f32 %v12216_v34, %v9111_v57  ;;  %v940_v23 = vmul.f32 %v12219_v58, %v9118_v62  ;;  %v12267_v19 = vld [vmem:[#allocation180_spill] sm:$0xff] }
 0x29b   : > { %v3471_v24 = vmul.f32 %v12267_v19, %v12191_v55  ;;  %v948_v0 = vmul.f32 %v12221_v4, %v9118_v62  ;;  %v6716_v33 = vld [vmem:[#allocation3 + $0x3e0] ss:$8 sps:$4 sm:$0xff]   ;;  %v3773_v2 = vpack.c.bf16 %v3669_v45, %v3661_v61  ;;  %v724_v48 = vadd.f32 %v9115_v9, %v554_v56  ;;  %v6717_v34 = vld [vmem:[#allocation3 + $0x3f4] ss:$8 sps:$4 sm:$0xff]  }
 0x29c   : > { %v2543_v39 = vadd.f32 %v2415_v3, %v2191_v44  ;;  %v2551_v36 = vadd.f32 %v2423_v7, %v2199_v16  ;;  %v716_v12 = vadd.f32 %v9115_v9, %v546_v42  ;;  %v12268_v44 = vld [vmem:[#allocation179_spill] sm:$0xff]  ;;  %v1300_v4 = vmul.f32 %v12224_v22, %v9121_v27 }
 0x29d   : > { %4964 = vmatpush1.bf16.msra.mxu0 %v6716_v33  ;;  %v3479_v16 = vmul.f32 %v12268_v44, %v12191_v55  ;;  %4874 = vmatprep.mubr.bf16.mxu0 %v3773_v2  ;;  %v1076_v61 = vadd.f32 %v948_v0, %v724_v48  ;;  %v1644_v45 = vmul.f32 %v12226_v51, %v9124_v53 }
 0x29e   : > { %4965 = vmatprep.subr.bf16.mxu0 %v6717_v34  ;;  %v2895_v3 = vadd.f32 %v2767_v47, %v2543_v39  ;;  %v2903_v7 = vadd.f32 %v2775_v10, %v2551_v36  ;;  %v1068_v33 = vadd.f32 %v940_v23, %v716_v12  ;;  %v1652_v42 = vmul.f32 %v12227_v41, %v9124_v53  ;;  %v6718_v36 = vld [vmem:[#allocation3 + $0x3f0] ss:$8 sps:$4 sm:$0xff]  }
 0x29f   : > { %v1996_v34 = vmul.f32 %v12229_v59, %v9145_v8  ;;  %v1428_v47 = vadd.f32 %v1300_v4, %v1076_v61  ;;  %v2004_v10 = vmul.f32 %v12230_v50, %v9145_v8  ;;  %v2348_v23 = vmul.f32 %v12232_v30, %v9148_v31  ;;  %v12269_v61 = vld [vmem:[#allocation12_spill] sm:$0xff] }
 0x2a0   : > { %v3247_v56 = vadd.f32 %v3119_v25, %v2895_v3  ;;  %v3255_v11 = vadd.f32 %v3127_v40, %v2903_v7  ;;  %v1420_v55 = vadd.f32 %v1292_v15, %v1068_v33  ;;  %v2356_v2 = vmul.f32 %v12233_v29, %v9148_v31  ;;  %v12278_v30 = vld [vmem:[#allocation164_spill] sm:$0xff] }
 0x2a1   : > { %4966 = vmatpush1.bf16.msra.mxu0 %v6718_v36  ;;  %v2700_v25 = vmul.f32 %v12235_v21, %v9164_v38  ;;  %v1780_v12 = vadd.f32 %v1652_v42, %v1428_v47  ;;  %v2708_v15 = vmul.f32 %v12236_v1, %v9164_v38  ;;  %v3052_v4 = vmul.f32 %v12238_v20, %v9167_v63  ;;  %v12271_v36 = vld [vmem:[#allocation15_spill] sm:$0xff]  ;;  %v12272_v47 = vld [vmem:[#allocation46_spill] sm:$0xff] }
 0x2a2   : > { %v3599_v39 = vadd.f32 %v3471_v24, %v3247_v56  ;;  %v3607_v0 = vadd.f32 %v3479_v16, %v3255_v11  ;;  %v1772_v40 = vadd.f32 %v1644_v45, %v1420_v55  ;;  %v3060_v24 = vmul.f32 %v12239_v18, %v9167_v63  ;;  %v12270_v45 = vld [vmem:[#allocation152_spill] sm:$0xff]  ;;  %v12274_v20 = vld [vmem:[#allocation155_spill] sm:$0xff] }
 0x2a3   : > { %v612_v11 = vmul.f32 %v12243_v32, %v9189_v28  ;;  %v2132_v16 = vadd.f32 %v2004_v10, %v1780_v12  ;;  %v620_v33 = vmul.f32 %v12244_v46, %v9189_v28  ;;  %v1006_v42 = vmul.f32 %v12270_v45, %v12269_v61  ;;  %v12276_v12 = vld [vmem:[#allocation104_spill] sm:$0xff]  ;;  %v12301_v46 = vld [vmem:[#allocation25_spill] sm:$0xff] }
 0x2a4   : > { %v3727_v48 = vmax.f32 %v3599_v39, 0.0  ;;  %v3735_v3 = vmax.f32 %v3607_v0, 0.0  ;;  %v2124_v7 = vadd.f32 %v1996_v34, %v1772_v40  ;;  %v1014_v39 = vmul.f32 %v12272_v47, %v12269_v61  ;;  %v12273_v0 = vld [vmem:[#allocation13_spill] sm:$0xff]  ;;  %v12275_v40 = vld [vmem:[#allocation51_spill] sm:$0xff]  ;;  %v12300_v47 = vld [vmem:[#allocation128_spill] sm:$0xff] }
 0x2a5   : > { %v782_v55 = vadd.f32 %v12271_v36, %v612_v11  ;;  %v1358_v18 = vmul.f32 %v12274_v20, %v12273_v0  ;;  %v2484_v21 = vadd.f32 %v2356_v2, %v2132_v16  ;;  %v790_v34 = vadd.f32 %v12271_v36, %v620_v33  ;;  %v12277_v11 = vld [vmem:[#allocation14_spill] sm:$0xff]  ;;  %v12279_v16 = vld [vmem:[#allocation16_spill] sm:$0xff]  ;;  %v12280_v33 = vld [vmem:[#allocation169_spill] sm:$0xff] }
 0x2a6   : > { %v3807_v56 = vpack.c.bf16 %v3735_v3, %v3727_v48  ;;  %v2476_v1 = vadd.f32 %v2348_v23, %v2124_v7  ;;  %v1366_v10 = vmul.f32 %v12251_v5, %v12273_v0  ;;  %v3404_v29 = vmul.f32 %v12276_v12, %v12275_v40  ;;  %v12298_v20 = vld [vmem:[#allocation23_spill] sm:$0xff]  ;;  %v12322_v36 = vld [vmem:[#allocation33_spill] sm:$0xff] }
 0x2a7   : > { %v3412_v48 = vmul.f32 %v12254_v14, %v12275_v40  ;;  %v1134_v3 = vadd.f32 %v1006_v42, %v782_v55  ;;  %v1710_v50 = vmul.f32 %v12278_v30, %v12277_v11  ;;  %v2836_v41 = vadd.f32 %v2708_v15, %v2484_v21  ;;  %v12281_v42 = vld [vmem:[#allocation17_spill] sm:$0xff] }
 0x2a8   : > { %5027 = vmatprep.mubr.bf16.mxu1 %v3807_v56  ;;  %v2828_v59 = vadd.f32 %v2700_v25, %v2476_v1  ;;  %v1142_v23 = vadd.f32 %v1014_v39, %v790_v34  ;;  %v1718_v2 = vmul.f32 %v12255_v60, %v12277_v11  ;;  %v2062_v56 = vmul.f32 %v12280_v33, %v12279_v16  ;;  %v12282_v1 = vld [vmem:[#allocation188_spill] sm:$0xff]  ;;  %v12292_v33 = vld [vmem:[#allocation19_spill] sm:$0xff]  ;;  %v12294_v60 = vld [vmem:[#allocation118_spill] sm:$0xff] }
 0x2a9   : > { %v1486_v7 = vadd.f32 %v1358_v18, %v1134_v3  ;;  %v2070_v12 = vmul.f32 %v12258_v49, %v12279_v16  ;;  %v3188_v22 = vadd.f32 %v3060_v24, %v2836_v41  ;;  %v2414_v55 = vmul.f32 %v12260_v13, %v12281_v42  ;;  %v12283_v3 = vld [vmem:[#allocation189_spill] sm:$0xff]  ;;  %v12285_v24 = vld [vmem:[#allocation114_spill] sm:$0xff]  ;;  %v12320_v16 = vld [vmem:[#allocation32_spill] sm:$0xff] }
 0x2aa   : > { %v3180_v51 = vadd.f32 %v3052_v4, %v2828_v59  ;;  %v1494_v40 = vadd.f32 %v1366_v10, %v1142_v23  ;;  %v2422_v21 = vmul.f32 %v12261_v43, %v12281_v42  ;;  %v2766_v25 = vmul.f32 %v12263_v6, %v12282_v1  ;;  %v12286_v23 = vld [vmem:[#allocation113_spill] sm:$0xff]  ;;  %v12321_v11 = vld [vmem:[#allocation158_spill] sm:$0xff] }
 0x2ab   : > { %v1838_v14 = vadd.f32 %v1710_v50, %v1486_v7  ;;  %v2774_v18 = vmul.f32 %v12264_v35, %v12282_v1  ;;  %v3540_v39 = vadd.f32 %v3412_v48, %v3188_v22  ;;  %v3118_v41 = vmul.f32 %v12265_v26, %v12283_v3  ;;  %v12284_v50 = vld [vmem:[#allocation18_spill] sm:$0xff]  ;;  %v12287_v35 = vld [vmem:[#allocation21_spill] sm:$0xff]  ;;  %v12289_v48 = vld [vmem:[#allocation187_spill] sm:$0xff] }
 0x2ac   : > { %v3532_v15 = vadd.f32 %v3404_v29, %v3180_v51  ;;  %v1846_v34 = vadd.f32 %v1718_v2, %v1494_v40  ;;  %v3126_v4 = vmul.f32 %v12266_v52, %v12283_v3  ;;  %v563_v10 = vmul.f32 %v12285_v24, %v12284_v50  ;;  %v12288_v51 = vld [vmem:[#allocation117_spill] sm:$0xff] }
 0x2ad   : > { %v2190_v59 = vadd.f32 %v2062_v56, %v1838_v14  ;;  %v571_v7 = vmul.f32 %v12286_v23, %v12284_v50  ;;  %v3668_v6 = vmax.f32 %v3540_v39, 0.0  ;;  %v957_v22 = vmul.f32 %v12288_v51, %v12287_v35  ;;  %v12290_v14 = vld [vmem:[#allocation20_spill] sm:$0xff]  ;;  %v12291_v13 = vld [vmem:[#allocation45_spill] sm:$0xff] }
 0x2ae   : > { %v3660_v58 = vmax.f32 %v3532_v15, 0.0  ;;  %v2198_v43 = vadd.f32 %v2070_v12, %v1846_v34  ;;  %v3470_v2 = vmul.f32 %v12267_v19, %v12289_v48  ;;  %v733_v56 = vadd.f32 %v12290_v14, %v563_v10  ;;  %v12293_v15 = vld [vmem:[#allocation119_spill] sm:$0xff]  ;;  %v12296_v30 = vld [vmem:[#allocation125_spill] sm:$0xff] }
 0x2af   : > { %v2542_v29 = vadd.f32 %v2414_v55, %v2190_v59  ;;  %v741_v40 = vadd.f32 %v12290_v14, %v571_v7  ;;  %v965_v49 = vmul.f32 %v12291_v13, %v12287_v35  ;;  %v1309_v39 = vmul.f32 %v12293_v15, %v12292_v33  ;;  %v12295_v59 = vld [vmem:[#allocation22_spill] sm:$0xff]  ;;  %v12312_v35 = vld [vmem:[#allocation165_spill] sm:$0xff] }
 0x2b0   : > { %v3772_v52 = vpack.c.bf16 %v3668_v6, %v3660_v58  ;;  %v2550_v26 = vadd.f32 %v2422_v21, %v2198_v43  ;;  %v1085_v34 = vadd.f32 %v957_v22, %v733_v56  ;;  %v1317_v55 = vmul.f32 %v12294_v60, %v12292_v33  ;;  %v12297_v6 = vld [vmem:[#allocation124_spill] sm:$0xff]  ;;  %v12309_v33 = vld [vmem:[#allocation86_spill] sm:$0xff] }
 0x2b1   : > { %v2894_v12 = vadd.f32 %v2766_v25, %v2542_v29  ;;  %v1661_v19 = vmul.f32 %v12296_v30, %v12295_v59  ;;  %v3478_v58 = vmul.f32 %v12268_v44, %v12289_v48  ;;  %v1093_v43 = vadd.f32 %v965_v49, %v741_v40  ;;  %v12299_v25 = vld [vmem:[#allocation129_spill] sm:$0xff]  ;;  %v12303_v49 = vld [vmem:[#allocation43_spill] sm:$0xff]  ;;  %v12304_v40 = vld [vmem:[#allocation26_spill] sm:$0xff] }
 0x2b2   : > { %4875 = vmatmul.mubr.bf16.gmra.mrb[8].mxu0 %v3772_v52  ;;  %v2902_v10 = vadd.f32 %v2774_v18, %v2550_v26  ;;  %v1669_v21 = vmul.f32 %v12297_v6, %v12295_v59  ;;  %v1437_v5 = vadd.f32 %v1309_v39, %v1085_v34  ;;  %v2013_v22 = vmul.f32 %v12299_v25, %v12298_v20  ;;  %v12302_v52 = vld [vmem:[#allocation44_spill] sm:$0xff]  ;;  %v12305_v44 = vld [vmem:[#allocation130_spill] sm:$0xff] }
 0x2b3   : > { %v3246_v7 = vadd.f32 %v3118_v41, %v2894_v12  ;;  %v1445_v56 = vadd.f32 %v1317_v55, %v1093_v43  ;;  %v2021_v45 = vmul.f32 %v12300_v47, %v12298_v20  ;;  %v2365_v26 = vmul.f32 %v12302_v52, %v12301_v46  ;;  %v12306_v34 = vld [vmem:[#allocation98_spill] sm:$0xff]  ;;  %v12307_v55 = vld [vmem:[#allocation27_spill] sm:$0xff] }
 0x2b4   : > { %v3254_v29 = vadd.f32 %v3126_v4, %v2902_v10  ;;  %v1789_v32 = vadd.f32 %v1661_v19, %v1437_v5  ;;  %v2373_v48 = vmul.f32 %v12303_v49, %v12301_v46  ;;  %v2717_v41 = vmul.f32 %v12305_v44, %v12304_v40  ;;  %v12308_v10 = vld [vmem:[#allocation87_spill] sm:$0xff]  ;;  %v12310_v5 = vld [vmem:[#allocation29_spill] sm:$0xff]  ;;  %v12311_v19 = vld [vmem:[#allocation166_spill] sm:$0xff] }
 0x2b5   : > { %v3598_v18 = vadd.f32 %v3470_v2, %v3246_v7  ;;  %v1797_v12 = vadd.f32 %v1669_v21, %v1445_v56  ;;  %v2725_v4 = vmul.f32 %v12306_v34, %v12304_v40  ;;  %v3069_v43 = vmul.f32 %v12308_v10, %v12307_v55  ;;  %v12313_v21 = vld [vmem:[#allocation30_spill] sm:$0xff] }
 0x2b6   : > { %v3606_v39 = vadd.f32 %v3478_v58, %v3254_v29  ;;  %v2141_v59 = vadd.f32 %v2013_v22, %v1789_v32  ;;  %v3077_v2 = vmul.f32 %v12309_v33, %v12307_v55  ;;  %v629_v7 = vmul.f32 %v12311_v19, %v12310_v5  ;;  %v12314_v29 = vld [vmem:[#allocation47_spill] sm:$0xff]  ;;  %v12316_v32 = vld [vmem:[#allocation108_spill] sm:$0xff] }
 0x2b7   : > { %v3726_v20 = vmax.f32 %v3598_v18, 0.0  ;;  %v2149_v14 = vadd.f32 %v2021_v45, %v1797_v12  ;;  %v637_v58 = vmul.f32 %v12312_v35, %v12310_v5  ;;  %v1023_v56 = vmul.f32 %v12314_v29, %v12313_v21  ;;  %v9614_v18 = vld [vmem:[%s10708_s1 + $0x68] ss:$0 sm:$0xff]  ;;  %v12317_v55 = vld [vmem:[#allocation28_spill] sm:$0xff]  ;;  %v12319_v5 = vld [vmem:[#allocation107_spill] sm:$0xff] }
 0x2b8   : > { %v3734_v46 = vmax.f32 %v3606_v39, 0.0  ;;  %v2493_v40 = vadd.f32 %v2365_v26, %v2141_v59  ;;  %12315 = vst [vmem:[#allocation24_spill] sm:$0xff] %v9614_v18  ;;  %v3421_v22 = vmul.f32 %v9614_v18, %v12316_v32  ;;  %v799_v50 = vadd.f32 %v12317_v55, %v629_v7  ;;  %v12318_v39 = vld [vmem:[#allocation136_spill] sm:$0xff]  ;;  %v12323_v29 = vld [vmem:[#allocation174_spill] sm:$0xff] }
 0x2b9   : > { %v1031_v45 = vmul.f32 %v12318_v39, %v12313_v21  ;;  %v2501_v3 = vadd.f32 %v2373_v48, %v2149_v14  ;;  %v3429_v1 = vmul.f32 %v9614_v18, %v12319_v5  ;;  %v807_v59 = vadd.f32 %v12317_v55, %v637_v58  ;;  %v12324_v21 = vld [vmem:[#allocation157_spill] sm:$0xff]  ;;  %v9632_v48 = vpop.f32.mrb[8].mxu1 }
 0x2ba   : > { %v3806_v12 = vpack.c.bf16 %v3734_v46, %v3726_v20  ;;  %v2845_v26 = vadd.f32 %v2717_v41, %v2493_v40  ;;  %v1151_v42 = vadd.f32 %v1023_v56, %v799_v50  ;;  %v1375_v0 = vmul.f32 %v12321_v11, %v12320_v16  ;;  %v12325_v46 = vld [vmem:[#allocation173_spill] sm:$0xff]  ;;  %12326 = vst [vmem:[#allocation51_spill] sm:$0xff] %v9632_v48  ;;  %v12327_v50 = vld [vmem:[#allocation176_spill] sm:$0xff]  ;;  %v12328_v56 = vld [vmem:[#allocation175_spill] sm:$0xff]  ;;  %v9638_v18 = vpop.f32.mrb[9].mxu1 }
 0x2bb   : > { %v1727_v61 = vmul.f32 %v12323_v29, %v12322_v36  ;;  %v2853_v7 = vadd.f32 %v2725_v4, %v2501_v3  ;;  %v1159_v35 = vadd.f32 %v1031_v45, %v807_v59  ;;  %v1383_v20 = vmul.f32 %v12324_v21, %v12320_v16  ;;  %12329 = vst [vmem:[#allocation187_spill] sm:$0xff] %v9638_v18  ;;  %v12330_v45 = vld [vmem:[#allocation178_spill] sm:$0xff]  ;;  %v12331_v59 = vld [vmem:[#allocation177_spill] sm:$0xff]  ;;  %v9644_v16 = vpop.f32.mrb[10].mxu1  ;;  %v12338_v18 = vld [vmem:[#allocation183_spill] sm:$0xff] }
 0x2bc   : > { %5028 = vmatmul.mubr.bf16.gmra.mrb[40].mxu1 %v3806_v12  ;;  %v1735_v14 = vmul.f32 %v12325_v46, %v12322_v36  ;;  %v3197_v58 = vadd.f32 %v3069_v43, %v2845_v26  ;;  %v1503_v40 = vadd.f32 %v1375_v0, %v1151_v42  ;;  %v2079_v41 = vmul.f32 %v12327_v50, %v12256_v54  ;;  %v12333_v42 = vld [vmem:[#allocation151_spill] sm:$0xff]  ;;  %v12334_v26 = vld [vmem:[#allocation182_spill] sm:$0xff]  ;;  %v12335_v50 = vld [vmem:[#allocation181_spill] sm:$0xff] }
 0x2bd   : > { %v2087_v55 = vmul.f32 %v12328_v56, %v12256_v54  ;;  %v3205_v3 = vadd.f32 %v3077_v2, %v2853_v7  ;;  %v1511_v4 = vadd.f32 %v1383_v20, %v1159_v35  ;;  %v2431_v12 = vmul.f32 %v12330_v45, %v12259_v17  ;;  %12332 = vst [vmem:[#allocation193_spill] sm:$0xff] %v9644_v16  ;;  %v9650_v56 = vpop.f32.mrb[11].mxu1  ;;  %v12337_v7 = vld [vmem:[#allocation184_spill] sm:$0xff] }
 0x2be   : > { %v2439_v36 = vmul.f32 %v12331_v59, %v12259_v17  ;;  %v3549_v43 = vadd.f32 %v3421_v22, %v3197_v58  ;;  %v1855_v0 = vadd.f32 %v1727_v61, %v1503_v40  ;;  %v2783_v48 = vmul.f32 %v12334_v26, %v12333_v42  ;;  %12336 = vst [vmem:[#allocation194_spill] sm:$0xff] %v9650_v56  ;;  %v9659_v61 = vld [vmem:[%s10708_s1 + $0x78] ss:$0 sm:$0xff]  ;;  %v12340_v22 = vld [vmem:[#allocation186_spill] sm:$0xff]  ;;  %v12341_v40 = vld [vmem:[#allocation185_spill] sm:$0xff] }
 0x2bf   : > { %v2791_v54 = vmul.f32 %v12335_v50, %v12333_v42  ;;  %v3557_v2 = vadd.f32 %v3429_v1, %v3205_v3  ;;  %v1863_v35 = vadd.f32 %v1735_v14, %v1511_v4  ;;  %v3135_v20 = vmul.f32 %v12337_v7, %v12188_v37  ;;  %12339 = vst [vmem:[#allocation195_spill] sm:$0xff] %v9659_v61 }
 0x2c0   : > { %v3143_v17 = vmul.f32 %v12338_v18, %v12188_v37  ;;  %v3677_v59 = vmax.f32 %v3549_v43, 0.0  ;;  %v2207_v16 = vadd.f32 %v2079_v41, %v1855_v0  ;;  %v3487_v58 = vmul.f32 %v9659_v61, %v12340_v22 }
 0x2c1   : > { %v3495_v1 = vmul.f32 %v9659_v61, %v12341_v40  ;;  %v3685_v14 = vmax.f32 %v3557_v2, 0.0  ;;  %v2215_v3 = vadd.f32 %v2087_v55, %v1863_v35  ;;  %v562_v4 = vmul.f32 %v12285_v24, %v9111_v57 }
 0x2c2   : > { %v570_v43 = vmul.f32 %v12286_v23, %v9111_v57  ;;  %v2559_v41 = vadd.f32 %v2431_v12, %v2207_v16  ;;  %v956_v0 = vmul.f32 %v12288_v51, %v9118_v62  ;;  %v964_v56 = vmul.f32 %v12291_v13, %v9118_v62 }
 0x2c3   : > { %v1308_v37 = vmul.f32 %v12293_v15, %v9121_v27  ;;  %v3781_v42 = vpack.c.bf16 %v3685_v14, %v3677_v59  ;;  %v2567_v61 = vadd.f32 %v2439_v36, %v2215_v3  ;;  %v732_v55 = vadd.f32 %v9115_v9, %v562_v4 }
 0x2c4   : > { %v740_v2 = vadd.f32 %v9115_v9, %v570_v43  ;;  %v2911_v35 = vadd.f32 %v2783_v48, %v2559_v41  ;;  %v1316_v23 = vmul.f32 %v12294_v60, %v9121_v27  ;;  %v1660_v16 = vmul.f32 %v12296_v30, %v9124_v53  ;;  %v12358_v30 = vld [vmem:[#allocation126_spill] sm:$0xff]  ;;  %v12360_v60 = vld [vmem:[#allocation37_spill] sm:$0xff] }
 0x2c5   : > { %v1668_v12 = vmul.f32 %v12297_v6, %v9124_v53  ;;  %4884 = vmatprep.mubr.bf16.mxu0 %v3781_v42  ;;  %v2919_v13 = vadd.f32 %v2791_v54, %v2567_v61  ;;  %v1084_v51 = vadd.f32 %v956_v0, %v732_v55  ;;  %v2012_v36 = vmul.f32 %v12299_v25, %v9145_v8  ;;  %v12353_v6 = vld [vmem:[#allocation188_spill] sm:$0xff] }
 0x2c6   : > { %v1092_v15 = vadd.f32 %v964_v56, %v740_v2  ;;  %v3263_v59 = vadd.f32 %v3135_v20, %v2911_v35  ;;  %v2020_v48 = vmul.f32 %v12300_v47, %v9145_v8  ;;  %v2364_v14 = vmul.f32 %v12302_v52, %v9148_v31  ;;  %v12348_v52 = vld [vmem:[#allocation16_spill] sm:$0xff] }
 0x2c7   : > { %v2372_v3 = vmul.f32 %v12303_v49, %v9148_v31  ;;  %v3271_v4 = vadd.f32 %v3143_v17, %v2919_v13  ;;  %v1436_v43 = vadd.f32 %v1308_v37, %v1084_v51  ;;  %v2716_v54 = vmul.f32 %v12305_v44, %v9164_v38  ;;  %v9702_v37 = vld [vmem:[%s10708_s1 + $0x60] ss:$0 sm:$0xff] }
 0x2c8   : > { %v1444_v41 = vadd.f32 %v1316_v23, %v1092_v15  ;;  %v3615_v56 = vadd.f32 %v3487_v58, %v3263_v59  ;;  %v2724_v42 = vmul.f32 %v12306_v34, %v9164_v38  ;;  %v3068_v20 = vmul.f32 %v12308_v10, %v9167_v63  ;;  %v12342_v15 = vld [vmem:[#allocation165_spill] sm:$0xff]  ;;  %v12344_v59 = vld [vmem:[#allocation47_spill] sm:$0xff]  ;;  %v12349_v47 = vld [vmem:[#allocation176_spill] sm:$0xff] }
 0x2c9   : > { %v3076_v61 = vmul.f32 %v12309_v33, %v9167_v63  ;;  %v3623_v0 = vadd.f32 %v3495_v1, %v3271_v4  ;;  %v1788_v55 = vadd.f32 %v1660_v16, %v1436_v43  ;;  %v3420_v17 = vmul.f32 %v9702_v37, %v12316_v32  ;;  %v12345_v43 = vld [vmem:[#allocation15_spill] sm:$0xff] }
 0x2ca   : > { %v1796_v2 = vadd.f32 %v1668_v12, %v1444_v41  ;;  %v3743_v13 = vmax.f32 %v3615_v56, 0.0  ;;  %v3428_v23 = vmul.f32 %v9702_v37, %v12319_v5  ;;  %v628_v51 = vmul.f32 %v12311_v19, %v9189_v28  ;;  %v12343_v12 = vld [vmem:[#allocation12_spill] sm:$0xff]  ;;  %v12346_v5 = vld [vmem:[#allocation13_spill] sm:$0xff] }
 0x2cb   : > { %v636_v58 = vmul.f32 %v12342_v15, %v9189_v28  ;;  %v3751_v1 = vmax.f32 %v3623_v0, 0.0  ;;  %v2140_v35 = vadd.f32 %v2012_v36, %v1788_v55  ;;  %v1022_v4 = vmul.f32 %v12344_v59, %v12343_v12  ;;  %v12347_v55 = vld [vmem:[#allocation14_spill] sm:$0xff] }
 0x2cc   : > { %v2148_v16 = vadd.f32 %v2020_v48, %v1796_v2  ;;  %v798_v41 = vadd.f32 %v12345_v43, %v628_v51  ;;  %v1030_v56 = vmul.f32 %v12318_v39, %v12343_v12  ;;  %v1374_v33 = vmul.f32 %v12321_v11, %v12346_v5  ;;  %v12367_v12 = vld [vmem:[#allocation131_spill] sm:$0xff] }
 0x2cd   : > { %v806_v32 = vadd.f32 %v12345_v43, %v636_v58  ;;  %v3815_v10 = vpack.c.bf16 %v3751_v1, %v3743_v13  ;;  %v2492_v34 = vadd.f32 %v2364_v14, %v2140_v35  ;;  %v1382_v36 = vmul.f32 %v12324_v21, %v12346_v5  ;;  %v12350_v14 = vld [vmem:[#allocation175_spill] sm:$0xff]  ;;  %v12351_v35 = vld [vmem:[#allocation17_spill] sm:$0xff] }
 0x2ce   : > { %v2500_v44 = vadd.f32 %v2372_v3, %v2148_v16  ;;  %v1150_v48 = vadd.f32 %v1022_v4, %v798_v41  ;;  %v1726_v2 = vmul.f32 %v12323_v29, %v12347_v55  ;;  %v1734_v51 = vmul.f32 %v12325_v46, %v12347_v55  ;;  %v12352_v16 = vld [vmem:[#allocation177_spill] sm:$0xff]  ;;  %v12362_v55 = vld [vmem:[#allocation20_spill] sm:$0xff]  ;;  %v12365_v43 = vld [vmem:[#allocation39_spill] sm:$0xff] }
 0x2cf   : > { %v1158_v0 = vadd.f32 %v1030_v56, %v806_v32  ;;  %5037 = vmatprep.mubr.bf16.mxu1 %v3815_v10  ;;  %v2844_v58 = vadd.f32 %v2716_v54, %v2492_v34  ;;  %v2078_v25 = vmul.f32 %v12349_v47, %v12348_v52  ;;  %v2086_v3 = vmul.f32 %v12350_v14, %v12348_v52  ;;  %v12373_v14 = vld [vmem:[#allocation142_spill] sm:$0xff]  ;;  %v12377_v46 = vld [vmem:[#allocation143_spill] sm:$0xff] }
 0x2d0   : > { %v2852_v49 = vadd.f32 %v2724_v42, %v2500_v44  ;;  %v1502_v13 = vadd.f32 %v1374_v33, %v1150_v48  ;;  %v2430_v32 = vmul.f32 %v12330_v45, %v12351_v35  ;;  %v2438_v4 = vmul.f32 %v12352_v16, %v12351_v35  ;;  %v12354_v42 = vld [vmem:[#allocation189_spill] sm:$0xff] }
 0x2d1   : > { %v1510_v1 = vadd.f32 %v1382_v36, %v1158_v0  ;;  %v3196_v41 = vadd.f32 %v3068_v20, %v2844_v58  ;;  %v2782_v34 = vmul.f32 %v12334_v26, %v12353_v6  ;;  %v2790_v44 = vmul.f32 %v12335_v50, %v12353_v6  ;;  %v12356_v58 = vld [vmem:[#allocation18_spill] sm:$0xff]  ;;  %v12372_v45 = vld [vmem:[#allocation25_spill] sm:$0xff] }
 0x2d2   : > { %v3204_v56 = vadd.f32 %v3076_v61, %v2852_v49  ;;  %v1854_v10 = vadd.f32 %v1726_v2, %v1502_v13  ;;  %v3134_v33 = vmul.f32 %v12337_v7, %v12354_v42  ;;  %v3142_v36 = vmul.f32 %v12338_v18, %v12354_v42  ;;  %v9745_v49 = vld [vmem:[%s10708_s1 + $0x70] ss:$0 sm:$0xff]  ;;  %v12357_v13 = vld [vmem:[#allocation127_spill] sm:$0xff]  ;;  %v12361_v42 = vld [vmem:[#allocation93_spill] sm:$0xff] }
 0x2d3   : > { %v1862_v54 = vadd.f32 %v1734_v51, %v1510_v1  ;;  %v3548_v48 = vadd.f32 %v3420_v17, %v3196_v41  ;;  %12355 = vst [vmem:[#allocation196_spill] sm:$0xff] %v9745_v49  ;;  %v3486_v20 = vmul.f32 %v9745_v49, %v12340_v22  ;;  %v3494_v61 = vmul.f32 %v9745_v49, %v12341_v40 }
 0x2d4   : > { %v3556_v0 = vadd.f32 %v3428_v23, %v3204_v56  ;;  %v2206_v2 = vadd.f32 %v2078_v25, %v1854_v10  ;;  %v579_v1 = vmul.f32 %v12357_v13, %v12356_v58  ;;  %v587_v17 = vmul.f32 %v12358_v30, %v12356_v58  ;;  %v12359_v56 = vld [vmem:[#allocation21_spill] sm:$0xff]  ;;  %v12363_v10 = vld [vmem:[#allocation19_spill] sm:$0xff] }
 0x2d5   : > { %v2214_v51 = vadd.f32 %v2086_v3, %v1862_v54  ;;  %v3676_v23 = vmax.f32 %v3548_v48, 0.0  ;;  %v973_v24 = vmul.f32 %v12360_v60, %v12359_v56  ;;  %v981_v6 = vmul.f32 %v12361_v42, %v12359_v56  ;;  %v12364_v54 = vld [vmem:[#allocation40_spill] sm:$0xff] }
 0x2d6   : > { %v3684_v41 = vmax.f32 %v3556_v0, 0.0  ;;  %v2558_v35 = vadd.f32 %v2430_v32, %v2206_v2  ;;  %v749_v49 = vadd.f32 %v12362_v55, %v579_v1  ;;  %v757_v25 = vadd.f32 %v12362_v55, %v587_v17  ;;  %v12366_v0 = vld [vmem:[#allocation22_spill] sm:$0xff]  ;;  %v12368_v32 = vld [vmem:[#allocation9_spill] sm:$0xff]  ;;  %v12369_v2 = vld [vmem:[#allocation23_spill] sm:$0xff] }
 0x2d7   : > { %v2566_v52 = vadd.f32 %v2438_v4, %v2214_v51  ;;  %v1325_v5 = vmul.f32 %v12364_v54, %v12363_v10  ;;  %v1333_v48 = vmul.f32 %v12365_v43, %v12363_v10  ;;  %v1677_v28 = vmul.f32 %v12367_v12, %v12366_v0  ;;  %v12370_v51 = vld [vmem:[#allocation135_spill] sm:$0xff]  ;;  %v12371_v17 = vld [vmem:[#allocation134_spill] sm:$0xff] }
 0x2d8   : > { %v3780_v3 = vpack.c.bf16 %v3684_v41, %v3676_v23  ;;  %v2910_v40 = vadd.f32 %v2782_v34, %v2558_v35  ;;  %v1101_v18 = vadd.f32 %v973_v24, %v749_v49  ;;  %v1109_v7 = vadd.f32 %v981_v6, %v757_v25  ;;  %v12374_v24 = vld [vmem:[#allocation141_spill] sm:$0xff]  ;;  %v12375_v25 = vld [vmem:[#allocation26_spill] sm:$0xff] }
 0x2d9   : > { %v2918_v22 = vadd.f32 %v2790_v44, %v2566_v52  ;;  %v1685_v4 = vmul.f32 %v12368_v32, %v12366_v0  ;;  %v2029_v1 = vmul.f32 %v12370_v51, %v12369_v2  ;;  %v2037_v23 = vmul.f32 %v12371_v17, %v12369_v2 }
 0x2da   : > { %4885 = vmatmul.mubr.bf16.gmra.mrb[12].mxu0 %v3780_v3  ;;  %v3262_v41 = vadd.f32 %v3134_v33, %v2910_v40  ;;  %v1453_v26 = vadd.f32 %v1325_v5, %v1101_v18  ;;  %v1461_v16 = vadd.f32 %v1333_v48, %v1109_v7  ;;  %v2381_v35 = vmul.f32 %v12373_v14, %v12372_v45  ;;  %v12376_v3 = vld [vmem:[#allocation144_spill] sm:$0xff]  ;;  %v12378_v40 = vld [vmem:[#allocation27_spill] sm:$0xff]  ;;  %v12380_v48 = vld [vmem:[#allocation90_spill] sm:$0xff] }
 0x2db   : > { %v3270_v50 = vadd.f32 %v3142_v36, %v2918_v22  ;;  %v2389_v6 = vmul.f32 %v12374_v24, %v12372_v45  ;;  %v2733_v47 = vmul.f32 %v12376_v3, %v12375_v25  ;;  %v2741_v21 = vmul.f32 %v12377_v46, %v12375_v25  ;;  %v12379_v22 = vld [vmem:[#allocation91_spill] sm:$0xff] }
 0x2dc   : > { %v3614_v52 = vadd.f32 %v3486_v20, %v3262_v41  ;;  %v1805_v44 = vadd.f32 %v1677_v28, %v1453_v26  ;;  %v1813_v49 = vadd.f32 %v1685_v4, %v1461_v16  ;;  %v3085_v5 = vmul.f32 %v12379_v22, %v12378_v40  ;;  %v12381_v20 = vld [vmem:[#allocation112_spill] sm:$0xff] }
 0x2dd   : > { %v3622_v34 = vadd.f32 %v3494_v61, %v3270_v50  ;;  %v3093_v29 = vmul.f32 %v12380_v48, %v12378_v40  ;;  %v12382_v50 = vld [vmem:[#allocation24_spill] sm:$0xff]  ;;  %v578_v26 = vmul.f32 %v12357_v13, %v9111_v57  ;;  %v586_v16 = vmul.f32 %v12358_v30, %v9111_v57  ;;  %v12383_v30 = vld [vmem:[#allocation111_spill] sm:$0xff] }
 0x2de   : > { %v3742_v18 = vmax.f32 %v3614_v52, 0.0  ;;  %v2157_v33 = vadd.f32 %v2029_v1, %v1805_v44  ;;  %v2165_v36 = vadd.f32 %v2037_v23, %v1813_v49  ;;  %v3437_v28 = vmul.f32 %v12382_v50, %v12381_v20 }
 0x2df   : > { %v3750_v7 = vmax.f32 %v3622_v34, 0.0  ;;  %v972_v52 = vmul.f32 %v12360_v60, %v9118_v62  ;;  %v748_v1 = vadd.f32 %v9115_v9, %v578_v26  ;;  %v756_v23 = vadd.f32 %v9115_v9, %v586_v16 }
 0x2e0   : > { %v2509_v4 = vadd.f32 %v2381_v35, %v2157_v33  ;;  %v2517_v41 = vadd.f32 %v2389_v6, %v2165_v36  ;;  %v980_v34 = vmul.f32 %v12361_v42, %v9118_v62  ;;  %v1324_v44 = vmul.f32 %v12364_v54, %v9121_v27 }
 0x2e1   : > { %v3814_v61 = vpack.c.bf16 %v3750_v7, %v3742_v18  ;;  %v3445_v35 = vmul.f32 %v12382_v50, %v12383_v30  ;;  %v1332_v6 = vmul.f32 %v12365_v43, %v9121_v27  ;;  %v1100_v60 = vadd.f32 %v972_v52, %v748_v1 }
 0x2e2   : > { %v2861_v13 = vadd.f32 %v2733_v47, %v2509_v4  ;;  %v2869_v49 = vadd.f32 %v2741_v21, %v2517_v41  ;;  %v1108_v18 = vadd.f32 %v980_v34, %v756_v23  ;;  %v1676_v7 = vmul.f32 %v12367_v12, %v9124_v53  ;;  %v12385_v23 = vld [vmem:[#allocation132_spill] sm:$0xff] }
 0x2e3   : > { %5038 = vmatmul.mubr.bf16.gmra.mrb[44].mxu1 %v3814_v61  ;;  %v1684_v42 = vmul.f32 %v12368_v32, %v9124_v53  ;;  %v2028_v47 = vmul.f32 %v12370_v51, %v9145_v8  ;;  %v1452_v21 = vadd.f32 %v1324_v44, %v1100_v60  ;;  %v2036_v26 = vmul.f32 %v12371_v17, %v9145_v8  ;;  %v12386_v44 = vld [vmem:[#allocation138_spill] sm:$0xff] }
 0x2e4   : > { %v3213_v33 = vadd.f32 %v3085_v5, %v2861_v13  ;;  %v3221_v36 = vadd.f32 %v3093_v29, %v2869_v49  ;;  %v1460_v54 = vadd.f32 %v1332_v6, %v1108_v18  ;;  %v2380_v43 = vmul.f32 %v12373_v14, %v9148_v31  ;;  %v12387_v13 = vld [vmem:[#allocation92_spill] sm:$0xff] }
 0x2e5   : > { %v2388_v12 = vmul.f32 %v12374_v24, %v9148_v31  ;;  %v2732_v32 = vmul.f32 %v12376_v3, %v9164_v38  ;;  %v1804_v29 = vadd.f32 %v1676_v7, %v1452_v21  ;;  %v2740_v51 = vmul.f32 %v12377_v46, %v9164_v38  ;;  %v12384_v3 = vld [vmem:[#allocation133_spill] sm:$0xff] }
 0x2e6   : > { %v3565_v16 = vadd.f32 %v3437_v28, %v3213_v33  ;;  %v3573_v61 = vadd.f32 %v3445_v35, %v3221_v36  ;;  %v1812_v5 = vadd.f32 %v1684_v42, %v1460_v54  ;;  %v3084_v4 = vmul.f32 %v12379_v22, %v9167_v63  ;;  %v12389_v42 = vld [vmem:[#allocation139_spill] sm:$0xff]  ;;  %v12390_v36 = vld [vmem:[#allocation146_spill] sm:$0xff]  ;;  %v12391_v21 = vld [vmem:[#allocation145_spill] sm:$0xff] }
 0x2e7   : > { %v3092_v14 = vmul.f32 %v12380_v48, %v9167_v63  ;;  %v3436_v28 = vmul.f32 %v9702_v37, %v12381_v20  ;;  %v2156_v24 = vadd.f32 %v2028_v47, %v1804_v29  ;;  %v595_v1 = vmul.f32 %v12384_v3, %v12356_v58  ;;  %v12388_v48 = vld [vmem:[#allocation140_spill] sm:$0xff] }
 0x2e8   : > { %v3693_v17 = vmax.f32 %v3565_v16, 0.0  ;;  %v3701_v41 = vmax.f32 %v3573_v61, 0.0  ;;  %v2164_v52 = vadd.f32 %v2036_v26, %v1812_v5  ;;  %v603_v34 = vmul.f32 %v12385_v23, %v12356_v58  ;;  %v12393_v5 = vld [vmem:[#allocation149_spill] sm:$0xff] }
 0x2e9   : > { %v989_v22 = vmul.f32 %v12386_v44, %v12359_v56  ;;  %v997_v49 = vmul.f32 %v12387_v13, %v12359_v56  ;;  %v1341_v35 = vmul.f32 %v12388_v48, %v12363_v10  ;;  %v2508_v6 = vadd.f32 %v2380_v43, %v2156_v24  ;;  %v12395_v24 = vld [vmem:[#allocation153_spill] sm:$0xff] }
 0x2ea   : > { %v3789_v46 = vpack.c.bf16 %v3701_v41, %v3693_v17  ;;  %v2516_v20 = vadd.f32 %v2388_v12, %v2164_v52  ;;  %v765_v60 = vadd.f32 %v12362_v55, %v595_v1  ;;  %v773_v18 = vadd.f32 %v12362_v55, %v603_v34  ;;  %v12392_v12 = vld [vmem:[#allocation150_spill] sm:$0xff] }
 0x2eb   : > { %v3444_v7 = vmul.f32 %v9702_v37, %v12383_v30  ;;  %v1349_v33 = vmul.f32 %v12389_v42, %v12363_v10  ;;  %v1693_v47 = vmul.f32 %v12390_v36, %v12366_v0  ;;  %v1701_v54 = vmul.f32 %v12391_v21, %v12366_v0  ;;  %v12394_v30 = vld [vmem:[#allocation156_spill] sm:$0xff] }
 0x2ec   : > { %4894 = vmatprep.mubr.bf16.mxu0 %v3789_v46  ;;  %v2860_v26 = vadd.f32 %v2732_v32, %v2508_v6  ;;  %v2868_v43 = vadd.f32 %v2740_v51, %v2516_v20  ;;  %v1117_v16 = vadd.f32 %v989_v22, %v765_v60  ;;  %v1125_v61 = vadd.f32 %v997_v49, %v773_v18  ;;  %v12396_v32 = vld [vmem:[#allocation160_spill] sm:$0xff]  ;;  %v12397_v22 = vld [vmem:[#allocation159_spill] sm:$0xff]  ;;  %v12398_v6 = vld [vmem:[#allocation162_spill] sm:$0xff] }
 0x2ed   : > { %v2045_v29 = vmul.f32 %v12392_v12, %v12369_v2  ;;  %v2053_v17 = vmul.f32 %v12393_v5, %v12369_v2  ;;  %v2397_v41 = vmul.f32 %v12394_v30, %v12372_v45  ;;  %v2405_v52 = vmul.f32 %v12395_v24, %v12372_v45  ;;  %v12399_v60 = vld [vmem:[#allocation161_spill] sm:$0xff] }
 0x2ee   : > { %v3212_v1 = vadd.f32 %v3084_v4, %v2860_v26  ;;  %v3220_v34 = vadd.f32 %v3092_v14, %v2868_v43  ;;  %v1469_v46 = vadd.f32 %v1341_v35, %v1117_v16  ;;  %v1477_v11 = vadd.f32 %v1349_v33, %v1125_v61  ;;  %v12400_v4 = vld [vmem:[#allocation42_spill] sm:$0xff] }
 0x2ef   : > { %v2749_v51 = vmul.f32 %v12396_v32, %v12375_v25  ;;  %v2757_v49 = vmul.f32 %v12397_v22, %v12375_v25  ;;  %v3101_v20 = vmul.f32 %v12398_v6, %v12378_v40  ;;  %v3109_v18 = vmul.f32 %v12399_v60, %v12378_v40 }
 0x2f0   : > { %v3564_v39 = vadd.f32 %v3436_v28, %v3212_v1  ;;  %v3572_v59 = vadd.f32 %v3444_v7, %v3220_v34  ;;  %v1821_v15 = vadd.f32 %v1693_v47, %v1469_v46  ;;  %v1829_v19 = vadd.f32 %v1701_v54, %v1477_v11 }
 0x2f1   : > { %v3453_v14 = vmul.f32 %v12382_v50, %v12400_v4  ;;  %v594_v35 = vmul.f32 %v12384_v3, %v9111_v57  ;;  %v602_v33 = vmul.f32 %v12385_v23, %v9111_v57  ;;  %v988_v26 = vmul.f32 %v12386_v44, %v9118_v62 }
 0x2f2   : > { %v3692_v43 = vmax.f32 %v3564_v39, 0.0  ;;  %v3700_v16 = vmax.f32 %v3572_v59, 0.0  ;;  %v2173_v61 = vadd.f32 %v2045_v29, %v1821_v15  ;;  %v2181_v40 = vadd.f32 %v2053_v17, %v1829_v19  ;;  %v12401_v17 = vld [vmem:[#allocation41_spill] sm:$0xff] }
 0x2f3   : > { %v764_v28 = vadd.f32 %v9115_v9, %v594_v35  ;;  %v772_v11 = vadd.f32 %v9115_v9, %v602_v33  ;;  %v996_v7 = vmul.f32 %v12387_v13, %v9118_v62  ;;  %v1340_v3 = vmul.f32 %v12388_v48, %v9121_v27 }
 0x2f4   : > { %v3788_v47 = vpack.c.bf16 %v3700_v16, %v3692_v43  ;;  %v2525_v54 = vadd.f32 %v2397_v41, %v2173_v61  ;;  %v2533_v23 = vadd.f32 %v2405_v52, %v2181_v40  ;;  %v1348_v44 = vmul.f32 %v12389_v42, %v9121_v27  ;;  %v12403_v43 = vld [vmem:[#allocation147_spill] sm:$0xff] }
 0x2f5   : > { %v1116_v39 = vadd.f32 %v988_v26, %v764_v28  ;;  %v1124_v59 = vadd.f32 %v996_v7, %v772_v11  ;;  %v1692_v19 = vmul.f32 %v12390_v36, %v9124_v53  ;;  %v1700_v15 = vmul.f32 %v12391_v21, %v9124_v53  ;;  %v12405_v28 = vld [vmem:[#allocation46_spill] sm:$0xff] }
 0x2f6   : > { %4895 = vmatmul.mubr.bf16.gmra.mrb[16].mxu0 %v3788_v47  ;;  %v2877_v29 = vadd.f32 %v2749_v51, %v2525_v54  ;;  %v2885_v13 = vadd.f32 %v2757_v49, %v2533_v23  ;;  %v3461_v48 = vmul.f32 %v12382_v50, %v12401_v17  ;;  %v2044_v40 = vmul.f32 %v12392_v12, %v9145_v8  ;;  %v12406_v54 = vld [vmem:[#allocation155_spill] sm:$0xff] }
 0x2f7   : > { %v1468_v41 = vadd.f32 %v1340_v3, %v1116_v39  ;;  %v1476_v52 = vadd.f32 %v1348_v44, %v1124_v59  ;;  %v2052_v42 = vmul.f32 %v12393_v5, %v9145_v8  ;;  %v2396_v36 = vmul.f32 %v12394_v30, %v9148_v31  ;;  %v12407_v44 = vld [vmem:[#allocation154_spill] sm:$0xff]  ;;  %v12408_v59 = vld [vmem:[#allocation164_spill] sm:$0xff] }
 0x2f8   : > { %v3229_v1 = vadd.f32 %v3101_v20, %v2877_v29  ;;  %v3237_v34 = vadd.f32 %v3109_v18, %v2885_v13  ;;  %v2404_v21 = vmul.f32 %v12395_v24, %v9148_v31  ;;  %v2748_v46 = vmul.f32 %v12396_v32, %v9164_v38  ;;  %v12402_v32 = vld [vmem:[#allocation148_spill] sm:$0xff] }
 0x2f9   : > { %v1820_v51 = vadd.f32 %v1692_v19, %v1468_v41  ;;  %v1828_v49 = vadd.f32 %v1700_v15, %v1476_v52  ;;  %v2756_v12 = vmul.f32 %v12397_v22, %v9164_v38  ;;  %v3100_v35 = vmul.f32 %v12398_v6, %v9167_v63  ;;  %v12404_v6 = vld [vmem:[#allocation152_spill] sm:$0xff]  ;;  %v12409_v41 = vld [vmem:[#allocation163_spill] sm:$0xff] }
 0x2fa   : > { %v3581_v5 = vadd.f32 %v3453_v14, %v3229_v1  ;;  %v3589_v33 = vadd.f32 %v3461_v48, %v3237_v34  ;;  %v3108_v30 = vmul.f32 %v12399_v60, %v9167_v63  ;;  %v3452_v20 = vmul.f32 %v9702_v37, %v12400_v4  ;;  %v12411_v1 = vld [vmem:[#allocation167_spill] sm:$0xff] }
 0x2fb   : > { %v2172_v24 = vadd.f32 %v2044_v40, %v1820_v51  ;;  %v2180_v18 = vadd.f32 %v2052_v42, %v1828_v49  ;;  %v611_v26 = vmul.f32 %v12402_v32, %v12356_v58  ;;  %v619_v16 = vmul.f32 %v12403_v43, %v12356_v58  ;;  %v12410_v42 = vld [vmem:[#allocation169_spill] sm:$0xff] }
 0x2fc   : > { %v3709_v22 = vmax.f32 %v3581_v5, 0.0  ;;  %v3717_v61 = vmax.f32 %v3589_v33, 0.0  ;;  %v1005_v14 = vmul.f32 %v12404_v6, %v12359_v56  ;;  %v1013_v11 = vmul.f32 %v12405_v28, %v12359_v56  ;;  %v12414_v33 = vld [vmem:[#allocation137_spill] sm:$0xff] }
 0x2fd   : > { %v2524_v60 = vadd.f32 %v2396_v36, %v2172_v24  ;;  %v2532_v7 = vadd.f32 %v2404_v21, %v2180_v18  ;;  %v781_v4 = vadd.f32 %v12362_v55, %v611_v26  ;;  %v789_v3 = vadd.f32 %v12362_v55, %v619_v16  ;;  %v9925_v21 = vpop.f32.mrb[12].mxu1  ;;  %v12415_v24 = vld [vmem:[#allocation48_spill] sm:$0xff]  ;;  %v12416_v26 = vld [vmem:[#allocation170_spill] sm:$0xff] }
 0x2fe   : > { %v3797_v47 = vpack.c.bf16 %v3717_v61, %v3709_v22  ;;  %v1357_v23 = vmul.f32 %v12406_v54, %v12363_v10  ;;  %v1365_v39 = vmul.f32 %v12407_v44, %v12363_v10  ;;  %v1709_v19 = vmul.f32 %v12408_v59, %v12366_v0  ;;  %12412 = vst [vmem:[#allocation18_spill] sm:$0xff] %v9925_v21  ;;  %v9927_v5 = vpop.f32.mrb[13].mxu1 }
 0x2ff   : > { %v2876_v15 = vadd.f32 %v2748_v46, %v2524_v60  ;;  %v2884_v29 = vadd.f32 %v2756_v12, %v2532_v7  ;;  %v1133_v13 = vadd.f32 %v1005_v14, %v781_v4  ;;  %v1141_v48 = vadd.f32 %v1013_v11, %v789_v3  ;;  %12413 = vst [vmem:[#allocation127_spill] sm:$0xff] %v9927_v5  ;;  %v9935_v22 = vpop.f32.mrb[14].mxu1  ;;  %v12419_v60 = vld [vmem:[#allocation168_spill] sm:$0xff]  ;;  %v12420_v4 = vld [vmem:[#allocation27_spill] sm:$0xff] }
 0x300   : > { %4904 = vmatprep.mubr.bf16.mxu0 %v3797_v47  ;;  %v3460_v40 = vmul.f32 %v9702_v37, %v12401_v17  ;;  %v1717_v52 = vmul.f32 %v12409_v41, %v12366_v0  ;;  %v2061_v36 = vmul.f32 %v12410_v42, %v12369_v2  ;;  %v2069_v34 = vmul.f32 %v12411_v1, %v12369_v2  ;;  %v12421_v3 = vld [vmem:[#allocation172_spill] sm:$0xff] }
 0x301   : > { %v3228_v51 = vadd.f32 %v3100_v35, %v2876_v15  ;;  %v3236_v46 = vadd.f32 %v3108_v30, %v2884_v29  ;;  %v1485_v49 = vadd.f32 %v1357_v23, %v1133_v13  ;;  %v1493_v12 = vadd.f32 %v1365_v39, %v1141_v48  ;;  %12417 = vst [vmem:[#allocation126_spill] sm:$0xff] %v9935_v22  ;;  %v9937_v30 = vpop.f32.mrb[15].mxu1  ;;  %v12422_v23 = vld [vmem:[#allocation171_spill] sm:$0xff] }
 0x302   : > { %v2413_v17 = vmul.f32 %v12414_v33, %v12372_v45  ;;  %v2421_v18 = vmul.f32 %v12415_v24, %v12372_v45  ;;  %v2765_v16 = vmul.f32 %v12416_v26, %v12375_v25  ;;  %12418 = vst [vmem:[#allocation21_spill] sm:$0xff] %v9937_v30  ;;  %v2773_v7 = vmul.f32 %v12419_v60, %v12375_v25  ;;  %v9947_v29 = vpop.f32.mrb[16].mxu1 }
 0x303   : > { %v3580_v61 = vadd.f32 %v3452_v20, %v3228_v51  ;;  %v3588_v14 = vadd.f32 %v3460_v40, %v3236_v46  ;;  %v1837_v11 = vadd.f32 %v1709_v19, %v1485_v49  ;;  %v1845_v35 = vadd.f32 %v1717_v52, %v1493_v12  ;;  %12423 = vst [vmem:[#allocation37_spill] sm:$0xff] %v9947_v29  ;;  %v9949_v40 = vpop.f32.mrb[17].mxu1 }
 0x304   : > { %v3117_v47 = vmul.f32 %v12421_v3, %v12420_v4  ;;  %v3125_v39 = vmul.f32 %v12422_v23, %v12420_v4  ;;  %v610_v15 = vmul.f32 %v12402_v32, %v9111_v57  ;;  %12424 = vst [vmem:[#allocation93_spill] sm:$0xff] %v9949_v40  ;;  %v618_v52 = vmul.f32 %v12403_v43, %v9111_v57  ;;  %v9958_v32 = vpop.f32.mrb[18].mxu1 }
 0x305   : > { %v3708_v20 = vmax.f32 %v3580_v61, 0.0  ;;  %v3716_v13 = vmax.f32 %v3588_v14, 0.0  ;;  %v2189_v19 = vadd.f32 %v2061_v36, %v1837_v11  ;;  %v2197_v48 = vadd.f32 %v2069_v34, %v1845_v35  ;;  %12425 = vst [vmem:[#allocation20_spill] sm:$0xff] %v9958_v32  ;;  %v9962_v34 = vpop.f32.mrb[19].mxu1 }
 0x306   : > { %v780_v51 = vadd.f32 %v9115_v9, %v610_v15  ;;  %v1004_v46 = vmul.f32 %v12404_v6, %v9118_v62  ;;  %v1012_v49 = vmul.f32 %v12405_v28, %v9118_v62  ;;  %v1356_v36 = vmul.f32 %v12406_v54, %v9121_v27  ;;  %12426 = vst [vmem:[#allocation19_spill] sm:$0xff] %v9962_v34  ;;  %v9969_v28 = vpop.f32.mrb[20].mxu1  ;;  %v12429_v54 = vld [vmem:[#allocation179_spill] sm:$0xff]  ;;  %v12513_v34 = vld [vmem:[#allocation102_spill] sm:$0xff] }
 0x307   : > { %v3796_v12 = vpack.c.bf16 %v3716_v13, %v3708_v20  ;;  %v2541_v61 = vadd.f32 %v2413_v17, %v2189_v19  ;;  %v2549_v14 = vadd.f32 %v2421_v18, %v2197_v48  ;;  %v788_v43 = vadd.f32 %v9115_v9, %v618_v52  ;;  %12427 = vst [vmem:[#allocation40_spill] sm:$0xff] %v9969_v28  ;;  %v12428_v18 = vld [vmem:[#allocation180_spill] sm:$0xff]  ;;  %v9975_v19 = vpop.f32.mrb[21].mxu1 }
 0x308   : > { %v1132_v11 = vadd.f32 %v1004_v46, %v780_v51  ;;  %v1364_v35 = vmul.f32 %v12407_v44, %v9121_v27  ;;  %v1708_v6 = vmul.f32 %v12408_v59, %v9124_v53  ;;  %v3469_v20 = vmul.f32 %v12382_v50, %v12428_v18  ;;  %12430 = vst [vmem:[#allocation39_spill] sm:$0xff] %v9975_v19  ;;  %v9981_v51 = vpop.f32.mrb[22].mxu1 }
 0x309   : > { %4905 = vmatmul.mubr.bf16.gmra.mrb[20].mxu0 %v3796_v12  ;;  %v2893_v15 = vadd.f32 %v2765_v16, %v2541_v61  ;;  %v2901_v17 = vadd.f32 %v2773_v7, %v2549_v14  ;;  %v3477_v13 = vmul.f32 %v12382_v50, %v12429_v54  ;;  %v1140_v48 = vadd.f32 %v1012_v49, %v788_v43  ;;  %v9987_v61 = vpop.f32.mrb[23].mxu1 }
 0x30a   : > { %v1484_v52 = vadd.f32 %v1356_v36, %v1132_v11  ;;  %v1716_v44 = vmul.f32 %v12409_v41, %v9124_v53  ;;  %v2060_v59 = vmul.f32 %v12410_v42, %v9145_v8  ;;  %12431 = vst [vmem:[#allocation22_spill] sm:$0xff] %v9981_v51  ;;  %v2068_v46 = vmul.f32 %v12411_v1, %v9145_v8  ;;  %v9993_v36 = vpop.f32.mrb[24].mxu1 }
 0x30b   : > { %v3245_v16 = vadd.f32 %v3117_v47, %v2893_v15  ;;  %v3253_v7 = vadd.f32 %v3125_v39, %v2901_v17  ;;  %v2412_v12 = vmul.f32 %v12414_v33, %v9148_v31  ;;  %12432 = vst [vmem:[#allocation131_spill] sm:$0xff] %v9987_v61  ;;  %v1492_v49 = vadd.f32 %v1364_v35, %v1140_v48  ;;  %v9999_v43 = vpop.f32.mrb[25].mxu1  ;;  %v12438_v48 = vld [vmem:[#allocation47_spill] sm:$0xff] }
 0x30c   : > { %v1836_v14 = vadd.f32 %v1708_v6, %v1484_v52  ;;  %v2420_v41 = vmul.f32 %v12415_v24, %v9148_v31  ;;  %v2764_v42 = vmul.f32 %v12416_v26, %v9164_v38  ;;  %12433 = vst [vmem:[#allocation9_spill] sm:$0xff] %v9993_v36  ;;  %v2772_v1 = vmul.f32 %v12419_v60, %v9164_v38  ;;  %v12435_v6 = vld [vmem:[#allocation166_spill] sm:$0xff]  ;;  %v10005_v15 = vpop.f32.mrb[26].mxu1 }
 0x30d   : > { %v3597_v47 = vadd.f32 %v3469_v20, %v3245_v16  ;;  %v3605_v39 = vadd.f32 %v3477_v13, %v3253_v7  ;;  %v3116_v33 = vmul.f32 %v12421_v3, %v9167_v63  ;;  %12434 = vst [vmem:[#allocation23_spill] sm:$0xff] %v9999_v43  ;;  %v1844_v11 = vadd.f32 %v1716_v44, %v1492_v49  ;;  %v12437_v13 = vld [vmem:[#allocation165_spill] sm:$0xff]  ;;  %v10011_v52 = vpop.f32.mrb[27].mxu1  ;;  %v12507_v43 = vld [vmem:[#allocation100_spill] sm:$0xff]  ;;  %v12509_v36 = vld [vmem:[#allocation106_spill] sm:$0xff] }
 0x30e   : > { %v2188_v35 = vadd.f32 %v2060_v59, %v1836_v14  ;;  %v3124_v24 = vmul.f32 %v12422_v23, %v9167_v63  ;;  %v627_v26 = vmul.f32 %v12435_v6, %v12356_v58  ;;  %12436 = vst [vmem:[#allocation135_spill] sm:$0xff] %v10005_v15  ;;  %v635_v60 = vmul.f32 %v12437_v13, %v12356_v58  ;;  %v12440_v23 = vld [vmem:[#allocation136_spill] sm:$0xff]  ;;  %v10016_v49 = vpop.f32.mrb[28].mxu1 }
 0x30f   : > { %v3725_v17 = vmax.f32 %v3597_v47, 0.0  ;;  %v3733_v20 = vmax.f32 %v3605_v39, 0.0  ;;  %v1021_v3 = vmul.f32 %v12438_v48, %v12359_v56  ;;  %12439 = vst [vmem:[#allocation134_spill] sm:$0xff] %v10011_v52  ;;  %v2196_v44 = vadd.f32 %v2068_v46, %v1844_v11  ;;  %12441 = vst [vmem:[#allocation25_spill] sm:$0xff] %v10016_v49  ;;  %v12442_v39 = vld [vmem:[#allocation158_spill] sm:$0xff]  ;;  %v10023_v22 = vpop.f32.mrb[29].mxu1 }
 0x310   : > { %v2540_v59 = vadd.f32 %v2412_v12, %v2188_v35  ;;  %v797_v16 = vadd.f32 %v12362_v55, %v627_v26  ;;  %v1029_v7 = vmul.f32 %v12440_v23, %v12359_v56  ;;  %v3468_v47 = vmul.f32 %v9702_v37, %v12428_v18  ;;  %12443 = vst [vmem:[#allocation142_spill] sm:$0xff] %v10023_v22  ;;  %v12444_v35 = vld [vmem:[#allocation174_spill] sm:$0xff]  ;;  %v10027_v56 = vpop.f32.mrb[30].mxu1 }
 0x311   : > { %v3805_v14 = vpack.c.bf16 %v3733_v20, %v3725_v17  ;;  %v805_v58 = vadd.f32 %v12362_v55, %v635_v60  ;;  %v1373_v30 = vmul.f32 %v12442_v39, %v12363_v10  ;;  %v2548_v46 = vadd.f32 %v2420_v41, %v2196_v44  ;;  %12445 = vst [vmem:[#allocation141_spill] sm:$0xff] %v10027_v56  ;;  %v12446_v55 = vld [vmem:[#allocation157_spill] sm:$0xff]  ;;  %v10035_v21 = vpop.f32.mrb[31].mxu1  ;;  %v12449_v44 = vld [vmem:[#allocation176_spill] sm:$0xff] }
 0x312   : > { %v2892_v12 = vadd.f32 %v2764_v42, %v2540_v59  ;;  %v1149_v11 = vadd.f32 %v1021_v3, %v797_v16  ;;  %v1725_v26 = vmul.f32 %v12444_v35, %v12366_v0  ;;  %v3476_v17 = vmul.f32 %v9702_v37, %v12429_v54  ;;  %v12447_v60 = vld [vmem:[#allocation173_spill] sm:$0xff]  ;;  %12448 = vst [vmem:[#allocation26_spill] sm:$0xff] %v10035_v21  ;;  %v12451_v54 = vld [vmem:[#allocation178_spill] sm:$0xff] }
 0x313   : > { %4914 = vmatprep.mubr.bf16.mxu0 %v3805_v14  ;;  %v1157_v18 = vadd.f32 %v1029_v7, %v805_v58  ;;  %v1381_v20 = vmul.f32 %v12446_v55, %v12363_v10  ;;  %v1733_v5 = vmul.f32 %v12447_v60, %v12366_v0  ;;  %v2900_v41 = vadd.f32 %v2772_v1, %v2548_v46  ;;  %v12450_v14 = vld [vmem:[#allocation175_spill] sm:$0xff]  ;;  %v12452_v10 = vld [vmem:[#allocation177_spill] sm:$0xff]  ;;  %v12453_v1 = vld [vmem:[#allocation182_spill] sm:$0xff] }
 0x314   : > { %v3244_v42 = vadd.f32 %v3116_v33, %v2892_v12  ;;  %v1501_v3 = vadd.f32 %v1373_v30, %v1149_v11  ;;  %v2077_v59 = vmul.f32 %v12449_v44, %v12369_v2  ;;  %v2085_v56 = vmul.f32 %v12450_v14, %v12369_v2  ;;  %v12454_v46 = vld [vmem:[#allocation181_spill] sm:$0xff]  ;;  %v12455_v11 = vld [vmem:[#allocation184_spill] sm:$0xff]  ;;  %v12456_v2 = vld [vmem:[#allocation183_spill] sm:$0xff] }
 0x315   : > { %v1509_v16 = vadd.f32 %v1381_v20, %v1157_v18  ;;  %v2429_v7 = vmul.f32 %v12451_v54, %v12372_v45  ;;  %v2437_v58 = vmul.f32 %v12452_v10, %v12372_v45  ;;  %v3252_v22 = vadd.f32 %v3124_v24, %v2900_v41 }
 0x316   : > { %v3596_v0 = vadd.f32 %v3468_v47, %v3244_v42  ;;  %v1853_v49 = vadd.f32 %v1725_v26, %v1501_v3  ;;  %v2781_v33 = vmul.f32 %v12453_v1, %v12375_v25  ;;  %v2789_v12 = vmul.f32 %v12454_v46, %v12375_v25  ;;  %v12457_v42 = vld [vmem:[#allocation186_spill] sm:$0xff] }
 0x317   : > { %v1861_v30 = vadd.f32 %v1733_v5, %v1509_v16  ;;  %v3133_v18 = vmul.f32 %v12455_v11, %v12420_v4  ;;  %v3141_v20 = vmul.f32 %v12456_v2, %v12420_v4  ;;  %v3604_v21 = vadd.f32 %v3476_v17, %v3252_v22  ;;  %v12458_v17 = vld [vmem:[#allocation185_spill] sm:$0xff] }
 0x318   : > { %v3724_v52 = vmax.f32 %v3596_v0, 0.0  ;;  %v2205_v15 = vadd.f32 %v2077_v59, %v1853_v49  ;;  %v626_v45 = vmul.f32 %v12435_v6, %v9111_v57  ;;  %v634_v47 = vmul.f32 %v12437_v13, %v9111_v57 }
 0x319   : > { %v2213_v24 = vadd.f32 %v2085_v56, %v1861_v30  ;;  %v1020_v5 = vmul.f32 %v12438_v48, %v9118_v62  ;;  %v1028_v25 = vmul.f32 %v12440_v23, %v9118_v62  ;;  %v3732_v26 = vmax.f32 %v3604_v21, 0.0  ;;  %v12459_v30 = vld [vmem:[#allocation29_spill] sm:$0xff] }
 0x31a   : > { %v2557_v41 = vadd.f32 %v2429_v7, %v2205_v15  ;;  %v3485_v22 = vmul.f32 %v12382_v50, %v12457_v42  ;;  %v796_v4 = vadd.f32 %v9115_v9, %v626_v45  ;;  %v3493_v6 = vmul.f32 %v12382_v50, %v12458_v17  ;;  %v12462_v45 = vld [vmem:[#allocation30_spill] sm:$0xff] }
 0x31b   : > { %v2565_v49 = vadd.f32 %v2437_v58, %v2213_v24  ;;  %v804_v56 = vadd.f32 %v9115_v9, %v634_v47  ;;  %v1372_v57 = vmul.f32 %v12442_v39, %v9121_v27  ;;  %v3804_v13 = vpack.c.bf16 %v3732_v26, %v3724_v52  ;;  %v12464_v24 = vld [vmem:[#allocation60_spill] sm:$0xff] }
 0x31c   : > { %v2909_v48 = vadd.f32 %v2781_v33, %v2557_v41  ;;  %v1148_v3 = vadd.f32 %v1020_v5, %v796_v4  ;;  %v1724_v62 = vmul.f32 %v12444_v35, %v9124_v53  ;;  %v1380_v23 = vmul.f32 %v12446_v55, %v9121_v27  ;;  %v12466_v4 = vld [vmem:[#allocation32_spill] sm:$0xff] }
 0x31d   : > { %v2917_v21 = vadd.f32 %v2789_v12, %v2565_v49  ;;  %v1156_v15 = vadd.f32 %v1028_v25, %v804_v56  ;;  %v1732_v59 = vmul.f32 %v12447_v60, %v9124_v53  ;;  %4915 = vmatmul.mubr.bf16.gmra.mrb[24].mxu0 %v3804_v13  ;;  %v2076_v39 = vmul.f32 %v12449_v44, %v9145_v8  ;;  %v12461_v12 = vld [vmem:[#allocation56_spill] sm:$0xff]  ;;  %v12467_v49 = vld [vmem:[#allocation55_spill] sm:$0xff] }
 0x31e   : > { %v3261_v50 = vadd.f32 %v3133_v18, %v2909_v48  ;;  %v1500_v9 = vadd.f32 %v1372_v57, %v1148_v3  ;;  %v2084_v52 = vmul.f32 %v12450_v14, %v9145_v8  ;;  %v2428_v35 = vmul.f32 %v12451_v54, %v9148_v31  ;;  %v12468_v48 = vld [vmem:[#allocation54_spill] sm:$0xff] }
 0x31f   : > { %v3269_v16 = vadd.f32 %v3141_v20, %v2917_v21  ;;  %v1508_v7 = vadd.f32 %v1380_v23, %v1156_v15  ;;  %v2436_v27 = vmul.f32 %v12452_v10, %v9148_v31  ;;  %v2780_v53 = vmul.f32 %v12453_v1, %v9164_v38  ;;  %v12460_v31 = vld [vmem:[#allocation57_spill] sm:$0xff]  ;;  %v12470_v21 = vld [vmem:[#allocation59_spill] sm:$0xff]  ;;  %v12471_v23 = vld [vmem:[#allocation58_spill] sm:$0xff] }
 0x320   : > { %v3613_v55 = vadd.f32 %v3485_v22, %v3261_v50  ;;  %v1852_v58 = vadd.f32 %v1724_v62, %v1500_v9  ;;  %v2788_v60 = vmul.f32 %v12454_v46, %v9164_v38  ;;  %v3132_v8 = vmul.f32 %v12455_v11, %v9167_v63  ;;  %v12463_v38 = vld [vmem:[#allocation61_spill] sm:$0xff]  ;;  %v12472_v50 = vld [vmem:[#allocation34_spill] sm:$0xff] }
 0x321   : > { %v3621_v44 = vadd.f32 %v3493_v6, %v3269_v16  ;;  %v1860_v0 = vadd.f32 %v1732_v59, %v1508_v7  ;;  %v3140_v14 = vmul.f32 %v12456_v2, %v9167_v63  ;;  %v517_v10 = vmul.f32 %v12460_v31, %v12459_v30  ;;  %v12465_v2 = vld [vmem:[#allocation28_spill] sm:$0xff]  ;;  %v12469_v62 = vld [vmem:[#allocation33_spill] sm:$0xff] }
 0x322   : > { %v3741_v54 = vmax.f32 %v3613_v55, 0.0  ;;  %v2204_v33 = vadd.f32 %v2076_v39, %v1852_v58  ;;  %v525_v18 = vmul.f32 %v12461_v12, %v12459_v30  ;;  %v911_v46 = vmul.f32 %v12463_v38, %v12462_v45  ;;  %v12473_v9 = vld [vmem:[#allocation65_spill] sm:$0xff]  ;;  %v12474_v16 = vld [vmem:[#allocation64_spill] sm:$0xff] }
 0x323   : > { %v3749_v1 = vmax.f32 %v3621_v44, 0.0  ;;  %v2212_v20 = vadd.f32 %v2084_v52, %v1860_v0  ;;  %v919_v47 = vmul.f32 %v12464_v24, %v12462_v45  ;;  %v3484_v63 = vmul.f32 %v9702_v37, %v12457_v42  ;;  %v12476_v55 = vld [vmem:[#allocation73_spill] sm:$0xff]  ;;  %v12477_v0 = vld [vmem:[#allocation72_spill] sm:$0xff] }
 0x324   : > { %v2556_v11 = vadd.f32 %v2428_v35, %v2204_v33  ;;  %v687_v5 = vadd.f32 %v12465_v2, %v517_v10  ;;  %v695_v25 = vadd.f32 %v12465_v2, %v525_v18  ;;  %v3492_v22 = vmul.f32 %v9702_v37, %v12458_v17  ;;  %v12478_v10 = vld [vmem:[#allocation151_spill] sm:$0xff]  ;;  %v12479_v18 = vld [vmem:[#allocation77_spill] sm:$0xff] }
 0x325   : > { %v3813_v26 = vpack.c.bf16 %v3749_v1, %v3741_v54  ;;  %v2564_v41 = vadd.f32 %v2436_v27, %v2212_v20  ;;  %v1263_v6 = vmul.f32 %v12467_v49, %v12466_v4  ;;  %v1271_v3 = vmul.f32 %v12468_v48, %v12466_v4  ;;  %v12475_v27 = vld [vmem:[#allocation35_spill] sm:$0xff] }
 0x326   : > { %v2908_v56 = vadd.f32 %v2780_v53, %v2556_v11  ;;  %v1039_v57 = vadd.f32 %v911_v46, %v687_v5  ;;  %v1047_v13 = vadd.f32 %v919_v47, %v695_v25  ;;  %v1615_v15 = vmul.f32 %v12470_v21, %v12469_v62  ;;  %v12481_v46 = vld [vmem:[#allocation49_spill] sm:$0xff]  ;;  %v12482_v47 = vld [vmem:[#allocation75_spill] sm:$0xff] }
 0x327   : > { %4924 = vmatprep.mubr.bf16.mxu0 %v3813_v26  ;;  %v2916_v42 = vadd.f32 %v2788_v60, %v2564_v41  ;;  %v1623_v59 = vmul.f32 %v12471_v23, %v12469_v62  ;;  %v1967_v37 = vmul.f32 %v12473_v9, %v12472_v50  ;;  %v1975_v7 = vmul.f32 %v12474_v16, %v12472_v50 }
 0x328   : > { %v3260_v17 = vadd.f32 %v3132_v8, %v2908_v56  ;;  %v1391_v39 = vadd.f32 %v1263_v6, %v1039_v57  ;;  %v1399_v52 = vadd.f32 %v1271_v3, %v1047_v13  ;;  %v2319_v58 = vmul.f32 %v12476_v55, %v12475_v27  ;;  %v12480_v8 = vld [vmem:[#allocation76_spill] sm:$0xff]  ;;  %v12484_v6 = vld [vmem:[#allocation97_spill] sm:$0xff]  ;;  %v12485_v56 = vld [vmem:[#allocation195_spill] sm:$0xff] }
 0x329   : > { %v3268_v35 = vadd.f32 %v3140_v14, %v2916_v42  ;;  %v2327_v54 = vmul.f32 %v12477_v0, %v12475_v27  ;;  %v2671_v1 = vmul.f32 %v12479_v18, %v12478_v10  ;;  %v2679_v20 = vmul.f32 %v12480_v8, %v12478_v10  ;;  %v12487_v3 = vld [vmem:[#allocation36_spill] sm:$0xff] }
 0x32a   : > { %v3612_v53 = vadd.f32 %v3484_v63, %v3260_v17  ;;  %v1743_v60 = vadd.f32 %v1615_v15, %v1391_v39  ;;  %v1751_v44 = vadd.f32 %v1623_v59, %v1399_v52  ;;  %v3023_v11 = vmul.f32 %v12482_v47, %v12481_v46  ;;  %v12483_v63 = vld [vmem:[#allocation74_spill] sm:$0xff] }
 0x32b   : > { %v3620_v33 = vadd.f32 %v3492_v22, %v3268_v35  ;;  %v3031_v26 = vmul.f32 %v12483_v63, %v12481_v46  ;;  %v3375_v57 = vmul.f32 %v12485_v56, %v12484_v6  ;;  %v12486_v22 = vld [vmem:[#allocation96_spill] sm:$0xff]  ;;  %v516_v42 = vmul.f32 %v12460_v31, %v12487_v3 }
 0x32c   : > { %v3740_v14 = vmax.f32 %v3612_v53, 0.0  ;;  %v2095_v5 = vadd.f32 %v1967_v37, %v1743_v60  ;;  %v2103_v25 = vadd.f32 %v1975_v7, %v1751_v44  ;;  %v3383_v13 = vmul.f32 %v12485_v56, %v12486_v22  ;;  %v12488_v37 = vld [vmem:[#allocation12_spill] sm:$0xff]  ;;  %v12489_v7 = vld [vmem:[#allocation15_spill] sm:$0xff]  ;;  %v12490_v60 = vld [vmem:[#allocation13_spill] sm:$0xff] }
 0x32d   : > { %v3748_v41 = vmax.f32 %v3620_v33, 0.0  ;;  %v524_v17 = vmul.f32 %v12461_v12, %v12487_v3  ;;  %v910_v39 = vmul.f32 %v12463_v38, %v12488_v37  ;;  %v686_v35 = vadd.f32 %v12489_v7, %v516_v42  ;;  %v12493_v42 = vld [vmem:[#allocation17_spill] sm:$0xff] }
 0x32e   : > { %v2447_v15 = vadd.f32 %v2319_v58, %v2095_v5  ;;  %v2455_v59 = vadd.f32 %v2327_v54, %v2103_v25  ;;  %v918_v53 = vmul.f32 %v12464_v24, %v12488_v37  ;;  %v1262_v44 = vmul.f32 %v12467_v49, %v12490_v60  ;;  %v12491_v54 = vld [vmem:[#allocation14_spill] sm:$0xff]  ;;  %v12492_v5 = vld [vmem:[#allocation16_spill] sm:$0xff] }
 0x32f   : > { %v3812_v52 = vpack.c.bf16 %v3748_v41, %v3740_v14  ;;  %v694_v31 = vadd.f32 %v12489_v7, %v524_v17  ;;  %v1270_v58 = vmul.f32 %v12468_v48, %v12490_v60  ;;  %v1038_v12 = vadd.f32 %v910_v39, %v686_v35 }
 0x330   : > { %v2799_v33 = vadd.f32 %v2671_v1, %v2447_v15  ;;  %v2807_v56 = vadd.f32 %v2679_v20, %v2455_v59  ;;  %v1614_v38 = vmul.f32 %v12470_v21, %v12491_v54  ;;  %v1622_v14 = vmul.f32 %v12471_v23, %v12491_v54  ;;  %v12494_v21 = vld [vmem:[#allocation188_spill] sm:$0xff] }
 0x331   : > { %4925 = vmatmul.mubr.bf16.gmra.mrb[28].mxu0 %v3812_v52  ;;  %v1966_v24 = vmul.f32 %v12473_v9, %v12492_v5  ;;  %v1046_v1 = vadd.f32 %v918_v53, %v694_v31  ;;  %v1974_v20 = vmul.f32 %v12474_v16, %v12492_v5  ;;  %v1390_v41 = vadd.f32 %v1262_v44, %v1038_v12 }
 0x332   : > { %v3151_v25 = vadd.f32 %v3023_v11, %v2799_v33  ;;  %v3159_v49 = vadd.f32 %v3031_v26, %v2807_v56  ;;  %v2318_v48 = vmul.f32 %v12476_v55, %v12493_v42  ;;  %v2326_v15 = vmul.f32 %v12477_v0, %v12493_v42  ;;  %v12495_v26 = vld [vmem:[#allocation189_spill] sm:$0xff]  ;;  %v12496_v55 = vld [vmem:[#allocation196_spill] sm:$0xff]  ;;  %v12498_v33 = vld [vmem:[#allocation62_spill] sm:$0xff] }
 0x333   : > { %v2670_v59 = vmul.f32 %v12479_v18, %v12494_v21  ;;  %v1398_v39 = vadd.f32 %v1270_v58, %v1046_v1  ;;  %v2678_v9 = vmul.f32 %v12480_v8, %v12494_v21  ;;  %v1742_v11 = vadd.f32 %v1614_v38, %v1390_v41  ;;  %v12501_v38 = vld [vmem:[#allocation69_spill] sm:$0xff] }
 0x334   : > { %v3503_v23 = vadd.f32 %v3375_v57, %v3151_v25  ;;  %v3511_v17 = vadd.f32 %v3383_v13, %v3159_v49  ;;  %v3022_v16 = vmul.f32 %v12482_v47, %v12495_v26  ;;  %v3030_v52 = vmul.f32 %v12483_v63, %v12495_v26  ;;  %v12497_v13 = vld [vmem:[#allocation63_spill] sm:$0xff]  ;;  %v12502_v49 = vld [vmem:[#allocation68_spill] sm:$0xff] }
 0x335   : > { %v3374_v35 = vmul.f32 %v12496_v55, %v12484_v6  ;;  %v1750_v44 = vadd.f32 %v1622_v14, %v1398_v39  ;;  %v3382_v18 = vmul.f32 %v12496_v55, %v12486_v22  ;;  %v2094_v57 = vadd.f32 %v1966_v24, %v1742_v11  ;;  %v12499_v47 = vld [vmem:[#allocation67_spill] sm:$0xff]  ;;  %v12500_v6 = vld [vmem:[#allocation66_spill] sm:$0xff]  ;;  %v12505_v11 = vld [vmem:[#allocation89_spill] sm:$0xff] }
 0x336   : > { %v3631_v0 = vmax.f32 %v3503_v23, 0.0  ;;  %v3639_v53 = vmax.f32 %v3511_v17, 0.0  ;;  %v533_v8 = vmul.f32 %v12497_v13, %v12459_v30  ;;  %v541_v56 = vmul.f32 %v12498_v33, %v12459_v30  ;;  %v12503_v23 = vld [vmem:[#allocation81_spill] sm:$0xff] }
 0x337   : > { %v927_v31 = vmul.f32 %v12499_v47, %v12462_v45  ;;  %v2102_v58 = vadd.f32 %v1974_v20, %v1750_v44  ;;  %v935_v12 = vmul.f32 %v12500_v6, %v12462_v45  ;;  %v1279_v14 = vmul.f32 %v12501_v38, %v12466_v4  ;;  %v12504_v20 = vld [vmem:[#allocation80_spill] sm:$0xff] }
 0x338   : > { %v3759_v63 = vpack.c.bf16 %v3639_v53, %v3631_v0  ;;  %v2446_v25 = vadd.f32 %v2318_v48, %v2094_v57  ;;  %v703_v22 = vadd.f32 %v12465_v2, %v533_v8  ;;  %v711_v24 = vadd.f32 %v12465_v2, %v541_v56  ;;  %v12506_v57 = vld [vmem:[#allocation88_spill] sm:$0xff] }
 0x339   : > { %v1287_v1 = vmul.f32 %v12502_v49, %v12466_v4  ;;  %v2454_v41 = vadd.f32 %v2326_v15, %v2102_v58  ;;  %v1631_v17 = vmul.f32 %v12503_v23, %v12469_v62  ;;  %v1639_v39 = vmul.f32 %v12504_v20, %v12469_v62  ;;  %v12508_v15 = vld [vmem:[#allocation99_spill] sm:$0xff] }
 0x33a   : > { %4967 = vmatprep.mubr.bf16.mxu0 %v3759_v63  ;;  %v1983_v0 = vmul.f32 %v12505_v11, %v12472_v50  ;;  %v2798_v53 = vadd.f32 %v2670_v59, %v2446_v25  ;;  %v1055_v48 = vadd.f32 %v927_v31, %v703_v22  ;;  %v1063_v44 = vadd.f32 %v935_v12, %v711_v24  ;;  %v12510_v59 = vld [vmem:[#allocation105_spill] sm:$0xff]  ;;  %v12511_v25 = vld [vmem:[#allocation79_spill] sm:$0xff] }
 0x33b   : > { %v1991_v8 = vmul.f32 %v12506_v57, %v12472_v50  ;;  %v2806_v56 = vadd.f32 %v2678_v9, %v2454_v41  ;;  %v2335_v63 = vmul.f32 %v12507_v43, %v12475_v27  ;;  %v2343_v58 = vmul.f32 %v12508_v15, %v12475_v27  ;;  %v12512_v9 = vld [vmem:[#allocation78_spill] sm:$0xff]  ;;  %v10208_v41 = vld [vmem:[%s10708_s1 + $0x78] ss:$0 sm:$0xff] }
 0x33c   : > { %v2687_v61 = vmul.f32 %v12509_v36, %v12478_v10  ;;  %v3150_v51 = vadd.f32 %v3022_v16, %v2798_v53  ;;  %v1407_v19 = vadd.f32 %v1279_v14, %v1055_v48  ;;  %v1415_v28 = vadd.f32 %v1287_v1, %v1063_v44 }
 0x33d   : > { %v2695_v31 = vmul.f32 %v12510_v59, %v12478_v10  ;;  %v3158_v12 = vadd.f32 %v3030_v52, %v2806_v56  ;;  %v3039_v22 = vmul.f32 %v12511_v25, %v12481_v46  ;;  %v3047_v24 = vmul.f32 %v12512_v9, %v12481_v46  ;;  %v12514_v52 = vld [vmem:[#allocation101_spill] sm:$0xff] }
 0x33e   : > { %v3391_v16 = vmul.f32 %v10208_v41, %v12513_v34  ;;  %v10212_v14 = vpop.f32.mrb[32].mxu1  ;;  %v3502_v1 = vadd.f32 %v3374_v35, %v3150_v51  ;;  %v1759_v53 = vadd.f32 %v1631_v17, %v1407_v19  ;;  %v1767_v48 = vadd.f32 %v1639_v39, %v1415_v28 }
 0x33f   : > { %v3399_v44 = vmul.f32 %v10208_v41, %v12514_v52  ;;  %v10216_v56 = vpop.f32.mrb[33].mxu1  ;;  %v3510_v32 = vadd.f32 %v3382_v18, %v3158_v12  ;;  %v532_v40 = vmul.f32 %v12497_v13, %v12487_v3  ;;  %v540_v29 = vmul.f32 %v12498_v33, %v12487_v3 }
 0x340   : > { %v926_v46 = vmul.f32 %v12499_v47, %v12488_v37  ;;  %v10224_v10 = vpop.f32.mrb[34].mxu1  ;;  %v3630_v51 = vmax.f32 %v3502_v1, 0.0  ;;  %v2111_v19 = vadd.f32 %v1983_v0, %v1759_v53  ;;  %v2119_v28 = vadd.f32 %v1991_v8, %v1767_v48 }
 0x341   : > { %12515 = vst [vmem:[#allocation144_spill] sm:$0xff] %v10224_v10  ;;  %v934_v35 = vmul.f32 %v12500_v6, %v12488_v37  ;;  %v10228_v17 = vpop.f32.mrb[35].mxu1  ;;  %v3638_v18 = vmax.f32 %v3510_v32, 0.0  ;;  %v702_v39 = vadd.f32 %v12489_v7, %v532_v40  ;;  %v710_v13 = vadd.f32 %v12489_v7, %v540_v29 }
 0x342   : > { %12516 = vst [vmem:[#allocation143_spill] sm:$0xff] %v10228_v17  ;;  %v1278_v33 = vmul.f32 %v12501_v38, %v12490_v60  ;;  %v2463_v12 = vadd.f32 %v2335_v63, %v2111_v19  ;;  %v2471_v47 = vadd.f32 %v2343_v58, %v2119_v28  ;;  %v1286_v1 = vmul.f32 %v12502_v49, %v12490_v60 }
 0x343   : > { %v1630_v0 = vmul.f32 %v12503_v23, %v12491_v54  ;;  %v3758_v8 = vpack.c.bf16 %v3638_v18, %v3630_v51  ;;  %v1054_v6 = vadd.f32 %v926_v46, %v702_v39  ;;  %v1062_v53 = vadd.f32 %v934_v35, %v710_v13  ;;  %v12518_v18 = vld [vmem:[#allocation84_spill] sm:$0xff] }
 0x344   : > { %v1638_v32 = vmul.f32 %v12504_v20, %v12491_v54  ;;  %v2815_v40 = vadd.f32 %v2687_v61, %v2463_v12  ;;  %v2823_v48 = vadd.f32 %v2695_v31, %v2471_v47  ;;  %v1982_v29 = vmul.f32 %v12505_v11, %v12492_v5 }
 0x345   : > { %v1990_v38 = vmul.f32 %v12506_v57, %v12492_v5  ;;  %4968 = vmatmul.mubr.bf16.vlgmr.msra.gmra.mrb[0].mxu0 %v3758_v8  ;;  %v1406_v63 = vadd.f32 %v1278_v33, %v1054_v6  ;;  %v1414_v49 = vadd.f32 %v1286_v1, %v1062_v53  ;;  %v2334_v23 = vmul.f32 %v12507_v43, %v12493_v42  ;;  %v12521_v1 = vld [vmem:[#allocation71_spill] sm:$0xff]  ;;  %v12522_v8 = vld [vmem:[#allocation70_spill] sm:$0xff] }
 0x346   : > { %v2342_v46 = vmul.f32 %v12508_v15, %v12493_v42  ;;  %v3167_v58 = vadd.f32 %v3039_v22, %v2815_v40  ;;  %v3175_v51 = vadd.f32 %v3047_v24, %v2823_v48  ;;  %v2686_v61 = vmul.f32 %v12509_v36, %v12494_v21  ;;  %v12523_v53 = vld [vmem:[#allocation110_spill] sm:$0xff] }
 0x347   : > { %v2694_v20 = vmul.f32 %v12510_v59, %v12494_v21  ;;  %v1758_v11 = vadd.f32 %v1630_v0, %v1406_v63  ;;  %v1766_v31 = vadd.f32 %v1638_v32, %v1414_v49  ;;  %v3038_v57 = vmul.f32 %v12511_v25, %v12495_v26  ;;  %v12517_v59 = vld [vmem:[#allocation85_spill] sm:$0xff] }
 0x348   : > { %v3046_v19 = vmul.f32 %v12512_v9, %v12495_v26  ;;  %v3519_v43 = vadd.f32 %v3391_v16, %v3167_v58  ;;  %v3527_v28 = vadd.f32 %v3399_v44, %v3175_v51  ;;  %v3390_v15 = vmul.f32 %v12496_v55, %v12513_v34  ;;  %v12519_v9 = vld [vmem:[#allocation95_spill] sm:$0xff]  ;;  %v12520_v44 = vld [vmem:[#allocation94_spill] sm:$0xff]  ;;  %v12524_v63 = vld [vmem:[#allocation109_spill] sm:$0xff] }
 0x349   : > { %v3398_v22 = vmul.f32 %v12496_v55, %v12514_v52  ;;  %v2110_v36 = vadd.f32 %v1982_v29, %v1758_v11  ;;  %v2118_v24 = vadd.f32 %v1990_v38, %v1766_v31  ;;  %v549_v35 = vmul.f32 %v12517_v59, %v12459_v30  ;;  %v12526_v58 = vld [vmem:[#allocation115_spill] sm:$0xff] }
 0x34a   : > { %v557_v39 = vmul.f32 %v12518_v18, %v12459_v30  ;;  %v3647_v25 = vmax.f32 %v3519_v43, 0.0  ;;  %v3655_v13 = vmax.f32 %v3527_v28, 0.0  ;;  %v943_v16 = vmul.f32 %v12519_v9, %v12462_v45 }
 0x34b   : > { %v951_v33 = vmul.f32 %v12520_v44, %v12462_v45  ;;  %v2462_v34 = vadd.f32 %v2334_v23, %v2110_v36  ;;  %v2470_v12 = vadd.f32 %v2342_v46, %v2118_v24  ;;  %v719_v55 = vadd.f32 %v12465_v2, %v549_v35  ;;  %v12525_v23 = vld [vmem:[#allocation116_spill] sm:$0xff]  ;;  %v12527_v36 = vld [vmem:[#allocation121_spill] sm:$0xff]  ;;  %v12529_v35 = vld [vmem:[#allocation151_spill] sm:$0xff] }
 0x34c   : > { %v727_v52 = vadd.f32 %v12465_v2, %v557_v39  ;;  %v3767_v47 = vpack.c.bf16 %v3655_v13, %v3647_v25  ;;  %v1295_v0 = vmul.f32 %v12521_v1, %v12466_v4  ;;  %v1303_v6 = vmul.f32 %v12522_v8, %v12466_v4  ;;  %v12530_v39 = vld [vmem:[#allocation123_spill] sm:$0xff]  ;;  %v12531_v13 = vld [vmem:[#allocation122_spill] sm:$0xff] }
 0x34d   : > { %v1647_v32 = vmul.f32 %v12523_v53, %v12469_v62  ;;  %v2814_v40 = vadd.f32 %v2686_v61, %v2462_v34  ;;  %v2822_v48 = vadd.f32 %v2694_v20, %v2470_v12  ;;  %v1071_v29 = vadd.f32 %v943_v16, %v719_v55  ;;  %v12528_v20 = vld [vmem:[#allocation120_spill] sm:$0xff] }
 0x34e   : > { %v1079_v38 = vadd.f32 %v951_v33, %v727_v52  ;;  %4977 = vmatprep.mubr.bf16.mxu0 %v3767_v47  ;;  %v1655_v49 = vmul.f32 %v12524_v63, %v12469_v62  ;;  %v1999_v46 = vmul.f32 %v12525_v23, %v12472_v50  ;;  %v2007_v51 = vmul.f32 %v12526_v58, %v12472_v50  ;;  %v12534_v47 = vld [vmem:[#allocation82_spill] sm:$0xff] }
 0x34f   : > { %v3166_v11 = vadd.f32 %v3038_v57, %v2814_v40  ;;  %v3174_v31 = vadd.f32 %v3046_v19, %v2822_v48  ;;  %v1423_v43 = vadd.f32 %v1295_v0, %v1071_v29  ;;  %v2351_v61 = vmul.f32 %v12527_v36, %v12475_v27  ;;  %v12532_v57 = vld [vmem:[#allocation49_spill] sm:$0xff]  ;;  %v12533_v19 = vld [vmem:[#allocation83_spill] sm:$0xff] }
 0x350   : > { %v1431_v28 = vadd.f32 %v1303_v6, %v1079_v38  ;;  %v2359_v24 = vmul.f32 %v12528_v20, %v12475_v27  ;;  %v2703_v25 = vmul.f32 %v12530_v39, %v12529_v35  ;;  %v2711_v16 = vmul.f32 %v12531_v13, %v12529_v35  ;;  %v12535_v6 = vld [vmem:[#allocation104_spill] sm:$0xff] }
 0x351   : > { %v3518_v33 = vadd.f32 %v3390_v15, %v3166_v11  ;;  %v3526_v34 = vadd.f32 %v3398_v22, %v3174_v31  ;;  %v1775_v12 = vadd.f32 %v1647_v32, %v1423_v43  ;;  %v3055_v52 = vmul.f32 %v12533_v19, %v12532_v57 }
 0x352   : > { %v1783_v55 = vadd.f32 %v1655_v49, %v1431_v28  ;;  %v3063_v0 = vmul.f32 %v12534_v47, %v12532_v57  ;;  %v3407_v40 = vmul.f32 %v10208_v41, %v12535_v6  ;;  %v548_v48 = vmul.f32 %v12517_v59, %v12487_v3 }
 0x353   : > { %v3646_v29 = vmax.f32 %v3518_v33, 0.0  ;;  %v3654_v38 = vmax.f32 %v3526_v34, 0.0  ;;  %v2127_v17 = vadd.f32 %v1999_v46, %v1775_v12  ;;  %v556_v15 = vmul.f32 %v12518_v18, %v12487_v3  ;;  %v12536_v34 = vld [vmem:[#allocation103_spill] sm:$0xff] }
 0x354   : > { %v2135_v10 = vadd.f32 %v2007_v51, %v1783_v55  ;;  %v718_v22 = vadd.f32 %v12489_v7, %v548_v48  ;;  %v942_v32 = vmul.f32 %v12519_v9, %v12488_v37  ;;  %v950_v49 = vmul.f32 %v12520_v44, %v12488_v37 }
 0x355   : > { %v3766_v11 = vpack.c.bf16 %v3654_v38, %v3646_v29  ;;  %v2479_v31 = vadd.f32 %v2351_v61, %v2127_v17  ;;  %v1294_v59 = vmul.f32 %v12521_v1, %v12490_v60  ;;  %v726_v46 = vadd.f32 %v12489_v7, %v556_v15 }
 0x356   : > { %v2487_v43 = vadd.f32 %v2359_v24, %v2135_v10  ;;  %v1070_v51 = vadd.f32 %v942_v32, %v718_v22  ;;  %v1302_v18 = vmul.f32 %v12522_v8, %v12490_v60  ;;  %v1646_v28 = vmul.f32 %v12523_v53, %v12491_v54 }
 0x357   : > { %4978 = vmatmul.mubr.bf16.gmra.mrb[4].mxu0 %v3766_v11  ;;  %v2831_v9 = vadd.f32 %v2703_v25, %v2479_v31  ;;  %v3415_v44 = vmul.f32 %v10208_v41, %v12536_v34  ;;  %v1654_v10 = vmul.f32 %v12524_v63, %v12491_v54  ;;  %v1078_v17 = vadd.f32 %v950_v49, %v726_v46 }
 0x358   : > { %v2839_v33 = vadd.f32 %v2711_v16, %v2487_v43  ;;  %v1422_v1 = vadd.f32 %v1294_v59, %v1070_v51  ;;  %v1998_v61 = vmul.f32 %v12525_v23, %v12492_v5  ;;  %v2006_v8 = vmul.f32 %v12526_v58, %v12492_v5  ;;  %v12540_v43 = vld [vmem:[#allocation45_spill] sm:$0xff]  ;;  %v12541_v51 = vld [vmem:[#allocation119_spill] sm:$0xff] }
 0x359   : > { %v3183_v24 = vadd.f32 %v3055_v52, %v2831_v9  ;;  %v2350_v53 = vmul.f32 %v12527_v36, %v12493_v42  ;;  %v2358_v25 = vmul.f32 %v12528_v20, %v12493_v42  ;;  %v1430_v16 = vadd.f32 %v1302_v18, %v1078_v17  ;;  %v10335_v20 = vld [vmem:[%s10708_s1 + $0x70] ss:$0 sm:$0xff] }
 0x35a   : > { %v3191_v12 = vadd.f32 %v3063_v0, %v2839_v33  ;;  %v1774_v55 = vadd.f32 %v1646_v28, %v1422_v1  ;;  %v2702_v63 = vmul.f32 %v12530_v39, %v12494_v21  ;;  %v2710_v48 = vmul.f32 %v12531_v13, %v12494_v21  ;;  %v12537_v13 = vld [vmem:[#allocation114_spill] sm:$0xff] }
 0x35b   : > { %v3535_v23 = vadd.f32 %v3407_v40, %v3183_v24  ;;  %v3054_v58 = vmul.f32 %v12533_v19, %v12495_v26  ;;  %v3062_v52 = vmul.f32 %v12534_v47, %v12495_v26  ;;  %v1782_v36 = vadd.f32 %v1654_v10, %v1430_v16  ;;  %v12538_v19 = vld [vmem:[#allocation113_spill] sm:$0xff]  ;;  %v12542_v28 = vld [vmem:[#allocation118_spill] sm:$0xff] }
 0x35c   : > { %v3543_v29 = vadd.f32 %v3415_v44, %v3191_v12  ;;  %v2126_v0 = vadd.f32 %v1998_v61, %v1774_v55  ;;  %v3406_v39 = vmul.f32 %v10335_v20, %v12535_v6  ;;  %v565_v40 = vmul.f32 %v12537_v13, %v12459_v30  ;;  %v12539_v47 = vld [vmem:[#allocation117_spill] sm:$0xff]  ;;  %v12544_v61 = vld [vmem:[#allocation124_spill] sm:$0xff] }
 0x35d   : > { %v3663_v38 = vmax.f32 %v3535_v23, 0.0  ;;  %v573_v22 = vmul.f32 %v12538_v19, %v12459_v30  ;;  %v959_v32 = vmul.f32 %v12539_v47, %v12462_v45  ;;  %v2134_v49 = vadd.f32 %v2006_v8, %v1782_v36  ;;  %v12543_v10 = vld [vmem:[#allocation125_spill] sm:$0xff]  ;;  %v12546_v55 = vld [vmem:[#allocation128_spill] sm:$0xff] }
 0x35e   : > { %v3671_v15 = vmax.f32 %v3543_v29, 0.0  ;;  %v2478_v11 = vadd.f32 %v2350_v53, %v2126_v0  ;;  %v735_v31 = vadd.f32 %v12465_v2, %v565_v40  ;;  %v967_v59 = vmul.f32 %v12540_v43, %v12462_v45  ;;  %v12545_v53 = vld [vmem:[#allocation129_spill] sm:$0xff]  ;;  %v12548_v29 = vld [vmem:[#allocation43_spill] sm:$0xff] }
 0x35f   : > { %v743_v6 = vadd.f32 %v12465_v2, %v573_v22  ;;  %v1311_v18 = vmul.f32 %v12541_v51, %v12466_v4  ;;  %v1319_v9 = vmul.f32 %v12542_v28, %v12466_v4  ;;  %v2486_v30 = vadd.f32 %v2358_v25, %v2134_v49  ;;  %v6658_v25 = vld [vmem:[%s10712_s5 + $0x40] sm:$0xff]   ;;  %v12550_v22 = vld [vmem:[#allocation98_spill] sm:$0xff] }
 0x360   : > { %v3775_v46 = vpack.c.bf16 %v3671_v15, %v3663_v38  ;;  %v2830_v33 = vadd.f32 %v2702_v63, %v2478_v11  ;;  %v1087_v44 = vadd.f32 %v959_v32, %v735_v31  ;;  %v1663_v17 = vmul.f32 %v12543_v10, %v12469_v62  ;;  %v12549_v38 = vld [vmem:[#allocation130_spill] sm:$0xff]  ;;  %5764 = vmatprep.subr.bf16.mxu1 %v6658_v25 }
 0x361   : > { %v3414_v1 = vmul.f32 %v10335_v20, %v12536_v34  ;;  %v1095_v45 = vadd.f32 %v967_v59, %v743_v6  ;;  %v1671_v2 = vmul.f32 %v12544_v61, %v12469_v62  ;;  %v2838_v8 = vadd.f32 %v2710_v48, %v2486_v30  ;;  %v12547_v34 = vld [vmem:[#allocation44_spill] sm:$0xff]  ;;  %v12552_v11 = vld [vmem:[#allocation86_spill] sm:$0xff] }
 0x362   : > { %4987 = vmatprep.mubr.bf16.mxu0 %v3775_v46  ;;  %v3182_v24 = vadd.f32 %v3054_v58, %v2830_v33  ;;  %v1439_v12 = vadd.f32 %v1311_v18, %v1087_v44  ;;  %v2015_v4 = vmul.f32 %v12545_v53, %v12472_v50  ;;  %v2023_v63 = vmul.f32 %v12546_v55, %v12472_v50  ;;  %v6659_v48 = vld [vmem:[%s10712_s5] sm:$0xff]   ;;  %v6660_v58 = vld [vmem:[%s10712_s5 + $0x48] sm:$0xff]  }
 0x363   : > { %v1447_v16 = vadd.f32 %v1319_v9, %v1095_v45  ;;  %v2367_v23 = vmul.f32 %v12547_v34, %v12475_v27  ;;  %v2375_v62 = vmul.f32 %v12548_v29, %v12475_v27  ;;  %v3190_v36 = vadd.f32 %v3062_v52, %v2838_v8  ;;  %v12551_v27 = vld [vmem:[#allocation87_spill] sm:$0xff]  ;;  %5765 = vmatpush3.bf16.msra.mxu1 %v6659_v48  ;;  %v6661_v52 = vld [vmem:[%s10712_s5 + $0x8] sm:$0xff]  }
 0x364   : > { %v3534_v0 = vadd.f32 %v3406_v39, %v3182_v24  ;;  %v1791_v40 = vadd.f32 %v1663_v17, %v1439_v12  ;;  %v2719_v50 = vmul.f32 %v12549_v38, %v12529_v35  ;;  %v2727_v32 = vmul.f32 %v12550_v22, %v12529_v35  ;;  %5766 = vmatprep.subr.bf16.mxu1 %v6660_v58  ;;  %v12553_v24 = vld [vmem:[#allocation108_spill] sm:$0xff] }
 0x365   : > { %v1799_v15 = vadd.f32 %v1671_v2, %v1447_v16  ;;  %v3071_v49 = vmul.f32 %v12551_v27, %v12532_v57  ;;  %v3079_v31 = vmul.f32 %v12552_v11, %v12532_v57  ;;  %v3542_v39 = vadd.f32 %v3414_v1, %v3190_v36 }
 0x366   : > { %v3662_v46 = vmax.f32 %v3534_v0, 0.0  ;;  %v2143_v6 = vadd.f32 %v2015_v4, %v1791_v40  ;;  %v564_v18 = vmul.f32 %v12537_v13, %v12487_v3  ;;  %v572_v57 = vmul.f32 %v12538_v19, %v12487_v3 }
 0x367   : > { %v10384_v59 = vpop.f32.mrb[36].mxu1  ;;  %v2151_v9 = vadd.f32 %v2023_v63, %v1799_v15  ;;  %v958_v30 = vmul.f32 %v12539_v47, %v12488_v37  ;;  %v966_v33 = vmul.f32 %v12540_v43, %v12488_v37  ;;  %v3670_v17 = vmax.f32 %v3542_v39, 0.0  ;;  %5767 = vmatpush3.bf16.msra.mxu1 %v6661_v52 }
 0x368   : > { %v10391_v35 = vpop.f32.mrb[37].mxu1  ;;  %v2495_v1 = vadd.f32 %v2367_v23, %v2143_v6  ;;  %v734_v45 = vadd.f32 %v12489_v7, %v564_v18  ;;  %v1310_v13 = vmul.f32 %v12541_v51, %v12490_v60  ;;  %v3423_v3 = vmul.f32 %v10208_v41, %v12553_v24  ;;  %v12554_v51 = vld [vmem:[#allocation107_spill] sm:$0xff] }
 0x369   : > { %v10399_v44 = vpop.f32.mrb[38].mxu1  ;;  %v2503_v8 = vadd.f32 %v2375_v62, %v2151_v9  ;;  %v742_v19 = vadd.f32 %v12489_v7, %v572_v57  ;;  %v1318_v37 = vmul.f32 %v12542_v28, %v12490_v60  ;;  %v3774_v47 = vpack.c.bf16 %v3670_v17, %v3662_v46  ;;  %v6668_v17 = vld [vmem:[%s10712_s5 + $0x68] sm:$0xff]  }
 0x36a   : > { %v10404_v2 = vpop.f32.mrb[39].mxu1  ;;  %v2847_v43 = vadd.f32 %v2719_v50, %v2495_v1  ;;  %v1086_v12 = vadd.f32 %v958_v30, %v734_v45  ;;  %v1662_v4 = vmul.f32 %v12543_v10, %v12491_v54  ;;  %v3431_v16 = vmul.f32 %v10208_v41, %v12554_v51  ;;  %v6666_v30 = vld [vmem:[%s10712_s5 + $0x60] sm:$0xff]  }
 0x36b   : > { %v2855_v25 = vadd.f32 %v2727_v32, %v2503_v8  ;;  %v1094_v63 = vadd.f32 %v966_v33, %v742_v19  ;;  %v1670_v23 = vmul.f32 %v12544_v61, %v12491_v54  ;;  %4988 = vmatmul.mubr.bf16.gmra.mrb[8].mxu0 %v3774_v47  ;;  %v2014_v60 = vmul.f32 %v12545_v53, %v12492_v5  ;;  %v6667_v33 = vld [vmem:[%s10712_s5 + $0x20] sm:$0xff]   ;;  %v6671_v19 = vld [vmem:[%s10712_s5 + $0x30] sm:$0xff]   ;;  %v6673_v47 = vld [vmem:[%s10712_s5 + $0x38] sm:$0xff]  }
 0x36c   : > { %v3199_v7 = vadd.f32 %v3071_v49, %v2847_v43  ;;  %v1438_v62 = vadd.f32 %v1310_v13, %v1086_v12  ;;  %v2022_v58 = vmul.f32 %v12546_v55, %v12492_v5  ;;  %v2366_v41 = vmul.f32 %v12547_v34, %v12493_v42  ;;  %v6669_v13 = vld [vmem:[%s10712_s5 + $0x28] sm:$0xff]  }
 0x36d   : > { %v3207_v28 = vadd.f32 %v3079_v31, %v2855_v25  ;;  %v1446_v48 = vadd.f32 %v1318_v37, %v1094_v63  ;;  %v2374_v54 = vmul.f32 %v12548_v29, %v12493_v42  ;;  %v2718_v53 = vmul.f32 %v12549_v38, %v12494_v21  ;;  %v6672_v37 = vld [vmem:[%s10712_s5 + $0x78] sm:$0xff]  }
 0x36e   : > { %v3551_v10 = vadd.f32 %v3423_v3, %v3199_v7  ;;  %v1790_v36 = vadd.f32 %v1662_v4, %v1438_v62  ;;  %v2726_v5 = vmul.f32 %v12550_v22, %v12494_v21  ;;  %v3070_v49 = vmul.f32 %v12551_v27, %v12495_v26  ;;  %v6662_v22 = vld [vmem:[%s10712_s5 + $0x50] sm:$0xff]   ;;  %v12557_v62 = vld [vmem:[#allocation37_spill] sm:$0xff] }
 0x36f   : > { %v3559_v0 = vadd.f32 %v3431_v16, %v3207_v28  ;;  %v1798_v40 = vadd.f32 %v1670_v23, %v1446_v48  ;;  %v3078_v52 = vmul.f32 %v12552_v11, %v12495_v26  ;;  %v3422_v29 = vmul.f32 %v10335_v20, %v12553_v24  ;;  %v6663_v26 = vld [vmem:[%s10712_s5 + $0x10] sm:$0xff]   ;;  %v6664_v11 = vld [vmem:[%s10712_s5 + $0x58] sm:$0xff]   ;;  %5768 = vmatprep.subr.bf16.mxu1 %v6662_v22  ;;  %v12558_v28 = vld [vmem:[#allocation93_spill] sm:$0xff] }
 0x370   : > { %v3679_v61 = vmax.f32 %v3551_v10, 0.0  ;;  %v2142_v50 = vadd.f32 %v2014_v60, %v1790_v36  ;;  %v3430_v39 = vmul.f32 %v10335_v20, %v12554_v51  ;;  %5769 = vmatpush3.bf16.msra.mxu1 %v6663_v26  ;;  %v6665_v20 = vld [vmem:[%s10712_s5 + $0x18] sm:$0xff]   ;;  %v6670_v3 = vld [vmem:[%s10712_s5 + $0x70] sm:$0xff]   ;;  %v3944_v51 = vld [vmem:[%s10711_s4] sm:$0x3] }
 0x371   : > { %v3687_v15 = vmax.f32 %v3559_v0, 0.0  ;;  %v2150_v32 = vadd.f32 %v2022_v58, %v1798_v40  ;;  %5770 = vmatprep.subr.bf16.mxu1 %v6664_v11  ;;  %v12555_v16 = vld [vmem:[#allocation10_spill] sm:$0xff]  ;;  %v12556_v23 = vld [vmem:[#allocation11_spill] sm:$0xff]  ;;  %v12559_v10 = vld [vmem:[#allocation20_spill] sm:$0xff] }
 0x372   : > { %v2494_v55 = vadd.f32 %v2366_v41, %v2142_v50  ;;  %v10493_v63 = vrot.slane %v3944_v51, %v12555_v16  ;;  %v10496_v7 = vrot.slane %v3944_v51, %v12556_v23  ;;  %v12560_v40 = vld [vmem:[#allocation19_spill] sm:$0xff] }
 0x373   : > { %v3783_v34 = vpack.c.bf16 %v3687_v15, %v3679_v61  ;;  %v2502_v31 = vadd.f32 %v2374_v54, %v2150_v32 }
 0x374   : > { %v2846_v42 = vadd.f32 %v2718_v53, %v2494_v55  ;;  %5771 = vmatpush3.bf16.msra.mxu1 %v6665_v20  ;;  %v4671_v60 = vadd.f32 %v12557_v62, %v10493_v63  ;;  %v4673_v48 = vadd.f32 %v12558_v28, %v10496_v7  ;;  %v4675_v36 = vadd.f32 %v12559_v10, %v10493_v63  ;;  %v12568_v10 = vld [vmem:[#allocation23_spill] sm:$0xff] }
 0x375   : > { %4997 = vmatprep.mubr.bf16.mxu0 %v3783_v34  ;;  %v2854_v38 = vadd.f32 %v2726_v5, %v2502_v31  ;;  %5772 = vmatprep.subr.bf16.mxu1 %v6666_v30  ;;  %v4677_v54 = vadd.f32 %v12560_v40, %v10496_v7  ;;  %v12562_v31 = vld [vmem:[#allocation143_spill] sm:$0xff]  ;;  %v12570_v40 = vld [vmem:[#allocation134_spill] sm:$0xff] }
 0x376   : > { %v3198_v46 = vadd.f32 %v3070_v49, %v2846_v42  ;;  %v12561_v49 = vld [vmem:[#allocation144_spill] sm:$0xff] }
 0x377   : > { %v3206_v21 = vadd.f32 %v3078_v52, %v2854_v38 }
 0x378   : > { %v3550_v27 = vadd.f32 %v3422_v29, %v3198_v46  ;;  %5773 = vmatpush3.bf16.msra.mxu1 %v6667_v33  ;;  %v12563_v29 = vld [vmem:[#allocation40_spill] sm:$0xff]  ;;  %v12564_v46 = vld [vmem:[#allocation39_spill] sm:$0xff] }
 0x379   : > { %v3558_v6 = vadd.f32 %v3430_v39, %v3206_v21  ;;  %5774 = vmatprep.subr.bf16.mxu1 %v6668_v17  ;;  %v4681_v38 = vadd.f32 %v12563_v29, %v10493_v63  ;;  %v4683_v21 = vadd.f32 %v12564_v46, %v10496_v7  ;;  %v12571_v46 = vld [vmem:[#allocation25_spill] sm:$0xff] }
 0x37a   : > { %v3678_v18 = vmax.f32 %v3550_v27, 0.0 }
 0x37b   : > { %v3686_v9 = vmax.f32 %v3558_v6, 0.0 }
 0x37c   : > { %5775 = vmatpush3.bf16.msra.mxu1 %v6669_v13 }
 0x37d   : > { %v3782_v57 = vpack.c.bf16 %v3686_v9, %v3678_v18  ;;  %5776 = vmatprep.subr.bf16.mxu1 %v6670_v3  ;;  %v12566_v18 = vld [vmem:[#allocation131_spill] sm:$0xff] }
 0x37e   : > { %v4687_v20 = vadd.f32 %v12566_v18, %v10496_v7 }
 0x37f   : > { %4998 = vmatmul.mubr.bf16.gmra.mrb[12].mxu0 %v3782_v57 }
 0x380   : > { %5777 = vmatpush3.bf16.msra.mxu1 %v6671_v19 }
 0x381   : > { %5778 = vmatprep.subr.bf16.mxu1 %v6672_v37 }
 0x384   : > { %5779 = vmatpush3.bf16.msra.mxu1 %v6673_v47 }
 0x38f   : > { %v10458_v1 = vpop.f32.mrb[40].mxu1 }
 0x390   : > { %v10460_v45 = vpop.f32.mrb[41].mxu1 }
 0x391   : > { %v10465_v8 = vpop.f32.mrb[42].mxu1 }
 0x392   : > { %v10467_v24 = vpop.f32.mrb[43].mxu1 }
 0x3b6   : > { %v10481_v43 = vpop.f32.mrb[44].mxu1 }
 0x3b7   : > { %v10483_v12 = vpop.f32.mrb[45].mxu1 }
 0x3b8   : > { %v10485_v4 = vpop.f32.mrb[46].mxu1 }
 0x3b9   : > { %v10487_v25 = vpop.f32.mrb[47].mxu1 }
 0x3c9   : > { %v4896_v58 = vpop.f32.mrb[16].mxu0 }
 0x3ca   : > { %v5893_v41 = vadd.f32 %v4896_v58, %v4671_v60  ;;  %v4898_v0 = vpop.f32.mrb[17].mxu0 }
 0x3cb   : > { %v5896_v61 = vadd.f32 %v4898_v0, %v4673_v48  ;;  %v4900_v50 = vpop.f32.mrb[18].mxu0 }
 0x3cc   : > { %v5894_v53 = vadd.f32 %v5893_v41, %v10212_v14  ;;  %v5899_v15 = vadd.f32 %v4900_v50, %v4675_v36  ;;  %v4902_v32 = vpop.f32.mrb[19].mxu0  ;;  %v12565_v14 = vld [vmem:[#allocation22_spill] sm:$0xff]  ;;  %v4693_v36 = vadd.f32 %v12568_v10, %v10496_v7  ;;  %v12569_v41 = vld [vmem:[#allocation135_spill] sm:$0xff] }
 0x3cd   : > { %v5897_v5 = vadd.f32 %v5896_v61, %v10216_v56  ;;  %v5902_v55 = vadd.f32 %v4902_v32, %v4677_v54  ;;  %v4685_v26 = vadd.f32 %v12565_v14, %v10493_v63  ;;  %v4697_v54 = vadd.f32 %v12570_v40, %v10496_v7 }
 0x3ce   : > { %v5900_v34 = vadd.f32 %v5899_v15, %v12561_v49  ;;  %v5064_v11 = vmax.f32 %v5894_v53, 0.0 }
 0x3cf   : > { %v5903_v52 = vadd.f32 %v5902_v55, %v12562_v31  ;;  %v5065_v22 = vmax.f32 %v5897_v5, 0.0 }
 0x3d0   : > { %v5066_v39 = vmax.f32 %v5900_v34, 0.0 }
 0x3d1   : > { %v5067_v42 = vmax.f32 %v5903_v52, 0.0 }
 0x3d2   : > { %v10521_v3 = vpack.c.bf16 %v5066_v39, %v5064_v11 }
 0x3d3   : > { %v10518_v30 = vpack.c.bf16 %v5067_v42, %v5065_v22 }
 0x3dc   : > { %v4906_v27 = vpop.f32.mrb[20].mxu0 }
 0x3dd   : > { %v5905_v56 = vadd.f32 %v4906_v27, %v4681_v38  ;;  %v4908_v6 = vpop.f32.mrb[21].mxu0  ;;  %v12573_v27 = vld [vmem:[#allocation141_spill] sm:$0xff] }
 0x3de   : > { %v5908_v9 = vadd.f32 %v4908_v6, %v4683_v21  ;;  %v4910_v57 = vpop.f32.mrb[22].mxu0  ;;  %v12572_v21 = vld [vmem:[#allocation142_spill] sm:$0xff] }
 0x3df   : > { %v5906_v33 = vadd.f32 %v5905_v56, %v10384_v59  ;;  %v5911_v17 = vadd.f32 %v4910_v57, %v4685_v26  ;;  %v4912_v13 = vpop.f32.mrb[23].mxu0  ;;  %v12567_v59 = vld [vmem:[#allocation9_spill] sm:$0xff]  ;;  %v4703_v22 = vadd.f32 %v12572_v21, %v10496_v7  ;;  %v12574_v26 = vld [vmem:[#allocation26_spill] sm:$0xff] }
 0x3e0   : > { %v5909_v19 = vadd.f32 %v5908_v9, %v10391_v35  ;;  %v5914_v37 = vadd.f32 %v4912_v13, %v4687_v20  ;;  %v4691_v58 = vadd.f32 %v12567_v59, %v10493_v63  ;;  %v4707_v11 = vadd.f32 %v12574_v26, %v10496_v7 }
 0x3e1   : > { %v5912_v47 = vadd.f32 %v5911_v17, %v10399_v44  ;;  %v5068_v60 = vmax.f32 %v5906_v33, 0.0  ;;  %v4695_v44 = vadd.f32 %v12569_v41, %v10493_v63 }
 0x3e2   : > { %v5915_v51 = vadd.f32 %v5914_v37, %v10404_v2  ;;  %v5069_v23 = vmax.f32 %v5909_v19, 0.0 }
 0x3e3   : > { %v5070_v16 = vmax.f32 %v5912_v47, 0.0 }
 0x3e4   : > { %v5071_v62 = vmax.f32 %v5915_v51, 0.0 }
 0x3e5   : > { %v10528_v48 = vpack.c.bf16 %v5070_v16, %v5068_v60  ;;  %v12576_v60 = vld [vmem:[#allocation31_spill] sm:$0xff] }
 0x3e6   : > { %v10526_v28 = vpack.c.bf16 %v5071_v62, %v5069_v23  ;;  %v12575_v62 = vld [vmem:[#allocation38_spill] sm:$0xff]  ;;  %v4633_v59 = vadd.f32 %v12576_v60, %v10496_v7 }
 0x3f0   : > { %v4916_v35 = vpop.f32.mrb[24].mxu0 }
 0x3f1   : > { %v5917_v0 = vadd.f32 %v4916_v35, %v4691_v58  ;;  %v4918_v2 = vpop.f32.mrb[25].mxu0  ;;  %v12577_v58 = vld [vmem:[#allocation52_spill] sm:$0xff] }
 0x3f2   : > { %v5920_v61 = vadd.f32 %v4918_v2, %v4693_v36  ;;  %v4920_v50 = vpop.f32.mrb[26].mxu0  ;;  %v12578_v36 = vld [vmem:[#allocation53_spill] sm:$0xff] }
 0x3f3   : > { %v5918_v53 = vadd.f32 %v5917_v0, %v10458_v1  ;;  %v5923_v15 = vadd.f32 %v4920_v50, %v4695_v44  ;;  %v4922_v32 = vpop.f32.mrb[27].mxu0  ;;  %v4701_v1 = vadd.f32 %v12571_v46, %v10493_v63  ;;  %v4637_v35 = vadd.f32 %v12578_v36, %v10496_v7 }
 0x3f4   : > { %v5921_v5 = vadd.f32 %v5920_v61, %v10460_v45  ;;  %v5926_v55 = vadd.f32 %v4922_v32, %v4697_v54 }
 0x3f5   : > { %v5924_v49 = vadd.f32 %v5923_v15, %v10465_v8  ;;  %v5072_v31 = vmax.f32 %v5918_v53, 0.0  ;;  %v4705_v8 = vadd.f32 %v12573_v27, %v10493_v63 }
 0x3f6   : > { %v5927_v34 = vadd.f32 %v5926_v55, %v10467_v24  ;;  %v5073_v42 = vmax.f32 %v5921_v5, 0.0  ;;  %v12579_v5 = vld [vmem:[#allocation190_spill] sm:$0xff] }
 0x3f7   : > { %v5074_v52 = vmax.f32 %v5924_v49, 0.0  ;;  %v4641_v55 = vadd.f32 %v12579_v5, %v10493_v63  ;;  %v12580_v49 = vld [vmem:[#allocation191_spill] sm:$0xff] }
 0x3f8   : > { %v5075_v29 = vmax.f32 %v5927_v34, 0.0  ;;  %v4643_v34 = vadd.f32 %v12580_v49, %v10496_v7 }
 0x3f9   : > { %v10542_v38 = vpack.c.bf16 %v5074_v52, %v5072_v31  ;;  %v12581_v52 = vld [vmem:[#allocation192_spill] sm:$0xff] }
 0x3fa   : > { %v10544_v39 = vpack.c.bf16 %v5075_v29, %v5073_v42  ;;  %v4645_v42 = vadd.f32 %v12581_v52, %v10493_v63 }
 0x404   : > { %v4926_v45 = vpop.f32.mrb[28].mxu0 }
 0x405   : > { %v5929_v14 = vadd.f32 %v4926_v45, %v4701_v1  ;;  %v4928_v24 = vpop.f32.mrb[29].mxu0  ;;  %v12582_v1 = vld [vmem:[#allocation50_spill] sm:$0xff] }
 0x406   : > { %v5932_v56 = vadd.f32 %v4928_v24, %v4703_v22  ;;  %v4930_v6 = vpop.f32.mrb[30].mxu0  ;;  %v4647_v21 = vadd.f32 %v12582_v1, %v10496_v7 }
 0x407   : > { %v5930_v18 = vadd.f32 %v5929_v14, %v10481_v43  ;;  %v5935_v20 = vadd.f32 %v4930_v6, %v4705_v8  ;;  %v4932_v9 = vpop.f32.mrb[31].mxu0  ;;  %v4631_v43 = vadd.f32 %v12575_v62, %v10493_v63 }
 0x408   : > { %v5933_v57 = vadd.f32 %v5932_v56, %v10483_v12  ;;  %v5938_v33 = vadd.f32 %v4932_v9, %v4707_v11 }
 0x409   : > { %v5936_v17 = vadd.f32 %v5935_v20, %v10485_v4  ;;  %v5076_v19 = vmax.f32 %v5930_v18, 0.0  ;;  %v4635_v4 = vadd.f32 %v12577_v58, %v10493_v63  ;;  %v12583_v20 = vld [vmem:[#allocation51_spill] sm:$0xff] }
 0x40a   : > { %v5939_v13 = vadd.f32 %v5938_v33, %v10487_v25  ;;  %v5077_v47 = vmax.f32 %v5933_v57, 0.0  ;;  %v4651_v9 = vadd.f32 %v12583_v20, %v10493_v63  ;;  %v12584_v57 = vld [vmem:[#allocation187_spill] sm:$0xff] }
 0x40b   : > { %v5078_v37 = vmax.f32 %v5936_v17, 0.0  ;;  %v4653_v33 = vadd.f32 %v12584_v57, %v10496_v7 }
 0x40c   : > { %v5079_v51 = vmax.f32 %v5939_v13, 0.0  ;;  %v12585_v13 = vld [vmem:[#allocation193_spill] sm:$0xff] }
 0x40d   : > { %v10558_v16 = vpack.c.bf16 %v5078_v37, %v5076_v19  ;;  %v4655_v19 = vadd.f32 %v12585_v13, %v10493_v63 }
 0x40e   : > { %v10560_v23 = vpack.c.bf16 %v5079_v51, %v5077_v47  ;;  %v12586_v51 = vld [vmem:[#allocation194_spill] sm:$0xff] }
 0x40f   : > { %v4657_v62 = vadd.f32 %v12586_v51, %v10496_v7 }
 0x418   : > { %v4969_v12 = vpop.f32.mrb[0].mxu0 }
 0x419   : > { %v5861_v10 = vadd.f32 %v4969_v12, %v4631_v43  ;;  %v4971_v25 = vpop.f32.mrb[1].mxu0 }
 0x41a   : > { %v5863_v41 = vadd.f32 %v4971_v25, %v4633_v59  ;;  %v4973_v44 = vpop.f32.mrb[2].mxu0 }
 0x41b   : > { %v5865_v0 = vadd.f32 %v4973_v44, %v4635_v4  ;;  %v4975_v2 = vpop.f32.mrb[3].mxu0  ;;  %v5048_v54 = vmax.f32 %v5861_v10, 0.0  ;;  %v12587_v44 = vld [vmem:[#allocation18_spill] sm:$0xff] }
 0x41c   : > { %v5867_v40 = vadd.f32 %v4975_v2, %v4637_v35  ;;  %v5049_v50 = vmax.f32 %v5863_v41, 0.0  ;;  %v12588_v2 = vld [vmem:[#allocation127_spill] sm:$0xff] }
 0x41d   : > { %v5050_v61 = vmax.f32 %v5865_v0, 0.0  ;;  %v4661_v0 = vadd.f32 %v12587_v44, %v10493_v63 }
 0x41e   : > { %v5051_v53 = vmax.f32 %v5867_v40, 0.0  ;;  %v4663_v40 = vadd.f32 %v12588_v2, %v10496_v7 }
 0x41f   : > { %v5080_v15 = vpack.c.bf16 %v5050_v61, %v5048_v54  ;;  %v12589_v61 = vld [vmem:[#allocation126_spill] sm:$0xff] }
 0x420   : > { %v5081_v32 = vpack.c.bf16 %v5051_v53, %v5049_v50  ;;  %v4665_v50 = vadd.f32 %v12589_v61, %v10493_v63 }
 0x422   : > { %5263 = vmatprep.mubr.bf16.mxu1 %v5081_v32  ;;  %v12590_v32 = vld [vmem:[#allocation21_spill] sm:$0xff] }
 0x423   : > { %5264 = vmatmul.mubr.bf16.vlgmr.msra.gmra.mrb[48].mxu1 %v5080_v15  ;;  %v4667_v5 = vadd.f32 %v12590_v32, %v10496_v7  ;;  %v10605_v7 = vld [vmem:[%s10713_s6] ss:$0 sm:$0xff] }
 0x42a   : > { %v4979_v31 = vpop.f32.mrb[4].mxu0 }
 0x42b   : > { %v5869_v29 = vadd.f32 %v4979_v31, %v4641_v55  ;;  %v4981_v46 = vpop.f32.mrb[5].mxu0 }
 0x42c   : > { %v5871_v22 = vadd.f32 %v4981_v46, %v4643_v34  ;;  %v4983_v45 = vpop.f32.mrb[6].mxu0 }
 0x42d   : > { %v5873_v27 = vadd.f32 %v4983_v45, %v4645_v42  ;;  %v4985_v8 = vpop.f32.mrb[7].mxu0  ;;  %v5052_v24 = vmax.f32 %v5869_v29, 0.0 }
 0x42e   : > { %v5875_v14 = vadd.f32 %v4985_v8, %v4647_v21  ;;  %v5053_v11 = vmax.f32 %v5871_v22, 0.0 }
 0x42f   : > { %v5054_v26 = vmax.f32 %v5873_v27, 0.0 }
 0x430   : > { %v5055_v56 = vmax.f32 %v5875_v14, 0.0 }
 0x431   : > { %v5082_v6 = vpack.c.bf16 %v5054_v26, %v5052_v24 }
 0x432   : > { %v5083_v18 = vpack.c.bf16 %v5055_v56, %v5053_v11 }
 0x434   : > { %5271 = vmatprep.mubr.bf16.mxu1 %v5083_v18 }
 0x435   : > { %5272 = vmatmul.mubr.bf16.gmra.mrb[52].mxu1 %v5082_v6 }
 0x43e   : > { %v4989_v17 = vpop.f32.mrb[8].mxu0 }
 0x43f   : > { %v5877_v37 = vadd.f32 %v4989_v17, %v4651_v9  ;;  %v4991_v47 = vpop.f32.mrb[9].mxu0 }
 0x440   : > { %v5879_v43 = vadd.f32 %v4991_v47, %v4653_v33  ;;  %v4993_v60 = vpop.f32.mrb[10].mxu0 }
 0x441   : > { %v5881_v59 = vadd.f32 %v4993_v60, %v4655_v19  ;;  %v4995_v12 = vpop.f32.mrb[11].mxu0  ;;  %v5056_v4 = vmax.f32 %v5877_v37, 0.0 }
 0x442   : > { %v5883_v58 = vadd.f32 %v4995_v12, %v4657_v62  ;;  %v5057_v25 = vmax.f32 %v5879_v43, 0.0 }
 0x443   : > { %v5058_v10 = vmax.f32 %v5881_v59, 0.0 }
 0x444   : > { %v5059_v36 = vmax.f32 %v5883_v58, 0.0 }
 0x445   : > { %v5084_v35 = vpack.c.bf16 %v5058_v10, %v5056_v4 }
 0x446   : > { %v5085_v41 = vpack.c.bf16 %v5059_v36, %v5057_v25 }
 0x448   : > { %5279 = vmatprep.mubr.bf16.mxu1 %v5085_v41 }
 0x449   : > { %5280 = vmatmul.mubr.bf16.gmra.mrb[56].mxu1 %v5084_v35 }
 0x452   : > { %v4999_v54 = vpop.f32.mrb[12].mxu0 }
 0x453   : > { %v5885_v53 = vadd.f32 %v4999_v54, %v4661_v0  ;;  %v5001_v15 = vpop.f32.mrb[13].mxu0 }
 0x454   : > { %v5887_v55 = vadd.f32 %v5001_v15, %v4663_v40  ;;  %v5003_v49 = vpop.f32.mrb[14].mxu0 }
 0x455   : > { %v5889_v34 = vadd.f32 %v5003_v49, %v4665_v50  ;;  %v5005_v31 = vpop.f32.mrb[15].mxu0  ;;  %v5060_v42 = vmax.f32 %v5885_v53, 0.0 }
 0x456   : > { %v5891_v52 = vadd.f32 %v5005_v31, %v4667_v5  ;;  %v5061_v46 = vmax.f32 %v5887_v55, 0.0 }
 0x457   : > { %v5062_v29 = vmax.f32 %v5889_v34, 0.0 }
 0x458   : > { %v5063_v1 = vmax.f32 %v5891_v52, 0.0 }
 0x459   : > { %v5086_v21 = vpack.c.bf16 %v5062_v29, %v5060_v42 }
 0x45a   : > { %v5087_v22 = vpack.c.bf16 %v5063_v1, %v5061_v46 }
 0x45c   : > { %5287 = vmatprep.mubr.bf16.mxu1 %v5087_v22 }
 0x45d   : > { %5288 = vmatmul.mubr.bf16.gmra.mrb[60].mxu1 %v5086_v21 }
 0x45e   : > { %5295 = vmatprep.mubr.bf16.mxu1 %v10518_v30 }
 0x465   : > { %5296 = vmatmul.mubr.bf16.gmra.mrb[64].mxu1 %v10521_v3 }
 0x466   : > { %5303 = vmatprep.mubr.bf16.mxu1 %v10526_v28 }
 0x46d   : > { %5304 = vmatmul.mubr.bf16.gmra.mrb[68].mxu1 %v10528_v48 }
 0x46e   : > { %5311 = vmatprep.mubr.bf16.mxu1 %v10544_v39 }
 0x475   : > { %5312 = vmatmul.mubr.bf16.gmra.mrb[72].mxu1 %v10542_v38  ;;  %v10611_v38 = vld [vmem:[%s10714_s7] ss:$0 sm:$0xff] }
 0x476   : > { %5319 = vmatprep.mubr.bf16.mxu1 %v10560_v23 }
 0x47d   : > { %5320 = vmatmul.mubr.bf16.gmra.mrb[76].mxu1 %v10558_v16 }
 0x4f6   : > { %v5780_v63 = vpop.f32.mrb[48].mxu1 }
 0x4f7   : > { %v5781_v30 = vpop.f32.mrb[49].mxu1 }
 0x4f8   : > { %v5782_v3 = vadd.f32 %v5781_v30, %v5780_v63  ;;  %v5783_v45 = vpop.f32.mrb[50].mxu1 }
 0x4f9   : > { %v5784_v28 = vpop.f32.mrb[51].mxu1 }
 0x4fa   : > { %v5266_v48 = vadd.f32 %v5782_v3, %v10605_v7  ;;  %v5785_v27 = vadd.f32 %v5784_v28, %v5783_v45 }
 0x4fc   : > { %v5328_v39 = vmax.f32 %v5266_v48, 0.0  ;;  %v5269_v16 = vadd.f32 %v5785_v27, %v10605_v7 }
 0x4fe   : > { %v5329_v23 = vmax.f32 %v5269_v16, 0.0  ;;  %v5351_v8 = vmul.f32 %v10611_v38, %v5328_v39 }
 0x500   : > { %v5368_v14 = vsel %vm5367_vm0, %v5351_v8, 0.0  ;;  %v5352_v24 = vmul.f32 %v10611_v38, %v5329_v23 }
 0x501   : > { %5369 = vadd.xlane.f32.xlu1 %v5368_v14 }
 0x502   : > { %v5371_v26 = vsel %vm5367_vm0, %v5352_v24, 0.0 }
 0x503   : > { %5372 = vadd.xlane.f32.xlu0 %v5371_v26 }
 0x508   : > { %v5786_v11 = vpop.f32.mrb[52].mxu1 }
 0x509   : > { %v5787_v56 = vpop.f32.mrb[53].mxu1 }
 0x50a   : > { %v5788_v6 = vadd.f32 %v5787_v56, %v5786_v11  ;;  %v5789_v18 = vpop.f32.mrb[54].mxu1 }
 0x50b   : > { %v5790_v20 = vpop.f32.mrb[55].mxu1 }
 0x50c   : > { %v5274_v9 = vadd.f32 %v5788_v6, %v10605_v7  ;;  %v5791_v57 = vadd.f32 %v5790_v20, %v5789_v18 }
 0x50e   : > { %v5330_v33 = vmax.f32 %v5274_v9, 0.0  ;;  %v5277_v17 = vadd.f32 %v5791_v57, %v10605_v7 }
 0x510   : > { %v5331_v13 = vmax.f32 %v5277_v17, 0.0  ;;  %v5353_v19 = vmul.f32 %v10611_v38, %v5330_v33 }
 0x512   : > { %v5374_v37 = vsel %vm5367_vm0, %v5353_v19, 0.0  ;;  %v5354_v47 = vmul.f32 %v10611_v38, %v5331_v13 }
 0x513   : > { %5375 = vadd.xlane.f32.xlu1 %v5374_v37 }
 0x514   : > { %v5377_v51 = vsel %vm5367_vm0, %v5354_v47, 0.0 }
 0x515   : > { %5378 = vadd.xlane.f32.xlu0 %v5377_v51 }
 0x51c   : > { %v5792_v62 = vpop.f32.mrb[56].mxu1 }
 0x51d   : > { %v5793_v43 = vpop.f32.mrb[57].mxu1 }
 0x51e   : > { %v5794_v60 = vadd.f32 %v5793_v43, %v5792_v62  ;;  %v5795_v59 = vpop.f32.mrb[58].mxu1 }
 0x51f   : > { %v5796_v12 = vpop.f32.mrb[59].mxu1 }
 0x520   : > { %v5282_v58 = vadd.f32 %v5794_v60, %v10605_v7  ;;  %v5797_v4 = vadd.f32 %v5796_v12, %v5795_v59 }
 0x522   : > { %v5332_v10 = vmax.f32 %v5282_v58, 0.0  ;;  %v5285_v25 = vadd.f32 %v5797_v4, %v10605_v7 }
 0x524   : > { %v5333_v36 = vmax.f32 %v5285_v25, 0.0  ;;  %v5355_v35 = vmul.f32 %v10611_v38, %v5332_v10 }
 0x526   : > { %v5380_v41 = vsel %vm5367_vm0, %v5355_v35, 0.0  ;;  %v5356_v44 = vmul.f32 %v10611_v38, %v5333_v36 }
 0x527   : > { %5381 = vadd.xlane.f32.xlu1 %v5380_v41 }
 0x528   : > { %v5383_v0 = vsel %vm5367_vm0, %v5356_v44, 0.0 }
 0x529   : > { %5384 = vadd.xlane.f32.xlu0 %v5383_v0 }
 0x530   : > { %v5798_v2 = vpop.f32.mrb[60].mxu1 }
 0x531   : > { %v5799_v40 = vpop.f32.mrb[61].mxu1 }
 0x532   : > { %v5800_v54 = vadd.f32 %v5799_v40, %v5798_v2  ;;  %v5801_v61 = vpop.f32.mrb[62].mxu1 }
 0x533   : > { %v5802_v50 = vpop.f32.mrb[63].mxu1 }
 0x534   : > { %v5290_v53 = vadd.f32 %v5800_v54, %v10605_v7  ;;  %v5803_v15 = vadd.f32 %v5802_v50, %v5801_v61 }
 0x536   : > { %v5334_v32 = vmax.f32 %v5290_v53, 0.0  ;;  %v5293_v5 = vadd.f32 %v5803_v15, %v10605_v7 }
 0x538   : > { %v5335_v55 = vmax.f32 %v5293_v5, 0.0  ;;  %v5804_v49 = vpop.f32.mrb[64].mxu1  ;;  %v5357_v34 = vmul.f32 %v10611_v38, %v5334_v32  ;;  %v5720_v5 = vld [vmem:[#allocation2] ss:$0 sm:$0xff] }
 0x539   : > { %v5805_v31 = vpop.f32.mrb[65].mxu1 }
 0x53a   : > { %v5806_v52 = vadd.f32 %v5805_v31, %v5804_v49  ;;  %v5807_v42 = vpop.f32.mrb[66].mxu1  ;;  %v5386_v29 = vsel %vm5367_vm0, %v5357_v34, 0.0  ;;  %v5358_v46 = vmul.f32 %v10611_v38, %v5335_v55 }
 0x53b   : > { %v5808_v1 = vpop.f32.mrb[67].mxu1  ;;  %5387 = vadd.xlane.f32.xlu1 %v5386_v29 }
 0x53c   : > { %v5298_v21 = vadd.f32 %v5806_v52, %v10605_v7  ;;  %v5809_v22 = vadd.f32 %v5808_v1, %v5807_v42  ;;  %v5389_v63 = vsel %vm5367_vm0, %v5358_v46, 0.0 }
 0x53d   : > { %5390 = vadd.xlane.f32.xlu0 %v5389_v63 }
 0x53e   : > { %v5336_v30 = vmax.f32 %v5298_v21, 0.0  ;;  %v5301_v3 = vadd.f32 %v5809_v22, %v10605_v7 }
 0x540   : > { %v5337_v45 = vmax.f32 %v5301_v3, 0.0  ;;  %v5810_v28 = vpop.f32.mrb[68].mxu1  ;;  %v5359_v48 = vmul.f32 %v10611_v38, %v5336_v30 }
 0x541   : > { %v5811_v27 = vpop.f32.mrb[69].mxu1 }
 0x542   : > { %v5812_v39 = vadd.f32 %v5811_v27, %v5810_v28  ;;  %v5813_v16 = vpop.f32.mrb[70].mxu1  ;;  %v5392_v23 = vsel %vm5367_vm0, %v5359_v48, 0.0  ;;  %v5360_v8 = vmul.f32 %v10611_v38, %v5337_v45 }
 0x543   : > { %v5814_v14 = vpop.f32.mrb[71].mxu1  ;;  %5393 = vadd.xlane.f32.xlu1 %v5392_v23 }
 0x544   : > { %v5306_v24 = vadd.f32 %v5812_v39, %v10605_v7  ;;  %v5815_v26 = vadd.f32 %v5814_v14, %v5813_v16  ;;  %v5395_v11 = vsel %vm5367_vm0, %v5360_v8, 0.0 }
 0x545   : > { %5396 = vadd.xlane.f32.xlu0 %v5395_v11 }
 0x546   : > { %v5338_v56 = vmax.f32 %v5306_v24, 0.0  ;;  %v5309_v6 = vadd.f32 %v5815_v26, %v10605_v7 }
 0x548   : > { %v5339_v18 = vmax.f32 %v5309_v6, 0.0  ;;  %v5816_v20 = vpop.f32.mrb[72].mxu1  ;;  %v5361_v9 = vmul.f32 %v10611_v38, %v5338_v56 }
 0x549   : > { %v5817_v57 = vpop.f32.mrb[73].mxu1 }
 0x54a   : > { %v5818_v33 = vadd.f32 %v5817_v57, %v5816_v20  ;;  %v5819_v17 = vpop.f32.mrb[74].mxu1  ;;  %v5398_v13 = vsel %vm5367_vm0, %v5361_v9, 0.0  ;;  %v5362_v19 = vmul.f32 %v10611_v38, %v5339_v18 }
 0x54b   : > { %v5820_v37 = vpop.f32.mrb[75].mxu1  ;;  %5399 = vadd.xlane.f32.xlu1 %v5398_v13 }
 0x54c   : > { %v5314_v47 = vadd.f32 %v5818_v33, %v10605_v7  ;;  %v5821_v51 = vadd.f32 %v5820_v37, %v5819_v17  ;;  %v5401_v62 = vsel %vm5367_vm0, %v5362_v19, 0.0 }
 0x54d   : > { %5402 = vadd.xlane.f32.xlu0 %v5401_v62 }
 0x54e   : > { %v5340_v43 = vmax.f32 %v5314_v47, 0.0  ;;  %v5317_v60 = vadd.f32 %v5821_v51, %v10605_v7 }
 0x550   : > { %v5341_v59 = vmax.f32 %v5317_v60, 0.0  ;;  %v5822_v12 = vpop.f32.mrb[76].mxu1  ;;  %v5363_v58 = vmul.f32 %v10611_v38, %v5340_v43 }
 0x551   : > { %v5823_v4 = vpop.f32.mrb[77].mxu1 }
 0x552   : > { %v5824_v10 = vadd.f32 %v5823_v4, %v5822_v12  ;;  %v5825_v25 = vpop.f32.mrb[78].mxu1  ;;  %v5404_v36 = vsel %vm5367_vm0, %v5363_v58, 0.0  ;;  %v5364_v35 = vmul.f32 %v10611_v38, %v5341_v59 }
 0x553   : > { %v5826_v41 = vpop.f32.mrb[79].mxu1  ;;  %5405 = vadd.xlane.f32.xlu1 %v5404_v36 }
 0x554   : > { %v5322_v44 = vadd.f32 %v5824_v10, %v10605_v7  ;;  %v5827_v0 = vadd.f32 %v5826_v41, %v5825_v25  ;;  %v5407_v2 = vsel %vm5367_vm0, %v5364_v35, 0.0 }
 0x555   : > { %5408 = vadd.xlane.f32.xlu0 %v5407_v2 }
 0x556   : > { %v5342_v40 = vmax.f32 %v5322_v44, 0.0  ;;  %v5325_v54 = vadd.f32 %v5827_v0, %v10605_v7 }
 0x558   : > { %v5343_v61 = vmax.f32 %v5325_v54, 0.0  ;;  %v5365_v50 = vmul.f32 %v10611_v38, %v5342_v40 }
 0x55a   : > { %v5410_v53 = vsel %vm5367_vm0, %v5365_v50, 0.0  ;;  %v5366_v15 = vmul.f32 %v10611_v38, %v5343_v61 }
 0x55b   : > { %5411 = vadd.xlane.f32.xlu1 %v5410_v53 }
 0x55c   : > { %v5413_v32 = vsel %vm5367_vm0, %v5366_v15, 0.0 }
 0x55d   : > { %5414 = vadd.xlane.f32.xlu0 %v5413_v32 }
 0x58e   : > { %v5370_v55 = vpop.xlane.xlu1 %5369 }
 0x58f   : > { %v5423_v49 = vadd.f32 %v5720_v5, %v5370_v55 }
 0x590   : > { %v5373_v34 = vpop.xlane.xlu0 %5372 }
 0x591   : > { %5439 = vxpose.xlu1.b32.start [1/16] (narrow) %v5423_v49, 8  ;;  %v5424_v31 = vadd.f32 %v5720_v5, %v5373_v34 }
 0x595   : > { %5440 = vxpose.xlu1.b32.cont [2/16] (narrow) %v5424_v31, 8 }
 0x5a0   : > { %v5376_v52 = vpop.xlane.xlu1 %5375 }
 0x5a1   : > { %v5425_v7 = vadd.f32 %v5720_v5, %v5376_v52 }
 0x5a2   : > { %v5379_v42 = vpop.xlane.xlu0 %5378 }
 0x5a3   : > { %5441 = vxpose.xlu1.b32.cont [3/16] (narrow) %v5425_v7, 8  ;;  %v5426_v29 = vadd.f32 %v5720_v5, %v5379_v42 }
 0x5a7   : > { %5442 = vxpose.xlu1.b32.cont [4/16] (narrow) %v5426_v29, 8 }
 0x5b4   : > { %v5382_v46 = vpop.xlane.xlu1 %5381 }
 0x5b5   : > { %v5427_v1 = vadd.f32 %v5720_v5, %v5382_v46 }
 0x5b6   : > { %v5385_v38 = vpop.xlane.xlu0 %5384 }
 0x5b7   : > { %5443 = vxpose.xlu1.b32.cont [5/16] (narrow) %v5427_v1, 8  ;;  %v5428_v21 = vadd.f32 %v5720_v5, %v5385_v38 }
 0x5bb   : > { %5444 = vxpose.xlu1.b32.cont [6/16] (narrow) %v5428_v21, 8 }
 0x5c8   : > { %v5388_v22 = vpop.xlane.xlu1 %5387 }
 0x5c9   : > { %v5429_v63 = vadd.f32 %v5720_v5, %v5388_v22 }
 0x5ca   : > { %v5391_v30 = vpop.xlane.xlu0 %5390 }
 0x5cb   : > { %5445 = vxpose.xlu1.b32.cont [7/16] (narrow) %v5429_v63, 8  ;;  %v5430_v3 = vadd.f32 %v5720_v5, %v5391_v30 }
 0x5cf   : > { %5446 = vxpose.xlu1.b32.cont [8/16] (narrow) %v5430_v3, 8 }
 0x5d0   : > { %v5394_v45 = vpop.xlane.xlu1 %5393 }
 0x5d1   : > { %v5431_v28 = vadd.f32 %v5720_v5, %v5394_v45 }
 0x5d2   : > { %v5397_v48 = vpop.xlane.xlu0 %5396 }
 0x5d3   : > { %5447 = vxpose.xlu1.b32.cont [9/16] (narrow) %v5431_v28, 8  ;;  %v5432_v27 = vadd.f32 %v5720_v5, %v5397_v48 }
 0x5d7   : > { %5448 = vxpose.xlu1.b32.cont [10/16] (narrow) %v5432_v27, 8 }
 0x5d8   : > { %v5400_v39 = vpop.xlane.xlu1 %5399 }
 0x5d9   : > { %v5433_v16 = vadd.f32 %v5720_v5, %v5400_v39 }
 0x5da   : > { %v5403_v23 = vpop.xlane.xlu0 %5402 }
 0x5db   : > { %5449 = vxpose.xlu1.b32.cont [11/16] (narrow) %v5433_v16, 8  ;;  %v5434_v8 = vadd.f32 %v5720_v5, %v5403_v23 }
 0x5df   : > { %5450 = vxpose.xlu1.b32.cont [12/16] (narrow) %v5434_v8, 8 }
 0x5e0   : > { %v5406_v14 = vpop.xlane.xlu1 %5405 }
 0x5e1   : > { %v5435_v24 = vadd.f32 %v5720_v5, %v5406_v14 }
 0x5e2   : > { %v5409_v26 = vpop.xlane.xlu0 %5408 }
 0x5e3   : > { %5451 = vxpose.xlu1.b32.cont [13/16] (narrow) %v5435_v24, 8  ;;  %v5436_v11 = vadd.f32 %v5720_v5, %v5409_v26 }
 0x5e7   : > { %5452 = vxpose.xlu1.b32.cont [14/16] (narrow) %v5436_v11, 8 }
 0x5e8   : > { %v5412_v56 = vpop.xlane.xlu1 %5411 }
 0x5e9   : > { %v5437_v6 = vadd.f32 %v5720_v5, %v5412_v56 }
 0x5ea   : > { %v5415_v18 = vpop.xlane.xlu0 %5414 }
 0x5eb   : > { %5453 = vxpose.xlu1.b32.cont [15/16] (narrow) %v5437_v6, 8  ;;  %v5438_v20 = vadd.f32 %v5720_v5, %v5415_v18 }
 0x5ef   : > { %5454 = vxpose.xlu1.b32.end [16/16] (narrow) %v5438_v20, 8 }
 0x633   : > { %v5455_v9 = vpop.trf.xlu1 }
 0x634   : > { %v5721_v57 = vmul.f32 -1.442695, %v5455_v9 }
 0x636   : > { %6674 = vpow2.f32 %v5721_v57 }
 0x640   : > { %v6675_v33 = vpop.eup %6674 }
 0x641   : > { %v5474_v17 = vadd.f32 1.0, %v6675_v33 }
 0x643   : > { %6676 = vrcp.f32 %v5474_v17 }
 0x64d   : > { %v6677_v13 = vpop.eup %6676 }
 0x64e   : > { %5477 = vst [vmem:[%s342_s30] sm:$0x1] %v6677_v13 }
 0x64f   : > { %6766 = shalt.err (!%p6763_p7)
}
 0x650   : > { %s6767_s28 = scalar_lea.hbm %s10665_s17, 16  ;;  %s6771_s29 = scalar_lea.hbm %s10716_s9, 32 }
 0x651   : > { %p6768_p8 = scmp.ne.s32.totalorder %s10665_s17, %s6767_s28  ;;  %p6772_p1 = scmp.lt.u32.totalorder %s10665_s17, %s10716_s9 }
 0x652   : > { %p6773_p0 = scmp.lt.u32.totalorder %s6771_s29, %s6767_s28  ;;  %p6775_p6 = scmp.lt.u32.totalorder %s6767_s28, %s10665_s17 }
 0x653   : > { %p6769_p11 = pnand %p6768_p8, %p12591_p9 }
 0x654   : > { %p6774_p5 = por %p6773_p0, %p6772_p1 }
 0x655   : > { %p6770_p13 = pneg %p6769_p11 }
 0x656   : > { %p6776_p10 = por %p6775_p6, %p6774_p5 }
 0x658   : > { %p6777_p12 = pnand %p6776_p10, %p6770_p13 }
 0x65a   : > { %6780 = shalt.err (!%p6777_p12)
}
 0x65b   : > { %5992 = dma.vmem_to_hbm [thread:$0]  (%p12591_p9), %s10667_s8, 16, %s10665_s17, %s5479_s18  }
 0x65c PF: > { %p6004_p2 = scmp.ge.s32.totalorder %s6819_s14, 2  ;;  %s5503_s15 = sand.u32 1, %s6807_s11  }
 0x65d   : > { %p12592_p3 = scmp.ne.s32.totalorder %s11550_s21, 0  ;;  %s5504_s23 = scalar_lea.sflag [#allocation5], %s5503_s15 }
 0x65f   : > { %p5999_p4 = pnand %p6004_p2, %p12592_p3 }
 0x661   : > { %6802 = dma.done.wait (!%p5999_p4), %s5504_s23, 16  }
 0x662   : > { %6804 = vsyncadd (!%p5999_p4), %s5504_s23, 4294967280  ;;  %p22_p7 = scmp.ge.s32.totalorder %s6912_s16, 4   ;;  %s12593_s11 = smov %s6811_s12 }
 0x663   : > { %s12594_s12 = smov %s6815_s13  ;;  %s12595_s13 = smov %s6923_s19 }
 0x664   : > { %s12596_s14 = smov %s6912_s16  ;;  %24 = sbr.rel (!%p22_p7) target bundleno = 7 (0x7), region = 96 }
 0x66b   :  { %5508 = vsyncpa [#allocation4], 1 }
 0x66c   :  { %5510 = vsyncpa [#allocation4 + $0x1], 1 }
 0x66d   :  { %5511 = vsyncpa [#allocation5], 1 }
 0x66e   :  { %5513 = vsyncpa [#allocation5 + $0x1], 1 }

</bundles_post_ra>
